<compile_context>
chip_gen: v7x
topology: tpu7x:2x2x1
jax: 0.10.0
libtpu: 0.0.40
codegen_flags: <defaults>
</compile_context>

<pallas_src>
import functools
import math

import jax
import jax.numpy as jnp
from jax.experimental import pallas as pl
from jax.experimental.pallas import tpu as pltpu

LANES = 128  # classifier output is lane-padded to a multiple of this


def _round_up(x, m):
    return ((x + m - 1) // m) * m


def _bytes(shape, dtype):
    return math.prod(shape) * jnp.dtype(dtype).itemsize


def _layer(h, w_val, b_val):
    """One Linear: bf16 x bf16 matmul on the MXU with f32 accumulation + f32 bias."""
    return jnp.dot(h.astype(jnp.bfloat16), w_val,
                   preferred_element_type=jnp.float32) + b_val


def _mlp_head_kernel(x_ref,
                     w1_ref, b1_ref, w2_ref, b2_ref,
                     w3_ref, b3_ref, w4_ref, b4_ref,
                     out_ref):
    """Multi-tile path: all weights VMEM-resident via constant index_map BlockSpecs."""
    h = _layer(x_ref[...], w1_ref[...], b1_ref[...])
    h = _layer(h, w2_ref[...], b2_ref[...])
    h = _layer(h, w3_ref[...], b3_ref[...])
    h = _layer(h, w4_ref[...], b4_ref[...])
    out_ref[...] = h.astype(out_ref.dtype)


def _mlp_head_overlap_kernel(x_ref,
                             w1_ref, b1_ref, b2_ref, b3_ref, b4_ref,
                             w2_hbm, w3_hbm, w4_hbm,
                             out_ref,
                             w2_vmem, w3_vmem, w4_vmem, sems):
    """Single-tile path: w2..w4 are DMA'd manually so their HBM transfer overlaps
    the earlier-layer matmuls, and each lives single-buffered in VMEM scratch."""
    cp2 = pltpu.make_async_copy(w2_hbm, w2_vmem, sems.at[0])
    cp3 = pltpu.make_async_copy(w3_hbm, w3_vmem, sems.at[1])
    cp4 = pltpu.make_async_copy(w4_hbm, w4_vmem, sems.at[2])
    cp2.start()
    cp3.start()
    cp4.start()

    h = _layer(x_ref[...], w1_ref[...], b1_ref[...])   # overlaps w2/w3/w4 DMA
    cp2.wait()
    h = _layer(h, w2_vmem[...], b2_ref[...])
    cp3.wait()
    h = _layer(h, w3_vmem[...], b3_ref[...])
    cp4.wait()
    h = _layer(h, w4_vmem[...], b4_ref[...])
    out_ref[...] = h.astype(out_ref.dtype)


@functools.partial(jax.jit, static_argnames=("tm",))
def _classification_head_padded(emb_pool, w1, b1, w2, b2, w3, b3, w4, b4, *, tm):
    """emb_pool: [B_pad, feat_dim] bf16, B_pad multiple of tm. Returns [B_pad, N_pad] f32."""
    b_pad, feat_dim = emb_pool.shape
    n_pad = w4.shape[1]
    num_tiles = b_pad // tm
    grid = (num_tiles,)
    single_tile = num_tiles == 1

    weights = (w1, w2, w3, w4)
    biases = (b1, b2, b3, b4)

    # ---- VMEM budget from the real block footprint --------------------------
    inter_cols = w1.shape[1] + w2.shape[1] + w3.shape[1] + n_pad
    inter_bytes = tm * inter_cols * (4 + 2)           # f32 layer outputs + bf16 recasts
    io_bytes = (2 * _bytes((tm, feat_dim), jnp.bfloat16)     # x tile, double-buffered
                + 2 * _bytes((tm, n_pad), jnp.float32))      # out tile, double-buffered
    bias_bytes = 2 * sum(8 * b.shape[1] * 4 for b in biases)  # (1,n)->(8,n) sublane pad
    if single_tile:
        # w1 via BlockSpec (x2 buffers); w2..w4 single-buffered VMEM scratch.
        w_bytes = (2 * _bytes(w1.shape, w1.dtype)
                   + sum(_bytes(w.shape, w.dtype) for w in (w2, w3, w4)))
    else:
        # All weights via constant-index_map BlockSpecs (x2 buffers each).
        # TODO(synk): once pipeline_mode=pl.Buffered(1) is verified on the target
        # jax version, single-buffer these grid-invariant specs to halve this.
        w_bytes = 2 * sum(_bytes(w.shape, w.dtype) for w in weights)
    footprint = io_bytes + bias_bytes + w_bytes + inter_bytes
    vmem_limit = int(min(footprint + max(footprint // 3, 4 << 20), 56 << 20))

    flops = 2 * b_pad * (feat_dim * w1.shape[1] + w1.shape[1] * w2.shape[1]
                         + w2.shape[1] * w3.shape[1] + w3.shape[1] * n_pad)
    bytes_accessed = (_bytes(emb_pool.shape, emb_pool.dtype)
                      + sum(_bytes(w.shape, w.dtype) for w in weights)
                      + sum(_bytes(b.shape, b.dtype) for b in biases)
                      + _bytes((b_pad, n_pad), jnp.float32))
    cost = pl.CostEstimate(flops=flops, transcendentals=0,
                           bytes_accessed=bytes_accessed)

    x_spec = pl.BlockSpec((tm, feat_dim), lambda i: (i, 0))
    out_spec = pl.BlockSpec((tm, n_pad), lambda i: (i, 0))
    out_shape = jax.ShapeDtypeStruct((b_pad, n_pad), jnp.float32)

    def const_spec(a):
        # Constant index_map: fetched once, VMEM-resident across batch tiles.
        return pl.BlockSpec(a.shape, lambda i: (0, 0))

    if single_tile:
        in_specs = ([x_spec, const_spec(w1)]
                    + [const_spec(b) for b in biases]
                    + [pl.BlockSpec(memory_space=pl.ANY)] * 3)
        return pl.pallas_call(
            _mlp_head_overlap_kernel,
            out_shape=out_shape,
            grid=grid,
            in_specs=in_specs,
            out_specs=out_spec,
            scratch_shapes=[pltpu.VMEM(w2.shape, w2.dtype),
                            pltpu.VMEM(w3.shape, w3.dtype),
                            pltpu.VMEM(w4.shape, w4.dtype),
                            pltpu.SemaphoreType.DMA((3,))],
            compiler_params=pltpu.CompilerParams(
                dimension_semantics=("arbitrary",),   # single step; keep on one TC
                vmem_limit_bytes=vmem_limit),
            cost_estimate=cost,
        )(emb_pool, w1, b1, b2, b3, b4, w2, w3, w4)

    in_specs = [x_spec]
    for a in (w1, b1, w2, b2, w3, b3, w4, b4):
        in_specs.append(const_spec(a))
    return pl.pallas_call(
        _mlp_head_kernel,
        out_shape=out_shape,
        grid=grid,
        in_specs=in_specs,
        out_specs=out_spec,
        compiler_params=pltpu.CompilerParams(
            # Batch tiles are independent: shard across v7x's 2 TensorCores.
            # (Only used when there are >=2 tiles, i.e. weights amortize; the
            #  weight-DMA-bound small-B case takes the single-tile path above.)
            dimension_semantics=("parallel",),
            vmem_limit_bytes=vmem_limit),
        cost_estimate=cost,
    )(emb_pool, w1, b1, w2, b2, w3, b3, w4, b4)


def classification_wrapper_forward(x_nchw, params, n_classes):
    """Mirrors ClassificationWrapper.forward with:
         feature_extractor = identity (returns {'emb': x}),
         pooling_op = None, use_dropout = False (nn.Dropout is identity in eval).
    Batch as many samples as possible into one call: the weight load is paid per call.
    """
    B = x_nchw.shape[0]
    # feature_extractor(*inputs, return_embs=True)[feat_name] -> identity stub
    emb = x_nchw
    # pooling is None -> emb_pool = emb ; .view(B, -1) == row-major flatten
    emb_pool = emb.reshape(B, -1)
    # Kernel computes in bf16 anyway -> feed bf16 and halve the x-tile HBM DMA.
    emb_pool = emb_pool.astype(jnp.bfloat16)
    # TODO(synk): training-mode dropout (use_dropout=True) not implemented here.
    # TODO(synk): for feat_dim large enough that w1 no longer fits VMEM (real CNN
    # backbones), add a K-reduction grid axis ("arbitrary", last) tiling w1 over
    # feat_dim with a VMEM f32 accumulator and run layers 2-4 under pl.when(last);
    # size tk per generation (v7x has half the VMEM of v5e/v6e).
    # TODO(synk): optional int8 (v5e/v6e) / fp8-e4m3 (v7x) weight variant to halve
    # the weight-DMA floor again if accuracy permits.

    # Batch tile: 256+ rows matches the 256-wide MXU on v6e/v7x and cuts grid-step
    # overhead; tiny eval batches just round up to the 8-sublane granule.
    if B >= 512:
        tm = 512
    elif B >= 256:
        tm = 256
    elif B >= 128:
        tm = 128
    else:
        tm = _round_up(B, 8)
    b_pad = _round_up(B, tm)
    if b_pad != B:
        emb_pool = jnp.pad(emb_pool, ((0, b_pad - B), (0, 0)))

    logits_pad = _classification_head_padded(
        emb_pool,
        params["w1"], params["b1"], params["w2"], params["b2"],
        params["w3"], params["b3"], params["w4"], params["b4"],
        tm=tm)
    return logits_pad[:B, :n_classes]


def _init_linear(key, fan_in, fan_out):
    """torch.nn.Linear default init: U(-1/sqrt(in), 1/sqrt(in)).
    Returns weight in [in, out] (transposed once for x @ W) and bias [1, out]."""
    kw, kb = jax.random.split(key)
    bound = 1.0 / jnp.sqrt(jnp.float32(fan_in))
    w_oi = jax.random.uniform(kw, (fan_out, fan_in), jnp.float32, -bound, bound)
    b = jax.random.uniform(kb, (1, fan_out), jnp.float32, -bound, bound)
    return w_oi.T, b


def make_params(key, feat_dim, n_classes):
    k1, k2, k3, k4 = jax.random.split(key, 4)
    w1, b1 = _init_linear(k1, feat_dim, 2048)
    w2, b2 = _init_linear(k2, 2048, 1024)
    w3, b3 = _init_linear(k3, 1024, 512)
    w4, b4 = _init_linear(k4, 512, n_classes)
    # Lane-pad the final layer so the last matmul N and the output store are
    # lane-dense (padded columns produce exactly 0 and are sliced off).
    n_pad = _round_up(n_classes, LANES)
    w4 = jnp.pad(w4, ((0, 0), (0, n_pad - n_classes)))
    b4 = jnp.pad(b4, ((0, 0), (0, n_pad - n_classes)))
    # Weights bf16 (cast once here, not per call); biases stay f32.
    return {"w1": w1.astype(jnp.bfloat16), "b1": b1,
            "w2": w2.astype(jnp.bfloat16), "b2": b2,
            "w3": w3.astype(jnp.bfloat16), "b3": b3,
            "w4": w4.astype(jnp.bfloat16), "b4": b4}


if __name__ == "__main__":
    key = jax.random.PRNGKey(0)
    kx, kp, kx2 = jax.random.split(key, 3)

    # Small NCHW input: batch=2, channels=4, spatial=16 -> feat_dim = 4*16*16 = 1024
    B, C, H, W = 2, 4, 16, 16
    n_classes = 10
    feat_dim = C * H * W

    x = jax.random.normal(kx, (B, C, H, W), jnp.float32)
    params = make_params(kp, feat_dim, n_classes)

    # Pure-JAX reference with the same bf16-rounded weights/activations fed to
    # f32-accumulating matmuls (matches kernel numerics up to accumulation order).
    def ref_forward(xin):
        h = xin.reshape(xin.shape[0], -1)
        for wi, bi in (("w1", "b1"), ("w2", "b2"), ("w3", "b3"), ("w4", "b4")):
            h = (h.astype(jnp.bfloat16).astype(jnp.float32)
                 @ params[wi].astype(jnp.float32)) + params[bi]
        return h[:, :n_classes]

    # 1) Small batch -> single-tile DMA-overlap kernel path.
    logit = jax.block_until_ready(classification_wrapper_forward(x, params, n_classes))
    ref = ref_forward(x)
    assert logit.shape == (B, n_classes)
    assert jnp.allclose(logit, ref, atol=5e-3, rtol=5e-3), (
        float(jnp.max(jnp.abs(logit - ref))))

    # 2) Larger batch -> multi-tile pipelined path (weights VMEM-resident,
    #    batch tiles "parallel"); also exercises batch padding (300 -> 512).
    B2 = 300
    x2 = jax.random.normal(kx2, (B2, C, H, W), jnp.float32)
    logit2 = jax.block_until_ready(classification_wrapper_forward(x2, params, n_classes))
    ref2 = ref_forward(x2)
    assert logit2.shape == (B2, n_classes)
    assert jnp.allclose(logit2, ref2, atol=5e-3, rtol=5e-3), (
        float(jnp.max(jnp.abs(logit2 - ref2))))

    print("KERNEL_OK")
</pallas_src>

<mosaic_0001>
module attributes {stable_mosaic.version = 11 : i64} {
  func.func @_mlp_head_overlap_kernel(%arg0: i32, %arg1: memref<8x1024xbf16, #tpu.memory_space<vmem>>, %arg2: memref<1024x2048xbf16, #tpu.memory_space<vmem>>, %arg3: memref<1x2048xf32, #tpu.memory_space<vmem>>, %arg4: memref<1x1024xf32, #tpu.memory_space<vmem>>, %arg5: memref<1x512xf32, #tpu.memory_space<vmem>>, %arg6: memref<1x128xf32, #tpu.memory_space<vmem>>, %arg7: memref<2048x1024xbf16, #tpu.memory_space<any>>, %arg8: memref<1024x512xbf16, #tpu.memory_space<any>>, %arg9: memref<512x128xbf16, #tpu.memory_space<any>>, %arg10: memref<8x128xf32, #tpu.memory_space<vmem>>, %arg11: memref<2048x1024xbf16, #tpu.memory_space<vmem>>, %arg12: memref<1024x512xbf16, #tpu.memory_space<vmem>>, %arg13: memref<512x128xbf16, #tpu.memory_space<vmem>>, %arg14: memref<3x!tpu.dma_semaphore, #tpu.memory_space<semaphore_mem>>) attributes {dimension_semantics = [#tpu.dimension_semantics<arbitrary>], iteration_bounds = array<i64: 1>, scalar_prefetch = 0 : i64, scratch_operands = 4 : i64, tpu.core_type = #tpu.core_type<tc>, window_params = [{transform_indices = @transform_0, window_bounds = array<i64: 8, 1024>}, {pipeline_mode = #tpu.pipeline_mode<synchronous>, transform_indices = @transform_1, window_bounds = array<i64: 1024, 2048>}, {pipeline_mode = #tpu.pipeline_mode<synchronous>, transform_indices = @transform_2, window_bounds = array<i64: 1, 2048>}, {pipeline_mode = #tpu.pipeline_mode<synchronous>, transform_indices = @transform_3, window_bounds = array<i64: 1, 1024>}, {pipeline_mode = #tpu.pipeline_mode<synchronous>, transform_indices = @transform_4, window_bounds = array<i64: 1, 512>}, {pipeline_mode = #tpu.pipeline_mode<synchronous>, transform_indices = @transform_5, window_bounds = array<i64: 1, 128>}, {}, {}, {}, {transform_indices = @transform_9, window_bounds = array<i64: 8, 128>}]} {
    %c0_i32 = arith.constant 0 : i32
    %0 = tpu.memref_slice %arg14[%c0_i32] : memref<3x!tpu.dma_semaphore, #tpu.memory_space<semaphore_mem>> -> memref<1x!tpu.dma_semaphore, #tpu.memory_space<semaphore_mem>>
    %1 = tpu.memref_squeeze %0 : memref<1x!tpu.dma_semaphore, #tpu.memory_space<semaphore_mem>> -> memref<!tpu.dma_semaphore, #tpu.memory_space<semaphore_mem>>
    tpu.enqueue_dma source(%arg7 : memref<2048x1024xbf16, #tpu.memory_space<any>>) target(%arg11 : memref<2048x1024xbf16, #tpu.memory_space<vmem>>) target_semaphore(%1 : memref<!tpu.dma_semaphore, #tpu.memory_space<semaphore_mem>>)
    %c1_i32 = arith.constant 1 : i32
    %2 = tpu.memref_slice %arg14[%c1_i32] : memref<3x!tpu.dma_semaphore, #tpu.memory_space<semaphore_mem>> -> memref<1x!tpu.dma_semaphore, #tpu.memory_space<semaphore_mem>>
    %3 = tpu.memref_squeeze %2 : memref<1x!tpu.dma_semaphore, #tpu.memory_space<semaphore_mem>> -> memref<!tpu.dma_semaphore, #tpu.memory_space<semaphore_mem>>
    tpu.enqueue_dma source(%arg8 : memref<1024x512xbf16, #tpu.memory_space<any>>) target(%arg12 : memref<1024x512xbf16, #tpu.memory_space<vmem>>) target_semaphore(%3 : memref<!tpu.dma_semaphore, #tpu.memory_space<semaphore_mem>>)
    %c2_i32 = arith.constant 2 : i32
    %4 = tpu.memref_slice %arg14[%c2_i32] : memref<3x!tpu.dma_semaphore, #tpu.memory_space<semaphore_mem>> -> memref<1x!tpu.dma_semaphore, #tpu.memory_space<semaphore_mem>>
    %5 = tpu.memref_squeeze %4 : memref<1x!tpu.dma_semaphore, #tpu.memory_space<semaphore_mem>> -> memref<!tpu.dma_semaphore, #tpu.memory_space<semaphore_mem>>
    tpu.enqueue_dma source(%arg9 : memref<512x128xbf16, #tpu.memory_space<any>>) target(%arg13 : memref<512x128xbf16, #tpu.memory_space<vmem>>) target_semaphore(%5 : memref<!tpu.dma_semaphore, #tpu.memory_space<semaphore_mem>>)
    %c0 = arith.constant 0 : index
    %c0_0 = arith.constant 0 : index
    %6 = vector.load %arg1[%c0, %c0_0] : memref<8x1024xbf16, #tpu.memory_space<vmem>>, vector<8x1024xbf16>
    %c0_1 = arith.constant 0 : index
    %c0_2 = arith.constant 0 : index
    %7 = vector.load %arg2[%c0_1, %c0_2] : memref<1024x2048xbf16, #tpu.memory_space<vmem>>, vector<1024x2048xbf16>
    %c0_3 = arith.constant 0 : index
    %c0_4 = arith.constant 0 : index
    %8 = vector.load %arg3[%c0_3, %c0_4] : memref<1x2048xf32, #tpu.memory_space<vmem>>, vector<1x2048xf32>
    %cst = arith.constant dense<0.000000e+00> : vector<8x2048xf32>
    %9 = tpu.matmul %6, %7, %cst {dimension_numbers = #tpu.dot_dimension_numbers<[1], [0], [0], [1], [0, 0, 1, 1], [], []>} : vector<8x1024xbf16>, vector<1024x2048xbf16>, vector<8x2048xf32> -> vector<8x2048xf32>
    %10 = vector.broadcast %8 : vector<1x2048xf32> to vector<8x2048xf32>
    %11 = arith.addf %9, %10 : vector<8x2048xf32>
    %c0_i32_5 = arith.constant 0 : i32
    %12 = tpu.memref_slice %arg14[%c0_i32_5] : memref<3x!tpu.dma_semaphore, #tpu.memory_space<semaphore_mem>> -> memref<1x!tpu.dma_semaphore, #tpu.memory_space<semaphore_mem>>
    %13 = tpu.memref_squeeze %12 : memref<1x!tpu.dma_semaphore, #tpu.memory_space<semaphore_mem>> -> memref<!tpu.dma_semaphore, #tpu.memory_space<semaphore_mem>>
    tpu.wait_dma2 semaphore(%13 : memref<!tpu.dma_semaphore, #tpu.memory_space<semaphore_mem>>) src(%arg7 : memref<2048x1024xbf16, #tpu.memory_space<any>>) dst(%arg11 : memref<2048x1024xbf16, #tpu.memory_space<vmem>>)
    %c0_6 = arith.constant 0 : index
    %c0_7 = arith.constant 0 : index
    %14 = vector.load %arg11[%c0_6, %c0_7] : memref<2048x1024xbf16, #tpu.memory_space<vmem>>, vector<2048x1024xbf16>
    %c0_8 = arith.constant 0 : index
    %c0_9 = arith.constant 0 : index
    %15 = vector.load %arg4[%c0_8, %c0_9] : memref<1x1024xf32, #tpu.memory_space<vmem>>, vector<1x1024xf32>
    %16 = arith.truncf %11 : vector<8x2048xf32> to vector<8x2048xbf16>
    %cst_10 = arith.constant dense<0.000000e+00> : vector<8x1024xf32>
    %17 = tpu.matmul %16, %14, %cst_10 {dimension_numbers = #tpu.dot_dimension_numbers<[1], [0], [0], [1], [0, 0, 1, 1], [], []>} : vector<8x2048xbf16>, vector<2048x1024xbf16>, vector<8x1024xf32> -> vector<8x1024xf32>
    %18 = vector.broadcast %15 : vector<1x1024xf32> to vector<8x1024xf32>
    %19 = arith.addf %17, %18 : vector<8x1024xf32>
    %c1_i32_11 = arith.constant 1 : i32
    %20 = tpu.memref_slice %arg14[%c1_i32_11] : memref<3x!tpu.dma_semaphore, #tpu.memory_space<semaphore_mem>> -> memref<1x!tpu.dma_semaphore, #tpu.memory_space<semaphore_mem>>
    %21 = tpu.memref_squeeze %20 : memref<1x!tpu.dma_semaphore, #tpu.memory_space<semaphore_mem>> -> memref<!tpu.dma_semaphore, #tpu.memory_space<semaphore_mem>>
    tpu.wait_dma2 semaphore(%21 : memref<!tpu.dma_semaphore, #tpu.memory_space<semaphore_mem>>) src(%arg8 : memref<1024x512xbf16, #tpu.memory_space<any>>) dst(%arg12 : memref<1024x512xbf16, #tpu.memory_space<vmem>>)
    %c0_12 = arith.constant 0 : index
    %c0_13 = arith.constant 0 : index
    %22 = vector.load %arg12[%c0_12, %c0_13] : memref<1024x512xbf16, #tpu.memory_space<vmem>>, vector<1024x512xbf16>
    %c0_14 = arith.constant 0 : index
    %c0_15 = arith.constant 0 : index
    %23 = vector.load %arg5[%c0_14, %c0_15] : memref<1x512xf32, #tpu.memory_space<vmem>>, vector<1x512xf32>
    %24 = arith.truncf %19 : vector<8x1024xf32> to vector<8x1024xbf16>
    %cst_16 = arith.constant dense<0.000000e+00> : vector<8x512xf32>
    %25 = tpu.matmul %24, %22, %cst_16 {dimension_numbers = #tpu.dot_dimension_numbers<[1], [0], [0], [1], [0, 0, 1, 1], [], []>} : vector<8x1024xbf16>, vector<1024x512xbf16>, vector<8x512xf32> -> vector<8x512xf32>
    %26 = vector.broadcast %23 : vector<1x512xf32> to vector<8x512xf32>
    %27 = arith.addf %25, %26 : vector<8x512xf32>
    %c2_i32_17 = arith.constant 2 : i32
    %28 = tpu.memref_slice %arg14[%c2_i32_17] : memref<3x!tpu.dma_semaphore, #tpu.memory_space<semaphore_mem>> -> memref<1x!tpu.dma_semaphore, #tpu.memory_space<semaphore_mem>>
    %29 = tpu.memref_squeeze %28 : memref<1x!tpu.dma_semaphore, #tpu.memory_space<semaphore_mem>> -> memref<!tpu.dma_semaphore, #tpu.memory_space<semaphore_mem>>
    tpu.wait_dma2 semaphore(%29 : memref<!tpu.dma_semaphore, #tpu.memory_space<semaphore_mem>>) src(%arg9 : memref<512x128xbf16, #tpu.memory_space<any>>) dst(%arg13 : memref<512x128xbf16, #tpu.memory_space<vmem>>)
    %c0_18 = arith.constant 0 : index
    %c0_19 = arith.constant 0 : index
    %30 = vector.load %arg13[%c0_18, %c0_19] : memref<512x128xbf16, #tpu.memory_space<vmem>>, vector<512x128xbf16>
    %c0_20 = arith.constant 0 : index
    %c0_21 = arith.constant 0 : index
    %31 = vector.load %arg6[%c0_20, %c0_21] : memref<1x128xf32, #tpu.memory_space<vmem>>, vector<1x128xf32>
    %32 = arith.truncf %27 : vector<8x512xf32> to vector<8x512xbf16>
    %cst_22 = arith.constant dense<0.000000e+00> : vector<8x128xf32>
    %33 = tpu.matmul %32, %30, %cst_22 {dimension_numbers = #tpu.dot_dimension_numbers<[1], [0], [0], [1], [0, 0, 1, 1], [], []>} : vector<8x512xbf16>, vector<512x128xbf16>, vector<8x128xf32> -> vector<8x128xf32>
    %34 = vector.broadcast %31 : vector<1x128xf32> to vector<8x128xf32>
    %35 = arith.addf %33, %34 : vector<8x128xf32>
    %c0_23 = arith.constant 0 : index
    %c0_24 = arith.constant 0 : index
    %36 = vector.load %arg10[%c0_23, %c0_24] : memref<8x128xf32, #tpu.memory_space<vmem>>, vector<8x128xf32>
    tpu.vector_store %arg10[%c0_23, %c0_24], %35 {strides = array<i32>} : memref<8x128xf32, #tpu.memory_space<vmem>>, vector<8x128xf32>,
    return
  }
  func.func @transform_0(%arg0: i32) -> (i32, i32) {
    %c0_i32 = arith.constant 0 : i32
    %c0_i32_0 = arith.constant 0 : i32
    return %arg0, %c0_i32 : i32, i32
  }
  func.func @transform_1(%arg0: i32) -> (i32, i32) {
    %c0_i32 = arith.constant 0 : i32
    %c0_i32_0 = arith.constant 0 : i32
    %c0_i32_1 = arith.constant 0 : i32
    return %c0_i32, %c0_i32_0 : i32, i32
  }
  func.func @transform_2(%arg0: i32) -> (i32, i32) {
    %c0_i32 = arith.constant 0 : i32
    %c0_i32_0 = arith.constant 0 : i32
    %c0_i32_1 = arith.constant 0 : i32
    return %c0_i32, %c0_i32_0 : i32, i32
  }
  func.func @transform_3(%arg0: i32) -> (i32, i32) {
    %c0_i32 = arith.constant 0 : i32
    %c0_i32_0 = arith.constant 0 : i32
    %c0_i32_1 = arith.constant 0 : i32
    return %c0_i32, %c0_i32_0 : i32, i32
  }
  func.func @transform_4(%arg0: i32) -> (i32, i32) {
    %c0_i32 = arith.constant 0 : i32
    %c0_i32_0 = arith.constant 0 : i32
    %c0_i32_1 = arith.constant 0 : i32
    return %c0_i32, %c0_i32_0 : i32, i32
  }
  func.func @transform_5(%arg0: i32) -> (i32, i32) {
    %c0_i32 = arith.constant 0 : i32
    %c0_i32_0 = arith.constant 0 : i32
    %c0_i32_1 = arith.constant 0 : i32
    return %c0_i32, %c0_i32_0 : i32, i32
  }
  func.func @transform_9(%arg0: i32) -> (i32, i32) {
    %c0_i32 = arith.constant 0 : i32
    %c0_i32_0 = arith.constant 0 : i32
    return %arg0, %c0_i32 : i32, i32
  }
}

</mosaic_0001>

<bundles_post_ra>
// kernel: _classification_head_padded.1
= control target key start
LH: loop header
LB: loop body
LE: loop exit
PB: predicated region body
PF: predicated region fallthrough
CT: control target
= control target key end

     0   :  { %14 = vsyncpa [#allocation7], 0  ;;  %s13055_s0 = inlined_call_operand.hbm [shape: bf16[8,1024], index: 0, kind: input, shape index: {}]   ;;  %s13056_s1 = inlined_call_operand.hbm [shape: bf16[1024,2048], index: 1, kind: input, shape index: {}]   ;;  %s13057_s2 = inlined_call_operand.hbm [shape: f32[1,2048], index: 2, kind: input, shape index: {}]   ;;  %s13058_s3 = inlined_call_operand.hbm [shape: f32[1,1024], index: 3, kind: input, shape index: {}]   ;;  %s13059_s4 = inlined_call_operand.hbm [shape: f32[1,512], index: 4, kind: input, shape index: {}]   ;;  %s13060_s5 = inlined_call_operand.hbm [shape: f32[1,128], index: 5, kind: input, shape index: {}]   ;;  %s13061_s6 = inlined_call_operand.hbm [shape: bf16[2048,1024], index: 6, kind: input, shape index: {}]   ;;  %s13062_s7 = inlined_call_operand.hbm [shape: bf16[1024,512], index: 7, kind: input, shape index: {}]   ;;  %s13063_s8 = inlined_call_operand.hbm [shape: bf16[512,128], index: 8, kind: input, shape index: {}]   ;;  %s13064_s9 = inlined_call_operand.hbm [shape: f32[8,128], index: 9, kind: output, shape index: {}]  }
   0x1   :  { %15 = vsyncpa [#allocation10], 0 }
   0x2   :  { %16 = vsyncpa [#allocation13], 0 }
   0x3   :  { %17 = vsyncpa [#allocation16], 0 }
   0x4   :  { %18 = vsyncpa [#allocation8], 0  ;;  %s12504_s30 = smov [#allocation9]   ;;  %s12312_s13 = scalar_lea.hbm %s13056_s1, 131072 }
   0x5   :  { %s34_s10 = sshll.u32 %s12504_s30, 4  ;;  %p12313_p0 = scmp.ne.s32.totalorder %s13056_s1, %s12312_s13  ;;  %s35_s10 = int_to_ptr.vmem [resolvable:$true] %s34_s10 }
   0x6   :  { %p12316_p1 = scmp.lt.u32.totalorder %s12312_s13, %s13056_s1 }
   0x8   :  { %p12318_p2 = pnand %p12316_p1, %p12313_p0 }
   0xa   :  { %12321 = shalt.err (!%p12318_p2)
}
   0xb   :  { %s12322_s18 = scalar_lea.vmem %s35_s10, 131072  ;;  %p12327_p4 = scmp.lt.s32.totalorder %s35_s10, %s35_s10 }
   0xc   :  { %p12323_p3 = scmp.ne.s32.totalorder %s35_s10, %s12322_s18  ;;  %p12328_p5 = scmp.lt.s32.totalorder %s12322_s18, %s12322_s18 }
   0xe   :  { %p12329_p6 = por %p12328_p5, %p12327_p4 }
  0x10   :  { %p12330_p7 = pnand %p12329_p6, %p12323_p3 }
  0x12   :  { %12333 = shalt.err (!%p12330_p7)
}
  0x13   :  { %s12505_s19 = smov 1024   ;;  %s12506_s20 = smov 64  }
  0x14   :  { %40 = dma.hbm_to_vmem [thread:$0]  %s13056_s1, 131072, %s35_s10, [#allocation10], %s12505_s19, %s12505_s19, %s12506_s20  }
  0x15   :  { %s12507_s23 = smov [#allocation12]   ;;  %s12508_s25 = smov [#allocation6]  }
  0x16   :  { %s57_s24 = sshll.u32 %s12507_s23, 4  ;;  %s25_s26 = sshll.u32 %s12508_s25, 4  ;;  %s58_s24 = int_to_ptr.vmem [resolvable:$true] %s57_s24  ;;  %s26_s26 = int_to_ptr.vmem [resolvable:$true] %s25_s26 }
  0x17   :  { %s12334_s29 = scalar_lea.hbm %s13058_s3, 128 }
  0x18   :  { %p12335_p8 = scmp.ne.s32.totalorder %s13058_s3, %s12334_s29  ;;  %p12338_p9 = scmp.lt.u32.totalorder %s12334_s29, %s13058_s3 }
  0x1a   :  { %p12340_p10 = pnand %p12338_p9, %p12335_p8 }
  0x1c   :  { %12343 = shalt.err (!%p12340_p10)
}
  0x1d   :  { %s12344_s1 = scalar_lea.vmem %s58_s24, 128  ;;  %p12349_p12 = scmp.lt.s32.totalorder %s58_s24, %s58_s24 }
  0x1e   :  { %p12345_p11 = scmp.ne.s32.totalorder %s58_s24, %s12344_s1  ;;  %p12350_p13 = scmp.lt.s32.totalorder %s12344_s1, %s12344_s1 }
  0x20   :  { %p12351_p0 = por %p12350_p13, %p12349_p12 }
  0x22   :  { %p12352_p1 = pnand %p12351_p0, %p12345_p11 }
  0x24   :  { %12355 = shalt.err (!%p12352_p1)
}
  0x25   :  { %60 = dma.hbm_to_vmem [thread:$0]  %s13058_s3, 128, %s58_s24, [#allocation13]  }
  0x26   :  { %s12356_s17 = scalar_lea.hbm %s13055_s0, 512 }
  0x27   :  { %p12357_p2 = scmp.ne.s32.totalorder %s13055_s0, %s12356_s17  ;;  %p12360_p3 = scmp.lt.u32.totalorder %s12356_s17, %s13055_s0 }
  0x29   :  { %p12362_p4 = pnand %p12360_p3, %p12357_p2 }
  0x2b   :  { %12365 = shalt.err (!%p12362_p4)
}
  0x2c   :  { %s12366_s25 = scalar_lea.vmem %s26_s26, 512  ;;  %p12371_p6 = scmp.lt.s32.totalorder %s26_s26, %s26_s26 }
  0x2d   :  { %p12367_p5 = scmp.ne.s32.totalorder %s26_s26, %s12366_s25  ;;  %p12372_p7 = scmp.lt.s32.totalorder %s12366_s25, %s12366_s25 }
  0x2f   :  { %p12373_p8 = por %p12372_p7, %p12371_p6 }
  0x31   :  { %p12374_p9 = pnand %p12373_p8, %p12367_p5 }
  0x33   :  { %12377 = shalt.err (!%p12374_p9)
}
  0x34   :  { %28 = dma.hbm_to_vmem [thread:$0]  %s13055_s0, 512, %s26_s26, [#allocation7]  }
  0x35   :  { %s12509_s27 = smov [#allocation11]   ;;  %s12510_s29 = smov [#allocation14]  }
  0x36   :  { %s47_s28 = sshll.u32 %s12509_s27, 4  ;;  %s67_s30 = sshll.u32 %s12510_s29, 4  ;;  %s48_s28 = int_to_ptr.vmem [resolvable:$true] %s47_s28  ;;  %s68_s30 = int_to_ptr.vmem [resolvable:$true] %s67_s30 }
  0x37   :  { %s12378_s13 = scalar_lea.hbm %s13057_s2, 256 }
  0x38   :  { %p12379_p10 = scmp.ne.s32.totalorder %s13057_s2, %s12378_s13  ;;  %p12382_p11 = scmp.lt.u32.totalorder %s12378_s13, %s13057_s2 }
  0x3a   :  { %p12384_p12 = pnand %p12382_p11, %p12379_p10 }
  0x3c   :  { %12387 = shalt.err (!%p12384_p12)
}
  0x3d   :  { %s12388_s0 = scalar_lea.vmem %s48_s28, 256  ;;  %p12393_p0 = scmp.lt.s32.totalorder %s48_s28, %s48_s28 }
  0x3e   :  { %p12389_p13 = scmp.ne.s32.totalorder %s48_s28, %s12388_s0  ;;  %p12394_p1 = scmp.lt.s32.totalorder %s12388_s0, %s12388_s0 }
  0x40   :  { %p12395_p2 = por %p12394_p1, %p12393_p0 }
  0x42   :  { %p12396_p3 = pnand %p12395_p2, %p12389_p13 }
  0x44   :  { %12399 = shalt.err (!%p12396_p3)
}
  0x45   :  { %50 = dma.hbm_to_vmem [thread:$0]  %s13057_s2, 256, %s48_s28, [#allocation10]  }
  0x46   :  { %s12400_s21 = scalar_lea.hbm %s13059_s4, 64 }
  0x47   :  { %p12401_p4 = scmp.ne.s32.totalorder %s13059_s4, %s12400_s21  ;;  %p12404_p5 = scmp.lt.u32.totalorder %s12400_s21, %s13059_s4 }
  0x49   :  { %p12406_p6 = pnand %p12404_p5, %p12401_p4 }
  0x4b   :  { %12409 = shalt.err (!%p12406_p6)
}
  0x4c   :  { %s12410_s24 = scalar_lea.vmem %s68_s30, 64  ;;  %p12415_p8 = scmp.lt.s32.totalorder %s68_s30, %s68_s30 }
  0x4d   :  { %p12411_p7 = scmp.ne.s32.totalorder %s68_s30, %s12410_s24  ;;  %p12416_p9 = scmp.lt.s32.totalorder %s12410_s24, %s12410_s24 }
  0x4f   :  { %p12417_p10 = por %p12416_p9, %p12415_p8 }
  0x51   :  { %p12418_p11 = pnand %p12417_p10, %p12411_p7 }
  0x53   :  { %12421 = shalt.err (!%p12418_p11)
}
  0x54   :  { %70 = dma.hbm_to_vmem [thread:$0]  %s13059_s4, 64, %s68_s30, [#allocation13]  }
  0x55   :  { %s12511_s28 = smov [#allocation15]   ;;  %s12422_s13 = scalar_lea.hbm %s13060_s5, 16 }
  0x56   :  { %s77_s29 = sshll.u32 %s12511_s28, 4  ;;  %p12423_p12 = scmp.ne.s32.totalorder %s13060_s5, %s12422_s13  ;;  %s78_s29 = int_to_ptr.vmem [resolvable:$true] %s77_s29 }
  0x57   :  { %p12426_p13 = scmp.lt.u32.totalorder %s12422_s13, %s13060_s5 }
  0x59   :  { %p12428_p0 = pnand %p12426_p13, %p12423_p12 }
  0x5b   :  { %12431 = shalt.err (!%p12428_p0)
}
  0x5c   :  { %s12432_s0 = scalar_lea.vmem %s78_s29, 16  ;;  %s12436_s4 = scalar_lea.vmem %s78_s29, 32 }
  0x5d   :  { %p12433_p1 = scmp.ne.s32.totalorder %s78_s29, %s12432_s0  ;;  %p12437_p2 = scmp.lt.s32.totalorder %s78_s29, %s78_s29 }
  0x5e   :  { %p12438_p3 = scmp.lt.s32.totalorder %s12436_s4, %s12432_s0 }
  0x60   :  { %p12439_p4 = por %p12438_p3, %p12437_p2 }
  0x62   :  { %p12440_p5 = pnand %p12439_p4, %p12433_p1 }
  0x64   :  { %12443 = shalt.err (!%p12440_p5)
}
  0x65   :  { %80 = dma.hbm_to_vmem [thread:$0]  %s13060_s5, 16, %s78_s29, [#allocation16]  }
  0x66   :  { %12488 = dma.done.wait [#allocation7], 512  }
  0x67   :  { %12489 = vsyncadd [#allocation7], 4294966784 }
  0x68   :  { %12490 = dma.done.wait [#allocation10], 131328  }
  0x69   :  { %12491 = vsyncadd [#allocation10], 4294835968 }
  0x6a   :  { %12492 = dma.done.wait [#allocation13], 192  }
  0x6b   :  { %12493 = vsyncadd [#allocation13], 4294967104 }
  0x6c   :  { %12494 = dma.done.wait [#allocation16], 16  }
  0x6d   :  { %12495 = vsyncadd [#allocation16], 4294967280  ;;  %s104_s16 = sld [smem:[#allocation0]]   ;;  %116 = sst [smem:[#allocation19]] %s12505_s19 }
  0x6e   :  { %118 = sst [smem:[#allocation19 + $0x1]] %s12505_s19  ;;  %s12512_s17 = smov [#allocation2]  }
  0x6f   :  { %s112_s18 = sshll.u32 %s12512_s17, 4  ;;  %s12513_s21 = smov 8   ;;  %s113_s18 = int_to_ptr.vmem [resolvable:$true] %s112_s18 }
  0x70   :  { %120 = sst [smem:[#allocation19 + $0x2]] %s12513_s21  ;;  %s12514_s5 = smov 128  }
  0x71   :  { %122 = sst [smem:[#allocation19 + $0x3]] %s12506_s20  ;;  %s12515_s23 = smov 2  }
  0x72   :  { %130 = sst [smem:[#allocation19 + $0x7]] %s12506_s20  ;;  %s12516_s3 = smov 512  }
  0x73   :  { %124 = sst [smem:[#allocation19 + $0x4]] %s12514_s5  ;;  %s10936_s22 = sshll.u32 %s104_s16, 26 }
  0x74   :  { %126 = sst [smem:[#allocation19 + $0x5]] %s12515_s23  ;;  %s10937_s25 = sadd.s32 134217728, %s10936_s22 }
  0x75   :  { %128 = sst [smem:[#allocation19 + $0x6]] %s12516_s3  ;;  %s12517_s24 = smov 4  }
  0x76   :  { %132 = sst [smem:[#allocation19 + $0x8]] %s12517_s24  ;;  %s12518_s19 = smov [#allocation5]  }
  0x77   :  { %s12519_s2 = smov [#allocation18]   ;;  %s12520_s29 = smov [#allocation3]  }
  0x78   :  { %134 = dma.general %s13061_s6, 131072, %s113_s18, %s12518_s19, %s12519_s2, [#allocation19], %s10937_s25, 0  }
  0x79   :  { %151 = sst [smem:[#allocation21]] %s12516_s3  ;;  %s147_s11 = sshll.u32 %s12520_s29, 4  ;;  %s148_s11 = int_to_ptr.vmem [resolvable:$true] %s147_s11 }
  0x7a   :  { %153 = sst [smem:[#allocation21 + $0x1]] %s12516_s3  ;;  %s12521_s12 = smov 256  }
  0x7b   :  { %155 = sst [smem:[#allocation21 + $0x2]] %s12517_s24  ;;  %s12522_s13 = smov [#allocation5 + $0x1]  }
  0x7c   :  { %157 = sst [smem:[#allocation21 + $0x3]] %s12506_s20  ;;  %s12523_s1 = smov [#allocation20]  }
  0x7d   :  { %159 = sst [smem:[#allocation21 + $0x4]] %s12514_s5  ;;  %s12524_s6 = smov [#allocation4]  }
  0x7e   :  { %161 = sst [smem:[#allocation21 + $0x5]] %s12515_s23  ;;  %s12444_s0 = scalar_lea.hbm %s13063_s8, 4096 }
  0x7f   :  { %163 = sst [smem:[#allocation21 + $0x6]] %s12521_s12  ;;  %p12445_p6 = scmp.ne.s32.totalorder %s13063_s8, %s12444_s0 }
  0x80   :  { %165 = sst [smem:[#allocation21 + $0x7]] %s12506_s20  ;;  %p12448_p7 = scmp.lt.u32.totalorder %s12444_s0, %s13063_s8 }
  0x81   :  { %167 = sst [smem:[#allocation21 + $0x8]] %s12517_s24 }
  0x82   :  { %169 = dma.general %s13062_s7, 32768, %s148_s11, %s12522_s13, %s12523_s1, [#allocation21], %s10937_s25, 0  }
  0x83   :  { %v186_v0 = vld [vmem:[#allocation9] sm:$0xff]  ;;  %v187_v2 = vld [vmem:[#allocation9 + $0x8] sm:$0xff]  ;;  %s178_s7 = sshll.u32 %s12524_s6, 4  ;;  %p12450_p8 = pnand %p12448_p7, %p12445_p6  ;;  %s179_s7 = int_to_ptr.vmem [resolvable:$true] %s178_s7 }
  0x84   :  { %v194_v1 = vld [vmem:[#allocation9 + $0x40] sm:$0xff]  ;;  %v195_v4 = vld [vmem:[#allocation9 + $0x48] sm:$0xff] }
  0x85   :  { %v10949_v3 = vcombine.high %v186_v0, %v194_v1  ;;  %v10948_v5 = vcombine.low %v186_v0, %v194_v1  ;;  %v202_v6 = vld [vmem:[#allocation9 + $0x80] sm:$0xff]  ;;  %v10951_v8 = vcombine.high %v187_v2, %v195_v4  ;;  %v10950_v9 = vcombine.low %v187_v2, %v195_v4  ;;  %v203_v11 = vld [vmem:[#allocation9 + $0x88] sm:$0xff] }
  0x86   :  { %v210_v7 = vld [vmem:[#allocation9 + $0xc0] sm:$0xff]  ;;  %v211_v12 = vld [vmem:[#allocation9 + $0xc8] sm:$0xff] }
  0x87   :  { %v10965_v10 = vcombine.high %v202_v6, %v210_v7  ;;  %v218_v13 = vld [vmem:[#allocation9 + $0x100] sm:$0xff]  ;;  %6442 = vmatprep.subr.bf16.mxu0 %v10949_v3  ;;  %v10967_v14 = vcombine.high %v203_v11, %v211_v12  ;;  %v219_v16 = vld [vmem:[#allocation9 + $0x108] sm:$0xff]  ;;  %6606 = vmatprep.subr.bf16.mxu1 %v10951_v8  ;;  %v10964_v18 = vcombine.low %v202_v6, %v210_v7 }
  0x88   :  { %v226_v15 = vld [vmem:[#allocation9 + $0x140] sm:$0xff]  ;;  %v227_v17 = vld [vmem:[#allocation9 + $0x148] sm:$0xff]  ;;  %6443 = vmatpush1.bf16.msra.mxu0 %v10948_v5  ;;  %6607 = vmatpush1.bf16.msra.mxu1 %v10950_v9  ;;  %v10966_v19 = vcombine.low %v203_v11, %v211_v12 }
  0x89   :  { %6444 = vmatprep.subr.bf16.mxu0 %v10965_v10  ;;  %v10981_v20 = vcombine.high %v218_v13, %v226_v15  ;;  %6608 = vmatprep.subr.bf16.mxu1 %v10967_v14  ;;  %v10983_v21 = vcombine.high %v219_v16, %v227_v17  ;;  %v234_v22 = vld [vmem:[#allocation9 + $0x180] sm:$0xff]  ;;  %v235_v24 = vld [vmem:[#allocation9 + $0x188] sm:$0xff]  ;;  %v10980_v26 = vcombine.low %v218_v13, %v226_v15 }
  0x8a   :  { %v242_v23 = vld [vmem:[#allocation9 + $0x1c0] sm:$0xff]  ;;  %v243_v25 = vld [vmem:[#allocation9 + $0x1c8] sm:$0xff]  ;;  %v10982_v27 = vcombine.low %v219_v16, %v227_v17 }
  0x8b   :  { %v10997_v28 = vcombine.high %v234_v22, %v242_v23  ;;  %v10999_v29 = vcombine.high %v235_v24, %v243_v25  ;;  %v250_v30 = vld [vmem:[#allocation9 + $0x200] sm:$0xff]  ;;  %v251_v32 = vld [vmem:[#allocation9 + $0x208] sm:$0xff]  ;;  %v10996_v34 = vcombine.low %v234_v22, %v242_v23  ;;  %v10998_v35 = vcombine.low %v235_v24, %v243_v25 }
  0x8c   :  { %6445 = vmatpush1.bf16.msra.mxu0 %v10964_v18  ;;  %6609 = vmatpush1.bf16.msra.mxu1 %v10966_v19  ;;  %v258_v31 = vld [vmem:[#allocation9 + $0x240] sm:$0xff]  ;;  %v259_v33 = vld [vmem:[#allocation9 + $0x248] sm:$0xff] }
  0x8d   :  { %6446 = vmatprep.subr.bf16.mxu0 %v10981_v20  ;;  %6610 = vmatprep.subr.bf16.mxu1 %v10983_v21  ;;  %v11013_v36 = vcombine.high %v250_v30, %v258_v31  ;;  %v11015_v37 = vcombine.high %v251_v32, %v259_v33  ;;  %v266_v38 = vld [vmem:[#allocation9 + $0x280] sm:$0xff]  ;;  %v267_v40 = vld [vmem:[#allocation9 + $0x288] sm:$0xff]  ;;  %v11012_v42 = vcombine.low %v250_v30, %v258_v31 }
  0x8e   :  { %v274_v39 = vld [vmem:[#allocation9 + $0x2c0] sm:$0xff]  ;;  %v275_v41 = vld [vmem:[#allocation9 + $0x2c8] sm:$0xff]  ;;  %v11014_v43 = vcombine.low %v251_v32, %v259_v33 }
  0x8f   :  { %v11029_v44 = vcombine.high %v266_v38, %v274_v39  ;;  %v11031_v45 = vcombine.high %v267_v40, %v275_v41  ;;  %v282_v46 = vld [vmem:[#allocation9 + $0x300] sm:$0xff]  ;;  %v283_v48 = vld [vmem:[#allocation9 + $0x308] sm:$0xff]  ;;  %v11028_v50 = vcombine.low %v266_v38, %v274_v39  ;;  %v11030_v51 = vcombine.low %v267_v40, %v275_v41 }
  0x90   :  { %6447 = vmatpush1.bf16.msra.mxu0 %v10980_v26  ;;  %6611 = vmatpush1.bf16.msra.mxu1 %v10982_v27  ;;  %v290_v47 = vld [vmem:[#allocation9 + $0x340] sm:$0xff]  ;;  %v291_v49 = vld [vmem:[#allocation9 + $0x348] sm:$0xff] }
  0x91   :  { %6448 = vmatprep.subr.bf16.mxu0 %v10997_v28  ;;  %6612 = vmatprep.subr.bf16.mxu1 %v10999_v29  ;;  %v11045_v52 = vcombine.high %v282_v46, %v290_v47  ;;  %v12663_v53 = vld [vmem:[#allocation6] sm:$0xff]  ;;  %v11047_v54 = vcombine.high %v283_v48, %v291_v49  ;;  %v299_v58 = vld [vmem:[#allocation9 + $0x388] sm:$0xff]  ;;  %v11044_v60 = vcombine.low %v282_v46, %v290_v47 }
  0x92   :  { %v298_v55 = vld [vmem:[#allocation9 + $0x380] sm:$0xff]  ;;  %v12667_v57 = vcombine.high %v12663_v53, %v12663_v53  ;;  %v307_v59 = vld [vmem:[#allocation9 + $0x3c8] sm:$0xff]  ;;  %v11046_v61 = vcombine.low %v283_v48, %v291_v49 }
  0x93   :  { %v306_v56 = vld [vmem:[#allocation9 + $0x3c0] sm:$0xff]  ;;  %v11063_v63 = vcombine.high %v299_v58, %v307_v59  ;;  %v315_v2 = vld [vmem:[#allocation9 + $0x408] sm:$0xff]  ;;  %v11062_v5 = vcombine.low %v299_v58, %v307_v59 }
  0x94   :  { %6449 = vmatpush1.bf16.msra.mxu0 %v10996_v34  ;;  %6613 = vmatpush1.bf16.msra.mxu1 %v10998_v35  ;;  %v11061_v62 = vcombine.high %v298_v55, %v306_v56  ;;  %v314_v0 = vld [vmem:[#allocation9 + $0x400] sm:$0xff]  ;;  %v323_v3 = vld [vmem:[#allocation9 + $0x448] sm:$0xff]  ;;  %v11060_v4 = vcombine.low %v298_v55, %v306_v56 }
  0x95   :  { %6450 = vmatprep.subr.bf16.mxu0 %v11013_v36  ;;  %6614 = vmatprep.subr.bf16.mxu1 %v11015_v37  ;;  %v322_v1 = vld [vmem:[#allocation9 + $0x440] sm:$0xff]  ;;  %v11079_v7 = vcombine.high %v315_v2, %v323_v3  ;;  %v331_v10 = vld [vmem:[#allocation9 + $0x488] sm:$0xff]  ;;  %v11078_v13 = vcombine.low %v315_v2, %v323_v3 }
  0x96   :  { %6474 = vmatprep.mubr.bf16.mxu0 %v12667_v57  ;;  %6638 = vmatprep.mubr.bf16.mxu1 %v12667_v57  ;;  %v11077_v6 = vcombine.high %v314_v0, %v322_v1  ;;  %v330_v8 = vld [vmem:[#allocation9 + $0x480] sm:$0xff]  ;;  %v339_v11 = vld [vmem:[#allocation9 + $0x4c8] sm:$0xff]  ;;  %v11076_v12 = vcombine.low %v314_v0, %v322_v1 }
  0x97   :  { %v338_v9 = vld [vmem:[#allocation9 + $0x4c0] sm:$0xff]  ;;  %v11095_v15 = vcombine.high %v331_v10, %v339_v11  ;;  %v347_v18 = vld [vmem:[#allocation9 + $0x508] sm:$0xff]  ;;  %v11094_v21 = vcombine.low %v331_v10, %v339_v11 }
  0x98   :  { %6451 = vmatpush1.bf16.msra.mxu0 %v11012_v42  ;;  %6615 = vmatpush1.bf16.msra.mxu1 %v11014_v43  ;;  %v11093_v14 = vcombine.high %v330_v8, %v338_v9  ;;  %v346_v16 = vld [vmem:[#allocation9 + $0x500] sm:$0xff]  ;;  %v355_v19 = vld [vmem:[#allocation9 + $0x548] sm:$0xff]  ;;  %v11092_v20 = vcombine.low %v330_v8, %v338_v9 }
  0x99   :  { %6452 = vmatprep.subr.bf16.mxu0 %v11029_v44  ;;  %6616 = vmatprep.subr.bf16.mxu1 %v11031_v45  ;;  %v354_v17 = vld [vmem:[#allocation9 + $0x540] sm:$0xff]  ;;  %v11111_v23 = vcombine.high %v347_v18, %v355_v19  ;;  %v363_v26 = vld [vmem:[#allocation9 + $0x588] sm:$0xff]  ;;  %v11110_v29 = vcombine.low %v347_v18, %v355_v19 }
  0x9a   :  { %v11109_v22 = vcombine.high %v346_v16, %v354_v17  ;;  %v362_v24 = vld [vmem:[#allocation9 + $0x580] sm:$0xff]  ;;  %v371_v27 = vld [vmem:[#allocation9 + $0x5c8] sm:$0xff]  ;;  %v11108_v28 = vcombine.low %v346_v16, %v354_v17 }
  0x9b   :  { %v370_v25 = vld [vmem:[#allocation9 + $0x5c0] sm:$0xff]  ;;  %v11127_v31 = vcombine.high %v363_v26, %v371_v27  ;;  %v379_v34 = vld [vmem:[#allocation9 + $0x608] sm:$0xff]  ;;  %v11126_v37 = vcombine.low %v363_v26, %v371_v27 }
  0x9c   :  { %6453 = vmatpush1.bf16.msra.mxu0 %v11028_v50  ;;  %6617 = vmatpush1.bf16.msra.mxu1 %v11030_v51  ;;  %v11125_v30 = vcombine.high %v362_v24, %v370_v25  ;;  %v378_v32 = vld [vmem:[#allocation9 + $0x600] sm:$0xff]  ;;  %v387_v35 = vld [vmem:[#allocation9 + $0x648] sm:$0xff]  ;;  %v11124_v36 = vcombine.low %v362_v24, %v370_v25 }
  0x9d   :  { %6454 = vmatprep.subr.bf16.mxu0 %v11045_v52  ;;  %6618 = vmatprep.subr.bf16.mxu1 %v11047_v54  ;;  %v386_v33 = vld [vmem:[#allocation9 + $0x640] sm:$0xff]  ;;  %v11143_v39 = vcombine.high %v379_v34, %v387_v35  ;;  %v395_v42 = vld [vmem:[#allocation9 + $0x688] sm:$0xff]  ;;  %v11142_v45 = vcombine.low %v379_v34, %v387_v35 }
  0x9e   :  { %v11141_v38 = vcombine.high %v378_v32, %v386_v33  ;;  %v394_v40 = vld [vmem:[#allocation9 + $0x680] sm:$0xff]  ;;  %v403_v43 = vld [vmem:[#allocation9 + $0x6c8] sm:$0xff]  ;;  %v11140_v44 = vcombine.low %v378_v32, %v386_v33 }
  0x9f   :  { %v402_v41 = vld [vmem:[#allocation9 + $0x6c0] sm:$0xff]  ;;  %v11159_v47 = vcombine.high %v395_v42, %v403_v43  ;;  %v411_v50 = vld [vmem:[#allocation9 + $0x708] sm:$0xff]  ;;  %v11158_v54 = vcombine.low %v395_v42, %v403_v43 }
  0xa0   :  { %6455 = vmatpush1.bf16.msra.mxu0 %v11044_v60  ;;  %6619 = vmatpush1.bf16.msra.mxu1 %v11046_v61  ;;  %v11157_v46 = vcombine.high %v394_v40, %v402_v41  ;;  %v410_v48 = vld [vmem:[#allocation9 + $0x700] sm:$0xff]  ;;  %v419_v51 = vld [vmem:[#allocation9 + $0x748] sm:$0xff]  ;;  %v11156_v52 = vcombine.low %v394_v40, %v402_v41 }
  0xa1   :  { %6456 = vmatprep.subr.bf16.mxu0 %v11061_v62  ;;  %6620 = vmatprep.subr.bf16.mxu1 %v11063_v63  ;;  %v418_v49 = vld [vmem:[#allocation9 + $0x740] sm:$0xff]  ;;  %v11175_v56 = vcombine.high %v411_v50, %v419_v51  ;;  %v427_v60 = vld [vmem:[#allocation9 + $0x788] sm:$0xff]  ;;  %v11174_v63 = vcombine.low %v411_v50, %v419_v51 }
  0xa2   :  { %v11173_v55 = vcombine.high %v410_v48, %v418_v49  ;;  %v426_v58 = vld [vmem:[#allocation9 + $0x780] sm:$0xff]  ;;  %v435_v61 = vld [vmem:[#allocation9 + $0x7c8] sm:$0xff]  ;;  %v11172_v62 = vcombine.low %v410_v48, %v418_v49 }
  0xa3   :  { %v434_v59 = vld [vmem:[#allocation9 + $0x7c0] sm:$0xff]  ;;  %v11191_v1 = vcombine.high %v427_v60, %v435_v61 }
  0xa4   :  { %6457 = vmatpush1.bf16.msra.mxu0 %v11060_v4  ;;  %6621 = vmatpush1.bf16.msra.mxu1 %v11062_v5  ;;  %v11189_v0 = vcombine.high %v426_v58, %v434_v59  ;;  %v442_v2 = vld [vmem:[#allocation9 + $0x800] sm:$0xff]  ;;  %v443_v4 = vld [vmem:[#allocation9 + $0x808] sm:$0xff] }
  0xa5   :  { %6458 = vmatprep.subr.bf16.mxu0 %v11077_v6  ;;  %6622 = vmatprep.subr.bf16.mxu1 %v11079_v7  ;;  %v450_v3 = vld [vmem:[#allocation9 + $0x840] sm:$0xff]  ;;  %v451_v5 = vld [vmem:[#allocation9 + $0x848] sm:$0xff]  ;;  %v11188_v6 = vcombine.low %v426_v58, %v434_v59  ;;  %v11190_v7 = vcombine.low %v427_v60, %v435_v61 }
  0xa6   :  { %v11205_v8 = vcombine.high %v442_v2, %v450_v3  ;;  %v11207_v9 = vcombine.high %v443_v4, %v451_v5  ;;  %v458_v10 = vld [vmem:[#allocation9 + $0x880] sm:$0xff]  ;;  %v11204_v16 = vcombine.low %v442_v2, %v450_v3  ;;  %v11206_v17 = vcombine.low %v443_v4, %v451_v5 }
  0xa7   :  { %v466_v11 = vld [vmem:[#allocation9 + $0x8c0] sm:$0xff] }
  0xa8   :  { %6459 = vmatpush1.bf16.msra.mxu0 %v11076_v12  ;;  %6623 = vmatpush1.bf16.msra.mxu1 %v11078_v13  ;;  %v12673_v12 = vcombine.low %v12663_v53, %v12663_v53  ;;  %v459_v13 = vld [vmem:[#allocation9 + $0x888] sm:$0xff]  ;;  %v11221_v18 = vcombine.high %v458_v10, %v466_v11  ;;  %v11220_v24 = vcombine.low %v458_v10, %v466_v11 }
  0xa9   :  { %6460 = vmatprep.subr.bf16.mxu0 %v11093_v14  ;;  %6624 = vmatprep.subr.bf16.mxu1 %v11095_v15  ;;  %v467_v14 = vld [vmem:[#allocation9 + $0x8c8] sm:$0xff] }
  0xaa   :  { %v12675_v15 = vld [vmem:[#allocation6 + $0x8] sm:$0xff]  ;;  %v11223_v19 = vcombine.high %v459_v13, %v467_v14  ;;  %v11222_v25 = vcombine.low %v459_v13, %v467_v14 }
  0xab   :  { %v475_v53 = vld [vmem:[#allocation9 + $0x908] sm:$0xff] }
  0xac   :  { %6461 = vmatpush1.bf16.msra.mxu0 %v11092_v20  ;;  %6625 = vmatpush1.bf16.msra.mxu1 %v11094_v21  ;;  %v474_v20 = vld [vmem:[#allocation9 + $0x900] sm:$0xff] }
  0xad   :  { %6462 = vmatprep.subr.bf16.mxu0 %v11109_v22  ;;  %6626 = vmatprep.subr.bf16.mxu1 %v11111_v23  ;;  %v482_v21 = vld [vmem:[#allocation9 + $0x940] sm:$0xff]  ;;  %v12679_v22 = vcombine.high %v12675_v15, %v12675_v15  ;;  %v483_v23 = vld [vmem:[#allocation9 + $0x948] sm:$0xff] }
  0xae   :  { %v11237_v26 = vcombine.high %v474_v20, %v482_v21  ;;  %v11239_v27 = vcombine.high %v475_v53, %v483_v23  ;;  %v11236_v32 = vcombine.low %v474_v20, %v482_v21  ;;  %v11238_v33 = vcombine.low %v475_v53, %v483_v23 }
  0xb0   :  { %6463 = vmatpush1.bf16.msra.mxu0 %v11108_v28  ;;  %6627 = vmatpush1.bf16.msra.mxu1 %v11110_v29  ;;  %v490_v28 = vld [vmem:[#allocation9 + $0x980] sm:$0xff] }
  0xb1   :  { %6464 = vmatprep.subr.bf16.mxu0 %v11125_v30  ;;  %6628 = vmatprep.subr.bf16.mxu1 %v11127_v31  ;;  %v498_v29 = vld [vmem:[#allocation9 + $0x9c0] sm:$0xff]  ;;  %v491_v30 = vld [vmem:[#allocation9 + $0x988] sm:$0xff] }
  0xb2   :  { %v499_v31 = vld [vmem:[#allocation9 + $0x9c8] sm:$0xff]  ;;  %v11253_v34 = vcombine.high %v490_v28, %v498_v29  ;;  %v11252_v40 = vcombine.low %v490_v28, %v498_v29 }
  0xb3   :  { %v11255_v35 = vcombine.high %v491_v30, %v499_v31  ;;  %v11254_v41 = vcombine.low %v491_v30, %v499_v31 }
  0xb4   :  { %6465 = vmatpush1.bf16.msra.mxu0 %v11124_v36  ;;  %6629 = vmatpush1.bf16.msra.mxu1 %v11126_v37  ;;  %v506_v36 = vld [vmem:[#allocation9 + $0xa00] sm:$0xff] }
  0xb5   :  { %6466 = vmatprep.subr.bf16.mxu0 %v11141_v38  ;;  %6630 = vmatprep.subr.bf16.mxu1 %v11143_v39  ;;  %v514_v37 = vld [vmem:[#allocation9 + $0xa40] sm:$0xff]  ;;  %v507_v38 = vld [vmem:[#allocation9 + $0xa08] sm:$0xff] }
  0xb6   :  { %v515_v39 = vld [vmem:[#allocation9 + $0xa48] sm:$0xff]  ;;  %v11269_v42 = vcombine.high %v506_v36, %v514_v37  ;;  %v11268_v48 = vcombine.low %v506_v36, %v514_v37 }
  0xb7   :  { %v11271_v43 = vcombine.high %v507_v38, %v515_v39  ;;  %v11270_v49 = vcombine.low %v507_v38, %v515_v39 }
  0xb8   :  { %6467 = vmatpush1.bf16.msra.mxu0 %v11140_v44  ;;  %6631 = vmatpush1.bf16.msra.mxu1 %v11142_v45  ;;  %v522_v44 = vld [vmem:[#allocation9 + $0xa80] sm:$0xff] }
  0xb9   :  { %6468 = vmatprep.subr.bf16.mxu0 %v11157_v46  ;;  %6632 = vmatprep.subr.bf16.mxu1 %v11159_v47  ;;  %v530_v45 = vld [vmem:[#allocation9 + $0xac0] sm:$0xff]  ;;  %v523_v46 = vld [vmem:[#allocation9 + $0xa88] sm:$0xff] }
  0xba   :  { %v531_v47 = vld [vmem:[#allocation9 + $0xac8] sm:$0xff]  ;;  %v11285_v50 = vcombine.high %v522_v44, %v530_v45  ;;  %v11284_v58 = vcombine.low %v522_v44, %v530_v45 }
  0xbb   :  { %v11287_v51 = vcombine.high %v523_v46, %v531_v47  ;;  %v11286_v59 = vcombine.low %v523_v46, %v531_v47 }
  0xbc   :  { %6469 = vmatpush1.bf16.msra.mxu0 %v11156_v52  ;;  %6633 = vmatpush1.bf16.msra.mxu1 %v11158_v54  ;;  %v538_v52 = vld [vmem:[#allocation9 + $0xb00] sm:$0xff] }
  0xbd   :  { %6470 = vmatprep.subr.bf16.mxu0 %v11173_v55  ;;  %6634 = vmatprep.subr.bf16.mxu1 %v11175_v56  ;;  %v546_v54 = vld [vmem:[#allocation9 + $0xb40] sm:$0xff]  ;;  %v539_v55 = vld [vmem:[#allocation9 + $0xb08] sm:$0xff] }
  0xbe   :  { %v547_v56 = vld [vmem:[#allocation9 + $0xb48] sm:$0xff]  ;;  %v11301_v60 = vcombine.high %v538_v52, %v546_v54  ;;  %v11300_v2 = vcombine.low %v538_v52, %v546_v54 }
  0xbf   :  { %v11303_v61 = vcombine.high %v539_v55, %v547_v56  ;;  %v11302_v3 = vcombine.low %v539_v55, %v547_v56 }
  0xc0   :  { %6471 = vmatpush1.bf16.msra.mxu0 %v11172_v62  ;;  %6635 = vmatpush1.bf16.msra.mxu1 %v11174_v63  ;;  %v554_v62 = vld [vmem:[#allocation9 + $0xb80] sm:$0xff] }
  0xc1   :  { %6472 = vmatprep.subr.bf16.mxu0 %v11189_v0  ;;  %6636 = vmatprep.subr.bf16.mxu1 %v11191_v1  ;;  %v562_v63 = vld [vmem:[#allocation9 + $0xbc0] sm:$0xff]  ;;  %v555_v0 = vld [vmem:[#allocation9 + $0xb88] sm:$0xff] }
  0xc2   :  { %v563_v1 = vld [vmem:[#allocation9 + $0xbc8] sm:$0xff]  ;;  %v11317_v4 = vcombine.high %v554_v62, %v562_v63  ;;  %v11316_v10 = vcombine.low %v554_v62, %v562_v63 }
  0xc3   :  { %v11319_v5 = vcombine.high %v555_v0, %v563_v1  ;;  %v11318_v11 = vcombine.low %v555_v0, %v563_v1 }
  0xc4   :  { %6473 = vmatpush1.bf16.msra.mxu0 %v11188_v6  ;;  %6637 = vmatpush1.bf16.msra.mxu1 %v11190_v7  ;;  %v570_v6 = vld [vmem:[#allocation9 + $0xc00] sm:$0xff] }
  0xc5   :  { %6483 = vmatprep.subr.bf16.mxu0 %v11205_v8  ;;  %6647 = vmatprep.subr.bf16.mxu1 %v11207_v9  ;;  %v578_v7 = vld [vmem:[#allocation9 + $0xc40] sm:$0xff]  ;;  %v571_v8 = vld [vmem:[#allocation9 + $0xc08] sm:$0xff] }
  0xc6   :  { %v579_v9 = vld [vmem:[#allocation9 + $0xc48] sm:$0xff]  ;;  %v11333_v13 = vcombine.high %v570_v6, %v578_v7  ;;  %v11332_v20 = vcombine.low %v570_v6, %v578_v7 }
  0xc7   :  { %6475 = vmatmul.mubr.bf16.vlgmr.msra.gmra.mrb[0].mxu0 %v12673_v12  ;;  %6639 = vmatmul.mubr.bf16.vlgmr.msra.gmra.mrb[0].mxu1 %v12673_v12  ;;  %v11335_v14 = vcombine.high %v571_v8, %v579_v9  ;;  %v11334_v21 = vcombine.low %v571_v8, %v579_v9 }
  0xc8   :  { %6484 = vmatpush1.bf16.msra.mxu0 %v11204_v16  ;;  %6648 = vmatpush1.bf16.msra.mxu1 %v11206_v17  ;;  %v586_v16 = vld [vmem:[#allocation9 + $0xc80] sm:$0xff] }
  0xc9   :  { %6485 = vmatprep.subr.bf16.mxu0 %v11221_v18  ;;  %6649 = vmatprep.subr.bf16.mxu1 %v11223_v19  ;;  %v594_v17 = vld [vmem:[#allocation9 + $0xcc0] sm:$0xff]  ;;  %v587_v18 = vld [vmem:[#allocation9 + $0xc88] sm:$0xff] }
  0xca   :  { %6515 = vmatprep.mubr.bf16.mxu0 %v12679_v22  ;;  %6679 = vmatprep.mubr.bf16.mxu1 %v12679_v22  ;;  %v595_v19 = vld [vmem:[#allocation9 + $0xcc8] sm:$0xff]  ;;  %v11349_v53 = vcombine.high %v586_v16, %v594_v17  ;;  %v11348_v28 = vcombine.low %v586_v16, %v594_v17 }
  0xcb   :  { %v11351_v23 = vcombine.high %v587_v18, %v595_v19  ;;  %v11350_v29 = vcombine.low %v587_v18, %v595_v19 }
  0xcc   :  { %6486 = vmatpush1.bf16.msra.mxu0 %v11220_v24  ;;  %6650 = vmatpush1.bf16.msra.mxu1 %v11222_v25  ;;  %v602_v24 = vld [vmem:[#allocation9 + $0xd00] sm:$0xff] }
  0xcd   :  { %6487 = vmatprep.subr.bf16.mxu0 %v11237_v26  ;;  %6651 = vmatprep.subr.bf16.mxu1 %v11239_v27  ;;  %v610_v25 = vld [vmem:[#allocation9 + $0xd40] sm:$0xff]  ;;  %v603_v26 = vld [vmem:[#allocation9 + $0xd08] sm:$0xff] }
  0xce   :  { %v611_v27 = vld [vmem:[#allocation9 + $0xd48] sm:$0xff]  ;;  %v11365_v30 = vcombine.high %v602_v24, %v610_v25  ;;  %v11364_v36 = vcombine.low %v602_v24, %v610_v25  ;;  %v12689_v25 = vld [vmem:[#allocation6 + $0x10] sm:$0xff] }
  0xcf   :  { %v11367_v31 = vcombine.high %v603_v26, %v611_v27  ;;  %v11366_v37 = vcombine.low %v603_v26, %v611_v27  ;;  %v723_v24 = vld [vmem:[#allocation9 + $0x10c8] sm:$0xff] }
  0xd0   :  { %6488 = vmatpush1.bf16.msra.mxu0 %v11236_v32  ;;  %6652 = vmatpush1.bf16.msra.mxu1 %v11238_v33  ;;  %v618_v32 = vld [vmem:[#allocation9 + $0xd80] sm:$0xff] }
  0xd1   :  { %6489 = vmatprep.subr.bf16.mxu0 %v11253_v34  ;;  %6653 = vmatprep.subr.bf16.mxu1 %v11255_v35  ;;  %v626_v33 = vld [vmem:[#allocation9 + $0xdc0] sm:$0xff]  ;;  %v619_v34 = vld [vmem:[#allocation9 + $0xd88] sm:$0xff] }
  0xd2   :  { %v627_v35 = vld [vmem:[#allocation9 + $0xdc8] sm:$0xff]  ;;  %v11381_v38 = vcombine.high %v618_v32, %v626_v33  ;;  %v11380_v44 = vcombine.low %v618_v32, %v626_v33  ;;  %v12693_v32 = vcombine.high %v12689_v25, %v12689_v25 }
  0xd3   :  { %v11383_v39 = vcombine.high %v619_v34, %v627_v35  ;;  %v11382_v45 = vcombine.low %v619_v34, %v627_v35  ;;  %v739_v33 = vld [vmem:[#allocation9 + $0x1148] sm:$0xff] }
  0xd4   :  { %6490 = vmatpush1.bf16.msra.mxu0 %v11252_v40  ;;  %6654 = vmatpush1.bf16.msra.mxu1 %v11254_v41  ;;  %v634_v40 = vld [vmem:[#allocation9 + $0xe00] sm:$0xff] }
  0xd5   :  { %6491 = vmatprep.subr.bf16.mxu0 %v11269_v42  ;;  %6655 = vmatprep.subr.bf16.mxu1 %v11271_v43  ;;  %v642_v41 = vld [vmem:[#allocation9 + $0xe40] sm:$0xff]  ;;  %v635_v42 = vld [vmem:[#allocation9 + $0xe08] sm:$0xff] }
  0xd6   :  { %v643_v43 = vld [vmem:[#allocation9 + $0xe48] sm:$0xff]  ;;  %v11397_v46 = vcombine.high %v634_v40, %v642_v41  ;;  %v11396_v52 = vcombine.low %v634_v40, %v642_v41 }
  0xd7   :  { %v11399_v47 = vcombine.high %v635_v42, %v643_v43  ;;  %v11398_v54 = vcombine.low %v635_v42, %v643_v43  ;;  %v747_v40 = vld [vmem:[#allocation9 + $0x1188] sm:$0xff] }
  0xd8   :  { %6492 = vmatpush1.bf16.msra.mxu0 %v11268_v48  ;;  %6656 = vmatpush1.bf16.msra.mxu1 %v11270_v49  ;;  %v650_v48 = vld [vmem:[#allocation9 + $0xe80] sm:$0xff]  ;;  %v755_v41 = vld [vmem:[#allocation9 + $0x11c8] sm:$0xff] }
  0xd9   :  { %6493 = vmatprep.subr.bf16.mxu0 %v11285_v50  ;;  %6657 = vmatprep.subr.bf16.mxu1 %v11287_v51  ;;  %v658_v49 = vld [vmem:[#allocation9 + $0xec0] sm:$0xff]  ;;  %v651_v50 = vld [vmem:[#allocation9 + $0xe88] sm:$0xff] }
  0xda   :  { %v659_v51 = vld [vmem:[#allocation9 + $0xec8] sm:$0xff]  ;;  %v11413_v55 = vcombine.high %v650_v48, %v658_v49  ;;  %v11412_v62 = vcombine.low %v650_v48, %v658_v49 }
  0xdb   :  { %v11415_v56 = vcombine.high %v651_v50, %v659_v51  ;;  %v11414_v63 = vcombine.low %v651_v50, %v659_v51  ;;  %v763_v48 = vld [vmem:[#allocation9 + $0x1208] sm:$0xff]  ;;  %v11510_v51 = vcombine.low %v747_v40, %v755_v41 }
  0xdc   :  { %6494 = vmatpush1.bf16.msra.mxu0 %v11284_v58  ;;  %6658 = vmatpush1.bf16.msra.mxu1 %v11286_v59  ;;  %v666_v58 = vld [vmem:[#allocation9 + $0xf00] sm:$0xff]  ;;  %v771_v49 = vld [vmem:[#allocation9 + $0x1248] sm:$0xff] }
  0xdd   :  { %6495 = vmatprep.subr.bf16.mxu0 %v11301_v60  ;;  %6659 = vmatprep.subr.bf16.mxu1 %v11303_v61  ;;  %v674_v59 = vld [vmem:[#allocation9 + $0xf40] sm:$0xff]  ;;  %v667_v60 = vld [vmem:[#allocation9 + $0xf08] sm:$0xff] }
  0xde   :  { %v675_v61 = vld [vmem:[#allocation9 + $0xf48] sm:$0xff]  ;;  %v11429_v0 = vcombine.high %v666_v58, %v674_v59  ;;  %v11428_v6 = vcombine.low %v666_v58, %v674_v59 }
  0xdf   :  { %v11431_v1 = vcombine.high %v667_v60, %v675_v61  ;;  %v11430_v7 = vcombine.low %v667_v60, %v675_v61  ;;  %v779_v58 = vld [vmem:[#allocation9 + $0x1288] sm:$0xff]  ;;  %v11526_v61 = vcombine.low %v763_v48, %v771_v49 }
  0xe0   :  { %6496 = vmatpush1.bf16.msra.mxu0 %v11300_v2  ;;  %6660 = vmatpush1.bf16.msra.mxu1 %v11302_v3  ;;  %v682_v2 = vld [vmem:[#allocation9 + $0xf80] sm:$0xff]  ;;  %v787_v59 = vld [vmem:[#allocation9 + $0x12c8] sm:$0xff] }
  0xe1   :  { %6497 = vmatprep.subr.bf16.mxu0 %v11317_v4  ;;  %6661 = vmatprep.subr.bf16.mxu1 %v11319_v5  ;;  %v690_v3 = vld [vmem:[#allocation9 + $0xfc0] sm:$0xff]  ;;  %v683_v4 = vld [vmem:[#allocation9 + $0xf88] sm:$0xff] }
  0xe2   :  { %v691_v5 = vld [vmem:[#allocation9 + $0xfc8] sm:$0xff]  ;;  %v11445_v8 = vcombine.high %v682_v2, %v690_v3  ;;  %v11444_v16 = vcombine.low %v682_v2, %v690_v3 }
  0xe3   :  { %v11447_v9 = vcombine.high %v683_v4, %v691_v5  ;;  %v11446_v17 = vcombine.low %v683_v4, %v691_v5  ;;  %v795_v2 = vld [vmem:[#allocation9 + $0x1308] sm:$0xff]  ;;  %v11542_v5 = vcombine.low %v779_v58, %v787_v59 }
  0xe4   :  { %6498 = vmatpush1.bf16.msra.mxu0 %v11316_v10  ;;  %6662 = vmatpush1.bf16.msra.mxu1 %v11318_v11  ;;  %v698_v10 = vld [vmem:[#allocation9 + $0x1000] sm:$0xff]  ;;  %v803_v3 = vld [vmem:[#allocation9 + $0x1348] sm:$0xff] }
  0xe5   :  { %6499 = vmatprep.subr.bf16.mxu0 %v11333_v13  ;;  %6663 = vmatprep.subr.bf16.mxu1 %v11335_v14  ;;  %v706_v11 = vld [vmem:[#allocation9 + $0x1040] sm:$0xff]  ;;  %v699_v13 = vld [vmem:[#allocation9 + $0x1008] sm:$0xff] }
  0xe6   :  { %v707_v14 = vld [vmem:[#allocation9 + $0x1048] sm:$0xff]  ;;  %v11461_v18 = vcombine.high %v698_v10, %v706_v11  ;;  %v11460_v26 = vcombine.low %v698_v10, %v706_v11 }
  0xe7   :  { %v11463_v19 = vcombine.high %v699_v13, %v707_v14  ;;  %v11462_v27 = vcombine.low %v699_v13, %v707_v14  ;;  %v811_v10 = vld [vmem:[#allocation9 + $0x1388] sm:$0xff]  ;;  %v11558_v14 = vcombine.low %v795_v2, %v803_v3 }
  0xe8   :  { %6500 = vmatpush1.bf16.msra.mxu0 %v11332_v20  ;;  %6664 = vmatpush1.bf16.msra.mxu1 %v11334_v21  ;;  %v714_v20 = vld [vmem:[#allocation9 + $0x1080] sm:$0xff]  ;;  %v819_v11 = vld [vmem:[#allocation9 + $0x13c8] sm:$0xff] }
  0xe9   :  { %6501 = vmatprep.subr.bf16.mxu0 %v11349_v53  ;;  %6665 = vmatprep.subr.bf16.mxu1 %v11351_v23  ;;  %v722_v21 = vld [vmem:[#allocation9 + $0x10c0] sm:$0xff]  ;;  %v12687_v53 = vcombine.low %v12675_v15, %v12675_v15  ;;  %v715_v23 = vld [vmem:[#allocation9 + $0x1088] sm:$0xff] }
  0xea   :  { %v731_v15 = vld [vmem:[#allocation9 + $0x1108] sm:$0xff]  ;;  %v11476_v34 = vcombine.low %v714_v20, %v722_v21  ;;  %v11478_v35 = vcombine.low %v715_v23, %v723_v24 }
  0xeb   :  { %v11494_v43 = vcombine.low %v731_v15, %v739_v33 }
  0xec   :  { %6502 = vmatpush1.bf16.msra.mxu0 %v11348_v28  ;;  %6666 = vmatpush1.bf16.msra.mxu1 %v11350_v29  ;;  %v11477_v28 = vcombine.high %v714_v20, %v722_v21  ;;  %v11479_v29 = vcombine.high %v715_v23, %v723_v24  ;;  %v827_v20 = vld [vmem:[#allocation9 + $0x1408] sm:$0xff]  ;;  %v11574_v24 = vcombine.low %v811_v10, %v819_v11 }
  0xed   :  { %6503 = vmatprep.subr.bf16.mxu0 %v11365_v30  ;;  %6667 = vmatprep.subr.bf16.mxu1 %v11367_v31  ;;  %v730_v30 = vld [vmem:[#allocation9 + $0x1100] sm:$0xff]  ;;  %v835_v21 = vld [vmem:[#allocation9 + $0x1448] sm:$0xff] }
  0xee   :  { %v738_v31 = vld [vmem:[#allocation9 + $0x1140] sm:$0xff] }
  0xef   :  { %v11492_v42 = vcombine.low %v730_v30, %v738_v31 }
  0xf0   :  { %6504 = vmatpush1.bf16.msra.mxu0 %v11364_v36  ;;  %6668 = vmatpush1.bf16.msra.mxu1 %v11366_v37  ;;  %v11493_v36 = vcombine.high %v730_v30, %v738_v31  ;;  %v11495_v37 = vcombine.high %v731_v15, %v739_v33  ;;  %v843_v30 = vld [vmem:[#allocation9 + $0x1488] sm:$0xff]  ;;  %v11590_v33 = vcombine.low %v827_v20, %v835_v21 }
  0xf1   :  { %6505 = vmatprep.subr.bf16.mxu0 %v11381_v38  ;;  %6669 = vmatprep.subr.bf16.mxu1 %v11383_v39  ;;  %v746_v38 = vld [vmem:[#allocation9 + $0x1180] sm:$0xff]  ;;  %v851_v31 = vld [vmem:[#allocation9 + $0x14c8] sm:$0xff] }
  0xf2   :  { %v754_v39 = vld [vmem:[#allocation9 + $0x11c0] sm:$0xff] }
  0xf3   :  { %v11508_v50 = vcombine.low %v746_v38, %v754_v39 }
  0xf4   :  { %6506 = vmatpush1.bf16.msra.mxu0 %v11380_v44  ;;  %6670 = vmatpush1.bf16.msra.mxu1 %v11382_v45  ;;  %v11509_v44 = vcombine.high %v746_v38, %v754_v39  ;;  %v11511_v45 = vcombine.high %v747_v40, %v755_v41  ;;  %v859_v38 = vld [vmem:[#allocation9 + $0x1508] sm:$0xff]  ;;  %v11606_v41 = vcombine.low %v843_v30, %v851_v31 }
  0xf5   :  { %6507 = vmatprep.subr.bf16.mxu0 %v11397_v46  ;;  %6671 = vmatprep.subr.bf16.mxu1 %v11399_v47  ;;  %v762_v46 = vld [vmem:[#allocation9 + $0x1200] sm:$0xff]  ;;  %v867_v39 = vld [vmem:[#allocation9 + $0x1548] sm:$0xff] }
  0xf6   :  { %v770_v47 = vld [vmem:[#allocation9 + $0x1240] sm:$0xff] }
  0xf7   :  { %v11524_v60 = vcombine.low %v762_v46, %v770_v47 }
  0xf8   :  { %6508 = vmatpush1.bf16.msra.mxu0 %v11396_v52  ;;  %6672 = vmatpush1.bf16.msra.mxu1 %v11398_v54  ;;  %v11525_v52 = vcombine.high %v762_v46, %v770_v47  ;;  %v11527_v54 = vcombine.high %v763_v48, %v771_v49  ;;  %v875_v46 = vld [vmem:[#allocation9 + $0x1588] sm:$0xff]  ;;  %v11622_v49 = vcombine.low %v859_v38, %v867_v39 }
  0xf9   :  { %6509 = vmatprep.subr.bf16.mxu0 %v11413_v55  ;;  %6673 = vmatprep.subr.bf16.mxu1 %v11415_v56  ;;  %v778_v55 = vld [vmem:[#allocation9 + $0x1280] sm:$0xff]  ;;  %v883_v47 = vld [vmem:[#allocation9 + $0x15c8] sm:$0xff] }
  0xfa   :  { %v786_v56 = vld [vmem:[#allocation9 + $0x12c0] sm:$0xff] }
  0xfb   :  { %v11540_v4 = vcombine.low %v778_v55, %v786_v56 }
  0xfc   :  { %6510 = vmatpush1.bf16.msra.mxu0 %v11412_v62  ;;  %6674 = vmatpush1.bf16.msra.mxu1 %v11414_v63  ;;  %v11541_v62 = vcombine.high %v778_v55, %v786_v56  ;;  %v11543_v63 = vcombine.high %v779_v58, %v787_v59  ;;  %v891_v55 = vld [vmem:[#allocation9 + $0x1608] sm:$0xff]  ;;  %v11638_v59 = vcombine.low %v875_v46, %v883_v47 }
  0xfd   :  { %6511 = vmatprep.subr.bf16.mxu0 %v11429_v0  ;;  %6675 = vmatprep.subr.bf16.mxu1 %v11431_v1  ;;  %v794_v0 = vld [vmem:[#allocation9 + $0x1300] sm:$0xff]  ;;  %v899_v56 = vld [vmem:[#allocation9 + $0x1648] sm:$0xff] }
  0xfe   :  { %v802_v1 = vld [vmem:[#allocation9 + $0x1340] sm:$0xff] }
  0xff   :  { %v11556_v13 = vcombine.low %v794_v0, %v802_v1 }
 0x100   :  { %6512 = vmatpush1.bf16.msra.mxu0 %v11428_v6  ;;  %6676 = vmatpush1.bf16.msra.mxu1 %v11430_v7  ;;  %v11557_v6 = vcombine.high %v794_v0, %v802_v1  ;;  %v11559_v7 = vcombine.high %v795_v2, %v803_v3  ;;  %v907_v0 = vld [vmem:[#allocation9 + $0x1688] sm:$0xff]  ;;  %v11654_v3 = vcombine.low %v891_v55, %v899_v56 }
 0x101   :  { %6513 = vmatprep.subr.bf16.mxu0 %v11445_v8  ;;  %6677 = vmatprep.subr.bf16.mxu1 %v11447_v9  ;;  %v810_v8 = vld [vmem:[#allocation9 + $0x1380] sm:$0xff]  ;;  %v915_v1 = vld [vmem:[#allocation9 + $0x16c8] sm:$0xff] }
 0x102   :  { %v818_v9 = vld [vmem:[#allocation9 + $0x13c0] sm:$0xff] }
 0x103   :  { %v11572_v23 = vcombine.low %v810_v8, %v818_v9 }
 0x104   :  { %6514 = vmatpush1.bf16.msra.mxu0 %v11444_v16  ;;  %6678 = vmatpush1.bf16.msra.mxu1 %v11446_v17  ;;  %v11573_v16 = vcombine.high %v810_v8, %v818_v9  ;;  %v11575_v17 = vcombine.high %v811_v10, %v819_v11  ;;  %v923_v8 = vld [vmem:[#allocation9 + $0x1708] sm:$0xff]  ;;  %v11670_v11 = vcombine.low %v907_v0, %v915_v1 }
 0x105   :  { %6524 = vmatprep.subr.bf16.mxu0 %v11461_v18  ;;  %6688 = vmatprep.subr.bf16.mxu1 %v11463_v19  ;;  %v826_v18 = vld [vmem:[#allocation9 + $0x1400] sm:$0xff]  ;;  %v931_v9 = vld [vmem:[#allocation9 + $0x1748] sm:$0xff] }
 0x106   :  { %v834_v19 = vld [vmem:[#allocation9 + $0x1440] sm:$0xff] }
 0x107   :  { %6516 = vmatmul.mubr.bf16.vlgmr.msra.gmra.mrb[0].mxu0 %v12687_v53  ;;  %6680 = vmatmul.mubr.bf16.vlgmr.msra.gmra.mrb[0].mxu1 %v12687_v53  ;;  %v11588_v15 = vcombine.low %v826_v18, %v834_v19 }
 0x108   :  { %6525 = vmatpush1.bf16.msra.mxu0 %v11460_v26  ;;  %6689 = vmatpush1.bf16.msra.mxu1 %v11462_v27  ;;  %v11589_v26 = vcombine.high %v826_v18, %v834_v19  ;;  %v11591_v27 = vcombine.high %v827_v20, %v835_v21  ;;  %v939_v18 = vld [vmem:[#allocation9 + $0x1788] sm:$0xff]  ;;  %v11686_v21 = vcombine.low %v923_v8, %v931_v9 }
 0x109   :  { %6526 = vmatprep.subr.bf16.mxu0 %v11477_v28  ;;  %6690 = vmatprep.subr.bf16.mxu1 %v11479_v29  ;;  %v842_v28 = vld [vmem:[#allocation9 + $0x1480] sm:$0xff]  ;;  %v947_v19 = vld [vmem:[#allocation9 + $0x17c8] sm:$0xff] }
 0x10a   :  { %6556 = vmatprep.mubr.bf16.mxu0 %v12693_v32  ;;  %6720 = vmatprep.mubr.bf16.mxu1 %v12693_v32  ;;  %v850_v29 = vld [vmem:[#allocation9 + $0x14c0] sm:$0xff] }
 0x10b   :  { %v11604_v40 = vcombine.low %v842_v28, %v850_v29 }
 0x10c   :  { %6527 = vmatpush1.bf16.msra.mxu0 %v11476_v34  ;;  %6691 = vmatpush1.bf16.msra.mxu1 %v11478_v35  ;;  %v11605_v34 = vcombine.high %v842_v28, %v850_v29  ;;  %v11607_v35 = vcombine.high %v843_v30, %v851_v31  ;;  %v955_v28 = vld [vmem:[#allocation9 + $0x1808] sm:$0xff]  ;;  %v11702_v31 = vcombine.low %v939_v18, %v947_v19 }
 0x10d   :  { %6528 = vmatprep.subr.bf16.mxu0 %v11493_v36  ;;  %6692 = vmatprep.subr.bf16.mxu1 %v11495_v37  ;;  %v858_v36 = vld [vmem:[#allocation9 + $0x1500] sm:$0xff]  ;;  %v963_v29 = vld [vmem:[#allocation9 + $0x1848] sm:$0xff] }
 0x10e   :  { %v866_v37 = vld [vmem:[#allocation9 + $0x1540] sm:$0xff] }
 0x10f   :  { %v11620_v48 = vcombine.low %v858_v36, %v866_v37 }
 0x110   :  { %6529 = vmatpush1.bf16.msra.mxu0 %v11492_v42  ;;  %6693 = vmatpush1.bf16.msra.mxu1 %v11494_v43  ;;  %v11621_v42 = vcombine.high %v858_v36, %v866_v37  ;;  %v11623_v43 = vcombine.high %v859_v38, %v867_v39  ;;  %v12701_v36 = vcombine.low %v12689_v25, %v12689_v25  ;;  %v971_v37 = vld [vmem:[#allocation9 + $0x1888] sm:$0xff]  ;;  %v12703_v39 = vld [vmem:[#allocation6 + $0x18] sm:$0xff] }
 0x111   :  { %6530 = vmatprep.subr.bf16.mxu0 %v11509_v44  ;;  %6694 = vmatprep.subr.bf16.mxu1 %v11511_v45  ;;  %v874_v44 = vld [vmem:[#allocation9 + $0x1580] sm:$0xff]  ;;  %v979_v38 = vld [vmem:[#allocation9 + $0x18c8] sm:$0xff] }
 0x112   :  { %v882_v45 = vld [vmem:[#allocation9 + $0x15c0] sm:$0xff]  ;;  %v987_v25 = vld [vmem:[#allocation9 + $0x1908] sm:$0xff] }
 0x113   :  { %v11636_v58 = vcombine.low %v874_v44, %v882_v45 }
 0x114   :  { %6531 = vmatpush1.bf16.msra.mxu0 %v11508_v50  ;;  %6695 = vmatpush1.bf16.msra.mxu1 %v11510_v51  ;;  %v11637_v50 = vcombine.high %v874_v44, %v882_v45  ;;  %v11639_v51 = vcombine.high %v875_v46, %v883_v47  ;;  %v986_v44 = vld [vmem:[#allocation9 + $0x1900] sm:$0xff]  ;;  %v12707_v46 = vcombine.high %v12703_v39, %v12703_v39  ;;  %v995_v47 = vld [vmem:[#allocation9 + $0x1948] sm:$0xff] }
 0x115   :  { %6532 = vmatprep.subr.bf16.mxu0 %v11525_v52  ;;  %6696 = vmatprep.subr.bf16.mxu1 %v11527_v54  ;;  %v890_v52 = vld [vmem:[#allocation9 + $0x1600] sm:$0xff] }
 0x116   :  { %v898_v54 = vld [vmem:[#allocation9 + $0x1640] sm:$0xff] }
 0x117   :  { %v11652_v2 = vcombine.low %v890_v52, %v898_v54  ;;  %v994_v45 = vld [vmem:[#allocation9 + $0x1940] sm:$0xff] }
 0x118   :  { %6533 = vmatpush1.bf16.msra.mxu0 %v11524_v60  ;;  %6697 = vmatpush1.bf16.msra.mxu1 %v11526_v61  ;;  %v11653_v60 = vcombine.high %v890_v52, %v898_v54  ;;  %v11655_v61 = vcombine.high %v891_v55, %v899_v56  ;;  %v1002_v52 = vld [vmem:[#allocation9 + $0x1980] sm:$0xff]  ;;  %v1003_v55 = vld [vmem:[#allocation9 + $0x1988] sm:$0xff] }
 0x119   :  { %6534 = vmatprep.subr.bf16.mxu0 %v11541_v62  ;;  %6698 = vmatprep.subr.bf16.mxu1 %v11543_v63  ;;  %v906_v62 = vld [vmem:[#allocation9 + $0x1680] sm:$0xff]  ;;  %v1011_v56 = vld [vmem:[#allocation9 + $0x19c8] sm:$0xff] }
 0x11a   :  { %v914_v63 = vld [vmem:[#allocation9 + $0x16c0] sm:$0xff] }
 0x11b   :  { %v11668_v10 = vcombine.low %v906_v62, %v914_v63  ;;  %v1010_v54 = vld [vmem:[#allocation9 + $0x19c0] sm:$0xff] }
 0x11c   :  { %6535 = vmatpush1.bf16.msra.mxu0 %v11540_v4  ;;  %6699 = vmatpush1.bf16.msra.mxu1 %v11542_v5  ;;  %v11669_v4 = vcombine.high %v906_v62, %v914_v63  ;;  %v11671_v5 = vcombine.high %v907_v0, %v915_v1  ;;  %v1018_v62 = vld [vmem:[#allocation9 + $0x1a00] sm:$0xff]  ;;  %v1019_v0 = vld [vmem:[#allocation9 + $0x1a08] sm:$0xff] }
 0x11d   :  { %6536 = vmatprep.subr.bf16.mxu0 %v11557_v6  ;;  %6700 = vmatprep.subr.bf16.mxu1 %v11559_v7  ;;  %v922_v6 = vld [vmem:[#allocation9 + $0x1700] sm:$0xff]  ;;  %v1027_v1 = vld [vmem:[#allocation9 + $0x1a48] sm:$0xff] }
 0x11e   :  { %v930_v7 = vld [vmem:[#allocation9 + $0x1740] sm:$0xff] }
 0x11f   :  { %v11684_v20 = vcombine.low %v922_v6, %v930_v7  ;;  %v1026_v63 = vld [vmem:[#allocation9 + $0x1a40] sm:$0xff] }
 0x120   :  { %6537 = vmatpush1.bf16.msra.mxu0 %v11556_v13  ;;  %6701 = vmatpush1.bf16.msra.mxu1 %v11558_v14  ;;  %v11685_v13 = vcombine.high %v922_v6, %v930_v7  ;;  %v11687_v14 = vcombine.high %v923_v8, %v931_v9  ;;  %v1034_v6 = vld [vmem:[#allocation9 + $0x1a80] sm:$0xff]  ;;  %v1035_v8 = vld [vmem:[#allocation9 + $0x1a88] sm:$0xff] }
 0x121   :  { %6538 = vmatprep.subr.bf16.mxu0 %v11573_v16  ;;  %6702 = vmatprep.subr.bf16.mxu1 %v11575_v17  ;;  %v938_v16 = vld [vmem:[#allocation9 + $0x1780] sm:$0xff]  ;;  %v1043_v9 = vld [vmem:[#allocation9 + $0x1ac8] sm:$0xff] }
 0x122   :  { %v946_v17 = vld [vmem:[#allocation9 + $0x17c0] sm:$0xff] }
 0x123   :  { %v11700_v30 = vcombine.low %v938_v16, %v946_v17  ;;  %v1042_v7 = vld [vmem:[#allocation9 + $0x1ac0] sm:$0xff] }
 0x124   :  { %6539 = vmatpush1.bf16.msra.mxu0 %v11572_v23  ;;  %6703 = vmatpush1.bf16.msra.mxu1 %v11574_v24  ;;  %v11701_v23 = vcombine.high %v938_v16, %v946_v17  ;;  %v11703_v24 = vcombine.high %v939_v18, %v947_v19  ;;  %v1050_v16 = vld [vmem:[#allocation9 + $0x1b00] sm:$0xff]  ;;  %v1051_v18 = vld [vmem:[#allocation9 + $0x1b08] sm:$0xff] }
 0x125   :  { %6540 = vmatprep.subr.bf16.mxu0 %v11589_v26  ;;  %6704 = vmatprep.subr.bf16.mxu1 %v11591_v27  ;;  %v954_v26 = vld [vmem:[#allocation9 + $0x1800] sm:$0xff]  ;;  %v1059_v19 = vld [vmem:[#allocation9 + $0x1b48] sm:$0xff] }
 0x126   :  { %v962_v27 = vld [vmem:[#allocation9 + $0x1840] sm:$0xff] }
 0x127   :  { %v1058_v17 = vld [vmem:[#allocation9 + $0x1b40] sm:$0xff] }
 0x128   :  { %6541 = vmatpush1.bf16.msra.mxu0 %v11588_v15  ;;  %6705 = vmatpush1.bf16.msra.mxu1 %v11590_v33  ;;  %v11717_v15 = vcombine.high %v954_v26, %v962_v27  ;;  %v11719_v33 = vcombine.high %v955_v28, %v963_v29 }
 0x129   :  { %6542 = vmatprep.subr.bf16.mxu0 %v11605_v34  ;;  %6706 = vmatprep.subr.bf16.mxu1 %v11607_v35  ;;  %v970_v34 = vld [vmem:[#allocation9 + $0x1880] sm:$0xff] }
 0x12a   :  { %v978_v35 = vld [vmem:[#allocation9 + $0x18c0] sm:$0xff] }
 0x12c   :  { %6543 = vmatpush1.bf16.msra.mxu0 %v11604_v40  ;;  %6707 = vmatpush1.bf16.msra.mxu1 %v11606_v41  ;;  %v11716_v40 = vcombine.low %v954_v26, %v962_v27  ;;  %v11718_v41 = vcombine.low %v955_v28, %v963_v29  ;;  %v1066_v26 = vld [vmem:[#allocation9 + $0x1b80] sm:$0xff]  ;;  %v1067_v28 = vld [vmem:[#allocation9 + $0x1b88] sm:$0xff] }
 0x12d   :  { %6544 = vmatprep.subr.bf16.mxu0 %v11621_v42  ;;  %6708 = vmatprep.subr.bf16.mxu1 %v11623_v43  ;;  %v11733_v42 = vcombine.high %v970_v34, %v978_v35  ;;  %v11735_v43 = vcombine.high %v971_v37, %v979_v38  ;;  %v1074_v27 = vld [vmem:[#allocation9 + $0x1bc0] sm:$0xff]  ;;  %v1075_v29 = vld [vmem:[#allocation9 + $0x1bc8] sm:$0xff] }
 0x130   :  { %6545 = vmatpush1.bf16.msra.mxu0 %v11620_v48  ;;  %6709 = vmatpush1.bf16.msra.mxu1 %v11622_v49  ;;  %v11732_v48 = vcombine.low %v970_v34, %v978_v35  ;;  %v11734_v49 = vcombine.low %v971_v37, %v979_v38  ;;  %v1082_v34 = vld [vmem:[#allocation9 + $0x1c00] sm:$0xff]  ;;  %v1083_v37 = vld [vmem:[#allocation9 + $0x1c08] sm:$0xff] }
 0x131   :  { %6546 = vmatprep.subr.bf16.mxu0 %v11637_v50  ;;  %6710 = vmatprep.subr.bf16.mxu1 %v11639_v51  ;;  %v11749_v50 = vcombine.high %v986_v44, %v994_v45  ;;  %v11751_v51 = vcombine.high %v987_v25, %v995_v47  ;;  %v1090_v35 = vld [vmem:[#allocation9 + $0x1c40] sm:$0xff]  ;;  %v1091_v38 = vld [vmem:[#allocation9 + $0x1c48] sm:$0xff] }
 0x134   :  { %6547 = vmatpush1.bf16.msra.mxu0 %v11636_v58  ;;  %6711 = vmatpush1.bf16.msra.mxu1 %v11638_v59  ;;  %v11748_v58 = vcombine.low %v986_v44, %v994_v45  ;;  %v11750_v59 = vcombine.low %v987_v25, %v995_v47  ;;  %v1098_v44 = vld [vmem:[#allocation9 + $0x1c80] sm:$0xff]  ;;  %v1099_v25 = vld [vmem:[#allocation9 + $0x1c88] sm:$0xff] }
 0x135   :  { %6548 = vmatprep.subr.bf16.mxu0 %v11653_v60  ;;  %6712 = vmatprep.subr.bf16.mxu1 %v11655_v61  ;;  %v11765_v60 = vcombine.high %v1002_v52, %v1010_v54  ;;  %v11767_v61 = vcombine.high %v1003_v55, %v1011_v56  ;;  %v1106_v45 = vld [vmem:[#allocation9 + $0x1cc0] sm:$0xff]  ;;  %v1107_v47 = vld [vmem:[#allocation9 + $0x1cc8] sm:$0xff] }
 0x138   :  { %6549 = vmatpush1.bf16.msra.mxu0 %v11652_v2  ;;  %6713 = vmatpush1.bf16.msra.mxu1 %v11654_v3  ;;  %v11764_v2 = vcombine.low %v1002_v52, %v1010_v54  ;;  %v11766_v3 = vcombine.low %v1003_v55, %v1011_v56  ;;  %v1114_v52 = vld [vmem:[#allocation9 + $0x1d00] sm:$0xff]  ;;  %v1115_v55 = vld [vmem:[#allocation9 + $0x1d08] sm:$0xff] }
 0x139   :  { %6550 = vmatprep.subr.bf16.mxu0 %v11669_v4  ;;  %6714 = vmatprep.subr.bf16.mxu1 %v11671_v5  ;;  %v11781_v4 = vcombine.high %v1018_v62, %v1026_v63  ;;  %v11783_v5 = vcombine.high %v1019_v0, %v1027_v1  ;;  %v1122_v54 = vld [vmem:[#allocation9 + $0x1d40] sm:$0xff]  ;;  %v1123_v56 = vld [vmem:[#allocation9 + $0x1d48] sm:$0xff] }
 0x13c   :  { %6551 = vmatpush1.bf16.msra.mxu0 %v11668_v10  ;;  %6715 = vmatpush1.bf16.msra.mxu1 %v11670_v11  ;;  %v11780_v10 = vcombine.low %v1018_v62, %v1026_v63  ;;  %v11782_v11 = vcombine.low %v1019_v0, %v1027_v1  ;;  %v1130_v62 = vld [vmem:[#allocation9 + $0x1d80] sm:$0xff]  ;;  %v1131_v0 = vld [vmem:[#allocation9 + $0x1d88] sm:$0xff] }
 0x13d   :  { %6552 = vmatprep.subr.bf16.mxu0 %v11685_v13  ;;  %6716 = vmatprep.subr.bf16.mxu1 %v11687_v14  ;;  %v11797_v13 = vcombine.high %v1034_v6, %v1042_v7  ;;  %v11799_v14 = vcombine.high %v1035_v8, %v1043_v9  ;;  %v1138_v63 = vld [vmem:[#allocation9 + $0x1dc0] sm:$0xff]  ;;  %v1139_v1 = vld [vmem:[#allocation9 + $0x1dc8] sm:$0xff] }
 0x140   :  { %6553 = vmatpush1.bf16.msra.mxu0 %v11684_v20  ;;  %6717 = vmatpush1.bf16.msra.mxu1 %v11686_v21  ;;  %v11796_v20 = vcombine.low %v1034_v6, %v1042_v7  ;;  %v11798_v21 = vcombine.low %v1035_v8, %v1043_v9  ;;  %v1146_v6 = vld [vmem:[#allocation9 + $0x1e00] sm:$0xff]  ;;  %v1147_v8 = vld [vmem:[#allocation9 + $0x1e08] sm:$0xff] }
 0x141   :  { %6554 = vmatprep.subr.bf16.mxu0 %v11701_v23  ;;  %6718 = vmatprep.subr.bf16.mxu1 %v11703_v24  ;;  %v11813_v23 = vcombine.high %v1050_v16, %v1058_v17  ;;  %v11815_v24 = vcombine.high %v1051_v18, %v1059_v19  ;;  %v1154_v7 = vld [vmem:[#allocation9 + $0x1e40] sm:$0xff]  ;;  %v1155_v9 = vld [vmem:[#allocation9 + $0x1e48] sm:$0xff] }
 0x144   :  { %6555 = vmatpush1.bf16.msra.mxu0 %v11700_v30  ;;  %6719 = vmatpush1.bf16.msra.mxu1 %v11702_v31  ;;  %v11812_v30 = vcombine.low %v1050_v16, %v1058_v17  ;;  %v11814_v31 = vcombine.low %v1051_v18, %v1059_v19  ;;  %v1162_v16 = vld [vmem:[#allocation9 + $0x1e80] sm:$0xff]  ;;  %v1163_v18 = vld [vmem:[#allocation9 + $0x1e88] sm:$0xff] }
 0x145   :  { %6565 = vmatprep.subr.bf16.mxu0 %v11717_v15  ;;  %6729 = vmatprep.subr.bf16.mxu1 %v11719_v33  ;;  %v11829_v15 = vcombine.high %v1066_v26, %v1074_v27  ;;  %v11831_v33 = vcombine.high %v1067_v28, %v1075_v29  ;;  %v1170_v17 = vld [vmem:[#allocation9 + $0x1ec0] sm:$0xff]  ;;  %v1171_v19 = vld [vmem:[#allocation9 + $0x1ec8] sm:$0xff] }
 0x147   :  { %6557 = vmatmul.mubr.bf16.vlgmr.msra.gmra.mrb[0].mxu0 %v12701_v36  ;;  %6721 = vmatmul.mubr.bf16.vlgmr.msra.gmra.mrb[0].mxu1 %v12701_v36 }
 0x148   :  { %6566 = vmatpush1.bf16.msra.mxu0 %v11716_v40  ;;  %6730 = vmatpush1.bf16.msra.mxu1 %v11718_v41  ;;  %v11828_v40 = vcombine.low %v1066_v26, %v1074_v27  ;;  %v11830_v41 = vcombine.low %v1067_v28, %v1075_v29  ;;  %v1178_v26 = vld [vmem:[#allocation9 + $0x1f00] sm:$0xff]  ;;  %v1179_v28 = vld [vmem:[#allocation9 + $0x1f08] sm:$0xff] }
 0x149   :  { %6567 = vmatprep.subr.bf16.mxu0 %v11733_v42  ;;  %6731 = vmatprep.subr.bf16.mxu1 %v11735_v43  ;;  %v11845_v42 = vcombine.high %v1082_v34, %v1090_v35  ;;  %v11847_v43 = vcombine.high %v1083_v37, %v1091_v38  ;;  %v1186_v27 = vld [vmem:[#allocation9 + $0x1f40] sm:$0xff]  ;;  %v1187_v29 = vld [vmem:[#allocation9 + $0x1f48] sm:$0xff] }
 0x14a   :  { %6597 = vmatprep.mubr.bf16.mxu0 %v12707_v46  ;;  %6761 = vmatprep.mubr.bf16.mxu1 %v12707_v46 }
 0x14c   :  { %6568 = vmatpush1.bf16.msra.mxu0 %v11732_v48  ;;  %6732 = vmatpush1.bf16.msra.mxu1 %v11734_v49  ;;  %v11844_v48 = vcombine.low %v1082_v34, %v1090_v35  ;;  %v11846_v49 = vcombine.low %v1083_v37, %v1091_v38  ;;  %v1194_v34 = vld [vmem:[#allocation9 + $0x1f80] sm:$0xff]  ;;  %v1195_v37 = vld [vmem:[#allocation9 + $0x1f88] sm:$0xff] }
 0x14d   :  { %6569 = vmatprep.subr.bf16.mxu0 %v11749_v50  ;;  %6733 = vmatprep.subr.bf16.mxu1 %v11751_v51  ;;  %v11861_v50 = vcombine.high %v1098_v44, %v1106_v45  ;;  %v11863_v51 = vcombine.high %v1099_v25, %v1107_v47  ;;  %v1202_v35 = vld [vmem:[#allocation9 + $0x1fc0] sm:$0xff]  ;;  %v1203_v38 = vld [vmem:[#allocation9 + $0x1fc8] sm:$0xff] }
 0x150   :  { %6570 = vmatpush1.bf16.msra.mxu0 %v11748_v58  ;;  %6734 = vmatpush1.bf16.msra.mxu1 %v11750_v59  ;;  %v11860_v58 = vcombine.low %v1098_v44, %v1106_v45  ;;  %v11862_v59 = vcombine.low %v1099_v25, %v1107_v47  ;;  %v188_v44 = vld [vmem:[#allocation9 + $0x10] sm:$0xff]  ;;  %v189_v25 = vld [vmem:[#allocation9 + $0x18] sm:$0xff] }
 0x151   :  { %6571 = vmatprep.subr.bf16.mxu0 %v11765_v60  ;;  %6735 = vmatprep.subr.bf16.mxu1 %v11767_v61  ;;  %v11877_v60 = vcombine.high %v1114_v52, %v1122_v54  ;;  %v11879_v61 = vcombine.high %v1115_v55, %v1123_v56  ;;  %v196_v45 = vld [vmem:[#allocation9 + $0x50] sm:$0xff]  ;;  %v197_v47 = vld [vmem:[#allocation9 + $0x58] sm:$0xff] }
 0x154   :  { %6572 = vmatpush1.bf16.msra.mxu0 %v11764_v2  ;;  %6736 = vmatpush1.bf16.msra.mxu1 %v11766_v3  ;;  %v11876_v2 = vcombine.low %v1114_v52, %v1122_v54  ;;  %v11878_v3 = vcombine.low %v1115_v55, %v1123_v56  ;;  %v204_v52 = vld [vmem:[#allocation9 + $0x90] sm:$0xff]  ;;  %v12715_v55 = vcombine.low %v12703_v39, %v12703_v39  ;;  %v205_v56 = vld [vmem:[#allocation9 + $0x98] sm:$0xff] }
 0x155   :  { %6573 = vmatprep.subr.bf16.mxu0 %v11781_v4  ;;  %6737 = vmatprep.subr.bf16.mxu1 %v11783_v5  ;;  %v11893_v4 = vcombine.high %v1130_v62, %v1138_v63  ;;  %v11895_v5 = vcombine.high %v1131_v0, %v1139_v1  ;;  %v212_v54 = vld [vmem:[#allocation9 + $0xd0] sm:$0xff] }
 0x156   :  { %v10968_v39 = vcombine.low %v204_v52, %v212_v54 }
 0x158   :  { %6574 = vmatpush1.bf16.msra.mxu0 %v11780_v10  ;;  %6738 = vmatpush1.bf16.msra.mxu1 %v11782_v11  ;;  %v11892_v10 = vcombine.low %v1130_v62, %v1138_v63  ;;  %v11894_v11 = vcombine.low %v1131_v0, %v1139_v1  ;;  %v220_v63 = vld [vmem:[#allocation9 + $0x110] sm:$0xff]  ;;  %v221_v1 = vld [vmem:[#allocation9 + $0x118] sm:$0xff] }
 0x159   :  { %6575 = vmatprep.subr.bf16.mxu0 %v11797_v13  ;;  %6739 = vmatprep.subr.bf16.mxu1 %v11799_v14  ;;  %v11909_v13 = vcombine.high %v1146_v6, %v1154_v7  ;;  %v11911_v14 = vcombine.high %v1147_v8, %v1155_v9  ;;  %v228_v0 = vld [vmem:[#allocation9 + $0x150] sm:$0xff] }
 0x15c   :  { %6576 = vmatpush1.bf16.msra.mxu0 %v11796_v20  ;;  %6740 = vmatpush1.bf16.msra.mxu1 %v11798_v21  ;;  %v11908_v20 = vcombine.low %v1146_v6, %v1154_v7  ;;  %v11910_v21 = vcombine.low %v1147_v8, %v1155_v9  ;;  %v236_v6 = vld [vmem:[#allocation9 + $0x190] sm:$0xff]  ;;  %v237_v8 = vld [vmem:[#allocation9 + $0x198] sm:$0xff] }
 0x15d   :  { %6577 = vmatprep.subr.bf16.mxu0 %v11813_v23  ;;  %6741 = vmatprep.subr.bf16.mxu1 %v11815_v24  ;;  %v11925_v23 = vcombine.high %v1162_v16, %v1170_v17  ;;  %v11927_v24 = vcombine.high %v1163_v18, %v1171_v19  ;;  %v244_v7 = vld [vmem:[#allocation9 + $0x1d0] sm:$0xff]  ;;  %v245_v9 = vld [vmem:[#allocation9 + $0x1d8] sm:$0xff] }
 0x160   :  { %6578 = vmatpush1.bf16.msra.mxu0 %v11812_v30  ;;  %6742 = vmatpush1.bf16.msra.mxu1 %v11814_v31  ;;  %v11924_v30 = vcombine.low %v1162_v16, %v1170_v17  ;;  %v11926_v31 = vcombine.low %v1163_v18, %v1171_v19  ;;  %v252_v16 = vld [vmem:[#allocation9 + $0x210] sm:$0xff]  ;;  %v253_v18 = vld [vmem:[#allocation9 + $0x218] sm:$0xff] }
 0x161   :  { %6579 = vmatprep.subr.bf16.mxu0 %v11829_v15  ;;  %6743 = vmatprep.subr.bf16.mxu1 %v11831_v33  ;;  %v11941_v15 = vcombine.high %v1178_v26, %v1186_v27  ;;  %v11943_v33 = vcombine.high %v1179_v28, %v1187_v29  ;;  %v260_v17 = vld [vmem:[#allocation9 + $0x250] sm:$0xff]  ;;  %v261_v19 = vld [vmem:[#allocation9 + $0x258] sm:$0xff] }
 0x164   :  { %6580 = vmatpush1.bf16.msra.mxu0 %v11828_v40  ;;  %6744 = vmatpush1.bf16.msra.mxu1 %v11830_v41  ;;  %v11940_v40 = vcombine.low %v1178_v26, %v1186_v27  ;;  %v11942_v41 = vcombine.low %v1179_v28, %v1187_v29  ;;  %v268_v26 = vld [vmem:[#allocation9 + $0x290] sm:$0xff]  ;;  %v269_v28 = vld [vmem:[#allocation9 + $0x298] sm:$0xff] }
 0x165   :  { %6581 = vmatprep.subr.bf16.mxu0 %v11845_v42  ;;  %6745 = vmatprep.subr.bf16.mxu1 %v11847_v43  ;;  %v11957_v42 = vcombine.high %v1194_v34, %v1202_v35  ;;  %v11959_v43 = vcombine.high %v1195_v37, %v1203_v38  ;;  %v276_v27 = vld [vmem:[#allocation9 + $0x2d0] sm:$0xff]  ;;  %v277_v29 = vld [vmem:[#allocation9 + $0x2d8] sm:$0xff] }
 0x168   :  { %6582 = vmatpush1.bf16.msra.mxu0 %v11844_v48  ;;  %6746 = vmatpush1.bf16.msra.mxu1 %v11846_v49  ;;  %v11956_v48 = vcombine.low %v1194_v34, %v1202_v35  ;;  %v11958_v49 = vcombine.low %v1195_v37, %v1203_v38  ;;  %v284_v34 = vld [vmem:[#allocation9 + $0x310] sm:$0xff]  ;;  %v285_v37 = vld [vmem:[#allocation9 + $0x318] sm:$0xff] }
 0x169   :  { %6583 = vmatprep.subr.bf16.mxu0 %v11861_v50  ;;  %6747 = vmatprep.subr.bf16.mxu1 %v11863_v51  ;;  %v10953_v50 = vcombine.high %v188_v44, %v196_v45  ;;  %v10955_v51 = vcombine.high %v189_v25, %v197_v47  ;;  %v292_v35 = vld [vmem:[#allocation9 + $0x350] sm:$0xff]  ;;  %v293_v38 = vld [vmem:[#allocation9 + $0x358] sm:$0xff] }
 0x16c   :  { %6584 = vmatpush1.bf16.msra.mxu0 %v11860_v58  ;;  %6748 = vmatpush1.bf16.msra.mxu1 %v11862_v59  ;;  %v213_v58 = vld [vmem:[#allocation9 + $0xd8] sm:$0xff]  ;;  %v10952_v59 = vcombine.low %v188_v44, %v196_v45  ;;  %v300_v44 = vld [vmem:[#allocation9 + $0x390] sm:$0xff] }
 0x16d   :  { %6585 = vmatprep.subr.bf16.mxu0 %v11877_v60  ;;  %6749 = vmatprep.subr.bf16.mxu1 %v11879_v61  ;;  %v10954_v60 = vcombine.low %v189_v25, %v197_v47  ;;  %v10969_v61 = vcombine.high %v204_v52, %v212_v54  ;;  %v10971_v62 = vcombine.high %v205_v56, %v213_v58  ;;  %v308_v45 = vld [vmem:[#allocation9 + $0x3d0] sm:$0xff]  ;;  %v301_v25 = vld [vmem:[#allocation9 + $0x398] sm:$0xff] }
 0x16e   :  { %v309_v47 = vld [vmem:[#allocation9 + $0x3d8] sm:$0xff]  ;;  %v316_v52 = vld [vmem:[#allocation9 + $0x410] sm:$0xff] }
 0x16f   :  { %v324_v54 = vld [vmem:[#allocation9 + $0x450] sm:$0xff] }
 0x170   :  { %6586 = vmatpush1.bf16.msra.mxu0 %v11876_v2  ;;  %6750 = vmatpush1.bf16.msra.mxu1 %v11878_v3  ;;  %v229_v2 = vld [vmem:[#allocation9 + $0x158] sm:$0xff]  ;;  %v10970_v3 = vcombine.low %v205_v56, %v213_v58 }
 0x171   :  { %6587 = vmatprep.subr.bf16.mxu0 %v11893_v4  ;;  %6751 = vmatprep.subr.bf16.mxu1 %v11895_v5  ;;  %v10985_v4 = vcombine.high %v220_v63, %v228_v0  ;;  %v10987_v5 = vcombine.high %v221_v1, %v229_v2  ;;  %v317_v56 = vld [vmem:[#allocation9 + $0x418] sm:$0xff] }
 0x172   :  { %v325_v58 = vld [vmem:[#allocation9 + $0x458] sm:$0xff] }
 0x174   :  { %6588 = vmatpush1.bf16.msra.mxu0 %v11892_v10  ;;  %6752 = vmatpush1.bf16.msra.mxu1 %v11894_v11  ;;  %v10984_v10 = vcombine.low %v220_v63, %v228_v0  ;;  %v10986_v11 = vcombine.low %v221_v1, %v229_v2  ;;  %v332_v63 = vld [vmem:[#allocation9 + $0x490] sm:$0xff]  ;;  %v333_v1 = vld [vmem:[#allocation9 + $0x498] sm:$0xff] }
 0x175   :  { %6589 = vmatprep.subr.bf16.mxu0 %v11909_v13  ;;  %6753 = vmatprep.subr.bf16.mxu1 %v11911_v14  ;;  %v11001_v13 = vcombine.high %v236_v6, %v244_v7  ;;  %v11003_v14 = vcombine.high %v237_v8, %v245_v9  ;;  %v340_v0 = vld [vmem:[#allocation9 + $0x4d0] sm:$0xff]  ;;  %v341_v2 = vld [vmem:[#allocation9 + $0x4d8] sm:$0xff] }
 0x178   :  { %6590 = vmatpush1.bf16.msra.mxu0 %v11908_v20  ;;  %6754 = vmatpush1.bf16.msra.mxu1 %v11910_v21  ;;  %v11000_v20 = vcombine.low %v236_v6, %v244_v7  ;;  %v11002_v21 = vcombine.low %v237_v8, %v245_v9  ;;  %v348_v6 = vld [vmem:[#allocation9 + $0x510] sm:$0xff]  ;;  %v349_v8 = vld [vmem:[#allocation9 + $0x518] sm:$0xff] }
 0x179   :  { %6591 = vmatprep.subr.bf16.mxu0 %v11925_v23  ;;  %6755 = vmatprep.subr.bf16.mxu1 %v11927_v24  ;;  %v11017_v23 = vcombine.high %v252_v16, %v260_v17  ;;  %v11019_v24 = vcombine.high %v253_v18, %v261_v19  ;;  %v356_v7 = vld [vmem:[#allocation9 + $0x550] sm:$0xff]  ;;  %v357_v9 = vld [vmem:[#allocation9 + $0x558] sm:$0xff] }
 0x17c   :  { %6592 = vmatpush1.bf16.msra.mxu0 %v11924_v30  ;;  %6756 = vmatpush1.bf16.msra.mxu1 %v11926_v31  ;;  %v11016_v30 = vcombine.low %v252_v16, %v260_v17  ;;  %v11018_v31 = vcombine.low %v253_v18, %v261_v19  ;;  %v364_v16 = vld [vmem:[#allocation9 + $0x590] sm:$0xff]  ;;  %v365_v18 = vld [vmem:[#allocation9 + $0x598] sm:$0xff] }
 0x17d   :  { %6593 = vmatprep.subr.bf16.mxu0 %v11941_v15  ;;  %6757 = vmatprep.subr.bf16.mxu1 %v11943_v33  ;;  %v11033_v15 = vcombine.high %v268_v26, %v276_v27  ;;  %v11035_v33 = vcombine.high %v269_v28, %v277_v29  ;;  %v372_v17 = vld [vmem:[#allocation9 + $0x5d0] sm:$0xff]  ;;  %v373_v19 = vld [vmem:[#allocation9 + $0x5d8] sm:$0xff] }
 0x180   :  { %6594 = vmatpush1.bf16.msra.mxu0 %v11940_v40  ;;  %6758 = vmatpush1.bf16.msra.mxu1 %v11942_v41  ;;  %v11032_v40 = vcombine.low %v268_v26, %v276_v27  ;;  %v11034_v41 = vcombine.low %v269_v28, %v277_v29  ;;  %v380_v26 = vld [vmem:[#allocation9 + $0x610] sm:$0xff]  ;;  %v381_v28 = vld [vmem:[#allocation9 + $0x618] sm:$0xff] }
 0x181   :  { %6595 = vmatprep.subr.bf16.mxu0 %v11957_v42  ;;  %6759 = vmatprep.subr.bf16.mxu1 %v11959_v43  ;;  %v11049_v42 = vcombine.high %v284_v34, %v292_v35  ;;  %v11051_v43 = vcombine.high %v285_v37, %v293_v38  ;;  %v388_v27 = vld [vmem:[#allocation9 + $0x650] sm:$0xff]  ;;  %v389_v29 = vld [vmem:[#allocation9 + $0x658] sm:$0xff] }
 0x184   :  { %6596 = vmatpush1.bf16.msra.mxu0 %v11956_v48  ;;  %6760 = vmatpush1.bf16.msra.mxu1 %v11958_v49  ;;  %v11048_v48 = vcombine.low %v284_v34, %v292_v35  ;;  %v11050_v49 = vcombine.low %v285_v37, %v293_v38  ;;  %v396_v34 = vld [vmem:[#allocation9 + $0x690] sm:$0xff]  ;;  %v397_v37 = vld [vmem:[#allocation9 + $0x698] sm:$0xff] }
 0x185   :  { %6770 = vmatprep.subr.bf16.mxu0 %v10953_v50  ;;  %6934 = vmatprep.subr.bf16.mxu1 %v10955_v51  ;;  %v11065_v50 = vcombine.high %v300_v44, %v308_v45  ;;  %v11067_v51 = vcombine.high %v301_v25, %v309_v47  ;;  %v404_v35 = vld [vmem:[#allocation9 + $0x6d0] sm:$0xff]  ;;  %v405_v38 = vld [vmem:[#allocation9 + $0x6d8] sm:$0xff] }
 0x187   :  { %6598 = vmatmul.mubr.bf16.vlgmr.msra.gmra.mrb[0].mxu0 %v12715_v55  ;;  %6762 = vmatmul.mubr.bf16.vlgmr.msra.gmra.mrb[0].mxu1 %v12715_v55 }
 0x188   :  { %6771 = vmatpush1.bf16.msra.mxu0 %v10952_v59  ;;  %6935 = vmatpush1.bf16.msra.mxu1 %v10954_v60  ;;  %v11064_v59 = vcombine.low %v300_v44, %v308_v45  ;;  %v11066_v60 = vcombine.low %v301_v25, %v309_v47  ;;  %v412_v44 = vld [vmem:[#allocation9 + $0x710] sm:$0xff]  ;;  %v413_v25 = vld [vmem:[#allocation9 + $0x718] sm:$0xff] }
 0x189   :  { %6772 = vmatprep.subr.bf16.mxu0 %v10969_v61  ;;  %6936 = vmatprep.subr.bf16.mxu1 %v10971_v62  ;;  %v11081_v61 = vcombine.high %v316_v52, %v324_v54  ;;  %v11083_v62 = vcombine.high %v317_v56, %v325_v58  ;;  %v420_v45 = vld [vmem:[#allocation9 + $0x750] sm:$0xff]  ;;  %v421_v47 = vld [vmem:[#allocation9 + $0x758] sm:$0xff] }
 0x18a   :  { %6802 = vmatprep.mubr.bf16.mxu0 %v12667_v57  ;;  %6966 = vmatprep.mubr.bf16.mxu1 %v12667_v57 }
 0x18c   :  { %6773 = vmatpush1.bf16.msra.mxu0 %v10968_v39  ;;  %6937 = vmatpush1.bf16.msra.mxu1 %v10970_v3  ;;  %v11080_v39 = vcombine.low %v316_v52, %v324_v54  ;;  %v11082_v3 = vcombine.low %v317_v56, %v325_v58  ;;  %v428_v52 = vld [vmem:[#allocation9 + $0x790] sm:$0xff]  ;;  %v429_v56 = vld [vmem:[#allocation9 + $0x798] sm:$0xff] }
 0x18d   :  { %6774 = vmatprep.subr.bf16.mxu0 %v10985_v4  ;;  %6938 = vmatprep.subr.bf16.mxu1 %v10987_v5  ;;  %v11097_v4 = vcombine.high %v332_v63, %v340_v0  ;;  %v11099_v5 = vcombine.high %v333_v1, %v341_v2  ;;  %v436_v54 = vld [vmem:[#allocation9 + $0x7d0] sm:$0xff]  ;;  %v437_v58 = vld [vmem:[#allocation9 + $0x7d8] sm:$0xff] }
 0x190   :  { %6775 = vmatpush1.bf16.msra.mxu0 %v10984_v10  ;;  %6939 = vmatpush1.bf16.msra.mxu1 %v10986_v11  ;;  %v11096_v10 = vcombine.low %v332_v63, %v340_v0  ;;  %v11098_v11 = vcombine.low %v333_v1, %v341_v2  ;;  %v444_v63 = vld [vmem:[#allocation9 + $0x810] sm:$0xff]  ;;  %v445_v1 = vld [vmem:[#allocation9 + $0x818] sm:$0xff] }
 0x191   :  { %6776 = vmatprep.subr.bf16.mxu0 %v11001_v13  ;;  %6940 = vmatprep.subr.bf16.mxu1 %v11003_v14  ;;  %v11113_v13 = vcombine.high %v348_v6, %v356_v7  ;;  %v11115_v14 = vcombine.high %v349_v8, %v357_v9  ;;  %v452_v0 = vld [vmem:[#allocation9 + $0x850] sm:$0xff]  ;;  %v453_v2 = vld [vmem:[#allocation9 + $0x858] sm:$0xff] }
 0x194   :  { %6777 = vmatpush1.bf16.msra.mxu0 %v11000_v20  ;;  %6941 = vmatpush1.bf16.msra.mxu1 %v11002_v21  ;;  %v11112_v20 = vcombine.low %v348_v6, %v356_v7  ;;  %v11114_v21 = vcombine.low %v349_v8, %v357_v9  ;;  %v460_v6 = vld [vmem:[#allocation9 + $0x890] sm:$0xff]  ;;  %v461_v8 = vld [vmem:[#allocation9 + $0x898] sm:$0xff] }
 0x195   :  { %6778 = vmatprep.subr.bf16.mxu0 %v11017_v23  ;;  %6942 = vmatprep.subr.bf16.mxu1 %v11019_v24  ;;  %v11129_v23 = vcombine.high %v364_v16, %v372_v17  ;;  %v11131_v24 = vcombine.high %v365_v18, %v373_v19  ;;  %v468_v7 = vld [vmem:[#allocation9 + $0x8d0] sm:$0xff]  ;;  %v469_v9 = vld [vmem:[#allocation9 + $0x8d8] sm:$0xff] }
 0x198   :  { %6779 = vmatpush1.bf16.msra.mxu0 %v11016_v30  ;;  %6943 = vmatpush1.bf16.msra.mxu1 %v11018_v31  ;;  %v11128_v30 = vcombine.low %v364_v16, %v372_v17  ;;  %v11130_v31 = vcombine.low %v365_v18, %v373_v19  ;;  %v476_v16 = vld [vmem:[#allocation9 + $0x910] sm:$0xff]  ;;  %v477_v18 = vld [vmem:[#allocation9 + $0x918] sm:$0xff] }
 0x199   :  { %6780 = vmatprep.subr.bf16.mxu0 %v11033_v15  ;;  %6944 = vmatprep.subr.bf16.mxu1 %v11035_v33  ;;  %v11145_v15 = vcombine.high %v380_v26, %v388_v27  ;;  %v11147_v33 = vcombine.high %v381_v28, %v389_v29  ;;  %v484_v17 = vld [vmem:[#allocation9 + $0x950] sm:$0xff]  ;;  %v485_v19 = vld [vmem:[#allocation9 + $0x958] sm:$0xff] }
 0x19c   :  { %6781 = vmatpush1.bf16.msra.mxu0 %v11032_v40  ;;  %6945 = vmatpush1.bf16.msra.mxu1 %v11034_v41  ;;  %v11144_v40 = vcombine.low %v380_v26, %v388_v27  ;;  %v11146_v41 = vcombine.low %v381_v28, %v389_v29  ;;  %v492_v26 = vld [vmem:[#allocation9 + $0x990] sm:$0xff]  ;;  %v493_v28 = vld [vmem:[#allocation9 + $0x998] sm:$0xff] }
 0x19d   :  { %6782 = vmatprep.subr.bf16.mxu0 %v11049_v42  ;;  %6946 = vmatprep.subr.bf16.mxu1 %v11051_v43  ;;  %v11161_v42 = vcombine.high %v396_v34, %v404_v35  ;;  %v11163_v43 = vcombine.high %v397_v37, %v405_v38  ;;  %v500_v27 = vld [vmem:[#allocation9 + $0x9d0] sm:$0xff]  ;;  %v501_v29 = vld [vmem:[#allocation9 + $0x9d8] sm:$0xff] }
 0x1a0   :  { %6783 = vmatpush1.bf16.msra.mxu0 %v11048_v48  ;;  %6947 = vmatpush1.bf16.msra.mxu1 %v11050_v49  ;;  %v11160_v48 = vcombine.low %v396_v34, %v404_v35  ;;  %v11162_v49 = vcombine.low %v397_v37, %v405_v38  ;;  %v508_v34 = vld [vmem:[#allocation9 + $0xa10] sm:$0xff]  ;;  %v509_v37 = vld [vmem:[#allocation9 + $0xa18] sm:$0xff] }
 0x1a1   :  { %6784 = vmatprep.subr.bf16.mxu0 %v11065_v50  ;;  %6948 = vmatprep.subr.bf16.mxu1 %v11067_v51  ;;  %v11177_v50 = vcombine.high %v412_v44, %v420_v45  ;;  %v11179_v51 = vcombine.high %v413_v25, %v421_v47  ;;  %v516_v35 = vld [vmem:[#allocation9 + $0xa50] sm:$0xff]  ;;  %v517_v38 = vld [vmem:[#allocation9 + $0xa58] sm:$0xff] }
 0x1a4   :  { %6785 = vmatpush1.bf16.msra.mxu0 %v11064_v59  ;;  %6949 = vmatpush1.bf16.msra.mxu1 %v11066_v60  ;;  %v11176_v59 = vcombine.low %v412_v44, %v420_v45  ;;  %v11178_v60 = vcombine.low %v413_v25, %v421_v47  ;;  %v524_v44 = vld [vmem:[#allocation9 + $0xa90] sm:$0xff]  ;;  %v525_v25 = vld [vmem:[#allocation9 + $0xa98] sm:$0xff] }
 0x1a5   :  { %6786 = vmatprep.subr.bf16.mxu0 %v11081_v61  ;;  %6950 = vmatprep.subr.bf16.mxu1 %v11083_v62  ;;  %v11193_v61 = vcombine.high %v428_v52, %v436_v54  ;;  %v11195_v62 = vcombine.high %v429_v56, %v437_v58  ;;  %v532_v45 = vld [vmem:[#allocation9 + $0xad0] sm:$0xff]  ;;  %v533_v47 = vld [vmem:[#allocation9 + $0xad8] sm:$0xff] }
 0x1a8   :  { %6787 = vmatpush1.bf16.msra.mxu0 %v11080_v39  ;;  %6951 = vmatpush1.bf16.msra.mxu1 %v11082_v3  ;;  %v11192_v39 = vcombine.low %v428_v52, %v436_v54  ;;  %v11194_v3 = vcombine.low %v429_v56, %v437_v58  ;;  %v540_v52 = vld [vmem:[#allocation9 + $0xb10] sm:$0xff]  ;;  %v541_v56 = vld [vmem:[#allocation9 + $0xb18] sm:$0xff] }
 0x1a9   :  { %6788 = vmatprep.subr.bf16.mxu0 %v11097_v4  ;;  %6952 = vmatprep.subr.bf16.mxu1 %v11099_v5  ;;  %v11209_v4 = vcombine.high %v444_v63, %v452_v0  ;;  %v11211_v5 = vcombine.high %v445_v1, %v453_v2  ;;  %v548_v54 = vld [vmem:[#allocation9 + $0xb50] sm:$0xff]  ;;  %v549_v58 = vld [vmem:[#allocation9 + $0xb58] sm:$0xff] }
 0x1ac   :  { %6789 = vmatpush1.bf16.msra.mxu0 %v11096_v10  ;;  %6953 = vmatpush1.bf16.msra.mxu1 %v11098_v11  ;;  %v11208_v10 = vcombine.low %v444_v63, %v452_v0  ;;  %v11210_v11 = vcombine.low %v445_v1, %v453_v2  ;;  %v556_v63 = vld [vmem:[#allocation9 + $0xb90] sm:$0xff]  ;;  %v557_v1 = vld [vmem:[#allocation9 + $0xb98] sm:$0xff] }
 0x1ad   :  { %6790 = vmatprep.subr.bf16.mxu0 %v11113_v13  ;;  %6954 = vmatprep.subr.bf16.mxu1 %v11115_v14  ;;  %v11225_v13 = vcombine.high %v460_v6, %v468_v7  ;;  %v11227_v14 = vcombine.high %v461_v8, %v469_v9  ;;  %v564_v0 = vld [vmem:[#allocation9 + $0xbd0] sm:$0xff]  ;;  %v565_v2 = vld [vmem:[#allocation9 + $0xbd8] sm:$0xff] }
 0x1b0   :  { %6791 = vmatpush1.bf16.msra.mxu0 %v11112_v20  ;;  %6955 = vmatpush1.bf16.msra.mxu1 %v11114_v21  ;;  %v11224_v20 = vcombine.low %v460_v6, %v468_v7  ;;  %v11226_v21 = vcombine.low %v461_v8, %v469_v9  ;;  %v572_v6 = vld [vmem:[#allocation9 + $0xc10] sm:$0xff]  ;;  %v573_v8 = vld [vmem:[#allocation9 + $0xc18] sm:$0xff] }
 0x1b1   :  { %6792 = vmatprep.subr.bf16.mxu0 %v11129_v23  ;;  %6956 = vmatprep.subr.bf16.mxu1 %v11131_v24  ;;  %v11241_v23 = vcombine.high %v476_v16, %v484_v17  ;;  %v11243_v24 = vcombine.high %v477_v18, %v485_v19  ;;  %v580_v7 = vld [vmem:[#allocation9 + $0xc50] sm:$0xff]  ;;  %v581_v9 = vld [vmem:[#allocation9 + $0xc58] sm:$0xff] }
 0x1b4   :  { %6793 = vmatpush1.bf16.msra.mxu0 %v11128_v30  ;;  %6957 = vmatpush1.bf16.msra.mxu1 %v11130_v31  ;;  %v11240_v30 = vcombine.low %v476_v16, %v484_v17  ;;  %v11242_v31 = vcombine.low %v477_v18, %v485_v19  ;;  %v588_v16 = vld [vmem:[#allocation9 + $0xc90] sm:$0xff]  ;;  %v589_v18 = vld [vmem:[#allocation9 + $0xc98] sm:$0xff] }
 0x1b5   :  { %6794 = vmatprep.subr.bf16.mxu0 %v11145_v15  ;;  %6958 = vmatprep.subr.bf16.mxu1 %v11147_v33  ;;  %v11257_v15 = vcombine.high %v492_v26, %v500_v27  ;;  %v11259_v33 = vcombine.high %v493_v28, %v501_v29  ;;  %v596_v17 = vld [vmem:[#allocation9 + $0xcd0] sm:$0xff]  ;;  %v597_v19 = vld [vmem:[#allocation9 + $0xcd8] sm:$0xff] }
 0x1b8   :  { %6795 = vmatpush1.bf16.msra.mxu0 %v11144_v40  ;;  %6959 = vmatpush1.bf16.msra.mxu1 %v11146_v41  ;;  %v11256_v40 = vcombine.low %v492_v26, %v500_v27  ;;  %v11258_v41 = vcombine.low %v493_v28, %v501_v29  ;;  %v604_v26 = vld [vmem:[#allocation9 + $0xd10] sm:$0xff]  ;;  %v605_v28 = vld [vmem:[#allocation9 + $0xd18] sm:$0xff] }
 0x1b9   :  { %6796 = vmatprep.subr.bf16.mxu0 %v11161_v42  ;;  %6960 = vmatprep.subr.bf16.mxu1 %v11163_v43  ;;  %v11273_v42 = vcombine.high %v508_v34, %v516_v35  ;;  %v11275_v43 = vcombine.high %v509_v37, %v517_v38  ;;  %v612_v27 = vld [vmem:[#allocation9 + $0xd50] sm:$0xff]  ;;  %v613_v29 = vld [vmem:[#allocation9 + $0xd58] sm:$0xff] }
 0x1bc   :  { %6797 = vmatpush1.bf16.msra.mxu0 %v11160_v48  ;;  %6961 = vmatpush1.bf16.msra.mxu1 %v11162_v49  ;;  %v11272_v48 = vcombine.low %v508_v34, %v516_v35  ;;  %v11274_v49 = vcombine.low %v509_v37, %v517_v38  ;;  %v620_v34 = vld [vmem:[#allocation9 + $0xd90] sm:$0xff]  ;;  %v621_v37 = vld [vmem:[#allocation9 + $0xd98] sm:$0xff] }
 0x1bd   :  { %6798 = vmatprep.subr.bf16.mxu0 %v11177_v50  ;;  %6962 = vmatprep.subr.bf16.mxu1 %v11179_v51  ;;  %v11289_v50 = vcombine.high %v524_v44, %v532_v45  ;;  %v11291_v51 = vcombine.high %v525_v25, %v533_v47  ;;  %v628_v35 = vld [vmem:[#allocation9 + $0xdd0] sm:$0xff]  ;;  %v629_v38 = vld [vmem:[#allocation9 + $0xdd8] sm:$0xff] }
 0x1c0   :  { %6799 = vmatpush1.bf16.msra.mxu0 %v11176_v59  ;;  %6963 = vmatpush1.bf16.msra.mxu1 %v11178_v60  ;;  %v11288_v59 = vcombine.low %v524_v44, %v532_v45  ;;  %v11290_v60 = vcombine.low %v525_v25, %v533_v47  ;;  %v636_v44 = vld [vmem:[#allocation9 + $0xe10] sm:$0xff]  ;;  %v637_v25 = vld [vmem:[#allocation9 + $0xe18] sm:$0xff] }
 0x1c1   :  { %6800 = vmatprep.subr.bf16.mxu0 %v11193_v61  ;;  %6964 = vmatprep.subr.bf16.mxu1 %v11195_v62  ;;  %v11305_v61 = vcombine.high %v540_v52, %v548_v54  ;;  %v11307_v62 = vcombine.high %v541_v56, %v549_v58  ;;  %v644_v45 = vld [vmem:[#allocation9 + $0xe50] sm:$0xff]  ;;  %v645_v47 = vld [vmem:[#allocation9 + $0xe58] sm:$0xff] }
 0x1c4   :  { %6801 = vmatpush1.bf16.msra.mxu0 %v11192_v39  ;;  %6965 = vmatpush1.bf16.msra.mxu1 %v11194_v3  ;;  %v11304_v39 = vcombine.low %v540_v52, %v548_v54  ;;  %v11306_v3 = vcombine.low %v541_v56, %v549_v58  ;;  %v652_v52 = vld [vmem:[#allocation9 + $0xe90] sm:$0xff]  ;;  %v653_v56 = vld [vmem:[#allocation9 + $0xe98] sm:$0xff] }
 0x1c5   :  { %6811 = vmatprep.subr.bf16.mxu0 %v11209_v4  ;;  %6975 = vmatprep.subr.bf16.mxu1 %v11211_v5  ;;  %v11321_v4 = vcombine.high %v556_v63, %v564_v0  ;;  %v11323_v5 = vcombine.high %v557_v1, %v565_v2  ;;  %v660_v54 = vld [vmem:[#allocation9 + $0xed0] sm:$0xff]  ;;  %v661_v58 = vld [vmem:[#allocation9 + $0xed8] sm:$0xff] }
 0x1c7   :  { %6803 = vmatmul.mubr.bf16.vlgmr.msra.gmra.mrb[4].mxu0 %v12673_v12  ;;  %6967 = vmatmul.mubr.bf16.vlgmr.msra.gmra.mrb[4].mxu1 %v12673_v12 }
 0x1c8   :  { %6812 = vmatpush1.bf16.msra.mxu0 %v11208_v10  ;;  %6976 = vmatpush1.bf16.msra.mxu1 %v11210_v11  ;;  %v11320_v10 = vcombine.low %v556_v63, %v564_v0  ;;  %v11322_v11 = vcombine.low %v557_v1, %v565_v2  ;;  %v668_v63 = vld [vmem:[#allocation9 + $0xf10] sm:$0xff]  ;;  %v669_v1 = vld [vmem:[#allocation9 + $0xf18] sm:$0xff] }
 0x1c9   :  { %6813 = vmatprep.subr.bf16.mxu0 %v11225_v13  ;;  %6977 = vmatprep.subr.bf16.mxu1 %v11227_v14  ;;  %v11337_v13 = vcombine.high %v572_v6, %v580_v7  ;;  %v11339_v14 = vcombine.high %v573_v8, %v581_v9  ;;  %v676_v0 = vld [vmem:[#allocation9 + $0xf50] sm:$0xff]  ;;  %v677_v2 = vld [vmem:[#allocation9 + $0xf58] sm:$0xff] }
 0x1ca   :  { %6843 = vmatprep.mubr.bf16.mxu0 %v12679_v22  ;;  %7007 = vmatprep.mubr.bf16.mxu1 %v12679_v22 }
 0x1cc   :  { %6814 = vmatpush1.bf16.msra.mxu0 %v11224_v20  ;;  %6978 = vmatpush1.bf16.msra.mxu1 %v11226_v21  ;;  %v11336_v20 = vcombine.low %v572_v6, %v580_v7  ;;  %v11338_v21 = vcombine.low %v573_v8, %v581_v9  ;;  %v684_v6 = vld [vmem:[#allocation9 + $0xf90] sm:$0xff]  ;;  %v685_v8 = vld [vmem:[#allocation9 + $0xf98] sm:$0xff] }
 0x1cd   :  { %6815 = vmatprep.subr.bf16.mxu0 %v11241_v23  ;;  %6979 = vmatprep.subr.bf16.mxu1 %v11243_v24  ;;  %v11353_v23 = vcombine.high %v588_v16, %v596_v17  ;;  %v11355_v24 = vcombine.high %v589_v18, %v597_v19  ;;  %v692_v7 = vld [vmem:[#allocation9 + $0xfd0] sm:$0xff]  ;;  %v693_v9 = vld [vmem:[#allocation9 + $0xfd8] sm:$0xff] }
 0x1d0   :  { %6816 = vmatpush1.bf16.msra.mxu0 %v11240_v30  ;;  %6980 = vmatpush1.bf16.msra.mxu1 %v11242_v31  ;;  %v11352_v30 = vcombine.low %v588_v16, %v596_v17  ;;  %v11354_v31 = vcombine.low %v589_v18, %v597_v19  ;;  %v700_v16 = vld [vmem:[#allocation9 + $0x1010] sm:$0xff]  ;;  %v701_v18 = vld [vmem:[#allocation9 + $0x1018] sm:$0xff] }
 0x1d1   :  { %6817 = vmatprep.subr.bf16.mxu0 %v11257_v15  ;;  %6981 = vmatprep.subr.bf16.mxu1 %v11259_v33  ;;  %v11369_v15 = vcombine.high %v604_v26, %v612_v27  ;;  %v11371_v33 = vcombine.high %v605_v28, %v613_v29  ;;  %v708_v17 = vld [vmem:[#allocation9 + $0x1050] sm:$0xff]  ;;  %v709_v19 = vld [vmem:[#allocation9 + $0x1058] sm:$0xff] }
 0x1d4   :  { %6818 = vmatpush1.bf16.msra.mxu0 %v11256_v40  ;;  %6982 = vmatpush1.bf16.msra.mxu1 %v11258_v41  ;;  %v11368_v40 = vcombine.low %v604_v26, %v612_v27  ;;  %v11370_v41 = vcombine.low %v605_v28, %v613_v29  ;;  %v716_v26 = vld [vmem:[#allocation9 + $0x1090] sm:$0xff]  ;;  %v717_v28 = vld [vmem:[#allocation9 + $0x1098] sm:$0xff] }
 0x1d5   :  { %6819 = vmatprep.subr.bf16.mxu0 %v11273_v42  ;;  %6983 = vmatprep.subr.bf16.mxu1 %v11275_v43  ;;  %v11385_v42 = vcombine.high %v620_v34, %v628_v35  ;;  %v11387_v43 = vcombine.high %v621_v37, %v629_v38  ;;  %v724_v27 = vld [vmem:[#allocation9 + $0x10d0] sm:$0xff]  ;;  %v725_v29 = vld [vmem:[#allocation9 + $0x10d8] sm:$0xff] }
 0x1d8   :  { %6820 = vmatpush1.bf16.msra.mxu0 %v11272_v48  ;;  %6984 = vmatpush1.bf16.msra.mxu1 %v11274_v49  ;;  %v11384_v48 = vcombine.low %v620_v34, %v628_v35  ;;  %v11386_v49 = vcombine.low %v621_v37, %v629_v38  ;;  %v732_v34 = vld [vmem:[#allocation9 + $0x1110] sm:$0xff]  ;;  %v733_v37 = vld [vmem:[#allocation9 + $0x1118] sm:$0xff] }
 0x1d9   :  { %6821 = vmatprep.subr.bf16.mxu0 %v11289_v50  ;;  %6985 = vmatprep.subr.bf16.mxu1 %v11291_v51  ;;  %v11401_v50 = vcombine.high %v636_v44, %v644_v45  ;;  %v11403_v51 = vcombine.high %v637_v25, %v645_v47  ;;  %v740_v35 = vld [vmem:[#allocation9 + $0x1150] sm:$0xff]  ;;  %v741_v38 = vld [vmem:[#allocation9 + $0x1158] sm:$0xff] }
 0x1dc   :  { %6822 = vmatpush1.bf16.msra.mxu0 %v11288_v59  ;;  %6986 = vmatpush1.bf16.msra.mxu1 %v11290_v60  ;;  %v11400_v59 = vcombine.low %v636_v44, %v644_v45  ;;  %v11402_v60 = vcombine.low %v637_v25, %v645_v47  ;;  %v748_v44 = vld [vmem:[#allocation9 + $0x1190] sm:$0xff]  ;;  %v749_v25 = vld [vmem:[#allocation9 + $0x1198] sm:$0xff] }
 0x1dd   :  { %6823 = vmatprep.subr.bf16.mxu0 %v11305_v61  ;;  %6987 = vmatprep.subr.bf16.mxu1 %v11307_v62  ;;  %v11417_v61 = vcombine.high %v652_v52, %v660_v54  ;;  %v11419_v62 = vcombine.high %v653_v56, %v661_v58  ;;  %v756_v45 = vld [vmem:[#allocation9 + $0x11d0] sm:$0xff]  ;;  %v757_v47 = vld [vmem:[#allocation9 + $0x11d8] sm:$0xff] }
 0x1e0   :  { %6824 = vmatpush1.bf16.msra.mxu0 %v11304_v39  ;;  %6988 = vmatpush1.bf16.msra.mxu1 %v11306_v3  ;;  %v11416_v39 = vcombine.low %v652_v52, %v660_v54  ;;  %v11418_v3 = vcombine.low %v653_v56, %v661_v58  ;;  %v764_v52 = vld [vmem:[#allocation9 + $0x1210] sm:$0xff]  ;;  %v765_v56 = vld [vmem:[#allocation9 + $0x1218] sm:$0xff] }
 0x1e1   :  { %6825 = vmatprep.subr.bf16.mxu0 %v11321_v4  ;;  %6989 = vmatprep.subr.bf16.mxu1 %v11323_v5  ;;  %v11433_v4 = vcombine.high %v668_v63, %v676_v0  ;;  %v11435_v5 = vcombine.high %v669_v1, %v677_v2  ;;  %v772_v54 = vld [vmem:[#allocation9 + $0x1250] sm:$0xff]  ;;  %v773_v58 = vld [vmem:[#allocation9 + $0x1258] sm:$0xff] }
 0x1e4   :  { %6826 = vmatpush1.bf16.msra.mxu0 %v11320_v10  ;;  %6990 = vmatpush1.bf16.msra.mxu1 %v11322_v11  ;;  %v11432_v10 = vcombine.low %v668_v63, %v676_v0  ;;  %v11434_v11 = vcombine.low %v669_v1, %v677_v2  ;;  %v780_v63 = vld [vmem:[#allocation9 + $0x1290] sm:$0xff]  ;;  %v781_v1 = vld [vmem:[#allocation9 + $0x1298] sm:$0xff] }
 0x1e5   :  { %6827 = vmatprep.subr.bf16.mxu0 %v11337_v13  ;;  %6991 = vmatprep.subr.bf16.mxu1 %v11339_v14  ;;  %v11449_v13 = vcombine.high %v684_v6, %v692_v7  ;;  %v11451_v14 = vcombine.high %v685_v8, %v693_v9  ;;  %v788_v0 = vld [vmem:[#allocation9 + $0x12d0] sm:$0xff]  ;;  %v789_v2 = vld [vmem:[#allocation9 + $0x12d8] sm:$0xff] }
 0x1e8   :  { %6828 = vmatpush1.bf16.msra.mxu0 %v11336_v20  ;;  %6992 = vmatpush1.bf16.msra.mxu1 %v11338_v21  ;;  %v11448_v20 = vcombine.low %v684_v6, %v692_v7  ;;  %v11450_v21 = vcombine.low %v685_v8, %v693_v9  ;;  %v796_v6 = vld [vmem:[#allocation9 + $0x1310] sm:$0xff]  ;;  %v797_v8 = vld [vmem:[#allocation9 + $0x1318] sm:$0xff] }
 0x1e9   :  { %6829 = vmatprep.subr.bf16.mxu0 %v11353_v23  ;;  %6993 = vmatprep.subr.bf16.mxu1 %v11355_v24  ;;  %v11465_v23 = vcombine.high %v700_v16, %v708_v17  ;;  %v11467_v24 = vcombine.high %v701_v18, %v709_v19  ;;  %v804_v7 = vld [vmem:[#allocation9 + $0x1350] sm:$0xff]  ;;  %v805_v9 = vld [vmem:[#allocation9 + $0x1358] sm:$0xff] }
 0x1ec   :  { %6830 = vmatpush1.bf16.msra.mxu0 %v11352_v30  ;;  %6994 = vmatpush1.bf16.msra.mxu1 %v11354_v31  ;;  %v11464_v30 = vcombine.low %v700_v16, %v708_v17  ;;  %v11466_v31 = vcombine.low %v701_v18, %v709_v19  ;;  %v812_v16 = vld [vmem:[#allocation9 + $0x1390] sm:$0xff]  ;;  %v813_v18 = vld [vmem:[#allocation9 + $0x1398] sm:$0xff] }
 0x1ed   :  { %6831 = vmatprep.subr.bf16.mxu0 %v11369_v15  ;;  %6995 = vmatprep.subr.bf16.mxu1 %v11371_v33  ;;  %v11481_v15 = vcombine.high %v716_v26, %v724_v27  ;;  %v11483_v33 = vcombine.high %v717_v28, %v725_v29  ;;  %v820_v17 = vld [vmem:[#allocation9 + $0x13d0] sm:$0xff]  ;;  %v821_v19 = vld [vmem:[#allocation9 + $0x13d8] sm:$0xff] }
 0x1f0   :  { %6832 = vmatpush1.bf16.msra.mxu0 %v11368_v40  ;;  %6996 = vmatpush1.bf16.msra.mxu1 %v11370_v41  ;;  %v11480_v40 = vcombine.low %v716_v26, %v724_v27  ;;  %v11482_v41 = vcombine.low %v717_v28, %v725_v29  ;;  %v828_v26 = vld [vmem:[#allocation9 + $0x1410] sm:$0xff]  ;;  %v829_v28 = vld [vmem:[#allocation9 + $0x1418] sm:$0xff] }
 0x1f1   :  { %6833 = vmatprep.subr.bf16.mxu0 %v11385_v42  ;;  %6997 = vmatprep.subr.bf16.mxu1 %v11387_v43  ;;  %v11497_v42 = vcombine.high %v732_v34, %v740_v35  ;;  %v11499_v43 = vcombine.high %v733_v37, %v741_v38  ;;  %v836_v27 = vld [vmem:[#allocation9 + $0x1450] sm:$0xff]  ;;  %v837_v29 = vld [vmem:[#allocation9 + $0x1458] sm:$0xff] }
 0x1f4   :  { %6834 = vmatpush1.bf16.msra.mxu0 %v11384_v48  ;;  %6998 = vmatpush1.bf16.msra.mxu1 %v11386_v49  ;;  %v11496_v48 = vcombine.low %v732_v34, %v740_v35  ;;  %v11498_v49 = vcombine.low %v733_v37, %v741_v38  ;;  %v844_v34 = vld [vmem:[#allocation9 + $0x1490] sm:$0xff]  ;;  %v845_v37 = vld [vmem:[#allocation9 + $0x1498] sm:$0xff] }
 0x1f5   :  { %6835 = vmatprep.subr.bf16.mxu0 %v11401_v50  ;;  %6999 = vmatprep.subr.bf16.mxu1 %v11403_v51  ;;  %v11513_v50 = vcombine.high %v748_v44, %v756_v45  ;;  %v11515_v51 = vcombine.high %v749_v25, %v757_v47  ;;  %v852_v35 = vld [vmem:[#allocation9 + $0x14d0] sm:$0xff]  ;;  %v853_v38 = vld [vmem:[#allocation9 + $0x14d8] sm:$0xff] }
 0x1f8   :  { %6836 = vmatpush1.bf16.msra.mxu0 %v11400_v59  ;;  %7000 = vmatpush1.bf16.msra.mxu1 %v11402_v60  ;;  %v11512_v59 = vcombine.low %v748_v44, %v756_v45  ;;  %v11514_v60 = vcombine.low %v749_v25, %v757_v47  ;;  %v860_v44 = vld [vmem:[#allocation9 + $0x1510] sm:$0xff]  ;;  %v861_v25 = vld [vmem:[#allocation9 + $0x1518] sm:$0xff] }
 0x1f9   :  { %6837 = vmatprep.subr.bf16.mxu0 %v11417_v61  ;;  %7001 = vmatprep.subr.bf16.mxu1 %v11419_v62  ;;  %v11529_v61 = vcombine.high %v764_v52, %v772_v54  ;;  %v11531_v62 = vcombine.high %v765_v56, %v773_v58  ;;  %v868_v45 = vld [vmem:[#allocation9 + $0x1550] sm:$0xff]  ;;  %v869_v47 = vld [vmem:[#allocation9 + $0x1558] sm:$0xff] }
 0x1fc   :  { %6838 = vmatpush1.bf16.msra.mxu0 %v11416_v39  ;;  %7002 = vmatpush1.bf16.msra.mxu1 %v11418_v3  ;;  %v11528_v39 = vcombine.low %v764_v52, %v772_v54  ;;  %v11530_v3 = vcombine.low %v765_v56, %v773_v58  ;;  %v876_v52 = vld [vmem:[#allocation9 + $0x1590] sm:$0xff]  ;;  %v877_v56 = vld [vmem:[#allocation9 + $0x1598] sm:$0xff] }
 0x1fd   :  { %6839 = vmatprep.subr.bf16.mxu0 %v11433_v4  ;;  %7003 = vmatprep.subr.bf16.mxu1 %v11435_v5  ;;  %v11545_v4 = vcombine.high %v780_v63, %v788_v0  ;;  %v11547_v5 = vcombine.high %v781_v1, %v789_v2  ;;  %v884_v54 = vld [vmem:[#allocation9 + $0x15d0] sm:$0xff]  ;;  %v885_v58 = vld [vmem:[#allocation9 + $0x15d8] sm:$0xff] }
 0x200   :  { %6840 = vmatpush1.bf16.msra.mxu0 %v11432_v10  ;;  %7004 = vmatpush1.bf16.msra.mxu1 %v11434_v11  ;;  %v11544_v10 = vcombine.low %v780_v63, %v788_v0  ;;  %v11546_v11 = vcombine.low %v781_v1, %v789_v2  ;;  %v892_v63 = vld [vmem:[#allocation9 + $0x1610] sm:$0xff]  ;;  %v893_v1 = vld [vmem:[#allocation9 + $0x1618] sm:$0xff] }
 0x201   :  { %6841 = vmatprep.subr.bf16.mxu0 %v11449_v13  ;;  %7005 = vmatprep.subr.bf16.mxu1 %v11451_v14  ;;  %v11561_v13 = vcombine.high %v796_v6, %v804_v7  ;;  %v11563_v14 = vcombine.high %v797_v8, %v805_v9  ;;  %v900_v0 = vld [vmem:[#allocation9 + $0x1650] sm:$0xff]  ;;  %v901_v2 = vld [vmem:[#allocation9 + $0x1658] sm:$0xff] }
 0x204   :  { %6842 = vmatpush1.bf16.msra.mxu0 %v11448_v20  ;;  %7006 = vmatpush1.bf16.msra.mxu1 %v11450_v21  ;;  %v11560_v20 = vcombine.low %v796_v6, %v804_v7  ;;  %v11562_v21 = vcombine.low %v797_v8, %v805_v9  ;;  %v908_v6 = vld [vmem:[#allocation9 + $0x1690] sm:$0xff]  ;;  %v909_v8 = vld [vmem:[#allocation9 + $0x1698] sm:$0xff] }
 0x205   :  { %6852 = vmatprep.subr.bf16.mxu0 %v11465_v23  ;;  %7016 = vmatprep.subr.bf16.mxu1 %v11467_v24  ;;  %v11577_v23 = vcombine.high %v812_v16, %v820_v17  ;;  %v11579_v24 = vcombine.high %v813_v18, %v821_v19  ;;  %v916_v7 = vld [vmem:[#allocation9 + $0x16d0] sm:$0xff]  ;;  %v917_v9 = vld [vmem:[#allocation9 + $0x16d8] sm:$0xff] }
 0x207   :  { %6844 = vmatmul.mubr.bf16.vlgmr.msra.gmra.mrb[4].mxu0 %v12687_v53  ;;  %7008 = vmatmul.mubr.bf16.vlgmr.msra.gmra.mrb[4].mxu1 %v12687_v53 }
 0x208   :  { %6853 = vmatpush1.bf16.msra.mxu0 %v11464_v30  ;;  %7017 = vmatpush1.bf16.msra.mxu1 %v11466_v31  ;;  %v11576_v30 = vcombine.low %v812_v16, %v820_v17  ;;  %v11578_v31 = vcombine.low %v813_v18, %v821_v19  ;;  %v924_v16 = vld [vmem:[#allocation9 + $0x1710] sm:$0xff]  ;;  %v925_v18 = vld [vmem:[#allocation9 + $0x1718] sm:$0xff] }
 0x209   :  { %6854 = vmatprep.subr.bf16.mxu0 %v11481_v15  ;;  %7018 = vmatprep.subr.bf16.mxu1 %v11483_v33  ;;  %v11593_v15 = vcombine.high %v828_v26, %v836_v27  ;;  %v11595_v33 = vcombine.high %v829_v28, %v837_v29  ;;  %v932_v17 = vld [vmem:[#allocation9 + $0x1750] sm:$0xff]  ;;  %v933_v19 = vld [vmem:[#allocation9 + $0x1758] sm:$0xff] }
 0x20a   :  { %6884 = vmatprep.mubr.bf16.mxu0 %v12693_v32  ;;  %7048 = vmatprep.mubr.bf16.mxu1 %v12693_v32 }
 0x20c   :  { %6855 = vmatpush1.bf16.msra.mxu0 %v11480_v40  ;;  %7019 = vmatpush1.bf16.msra.mxu1 %v11482_v41  ;;  %v11592_v40 = vcombine.low %v828_v26, %v836_v27  ;;  %v11594_v41 = vcombine.low %v829_v28, %v837_v29  ;;  %v940_v26 = vld [vmem:[#allocation9 + $0x1790] sm:$0xff]  ;;  %v941_v28 = vld [vmem:[#allocation9 + $0x1798] sm:$0xff] }
 0x20d   :  { %6856 = vmatprep.subr.bf16.mxu0 %v11497_v42  ;;  %7020 = vmatprep.subr.bf16.mxu1 %v11499_v43  ;;  %v11609_v42 = vcombine.high %v844_v34, %v852_v35  ;;  %v11611_v43 = vcombine.high %v845_v37, %v853_v38  ;;  %v948_v27 = vld [vmem:[#allocation9 + $0x17d0] sm:$0xff]  ;;  %v949_v29 = vld [vmem:[#allocation9 + $0x17d8] sm:$0xff] }
 0x210   :  { %6857 = vmatpush1.bf16.msra.mxu0 %v11496_v48  ;;  %7021 = vmatpush1.bf16.msra.mxu1 %v11498_v49  ;;  %v11608_v48 = vcombine.low %v844_v34, %v852_v35  ;;  %v11610_v49 = vcombine.low %v845_v37, %v853_v38  ;;  %v956_v34 = vld [vmem:[#allocation9 + $0x1810] sm:$0xff]  ;;  %v957_v37 = vld [vmem:[#allocation9 + $0x1818] sm:$0xff] }
 0x211   :  { %6858 = vmatprep.subr.bf16.mxu0 %v11513_v50  ;;  %7022 = vmatprep.subr.bf16.mxu1 %v11515_v51  ;;  %v11625_v50 = vcombine.high %v860_v44, %v868_v45  ;;  %v11627_v51 = vcombine.high %v861_v25, %v869_v47  ;;  %v964_v35 = vld [vmem:[#allocation9 + $0x1850] sm:$0xff]  ;;  %v965_v38 = vld [vmem:[#allocation9 + $0x1858] sm:$0xff] }
 0x214   :  { %6859 = vmatpush1.bf16.msra.mxu0 %v11512_v59  ;;  %7023 = vmatpush1.bf16.msra.mxu1 %v11514_v60  ;;  %v11624_v59 = vcombine.low %v860_v44, %v868_v45  ;;  %v11626_v60 = vcombine.low %v861_v25, %v869_v47  ;;  %v972_v44 = vld [vmem:[#allocation9 + $0x1890] sm:$0xff]  ;;  %v973_v25 = vld [vmem:[#allocation9 + $0x1898] sm:$0xff] }
 0x215   :  { %6860 = vmatprep.subr.bf16.mxu0 %v11529_v61  ;;  %7024 = vmatprep.subr.bf16.mxu1 %v11531_v62  ;;  %v11641_v61 = vcombine.high %v876_v52, %v884_v54  ;;  %v11643_v62 = vcombine.high %v877_v56, %v885_v58  ;;  %v980_v45 = vld [vmem:[#allocation9 + $0x18d0] sm:$0xff]  ;;  %v981_v47 = vld [vmem:[#allocation9 + $0x18d8] sm:$0xff] }
 0x218   :  { %6861 = vmatpush1.bf16.msra.mxu0 %v11528_v39  ;;  %7025 = vmatpush1.bf16.msra.mxu1 %v11530_v3  ;;  %v11640_v39 = vcombine.low %v876_v52, %v884_v54  ;;  %v11642_v3 = vcombine.low %v877_v56, %v885_v58  ;;  %v988_v52 = vld [vmem:[#allocation9 + $0x1910] sm:$0xff]  ;;  %v989_v56 = vld [vmem:[#allocation9 + $0x1918] sm:$0xff] }
 0x219   :  { %6862 = vmatprep.subr.bf16.mxu0 %v11545_v4  ;;  %7026 = vmatprep.subr.bf16.mxu1 %v11547_v5  ;;  %v11657_v4 = vcombine.high %v892_v63, %v900_v0  ;;  %v11659_v5 = vcombine.high %v893_v1, %v901_v2  ;;  %v996_v54 = vld [vmem:[#allocation9 + $0x1950] sm:$0xff]  ;;  %v997_v58 = vld [vmem:[#allocation9 + $0x1958] sm:$0xff] }
 0x21c   :  { %6863 = vmatpush1.bf16.msra.mxu0 %v11544_v10  ;;  %7027 = vmatpush1.bf16.msra.mxu1 %v11546_v11  ;;  %v11656_v10 = vcombine.low %v892_v63, %v900_v0  ;;  %v11658_v11 = vcombine.low %v893_v1, %v901_v2  ;;  %v1004_v63 = vld [vmem:[#allocation9 + $0x1990] sm:$0xff]  ;;  %v1005_v1 = vld [vmem:[#allocation9 + $0x1998] sm:$0xff] }
 0x21d   :  { %6864 = vmatprep.subr.bf16.mxu0 %v11561_v13  ;;  %7028 = vmatprep.subr.bf16.mxu1 %v11563_v14  ;;  %v11673_v13 = vcombine.high %v908_v6, %v916_v7  ;;  %v11675_v14 = vcombine.high %v909_v8, %v917_v9  ;;  %v1012_v0 = vld [vmem:[#allocation9 + $0x19d0] sm:$0xff]  ;;  %v1013_v2 = vld [vmem:[#allocation9 + $0x19d8] sm:$0xff] }
 0x220   :  { %6865 = vmatpush1.bf16.msra.mxu0 %v11560_v20  ;;  %7029 = vmatpush1.bf16.msra.mxu1 %v11562_v21  ;;  %v11672_v20 = vcombine.low %v908_v6, %v916_v7  ;;  %v11674_v21 = vcombine.low %v909_v8, %v917_v9  ;;  %v11771_v6 = vcombine.high %v1005_v1, %v1013_v2  ;;  %v1020_v7 = vld [vmem:[#allocation9 + $0x1a10] sm:$0xff]  ;;  %v1021_v9 = vld [vmem:[#allocation9 + $0x1a18] sm:$0xff] }
 0x221   :  { %6866 = vmatprep.subr.bf16.mxu0 %v11577_v23  ;;  %7030 = vmatprep.subr.bf16.mxu1 %v11579_v24  ;;  %v11689_v23 = vcombine.high %v924_v16, %v932_v17  ;;  %v11691_v24 = vcombine.high %v925_v18, %v933_v19  ;;  %v1028_v8 = vld [vmem:[#allocation9 + $0x1a50] sm:$0xff] }
 0x224   :  { %6867 = vmatpush1.bf16.msra.mxu0 %v11576_v30  ;;  %7031 = vmatpush1.bf16.msra.mxu1 %v11578_v31  ;;  %v11688_v30 = vcombine.low %v924_v16, %v932_v17  ;;  %v11690_v31 = vcombine.low %v925_v18, %v933_v19  ;;  %v11785_v16 = vcombine.high %v1020_v7, %v1028_v8  ;;  %v1036_v18 = vld [vmem:[#allocation9 + $0x1a90] sm:$0xff] }
 0x225   :  { %6868 = vmatprep.subr.bf16.mxu0 %v11593_v15  ;;  %7032 = vmatprep.subr.bf16.mxu1 %v11595_v33  ;;  %v11705_v15 = vcombine.high %v940_v26, %v948_v27  ;;  %v11707_v33 = vcombine.high %v941_v28, %v949_v29  ;;  %v1044_v19 = vld [vmem:[#allocation9 + $0x1ad0] sm:$0xff] }
 0x228   :  { %6869 = vmatpush1.bf16.msra.mxu0 %v11592_v40  ;;  %7033 = vmatpush1.bf16.msra.mxu1 %v11594_v41  ;;  %v11704_v40 = vcombine.low %v940_v26, %v948_v27  ;;  %v11706_v41 = vcombine.low %v941_v28, %v949_v29  ;;  %v1210_v26 = vld [vmem:[#allocation11] sm:$0xff] }
 0x229   :  { %6870 = vmatprep.subr.bf16.mxu0 %v11609_v42  ;;  %7034 = vmatprep.subr.bf16.mxu1 %v11611_v43  ;;  %v11721_v42 = vcombine.high %v956_v34, %v964_v35  ;;  %v11723_v43 = vcombine.high %v957_v37, %v965_v38 }
 0x22c   :  { %6871 = vmatpush1.bf16.msra.mxu0 %v11608_v48  ;;  %7035 = vmatpush1.bf16.msra.mxu1 %v11610_v49  ;;  %v11720_v48 = vcombine.low %v956_v34, %v964_v35  ;;  %v11722_v49 = vcombine.low %v957_v37, %v965_v38  ;;  %v1060_v34 = vld [vmem:[#allocation9 + $0x1b50] sm:$0xff]  ;;  %v1053_v37 = vld [vmem:[#allocation9 + $0x1b18] sm:$0xff] }
 0x22d   :  { %6872 = vmatprep.subr.bf16.mxu0 %v11625_v50  ;;  %7036 = vmatprep.subr.bf16.mxu1 %v11627_v51  ;;  %v11737_v50 = vcombine.high %v972_v44, %v980_v45  ;;  %v11739_v51 = vcombine.high %v973_v25, %v981_v47  ;;  %v1061_v38 = vld [vmem:[#allocation9 + $0x1b58] sm:$0xff] }
 0x230   :  { %6873 = vmatpush1.bf16.msra.mxu0 %v11624_v59  ;;  %7037 = vmatpush1.bf16.msra.mxu1 %v11626_v60  ;;  %v11736_v59 = vcombine.low %v972_v44, %v980_v45  ;;  %v11738_v60 = vcombine.low %v973_v25, %v981_v47  ;;  %v11819_v47 = vcombine.high %v1053_v37, %v1061_v38 }
 0x231   :  { %6874 = vmatprep.subr.bf16.mxu0 %v11641_v61  ;;  %7038 = vmatprep.subr.bf16.mxu1 %v11643_v62  ;;  %v11753_v61 = vcombine.high %v988_v52, %v996_v54  ;;  %v11755_v62 = vcombine.high %v989_v56, %v997_v58 }
 0x234   :  { %6875 = vmatpush1.bf16.msra.mxu0 %v11640_v39  ;;  %7039 = vmatpush1.bf16.msra.mxu1 %v11642_v3  ;;  %v1214_v39 = vlaneseq  ;;  %v11752_v3 = vcombine.low %v988_v52, %v996_v54  ;;  %v1069_v54 = vld [vmem:[#allocation9 + $0x1b98] sm:$0xff] }
 0x235   :  { %6876 = vmatprep.subr.bf16.mxu0 %v11657_v4  ;;  %7040 = vmatprep.subr.bf16.mxu1 %v11659_v5  ;;  %v11754_v4 = vcombine.low %v989_v56, %v997_v58  ;;  %v11769_v5 = vcombine.high %v1004_v63, %v1012_v0  ;;  %v1077_v56 = vld [vmem:[#allocation9 + $0x1bd8] sm:$0xff] }
 0x238   :  { %6877 = vmatpush1.bf16.msra.mxu0 %v11656_v10  ;;  %7041 = vmatpush1.bf16.msra.mxu1 %v11658_v11  ;;  %v1029_v10 = vld [vmem:[#allocation9 + $0x1a58] sm:$0xff]  ;;  %v12733_v11 = vshrl.u32 %v1214_v39, 7 }
 0x239   :  { %6878 = vmatprep.subr.bf16.mxu0 %v11673_v13  ;;  %7042 = vmatprep.subr.bf16.mxu1 %v11675_v14  ;;  %v11768_v13 = vcombine.low %v1004_v63, %v1012_v0  ;;  %v11770_v14 = vcombine.low %v1005_v1, %v1013_v2  ;;  %v11787_v17 = vcombine.high %v1021_v9, %v1029_v10 }
 0x23a   :  { %v12739_v27 = vsub.s32 2, %v12733_v11  ;;  %v12742_v28 = vsub.s32 1, %v12733_v11  ;;  %v11786_v29 = vcombine.low %v1021_v9, %v1029_v10  ;;  %v11818_v2 = vcombine.low %v1053_v37, %v1061_v38 }
 0x23b   :  { %v11834_v10 = vcombine.low %v1069_v54, %v1077_v56 }
 0x23c   :  { %6879 = vmatpush1.bf16.msra.mxu0 %v11672_v20  ;;  %7043 = vmatpush1.bf16.msra.mxu1 %v11674_v21  ;;  %v12736_v20 = vsub.s32 0, %v12733_v11  ;;  %v1037_v21 = vld [vmem:[#allocation9 + $0x1a98] sm:$0xff] }
 0x23d   :  { %6880 = vmatprep.subr.bf16.mxu0 %v11689_v23  ;;  %7044 = vmatprep.subr.bf16.mxu1 %v11691_v24  ;;  %v1045_v23 = vld [vmem:[#allocation9 + $0x1ad8] sm:$0xff]  ;;  %v11784_v24 = vcombine.low %v1020_v7, %v1028_v8 }
 0x23e   :  { %v1217_v35 = vrot.slane %v1210_v26, %v12736_v20  ;;  %v11802_v44 = vcombine.low %v1037_v21, %v1045_v23  ;;  %v1085_v7 = vld [vmem:[#allocation9 + $0x1c18] sm:$0xff] }
 0x23f   :  { %v1093_v8 = vld [vmem:[#allocation9 + $0x1c58] sm:$0xff] }
 0x240   :  { %6881 = vmatpush1.bf16.msra.mxu0 %v11688_v30  ;;  %7045 = vmatpush1.bf16.msra.mxu1 %v11690_v31  ;;  %v12745_v30 = vsub.s32 3, %v12733_v11  ;;  %v11801_v31 = vcombine.high %v1036_v18, %v1044_v19 }
 0x241   :  { %6882 = vmatprep.subr.bf16.mxu0 %v11705_v15  ;;  %7046 = vmatprep.subr.bf16.mxu1 %v11707_v33  ;;  %v11803_v15 = vcombine.high %v1037_v21, %v1045_v23  ;;  %v1052_v33 = vld [vmem:[#allocation9 + $0x1b10] sm:$0xff]  ;;  %v11850_v23 = vcombine.low %v1085_v7, %v1093_v8 }
 0x242   :  { %v11817_v45 = vcombine.high %v1052_v33, %v1060_v34 }
 0x244   :  { %6883 = vmatpush1.bf16.msra.mxu0 %v11704_v40  ;;  %7047 = vmatpush1.bf16.msra.mxu1 %v11706_v41  ;;  %v1225_v40 = vrot.slane %v1210_v26, %v12739_v27  ;;  %v1221_v41 = vrot.slane %v1210_v26, %v12742_v28 }
 0x245   :  { %6893 = vmatprep.subr.bf16.mxu0 %v11721_v42  ;;  %7057 = vmatprep.subr.bf16.mxu1 %v11723_v43  ;;  %v11800_v42 = vcombine.low %v1036_v18, %v1044_v19  ;;  %v1229_v43 = vrot.slane %v1210_v26, %v12745_v30  ;;  %v1101_v18 = vld [vmem:[#allocation9 + $0x1c98] sm:$0xff] }
 0x246   :  { %v1109_v19 = vld [vmem:[#allocation9 + $0x1cd8] sm:$0xff] }
 0x247   :  { %6885 = vmatmul.mubr.bf16.vlgmr.msra.gmra.mrb[4].mxu0 %v12701_v36  ;;  %7049 = vmatmul.mubr.bf16.vlgmr.msra.gmra.mrb[4].mxu1 %v12701_v36  ;;  %v11867_v26 = vcombine.high %v1101_v18, %v1109_v19 }
 0x248   :  { %6894 = vmatpush1.bf16.msra.mxu0 %v11720_v48  ;;  %7058 = vmatpush1.bf16.msra.mxu1 %v11722_v49  ;;  %v1068_v48 = vld [vmem:[#allocation9 + $0x1b90] sm:$0xff] }
 0x249   :  { %6895 = vmatprep.subr.bf16.mxu0 %v11737_v50  ;;  %7059 = vmatprep.subr.bf16.mxu1 %v11739_v51  ;;  %v1076_v49 = vld [vmem:[#allocation9 + $0x1bd0] sm:$0xff] }
 0x24a   :  { %6925 = vmatprep.mubr.bf16.mxu0 %v12707_v46  ;;  %7089 = vmatprep.mubr.bf16.mxu1 %v12707_v46  ;;  %v11833_v39 = vcombine.high %v1068_v48, %v1076_v49  ;;  %v11832_v9 = vcombine.low %v1068_v48, %v1076_v49  ;;  %v1148_v48 = vld [vmem:[#allocation9 + $0x1e10] sm:$0xff] }
 0x24b   :  { %v1156_v49 = vld [vmem:[#allocation9 + $0x1e50] sm:$0xff] }
 0x24c   :  { %6896 = vmatpush1.bf16.msra.mxu0 %v11736_v59  ;;  %7060 = vmatpush1.bf16.msra.mxu1 %v11738_v60 }
 0x24d   :  { %6897 = vmatprep.subr.bf16.mxu0 %v11753_v61  ;;  %7061 = vmatprep.subr.bf16.mxu1 %v11755_v62  ;;  %v11816_v62 = vcombine.low %v1052_v33, %v1060_v34  ;;  %v1125_v33 = vld [vmem:[#allocation9 + $0x1d58] sm:$0xff] }
 0x250   :  { %6898 = vmatpush1.bf16.msra.mxu0 %v11752_v3  ;;  %7062 = vmatpush1.bf16.msra.mxu1 %v11754_v4  ;;  %v11835_v4 = vcombine.high %v1069_v54, %v1077_v56 }
 0x251   :  { %6899 = vmatprep.subr.bf16.mxu0 %v11769_v5  ;;  %7063 = vmatprep.subr.bf16.mxu1 %v11771_v6  ;;  %v1084_v5 = vld [vmem:[#allocation9 + $0x1c10] sm:$0xff] }
 0x252   :  { %v1092_v6 = vld [vmem:[#allocation9 + $0x1c50] sm:$0xff] }
 0x253   :  { %v11848_v21 = vcombine.low %v1084_v5, %v1092_v6 }
 0x254   :  { %6900 = vmatpush1.bf16.msra.mxu0 %v11768_v13  ;;  %7064 = vmatpush1.bf16.msra.mxu1 %v11770_v14  ;;  %v11849_v13 = vcombine.high %v1084_v5, %v1092_v6  ;;  %v11851_v14 = vcombine.high %v1085_v7, %v1093_v8  ;;  %v1180_v6 = vld [vmem:[#allocation9 + $0x1f10] sm:$0xff]  ;;  %v1181_v8 = vld [vmem:[#allocation9 + $0x1f18] sm:$0xff] }
 0x255   :  { %6901 = vmatprep.subr.bf16.mxu0 %v11785_v16  ;;  %7065 = vmatprep.subr.bf16.mxu1 %v11787_v17  ;;  %v1100_v16 = vld [vmem:[#allocation9 + $0x1c90] sm:$0xff] }
 0x256   :  { %v1108_v17 = vld [vmem:[#allocation9 + $0x1cd0] sm:$0xff] }
 0x257   :  { %v11864_v34 = vcombine.low %v1100_v16, %v1108_v17  ;;  %v1188_v7 = vld [vmem:[#allocation9 + $0x1f50] sm:$0xff] }
 0x258   :  { %6902 = vmatpush1.bf16.msra.mxu0 %v11784_v24  ;;  %7066 = vmatpush1.bf16.msra.mxu1 %v11786_v29  ;;  %v11865_v24 = vcombine.high %v1100_v16, %v1108_v17  ;;  %v1116_v29 = vld [vmem:[#allocation9 + $0x1d10] sm:$0xff] }
 0x259   :  { %6903 = vmatprep.subr.bf16.mxu0 %v11801_v31  ;;  %7067 = vmatprep.subr.bf16.mxu1 %v11803_v15  ;;  %v1124_v31 = vld [vmem:[#allocation9 + $0x1d50] sm:$0xff]  ;;  %v1117_v15 = vld [vmem:[#allocation9 + $0x1d18] sm:$0xff] }
 0x25a   :  { %v6599_v25 = vpop.f32.mrb[0].mxu0  ;;  %v6763_v51 = vpop.f32.mrb[0].mxu1  ;;  %v11881_v37 = vcombine.high %v1116_v29, %v1124_v31  ;;  %v11883_v38 = vcombine.high %v1117_v15, %v1125_v33  ;;  %v1196_v17 = vld [vmem:[#allocation9 + $0x1f90] sm:$0xff] }
 0x25b   :  { %v12751_v50 = vadd.f32 %v6599_v25, %v1217_v35  ;;  %v6601_v52 = vpop.f32.mrb[1].mxu0  ;;  %v12753_v58 = vadd.f32 %v6763_v51, %v1225_v40  ;;  %v6765_v60 = vpop.f32.mrb[1].mxu1  ;;  %v11866_v35 = vcombine.low %v1101_v18, %v1109_v19  ;;  %v1132_v40 = vld [vmem:[#allocation9 + $0x1d90] sm:$0xff]  ;;  %v1149_v51 = vld [vmem:[#allocation9 + $0x1e18] sm:$0xff] }
 0x25c   :  { %v12755_v59 = vadd.f32 %v6601_v52, %v1221_v41  ;;  %v6603_v61 = vpop.f32.mrb[2].mxu0  ;;  %6904 = vmatpush1.bf16.msra.mxu0 %v11800_v42  ;;  %v12757_v63 = vadd.f32 %v6765_v60, %v1229_v43  ;;  %v6767_v0 = vpop.f32.mrb[2].mxu1  ;;  %7068 = vmatpush1.bf16.msra.mxu1 %v11802_v44  ;;  %v1140_v41 = vld [vmem:[#allocation9 + $0x1dd0] sm:$0xff]  ;;  %v1133_v42 = vld [vmem:[#allocation9 + $0x1d98] sm:$0xff]  ;;  %v11880_v44 = vcombine.low %v1116_v29, %v1124_v31  ;;  %v190_v31 = vld [vmem:[#allocation9 + $0x20] sm:$0xff] }
 0x25d   :  { %v6604_v1 = vpop.f32.mrb[3].mxu0  ;;  %6905 = vmatprep.subr.bf16.mxu0 %v11817_v45  ;;  %v6768_v3 = vpop.f32.mrb[3].mxu1  ;;  %7069 = vmatprep.subr.bf16.mxu1 %v11819_v47  ;;  %v1141_v43 = vld [vmem:[#allocation9 + $0x1dd8] sm:$0xff]  ;;  %v11882_v45 = vcombine.low %v1117_v15, %v1125_v33  ;;  %v11897_v25 = vcombine.high %v1132_v40, %v1140_v41  ;;  %v11896_v54 = vcombine.low %v1132_v40, %v1140_v41  ;;  %v1172_v0 = vld [vmem:[#allocation9 + $0x1ed0] sm:$0xff]  ;;  %v198_v15 = vld [vmem:[#allocation9 + $0x60] sm:$0xff] }
 0x25e   :  { %v11899_v47 = vcombine.high %v1133_v42, %v1141_v43  ;;  %v1157_v52 = vld [vmem:[#allocation9 + $0x1e58] sm:$0xff]  ;;  %v11898_v56 = vcombine.low %v1133_v42, %v1141_v43  ;;  %v11913_v60 = vcombine.high %v1148_v48, %v1156_v49  ;;  %v1204_v18 = vld [vmem:[#allocation9 + $0x1fd0] sm:$0xff]  ;;  %v191_v33 = vld [vmem:[#allocation9 + $0x28] sm:$0xff] }
 0x25f   :  { %v11915_v61 = vcombine.high %v1149_v51, %v1157_v52  ;;  %v1165_v1 = vld [vmem:[#allocation9 + $0x1e98] sm:$0xff]  ;;  %v11914_v3 = vcombine.low %v1149_v51, %v1157_v52  ;;  %v206_v41 = vld [vmem:[#allocation9 + $0xa0] sm:$0xff]  ;;  %v207_v43 = vld [vmem:[#allocation9 + $0xa8] sm:$0xff] }
 0x260   :  { %6906 = vmatpush1.bf16.msra.mxu0 %v11816_v62  ;;  %7070 = vmatpush1.bf16.msra.mxu1 %v11818_v2  ;;  %v1164_v62 = vld [vmem:[#allocation9 + $0x1e90] sm:$0xff]  ;;  %v1173_v2 = vld [vmem:[#allocation9 + $0x1ed8] sm:$0xff]  ;;  %v214_v42 = vld [vmem:[#allocation9 + $0xe0] sm:$0xff] }
 0x261   :  { %6907 = vmatprep.subr.bf16.mxu0 %v11833_v39  ;;  %7071 = vmatprep.subr.bf16.mxu1 %v11835_v4  ;;  %v11912_v39 = vcombine.low %v1148_v48, %v1156_v49  ;;  %v11929_v4 = vcombine.high %v1164_v62, %v1172_v0  ;;  %v11931_v5 = vcombine.high %v1165_v1, %v1173_v2  ;;  %v1197_v19 = vld [vmem:[#allocation9 + $0x1f98] sm:$0xff]  ;;  %v222_v49 = vld [vmem:[#allocation9 + $0x120] sm:$0xff]  ;;  %v223_v52 = vld [vmem:[#allocation9 + $0x128] sm:$0xff] }
 0x262   :  { %v230_v51 = vld [vmem:[#allocation9 + $0x160] sm:$0xff] }
 0x264   :  { %6908 = vmatpush1.bf16.msra.mxu0 %v11832_v9  ;;  %7072 = vmatpush1.bf16.msra.mxu1 %v11834_v10  ;;  %v1189_v9 = vld [vmem:[#allocation9 + $0x1f58] sm:$0xff]  ;;  %v11928_v10 = vcombine.low %v1164_v62, %v1172_v0  ;;  %v238_v0 = vld [vmem:[#allocation9 + $0x1a0] sm:$0xff] }
 0x265   :  { %6909 = vmatprep.subr.bf16.mxu0 %v11849_v13  ;;  %7073 = vmatprep.subr.bf16.mxu1 %v11851_v14  ;;  %v11930_v13 = vcombine.low %v1165_v1, %v1173_v2  ;;  %v11945_v14 = vcombine.high %v1180_v6, %v1188_v7  ;;  %v11947_v16 = vcombine.high %v1181_v8, %v1189_v9  ;;  %v246_v1 = vld [vmem:[#allocation9 + $0x1e0] sm:$0xff]  ;;  %v239_v2 = vld [vmem:[#allocation9 + $0x1a8] sm:$0xff] }
 0x268   :  { %6910 = vmatpush1.bf16.msra.mxu0 %v11848_v21  ;;  %7074 = vmatpush1.bf16.msra.mxu1 %v11850_v23  ;;  %v1205_v21 = vld [vmem:[#allocation9 + $0x1fd8] sm:$0xff]  ;;  %v11944_v23 = vcombine.low %v1180_v6, %v1188_v7  ;;  %v254_v7 = vld [vmem:[#allocation9 + $0x220] sm:$0xff] }
 0x269   :  { %6911 = vmatprep.subr.bf16.mxu0 %v11865_v24  ;;  %7075 = vmatprep.subr.bf16.mxu1 %v11867_v26  ;;  %v11946_v24 = vcombine.low %v1181_v8, %v1189_v9  ;;  %v11961_v26 = vcombine.high %v1196_v17, %v1204_v18  ;;  %v11963_v29 = vcombine.high %v1197_v19, %v1205_v21  ;;  %v262_v8 = vld [vmem:[#allocation9 + $0x260] sm:$0xff]  ;;  %v255_v9 = vld [vmem:[#allocation9 + $0x228] sm:$0xff] }
 0x26c   :  { %6912 = vmatpush1.bf16.msra.mxu0 %v11864_v34  ;;  %7076 = vmatpush1.bf16.msra.mxu1 %v11866_v35  ;;  %v199_v34 = vld [vmem:[#allocation9 + $0x68] sm:$0xff]  ;;  %v11960_v35 = vcombine.low %v1196_v17, %v1204_v18  ;;  %v270_v18 = vld [vmem:[#allocation9 + $0x2a0] sm:$0xff] }
 0x26d   :  { %6913 = vmatprep.subr.bf16.mxu0 %v11881_v37  ;;  %7077 = vmatprep.subr.bf16.mxu1 %v11883_v38  ;;  %v11962_v37 = vcombine.low %v1197_v19, %v1205_v21  ;;  %v10957_v38 = vcombine.high %v190_v31, %v198_v15  ;;  %v10959_v40 = vcombine.high %v191_v33, %v199_v34  ;;  %v278_v19 = vld [vmem:[#allocation9 + $0x2e0] sm:$0xff]  ;;  %v271_v21 = vld [vmem:[#allocation9 + $0x2a8] sm:$0xff] }
 0x270   :  { %6914 = vmatpush1.bf16.msra.mxu0 %v11880_v44  ;;  %7078 = vmatpush1.bf16.msra.mxu1 %v11882_v45  ;;  %v215_v44 = vld [vmem:[#allocation9 + $0xe8] sm:$0xff]  ;;  %v10956_v45 = vcombine.low %v190_v31, %v198_v15  ;;  %v286_v15 = vld [vmem:[#allocation9 + $0x320] sm:$0xff] }
 0x271   :  { %6915 = vmatprep.subr.bf16.mxu0 %v11897_v25  ;;  %7079 = vmatprep.subr.bf16.mxu1 %v11899_v47  ;;  %v10958_v25 = vcombine.low %v191_v33, %v199_v34  ;;  %v10973_v47 = vcombine.high %v206_v41, %v214_v42  ;;  %v10975_v48 = vcombine.high %v207_v43, %v215_v44  ;;  %v294_v33 = vld [vmem:[#allocation9 + $0x360] sm:$0xff]  ;;  %v287_v34 = vld [vmem:[#allocation9 + $0x328] sm:$0xff] }
 0x274   :  { %6916 = vmatpush1.bf16.msra.mxu0 %v11896_v54  ;;  %7080 = vmatpush1.bf16.msra.mxu1 %v11898_v56  ;;  %v231_v54 = vld [vmem:[#allocation9 + $0x168] sm:$0xff]  ;;  %v10972_v56 = vcombine.low %v206_v41, %v214_v42  ;;  %v302_v42 = vld [vmem:[#allocation9 + $0x3a0] sm:$0xff] }
 0x275   :  { %6917 = vmatprep.subr.bf16.mxu0 %v11913_v60  ;;  %7081 = vmatprep.subr.bf16.mxu1 %v11915_v61  ;;  %v10974_v60 = vcombine.low %v207_v43, %v215_v44  ;;  %v10989_v61 = vcombine.high %v222_v49, %v230_v51  ;;  %v10991_v62 = vcombine.high %v223_v52, %v231_v54  ;;  %v310_v43 = vld [vmem:[#allocation9 + $0x3e0] sm:$0xff]  ;;  %v303_v44 = vld [vmem:[#allocation9 + $0x3a8] sm:$0xff] }
 0x278   :  { %6918 = vmatpush1.bf16.msra.mxu0 %v11912_v39  ;;  %7082 = vmatpush1.bf16.msra.mxu1 %v11914_v3  ;;  %v247_v39 = vld [vmem:[#allocation9 + $0x1e8] sm:$0xff]  ;;  %v10988_v3 = vcombine.low %v222_v49, %v230_v51  ;;  %v318_v51 = vld [vmem:[#allocation9 + $0x420] sm:$0xff] }
 0x279   :  { %6919 = vmatprep.subr.bf16.mxu0 %v11929_v4  ;;  %7083 = vmatprep.subr.bf16.mxu1 %v11931_v5  ;;  %v10990_v4 = vcombine.low %v223_v52, %v231_v54  ;;  %v11005_v5 = vcombine.high %v238_v0, %v246_v1  ;;  %v11007_v6 = vcombine.high %v239_v2, %v247_v39  ;;  %v326_v52 = vld [vmem:[#allocation9 + $0x460] sm:$0xff]  ;;  %v319_v54 = vld [vmem:[#allocation9 + $0x428] sm:$0xff] }
 0x27c   :  { %6920 = vmatpush1.bf16.msra.mxu0 %v11928_v10  ;;  %7084 = vmatpush1.bf16.msra.mxu1 %v11930_v13  ;;  %v263_v10 = vld [vmem:[#allocation9 + $0x268] sm:$0xff]  ;;  %v11004_v13 = vcombine.low %v238_v0, %v246_v1  ;;  %v334_v1 = vld [vmem:[#allocation9 + $0x4a0] sm:$0xff] }
 0x27d   :  { %6921 = vmatprep.subr.bf16.mxu0 %v11945_v14  ;;  %7085 = vmatprep.subr.bf16.mxu1 %v11947_v16  ;;  %v11006_v14 = vcombine.low %v239_v2, %v247_v39  ;;  %v11021_v16 = vcombine.high %v254_v7, %v262_v8  ;;  %v11023_v17 = vcombine.high %v255_v9, %v263_v10  ;;  %v342_v2 = vld [vmem:[#allocation9 + $0x4e0] sm:$0xff]  ;;  %v335_v39 = vld [vmem:[#allocation9 + $0x4a8] sm:$0xff] }
 0x280   :  { %6922 = vmatpush1.bf16.msra.mxu0 %v11944_v23  ;;  %7086 = vmatpush1.bf16.msra.mxu1 %v11946_v24  ;;  %v279_v23 = vld [vmem:[#allocation9 + $0x2e8] sm:$0xff]  ;;  %v11020_v24 = vcombine.low %v254_v7, %v262_v8  ;;  %v350_v8 = vld [vmem:[#allocation9 + $0x520] sm:$0xff] }
 0x281   :  { %6923 = vmatprep.subr.bf16.mxu0 %v11961_v26  ;;  %7087 = vmatprep.subr.bf16.mxu1 %v11963_v29  ;;  %v11022_v26 = vcombine.low %v255_v9, %v263_v10  ;;  %v11037_v29 = vcombine.high %v270_v18, %v278_v19  ;;  %v11039_v31 = vcombine.high %v271_v21, %v279_v23  ;;  %v358_v9 = vld [vmem:[#allocation9 + $0x560] sm:$0xff]  ;;  %v351_v10 = vld [vmem:[#allocation9 + $0x528] sm:$0xff] }
 0x284   :  { %6924 = vmatpush1.bf16.msra.mxu0 %v11960_v35  ;;  %7088 = vmatpush1.bf16.msra.mxu1 %v11962_v37  ;;  %v295_v35 = vld [vmem:[#allocation9 + $0x368] sm:$0xff]  ;;  %v11036_v37 = vcombine.low %v270_v18, %v278_v19  ;;  %v366_v19 = vld [vmem:[#allocation9 + $0x5a0] sm:$0xff] }
 0x285   :  { %7098 = vmatprep.subr.bf16.mxu0 %v10957_v38  ;;  %7262 = vmatprep.subr.bf16.mxu1 %v10959_v40  ;;  %v11038_v38 = vcombine.low %v271_v21, %v279_v23  ;;  %v11053_v40 = vcombine.high %v286_v15, %v294_v33  ;;  %v11055_v41 = vcombine.high %v287_v34, %v295_v35  ;;  %v374_v21 = vld [vmem:[#allocation9 + $0x5e0] sm:$0xff]  ;;  %v367_v23 = vld [vmem:[#allocation9 + $0x5a8] sm:$0xff] }
 0x287   :  { %6926 = vmatmul.mubr.bf16.vlgmr.msra.gmra.mrb[4].mxu0 %v12715_v55  ;;  %7090 = vmatmul.mubr.bf16.vlgmr.msra.gmra.mrb[4].mxu1 %v12715_v55 }
 0x288   :  { %7099 = vmatpush1.bf16.msra.mxu0 %v10956_v45  ;;  %7263 = vmatpush1.bf16.msra.mxu1 %v10958_v25  ;;  %v311_v45 = vld [vmem:[#allocation9 + $0x3e8] sm:$0xff]  ;;  %v11052_v25 = vcombine.low %v286_v15, %v294_v33  ;;  %v382_v33 = vld [vmem:[#allocation9 + $0x620] sm:$0xff] }
 0x289   :  { %7100 = vmatprep.subr.bf16.mxu0 %v10973_v47  ;;  %7264 = vmatprep.subr.bf16.mxu1 %v10975_v48  ;;  %v11054_v47 = vcombine.low %v287_v34, %v295_v35  ;;  %v11069_v48 = vcombine.high %v302_v42, %v310_v43  ;;  %v11071_v49 = vcombine.high %v303_v44, %v311_v45  ;;  %v390_v34 = vld [vmem:[#allocation9 + $0x660] sm:$0xff]  ;;  %v383_v35 = vld [vmem:[#allocation9 + $0x628] sm:$0xff] }
 0x28a   :  { %7130 = vmatprep.mubr.bf16.mxu0 %v12667_v57  ;;  %7294 = vmatprep.mubr.bf16.mxu1 %v12667_v57 }
 0x28c   :  { %7101 = vmatpush1.bf16.msra.mxu0 %v10972_v56  ;;  %7265 = vmatpush1.bf16.msra.mxu1 %v10974_v60  ;;  %v327_v56 = vld [vmem:[#allocation9 + $0x468] sm:$0xff]  ;;  %v11068_v60 = vcombine.low %v302_v42, %v310_v43  ;;  %v398_v43 = vld [vmem:[#allocation9 + $0x6a0] sm:$0xff] }
 0x28d   :  { %7102 = vmatprep.subr.bf16.mxu0 %v10989_v61  ;;  %7266 = vmatprep.subr.bf16.mxu1 %v10991_v62  ;;  %v11070_v61 = vcombine.low %v303_v44, %v311_v45  ;;  %v11085_v62 = vcombine.high %v318_v51, %v326_v52  ;;  %v11087_v0 = vcombine.high %v319_v54, %v327_v56  ;;  %v406_v44 = vld [vmem:[#allocation9 + $0x6e0] sm:$0xff]  ;;  %v399_v45 = vld [vmem:[#allocation9 + $0x6a8] sm:$0xff] }
 0x290   :  { %7103 = vmatpush1.bf16.msra.mxu0 %v10988_v3  ;;  %7267 = vmatpush1.bf16.msra.mxu1 %v10990_v4  ;;  %v343_v3 = vld [vmem:[#allocation9 + $0x4e8] sm:$0xff]  ;;  %v11084_v4 = vcombine.low %v318_v51, %v326_v52  ;;  %v414_v52 = vld [vmem:[#allocation9 + $0x720] sm:$0xff] }
 0x291   :  { %7104 = vmatprep.subr.bf16.mxu0 %v11005_v5  ;;  %7268 = vmatprep.subr.bf16.mxu1 %v11007_v6  ;;  %v11086_v5 = vcombine.low %v319_v54, %v327_v56  ;;  %v11101_v6 = vcombine.high %v334_v1, %v342_v2  ;;  %v11103_v7 = vcombine.high %v335_v39, %v343_v3  ;;  %v422_v54 = vld [vmem:[#allocation9 + $0x760] sm:$0xff]  ;;  %v415_v56 = vld [vmem:[#allocation9 + $0x728] sm:$0xff] }
 0x294   :  { %7105 = vmatpush1.bf16.msra.mxu0 %v11004_v13  ;;  %7269 = vmatpush1.bf16.msra.mxu1 %v11006_v14  ;;  %v359_v13 = vld [vmem:[#allocation9 + $0x568] sm:$0xff]  ;;  %v11100_v14 = vcombine.low %v334_v1, %v342_v2  ;;  %v430_v2 = vld [vmem:[#allocation9 + $0x7a0] sm:$0xff] }
 0x295   :  { %7106 = vmatprep.subr.bf16.mxu0 %v11021_v16  ;;  %7270 = vmatprep.subr.bf16.mxu1 %v11023_v17  ;;  %v11102_v16 = vcombine.low %v335_v39, %v343_v3  ;;  %v11117_v17 = vcombine.high %v350_v8, %v358_v9  ;;  %v11119_v18 = vcombine.high %v351_v10, %v359_v13  ;;  %v438_v39 = vld [vmem:[#allocation9 + $0x7e0] sm:$0xff]  ;;  %v431_v3 = vld [vmem:[#allocation9 + $0x7a8] sm:$0xff] }
 0x298   :  { %7107 = vmatpush1.bf16.msra.mxu0 %v11020_v24  ;;  %7271 = vmatpush1.bf16.msra.mxu1 %v11022_v26  ;;  %v375_v24 = vld [vmem:[#allocation9 + $0x5e8] sm:$0xff]  ;;  %v11116_v26 = vcombine.low %v350_v8, %v358_v9  ;;  %v446_v9 = vld [vmem:[#allocation9 + $0x820] sm:$0xff] }
 0x299   :  { %7108 = vmatprep.subr.bf16.mxu0 %v11037_v29  ;;  %7272 = vmatprep.subr.bf16.mxu1 %v11039_v31  ;;  %v11118_v29 = vcombine.low %v351_v10, %v359_v13  ;;  %v11133_v31 = vcombine.high %v366_v19, %v374_v21  ;;  %v11135_v15 = vcombine.high %v367_v23, %v375_v24  ;;  %v454_v10 = vld [vmem:[#allocation9 + $0x860] sm:$0xff]  ;;  %v447_v13 = vld [vmem:[#allocation9 + $0x828] sm:$0xff] }
 0x29c   :  { %7109 = vmatpush1.bf16.msra.mxu0 %v11036_v37  ;;  %7273 = vmatpush1.bf16.msra.mxu1 %v11038_v38  ;;  %v391_v37 = vld [vmem:[#allocation9 + $0x668] sm:$0xff]  ;;  %v11132_v38 = vcombine.low %v366_v19, %v374_v21  ;;  %v462_v21 = vld [vmem:[#allocation9 + $0x8a0] sm:$0xff] }
 0x29d   :  { %7110 = vmatprep.subr.bf16.mxu0 %v11053_v40  ;;  %7274 = vmatprep.subr.bf16.mxu1 %v11055_v41  ;;  %v11134_v40 = vcombine.low %v367_v23, %v375_v24  ;;  %v11149_v41 = vcombine.high %v382_v33, %v390_v34  ;;  %v11151_v42 = vcombine.high %v383_v35, %v391_v37  ;;  %v470_v23 = vld [vmem:[#allocation9 + $0x8e0] sm:$0xff]  ;;  %v463_v24 = vld [vmem:[#allocation9 + $0x8a8] sm:$0xff] }
 0x2a0   :  { %7111 = vmatpush1.bf16.msra.mxu0 %v11052_v25  ;;  %7275 = vmatpush1.bf16.msra.mxu1 %v11054_v47  ;;  %v407_v25 = vld [vmem:[#allocation9 + $0x6e8] sm:$0xff]  ;;  %v11148_v47 = vcombine.low %v382_v33, %v390_v34  ;;  %v478_v34 = vld [vmem:[#allocation9 + $0x920] sm:$0xff] }
 0x2a1   :  { %7112 = vmatprep.subr.bf16.mxu0 %v11069_v48  ;;  %7276 = vmatprep.subr.bf16.mxu1 %v11071_v49  ;;  %v11150_v48 = vcombine.low %v383_v35, %v391_v37  ;;  %v11165_v49 = vcombine.high %v398_v43, %v406_v44  ;;  %v11167_v51 = vcombine.high %v399_v45, %v407_v25  ;;  %v486_v35 = vld [vmem:[#allocation9 + $0x960] sm:$0xff]  ;;  %v479_v37 = vld [vmem:[#allocation9 + $0x928] sm:$0xff] }
 0x2a4   :  { %7113 = vmatpush1.bf16.msra.mxu0 %v11068_v60  ;;  %7277 = vmatpush1.bf16.msra.mxu1 %v11070_v61  ;;  %v423_v60 = vld [vmem:[#allocation9 + $0x768] sm:$0xff]  ;;  %v11164_v61 = vcombine.low %v398_v43, %v406_v44  ;;  %v494_v44 = vld [vmem:[#allocation9 + $0x9a0] sm:$0xff] }
 0x2a5   :  { %7114 = vmatprep.subr.bf16.mxu0 %v11085_v62  ;;  %7278 = vmatprep.subr.bf16.mxu1 %v11087_v0  ;;  %v11166_v62 = vcombine.low %v399_v45, %v407_v25  ;;  %v11181_v0 = vcombine.high %v414_v52, %v422_v54  ;;  %v11183_v1 = vcombine.high %v415_v56, %v423_v60  ;;  %v502_v45 = vld [vmem:[#allocation9 + $0x9e0] sm:$0xff]  ;;  %v495_v25 = vld [vmem:[#allocation9 + $0x9a8] sm:$0xff] }
 0x2a8   :  { %7115 = vmatpush1.bf16.msra.mxu0 %v11084_v4  ;;  %7279 = vmatpush1.bf16.msra.mxu1 %v11086_v5  ;;  %v439_v4 = vld [vmem:[#allocation9 + $0x7e8] sm:$0xff]  ;;  %v11180_v5 = vcombine.low %v414_v52, %v422_v54  ;;  %v510_v54 = vld [vmem:[#allocation9 + $0xa20] sm:$0xff] }
 0x2a9   :  { %7116 = vmatprep.subr.bf16.mxu0 %v11101_v6  ;;  %7280 = vmatprep.subr.bf16.mxu1 %v11103_v7  ;;  %v11182_v6 = vcombine.low %v415_v56, %v423_v60  ;;  %v11197_v7 = vcombine.high %v430_v2, %v438_v39  ;;  %v11199_v8 = vcombine.high %v431_v3, %v439_v4  ;;  %v518_v56 = vld [vmem:[#allocation9 + $0xa60] sm:$0xff]  ;;  %v511_v60 = vld [vmem:[#allocation9 + $0xa28] sm:$0xff] }
 0x2ac   :  { %7117 = vmatpush1.bf16.msra.mxu0 %v11100_v14  ;;  %7281 = vmatpush1.bf16.msra.mxu1 %v11102_v16  ;;  %v455_v14 = vld [vmem:[#allocation9 + $0x868] sm:$0xff]  ;;  %v11196_v16 = vcombine.low %v430_v2, %v438_v39  ;;  %v526_v39 = vld [vmem:[#allocation9 + $0xaa0] sm:$0xff] }
 0x2ad   :  { %7118 = vmatprep.subr.bf16.mxu0 %v11117_v17  ;;  %7282 = vmatprep.subr.bf16.mxu1 %v11119_v18  ;;  %v11198_v17 = vcombine.low %v431_v3, %v439_v4  ;;  %v11213_v18 = vcombine.high %v446_v9, %v454_v10  ;;  %v11215_v19 = vcombine.high %v447_v13, %v455_v14  ;;  %v534_v3 = vld [vmem:[#allocation9 + $0xae0] sm:$0xff]  ;;  %v527_v4 = vld [vmem:[#allocation9 + $0xaa8] sm:$0xff] }
 0x2b0   :  { %7119 = vmatpush1.bf16.msra.mxu0 %v11116_v26  ;;  %7283 = vmatpush1.bf16.msra.mxu1 %v11118_v29  ;;  %v471_v26 = vld [vmem:[#allocation9 + $0x8e8] sm:$0xff]  ;;  %v11212_v29 = vcombine.low %v446_v9, %v454_v10  ;;  %v542_v10 = vld [vmem:[#allocation9 + $0xb20] sm:$0xff] }
 0x2b1   :  { %7120 = vmatprep.subr.bf16.mxu0 %v11133_v31  ;;  %7284 = vmatprep.subr.bf16.mxu1 %v11135_v15  ;;  %v11214_v31 = vcombine.low %v447_v13, %v455_v14  ;;  %v11229_v15 = vcombine.high %v462_v21, %v470_v23  ;;  %v11231_v33 = vcombine.high %v463_v24, %v471_v26  ;;  %v550_v13 = vld [vmem:[#allocation9 + $0xb60] sm:$0xff]  ;;  %v543_v14 = vld [vmem:[#allocation9 + $0xb28] sm:$0xff] }
 0x2b4   :  { %7121 = vmatpush1.bf16.msra.mxu0 %v11132_v38  ;;  %7285 = vmatpush1.bf16.msra.mxu1 %v11134_v40  ;;  %v487_v38 = vld [vmem:[#allocation9 + $0x968] sm:$0xff]  ;;  %v11228_v40 = vcombine.low %v462_v21, %v470_v23  ;;  %v558_v23 = vld [vmem:[#allocation9 + $0xba0] sm:$0xff] }
 0x2b5   :  { %7122 = vmatprep.subr.bf16.mxu0 %v11149_v41  ;;  %7286 = vmatprep.subr.bf16.mxu1 %v11151_v42  ;;  %v11230_v41 = vcombine.low %v463_v24, %v471_v26  ;;  %v11245_v42 = vcombine.high %v478_v34, %v486_v35  ;;  %v11247_v43 = vcombine.high %v479_v37, %v487_v38  ;;  %v566_v24 = vld [vmem:[#allocation9 + $0xbe0] sm:$0xff]  ;;  %v559_v26 = vld [vmem:[#allocation9 + $0xba8] sm:$0xff] }
 0x2b8   :  { %7123 = vmatpush1.bf16.msra.mxu0 %v11148_v47  ;;  %7287 = vmatpush1.bf16.msra.mxu1 %v11150_v48  ;;  %v503_v47 = vld [vmem:[#allocation9 + $0x9e8] sm:$0xff]  ;;  %v11244_v48 = vcombine.low %v478_v34, %v486_v35  ;;  %v574_v35 = vld [vmem:[#allocation9 + $0xc20] sm:$0xff] }
 0x2b9   :  { %7124 = vmatprep.subr.bf16.mxu0 %v11165_v49  ;;  %7288 = vmatprep.subr.bf16.mxu1 %v11167_v51  ;;  %v11246_v49 = vcombine.low %v479_v37, %v487_v38  ;;  %v11261_v51 = vcombine.high %v494_v44, %v502_v45  ;;  %v11263_v52 = vcombine.high %v495_v25, %v503_v47  ;;  %v582_v37 = vld [vmem:[#allocation9 + $0xc60] sm:$0xff]  ;;  %v575_v38 = vld [vmem:[#allocation9 + $0xc28] sm:$0xff] }
 0x2bc   :  { %7125 = vmatpush1.bf16.msra.mxu0 %v11164_v61  ;;  %7289 = vmatpush1.bf16.msra.mxu1 %v11166_v62  ;;  %v519_v61 = vld [vmem:[#allocation9 + $0xa68] sm:$0xff]  ;;  %v11260_v62 = vcombine.low %v494_v44, %v502_v45  ;;  %v590_v45 = vld [vmem:[#allocation9 + $0xca0] sm:$0xff] }
 0x2bd   :  { %7126 = vmatprep.subr.bf16.mxu0 %v11181_v0  ;;  %7290 = vmatprep.subr.bf16.mxu1 %v11183_v1  ;;  %v11262_v0 = vcombine.low %v495_v25, %v503_v47  ;;  %v11277_v1 = vcombine.high %v510_v54, %v518_v56  ;;  %v11279_v2 = vcombine.high %v511_v60, %v519_v61  ;;  %v598_v25 = vld [vmem:[#allocation9 + $0xce0] sm:$0xff]  ;;  %v591_v47 = vld [vmem:[#allocation9 + $0xca8] sm:$0xff] }
 0x2c0   :  { %7127 = vmatpush1.bf16.msra.mxu0 %v11180_v5  ;;  %7291 = vmatpush1.bf16.msra.mxu1 %v11182_v6  ;;  %v535_v5 = vld [vmem:[#allocation9 + $0xae8] sm:$0xff]  ;;  %v11276_v6 = vcombine.low %v510_v54, %v518_v56  ;;  %v606_v56 = vld [vmem:[#allocation9 + $0xd20] sm:$0xff] }
 0x2c1   :  { %7128 = vmatprep.subr.bf16.mxu0 %v11197_v7  ;;  %7292 = vmatprep.subr.bf16.mxu1 %v11199_v8  ;;  %v11278_v7 = vcombine.low %v511_v60, %v519_v61  ;;  %v11293_v8 = vcombine.high %v526_v39, %v534_v3  ;;  %v11295_v9 = vcombine.high %v527_v4, %v535_v5  ;;  %v614_v60 = vld [vmem:[#allocation9 + $0xd60] sm:$0xff]  ;;  %v607_v61 = vld [vmem:[#allocation9 + $0xd28] sm:$0xff] }
 0x2c4   :  { %7129 = vmatpush1.bf16.msra.mxu0 %v11196_v16  ;;  %7293 = vmatpush1.bf16.msra.mxu1 %v11198_v17  ;;  %v551_v16 = vld [vmem:[#allocation9 + $0xb68] sm:$0xff]  ;;  %v11292_v17 = vcombine.low %v526_v39, %v534_v3  ;;  %v622_v3 = vld [vmem:[#allocation9 + $0xda0] sm:$0xff] }
 0x2c5   :  { %7139 = vmatprep.subr.bf16.mxu0 %v11213_v18  ;;  %7303 = vmatprep.subr.bf16.mxu1 %v11215_v19  ;;  %v11294_v18 = vcombine.low %v527_v4, %v535_v5  ;;  %v11309_v19 = vcombine.high %v542_v10, %v550_v13  ;;  %v11311_v21 = vcombine.high %v543_v14, %v551_v16  ;;  %v630_v4 = vld [vmem:[#allocation9 + $0xde0] sm:$0xff]  ;;  %v623_v5 = vld [vmem:[#allocation9 + $0xda8] sm:$0xff] }
 0x2c7   :  { %7131 = vmatmul.mubr.bf16.vlgmr.msra.gmra.mrb[8].mxu0 %v12673_v12  ;;  %7295 = vmatmul.mubr.bf16.vlgmr.msra.gmra.mrb[8].mxu1 %v12673_v12 }
 0x2c8   :  { %7140 = vmatpush1.bf16.msra.mxu0 %v11212_v29  ;;  %7304 = vmatpush1.bf16.msra.mxu1 %v11214_v31  ;;  %v567_v29 = vld [vmem:[#allocation9 + $0xbe8] sm:$0xff]  ;;  %v11308_v31 = vcombine.low %v542_v10, %v550_v13  ;;  %v638_v13 = vld [vmem:[#allocation9 + $0xe20] sm:$0xff] }
 0x2c9   :  { %7141 = vmatprep.subr.bf16.mxu0 %v11229_v15  ;;  %7305 = vmatprep.subr.bf16.mxu1 %v11231_v33  ;;  %v11310_v15 = vcombine.low %v543_v14, %v551_v16  ;;  %v11325_v33 = vcombine.high %v558_v23, %v566_v24  ;;  %v11327_v34 = vcombine.high %v559_v26, %v567_v29  ;;  %v646_v14 = vld [vmem:[#allocation9 + $0xe60] sm:$0xff]  ;;  %v639_v16 = vld [vmem:[#allocation9 + $0xe28] sm:$0xff] }
 0x2ca   :  { %7171 = vmatprep.mubr.bf16.mxu0 %v12679_v22  ;;  %7335 = vmatprep.mubr.bf16.mxu1 %v12679_v22 }
 0x2cc   :  { %7142 = vmatpush1.bf16.msra.mxu0 %v11228_v40  ;;  %7306 = vmatpush1.bf16.msra.mxu1 %v11230_v41  ;;  %v583_v40 = vld [vmem:[#allocation9 + $0xc68] sm:$0xff]  ;;  %v11324_v41 = vcombine.low %v558_v23, %v566_v24  ;;  %v654_v24 = vld [vmem:[#allocation9 + $0xea0] sm:$0xff] }
 0x2cd   :  { %7143 = vmatprep.subr.bf16.mxu0 %v11245_v42  ;;  %7307 = vmatprep.subr.bf16.mxu1 %v11247_v43  ;;  %v11326_v42 = vcombine.low %v559_v26, %v567_v29  ;;  %v11341_v43 = vcombine.high %v574_v35, %v582_v37  ;;  %v11343_v44 = vcombine.high %v575_v38, %v583_v40  ;;  %v662_v26 = vld [vmem:[#allocation9 + $0xee0] sm:$0xff]  ;;  %v655_v29 = vld [vmem:[#allocation9 + $0xea8] sm:$0xff] }
 0x2d0   :  { %7144 = vmatpush1.bf16.msra.mxu0 %v11244_v48  ;;  %7308 = vmatpush1.bf16.msra.mxu1 %v11246_v49  ;;  %v599_v48 = vld [vmem:[#allocation9 + $0xce8] sm:$0xff]  ;;  %v11340_v49 = vcombine.low %v574_v35, %v582_v37  ;;  %v670_v37 = vld [vmem:[#allocation9 + $0xf20] sm:$0xff] }
 0x2d1   :  { %7145 = vmatprep.subr.bf16.mxu0 %v11261_v51  ;;  %7309 = vmatprep.subr.bf16.mxu1 %v11263_v52  ;;  %v11342_v51 = vcombine.low %v575_v38, %v583_v40  ;;  %v11357_v52 = vcombine.high %v590_v45, %v598_v25  ;;  %v11359_v54 = vcombine.high %v591_v47, %v599_v48  ;;  %v678_v38 = vld [vmem:[#allocation9 + $0xf60] sm:$0xff]  ;;  %v671_v40 = vld [vmem:[#allocation9 + $0xf28] sm:$0xff] }
 0x2d4   :  { %7146 = vmatpush1.bf16.msra.mxu0 %v11260_v62  ;;  %7310 = vmatpush1.bf16.msra.mxu1 %v11262_v0  ;;  %v615_v62 = vld [vmem:[#allocation9 + $0xd68] sm:$0xff]  ;;  %v11356_v0 = vcombine.low %v590_v45, %v598_v25  ;;  %v686_v25 = vld [vmem:[#allocation9 + $0xfa0] sm:$0xff] }
 0x2d5   :  { %7147 = vmatprep.subr.bf16.mxu0 %v11277_v1  ;;  %7311 = vmatprep.subr.bf16.mxu1 %v11279_v2  ;;  %v11358_v1 = vcombine.low %v591_v47, %v599_v48  ;;  %v11373_v2 = vcombine.high %v606_v56, %v614_v60  ;;  %v11375_v39 = vcombine.high %v607_v61, %v615_v62  ;;  %v694_v47 = vld [vmem:[#allocation9 + $0xfe0] sm:$0xff]  ;;  %v687_v48 = vld [vmem:[#allocation9 + $0xfa8] sm:$0xff] }
 0x2d8   :  { %7148 = vmatpush1.bf16.msra.mxu0 %v11276_v6  ;;  %7312 = vmatpush1.bf16.msra.mxu1 %v11278_v7  ;;  %v631_v6 = vld [vmem:[#allocation9 + $0xde8] sm:$0xff]  ;;  %v11372_v7 = vcombine.low %v606_v56, %v614_v60  ;;  %v702_v60 = vld [vmem:[#allocation9 + $0x1020] sm:$0xff] }
 0x2d9   :  { %7149 = vmatprep.subr.bf16.mxu0 %v11293_v8  ;;  %7313 = vmatprep.subr.bf16.mxu1 %v11295_v9  ;;  %v11374_v8 = vcombine.low %v607_v61, %v615_v62  ;;  %v11389_v9 = vcombine.high %v622_v3, %v630_v4  ;;  %v11391_v10 = vcombine.high %v623_v5, %v631_v6  ;;  %v710_v61 = vld [vmem:[#allocation9 + $0x1060] sm:$0xff]  ;;  %v703_v62 = vld [vmem:[#allocation9 + $0x1028] sm:$0xff] }
 0x2dc   :  { %7150 = vmatpush1.bf16.msra.mxu0 %v11292_v17  ;;  %7314 = vmatpush1.bf16.msra.mxu1 %v11294_v18  ;;  %v647_v17 = vld [vmem:[#allocation9 + $0xe68] sm:$0xff]  ;;  %v11388_v18 = vcombine.low %v622_v3, %v630_v4  ;;  %v718_v4 = vld [vmem:[#allocation9 + $0x10a0] sm:$0xff] }
 0x2dd   :  { %7151 = vmatprep.subr.bf16.mxu0 %v11309_v19  ;;  %7315 = vmatprep.subr.bf16.mxu1 %v11311_v21  ;;  %v11390_v19 = vcombine.low %v623_v5, %v631_v6  ;;  %v11405_v21 = vcombine.high %v638_v13, %v646_v14  ;;  %v11407_v23 = vcombine.high %v639_v16, %v647_v17  ;;  %v726_v5 = vld [vmem:[#allocation9 + $0x10e0] sm:$0xff]  ;;  %v719_v6 = vld [vmem:[#allocation9 + $0x10a8] sm:$0xff] }
 0x2e0   :  { %7152 = vmatpush1.bf16.msra.mxu0 %v11308_v31  ;;  %7316 = vmatpush1.bf16.msra.mxu1 %v11310_v15  ;;  %v663_v31 = vld [vmem:[#allocation9 + $0xee8] sm:$0xff]  ;;  %v11404_v15 = vcombine.low %v638_v13, %v646_v14  ;;  %v734_v14 = vld [vmem:[#allocation9 + $0x1120] sm:$0xff] }
 0x2e1   :  { %7153 = vmatprep.subr.bf16.mxu0 %v11325_v33  ;;  %7317 = vmatprep.subr.bf16.mxu1 %v11327_v34  ;;  %v11406_v33 = vcombine.low %v639_v16, %v647_v17  ;;  %v11421_v34 = vcombine.high %v654_v24, %v662_v26  ;;  %v11423_v35 = vcombine.high %v655_v29, %v663_v31  ;;  %v742_v16 = vld [vmem:[#allocation9 + $0x1160] sm:$0xff]  ;;  %v735_v17 = vld [vmem:[#allocation9 + $0x1128] sm:$0xff] }
 0x2e4   :  { %7154 = vmatpush1.bf16.msra.mxu0 %v11324_v41  ;;  %7318 = vmatpush1.bf16.msra.mxu1 %v11326_v42  ;;  %v679_v41 = vld [vmem:[#allocation9 + $0xf68] sm:$0xff]  ;;  %v11420_v42 = vcombine.low %v654_v24, %v662_v26  ;;  %v750_v26 = vld [vmem:[#allocation9 + $0x11a0] sm:$0xff] }
 0x2e5   :  { %7155 = vmatprep.subr.bf16.mxu0 %v11341_v43  ;;  %7319 = vmatprep.subr.bf16.mxu1 %v11343_v44  ;;  %v11422_v43 = vcombine.low %v655_v29, %v663_v31  ;;  %v11437_v44 = vcombine.high %v670_v37, %v678_v38  ;;  %v11439_v45 = vcombine.high %v671_v40, %v679_v41  ;;  %v758_v29 = vld [vmem:[#allocation9 + $0x11e0] sm:$0xff]  ;;  %v751_v31 = vld [vmem:[#allocation9 + $0x11a8] sm:$0xff] }
 0x2e8   :  { %7156 = vmatpush1.bf16.msra.mxu0 %v11340_v49  ;;  %7320 = vmatpush1.bf16.msra.mxu1 %v11342_v51  ;;  %v695_v49 = vld [vmem:[#allocation9 + $0xfe8] sm:$0xff]  ;;  %v11436_v51 = vcombine.low %v670_v37, %v678_v38  ;;  %v766_v38 = vld [vmem:[#allocation9 + $0x1220] sm:$0xff] }
 0x2e9   :  { %7157 = vmatprep.subr.bf16.mxu0 %v11357_v52  ;;  %7321 = vmatprep.subr.bf16.mxu1 %v11359_v54  ;;  %v11438_v52 = vcombine.low %v671_v40, %v679_v41  ;;  %v11453_v54 = vcombine.high %v686_v25, %v694_v47  ;;  %v11455_v56 = vcombine.high %v687_v48, %v695_v49  ;;  %v774_v40 = vld [vmem:[#allocation9 + $0x1260] sm:$0xff]  ;;  %v767_v41 = vld [vmem:[#allocation9 + $0x1228] sm:$0xff] }
 0x2ec   :  { %7158 = vmatpush1.bf16.msra.mxu0 %v11356_v0  ;;  %7322 = vmatpush1.bf16.msra.mxu1 %v11358_v1  ;;  %v711_v0 = vld [vmem:[#allocation9 + $0x1068] sm:$0xff]  ;;  %v11452_v1 = vcombine.low %v686_v25, %v694_v47  ;;  %v782_v47 = vld [vmem:[#allocation9 + $0x12a0] sm:$0xff] }
 0x2ed   :  { %7159 = vmatprep.subr.bf16.mxu0 %v11373_v2  ;;  %7323 = vmatprep.subr.bf16.mxu1 %v11375_v39  ;;  %v11454_v2 = vcombine.low %v687_v48, %v695_v49  ;;  %v11469_v39 = vcombine.high %v702_v60, %v710_v61  ;;  %v11471_v3 = vcombine.high %v703_v62, %v711_v0  ;;  %v790_v48 = vld [vmem:[#allocation9 + $0x12e0] sm:$0xff]  ;;  %v783_v49 = vld [vmem:[#allocation9 + $0x12a8] sm:$0xff] }
 0x2f0   :  { %7160 = vmatpush1.bf16.msra.mxu0 %v11372_v7  ;;  %7324 = vmatpush1.bf16.msra.mxu1 %v11374_v8  ;;  %v727_v7 = vld [vmem:[#allocation9 + $0x10e8] sm:$0xff]  ;;  %v11468_v8 = vcombine.low %v702_v60, %v710_v61  ;;  %v798_v61 = vld [vmem:[#allocation9 + $0x1320] sm:$0xff] }
 0x2f1   :  { %7161 = vmatprep.subr.bf16.mxu0 %v11389_v9  ;;  %7325 = vmatprep.subr.bf16.mxu1 %v11391_v10  ;;  %v11470_v9 = vcombine.low %v703_v62, %v711_v0  ;;  %v11485_v10 = vcombine.high %v718_v4, %v726_v5  ;;  %v11487_v13 = vcombine.high %v719_v6, %v727_v7  ;;  %v806_v62 = vld [vmem:[#allocation9 + $0x1360] sm:$0xff]  ;;  %v799_v0 = vld [vmem:[#allocation9 + $0x1328] sm:$0xff] }
 0x2f4   :  { %7162 = vmatpush1.bf16.msra.mxu0 %v11388_v18  ;;  %7326 = vmatpush1.bf16.msra.mxu1 %v11390_v19  ;;  %v743_v18 = vld [vmem:[#allocation9 + $0x1168] sm:$0xff]  ;;  %v11484_v19 = vcombine.low %v718_v4, %v726_v5  ;;  %v814_v5 = vld [vmem:[#allocation9 + $0x13a0] sm:$0xff] }
 0x2f5   :  { %7163 = vmatprep.subr.bf16.mxu0 %v11405_v21  ;;  %7327 = vmatprep.subr.bf16.mxu1 %v11407_v23  ;;  %v11486_v21 = vcombine.low %v719_v6, %v727_v7  ;;  %v11501_v23 = vcombine.high %v734_v14, %v742_v16  ;;  %v11503_v24 = vcombine.high %v735_v17, %v743_v18  ;;  %v822_v6 = vld [vmem:[#allocation9 + $0x13e0] sm:$0xff]  ;;  %v815_v7 = vld [vmem:[#allocation9 + $0x13a8] sm:$0xff] }
 0x2f8   :  { %7164 = vmatpush1.bf16.msra.mxu0 %v11404_v15  ;;  %7328 = vmatpush1.bf16.msra.mxu1 %v11406_v33  ;;  %v759_v15 = vld [vmem:[#allocation9 + $0x11e8] sm:$0xff]  ;;  %v11500_v33 = vcombine.low %v734_v14, %v742_v16  ;;  %v830_v16 = vld [vmem:[#allocation9 + $0x1420] sm:$0xff] }
 0x2f9   :  { %7165 = vmatprep.subr.bf16.mxu0 %v11421_v34  ;;  %7329 = vmatprep.subr.bf16.mxu1 %v11423_v35  ;;  %v11502_v34 = vcombine.low %v735_v17, %v743_v18  ;;  %v11517_v35 = vcombine.high %v750_v26, %v758_v29  ;;  %v11519_v37 = vcombine.high %v751_v31, %v759_v15  ;;  %v838_v17 = vld [vmem:[#allocation9 + $0x1460] sm:$0xff]  ;;  %v831_v18 = vld [vmem:[#allocation9 + $0x1428] sm:$0xff] }
 0x2fc   :  { %7166 = vmatpush1.bf16.msra.mxu0 %v11420_v42  ;;  %7330 = vmatpush1.bf16.msra.mxu1 %v11422_v43  ;;  %v775_v42 = vld [vmem:[#allocation9 + $0x1268] sm:$0xff]  ;;  %v11516_v43 = vcombine.low %v750_v26, %v758_v29  ;;  %v846_v29 = vld [vmem:[#allocation9 + $0x14a0] sm:$0xff] }
 0x2fd   :  { %7167 = vmatprep.subr.bf16.mxu0 %v11437_v44  ;;  %7331 = vmatprep.subr.bf16.mxu1 %v11439_v45  ;;  %v11518_v44 = vcombine.low %v751_v31, %v759_v15  ;;  %v11533_v45 = vcombine.high %v766_v38, %v774_v40  ;;  %v11535_v25 = vcombine.high %v767_v41, %v775_v42  ;;  %v854_v31 = vld [vmem:[#allocation9 + $0x14e0] sm:$0xff]  ;;  %v847_v15 = vld [vmem:[#allocation9 + $0x14a8] sm:$0xff] }
 0x300   :  { %7168 = vmatpush1.bf16.msra.mxu0 %v11436_v51  ;;  %7332 = vmatpush1.bf16.msra.mxu1 %v11438_v52  ;;  %v791_v51 = vld [vmem:[#allocation9 + $0x12e8] sm:$0xff]  ;;  %v11532_v52 = vcombine.low %v766_v38, %v774_v40  ;;  %v862_v40 = vld [vmem:[#allocation9 + $0x1520] sm:$0xff] }
 0x301   :  { %7169 = vmatprep.subr.bf16.mxu0 %v11453_v54  ;;  %7333 = vmatprep.subr.bf16.mxu1 %v11455_v56  ;;  %v11534_v54 = vcombine.low %v767_v41, %v775_v42  ;;  %v11549_v56 = vcombine.high %v782_v47, %v790_v48  ;;  %v11551_v60 = vcombine.high %v783_v49, %v791_v51  ;;  %v870_v41 = vld [vmem:[#allocation9 + $0x1560] sm:$0xff]  ;;  %v863_v42 = vld [vmem:[#allocation9 + $0x1528] sm:$0xff] }
 0x304   :  { %7170 = vmatpush1.bf16.msra.mxu0 %v11452_v1  ;;  %7334 = vmatpush1.bf16.msra.mxu1 %v11454_v2  ;;  %v807_v1 = vld [vmem:[#allocation9 + $0x1368] sm:$0xff]  ;;  %v11548_v2 = vcombine.low %v782_v47, %v790_v48  ;;  %v878_v48 = vld [vmem:[#allocation9 + $0x15a0] sm:$0xff] }
 0x305   :  { %7180 = vmatprep.subr.bf16.mxu0 %v11469_v39  ;;  %7344 = vmatprep.subr.bf16.mxu1 %v11471_v3  ;;  %v11550_v39 = vcombine.low %v783_v49, %v791_v51  ;;  %v11565_v3 = vcombine.high %v798_v61, %v806_v62  ;;  %v11567_v4 = vcombine.high %v799_v0, %v807_v1  ;;  %v886_v49 = vld [vmem:[#allocation9 + $0x15e0] sm:$0xff]  ;;  %v879_v51 = vld [vmem:[#allocation9 + $0x15a8] sm:$0xff] }
 0x307   :  { %7172 = vmatmul.mubr.bf16.vlgmr.msra.gmra.mrb[8].mxu0 %v12687_v53  ;;  %7336 = vmatmul.mubr.bf16.vlgmr.msra.gmra.mrb[8].mxu1 %v12687_v53 }
 0x308   :  { %7181 = vmatpush1.bf16.msra.mxu0 %v11468_v8  ;;  %7345 = vmatpush1.bf16.msra.mxu1 %v11470_v9  ;;  %v823_v8 = vld [vmem:[#allocation9 + $0x13e8] sm:$0xff]  ;;  %v11564_v9 = vcombine.low %v798_v61, %v806_v62  ;;  %v894_v62 = vld [vmem:[#allocation9 + $0x1620] sm:$0xff] }
 0x309   :  { %7182 = vmatprep.subr.bf16.mxu0 %v11485_v10  ;;  %7346 = vmatprep.subr.bf16.mxu1 %v11487_v13  ;;  %v11566_v10 = vcombine.low %v799_v0, %v807_v1  ;;  %v11581_v13 = vcombine.high %v814_v5, %v822_v6  ;;  %v11583_v14 = vcombine.high %v815_v7, %v823_v8  ;;  %v902_v0 = vld [vmem:[#allocation9 + $0x1660] sm:$0xff]  ;;  %v895_v1 = vld [vmem:[#allocation9 + $0x1628] sm:$0xff] }
 0x30a   :  { %7212 = vmatprep.mubr.bf16.mxu0 %v12693_v32  ;;  %7376 = vmatprep.mubr.bf16.mxu1 %v12693_v32 }
 0x30c   :  { %7183 = vmatpush1.bf16.msra.mxu0 %v11484_v19  ;;  %7347 = vmatpush1.bf16.msra.mxu1 %v11486_v21  ;;  %v839_v19 = vld [vmem:[#allocation9 + $0x1468] sm:$0xff]  ;;  %v11580_v21 = vcombine.low %v814_v5, %v822_v6  ;;  %v910_v6 = vld [vmem:[#allocation9 + $0x16a0] sm:$0xff] }
 0x30d   :  { %7184 = vmatprep.subr.bf16.mxu0 %v11501_v23  ;;  %7348 = vmatprep.subr.bf16.mxu1 %v11503_v24  ;;  %v11582_v23 = vcombine.low %v815_v7, %v823_v8  ;;  %v11597_v24 = vcombine.high %v830_v16, %v838_v17  ;;  %v11599_v26 = vcombine.high %v831_v18, %v839_v19  ;;  %v918_v7 = vld [vmem:[#allocation9 + $0x16e0] sm:$0xff]  ;;  %v911_v8 = vld [vmem:[#allocation9 + $0x16a8] sm:$0xff] }
 0x310   :  { %7185 = vmatpush1.bf16.msra.mxu0 %v11500_v33  ;;  %7349 = vmatpush1.bf16.msra.mxu1 %v11502_v34  ;;  %v855_v33 = vld [vmem:[#allocation9 + $0x14e8] sm:$0xff]  ;;  %v11596_v34 = vcombine.low %v830_v16, %v838_v17  ;;  %v926_v17 = vld [vmem:[#allocation9 + $0x1720] sm:$0xff] }
 0x311   :  { %7186 = vmatprep.subr.bf16.mxu0 %v11517_v35  ;;  %7350 = vmatprep.subr.bf16.mxu1 %v11519_v37  ;;  %v11598_v35 = vcombine.low %v831_v18, %v839_v19  ;;  %v11613_v37 = vcombine.high %v846_v29, %v854_v31  ;;  %v11615_v38 = vcombine.high %v847_v15, %v855_v33  ;;  %v934_v18 = vld [vmem:[#allocation9 + $0x1760] sm:$0xff]  ;;  %v927_v19 = vld [vmem:[#allocation9 + $0x1728] sm:$0xff] }
 0x314   :  { %7187 = vmatpush1.bf16.msra.mxu0 %v11516_v43  ;;  %7351 = vmatpush1.bf16.msra.mxu1 %v11518_v44  ;;  %v871_v43 = vld [vmem:[#allocation9 + $0x1568] sm:$0xff]  ;;  %v11612_v44 = vcombine.low %v846_v29, %v854_v31  ;;  %v942_v31 = vld [vmem:[#allocation9 + $0x17a0] sm:$0xff] }
 0x315   :  { %7188 = vmatprep.subr.bf16.mxu0 %v11533_v45  ;;  %7352 = vmatprep.subr.bf16.mxu1 %v11535_v25  ;;  %v11614_v45 = vcombine.low %v847_v15, %v855_v33  ;;  %v11629_v25 = vcombine.high %v862_v40, %v870_v41  ;;  %v11631_v47 = vcombine.high %v863_v42, %v871_v43  ;;  %v950_v15 = vld [vmem:[#allocation9 + $0x17e0] sm:$0xff]  ;;  %v943_v33 = vld [vmem:[#allocation9 + $0x17a8] sm:$0xff] }
 0x318   :  { %7189 = vmatpush1.bf16.msra.mxu0 %v11532_v52  ;;  %7353 = vmatpush1.bf16.msra.mxu1 %v11534_v54  ;;  %v887_v52 = vld [vmem:[#allocation9 + $0x15e8] sm:$0xff]  ;;  %v11628_v54 = vcombine.low %v862_v40, %v870_v41  ;;  %v958_v41 = vld [vmem:[#allocation9 + $0x1820] sm:$0xff] }
 0x319   :  { %7190 = vmatprep.subr.bf16.mxu0 %v11549_v56  ;;  %7354 = vmatprep.subr.bf16.mxu1 %v11551_v60  ;;  %v11630_v56 = vcombine.low %v863_v42, %v871_v43  ;;  %v11645_v60 = vcombine.high %v878_v48, %v886_v49  ;;  %v11647_v61 = vcombine.high %v879_v51, %v887_v52  ;;  %v966_v42 = vld [vmem:[#allocation9 + $0x1860] sm:$0xff]  ;;  %v959_v43 = vld [vmem:[#allocation9 + $0x1828] sm:$0xff] }
 0x31c   :  { %7191 = vmatpush1.bf16.msra.mxu0 %v11548_v2  ;;  %7355 = vmatpush1.bf16.msra.mxu1 %v11550_v39  ;;  %v903_v2 = vld [vmem:[#allocation9 + $0x1668] sm:$0xff]  ;;  %v11644_v39 = vcombine.low %v878_v48, %v886_v49  ;;  %v974_v49 = vld [vmem:[#allocation9 + $0x18a0] sm:$0xff] }
 0x31d   :  { %7192 = vmatprep.subr.bf16.mxu0 %v11565_v3  ;;  %7356 = vmatprep.subr.bf16.mxu1 %v11567_v4  ;;  %v11646_v3 = vcombine.low %v879_v51, %v887_v52  ;;  %v11661_v4 = vcombine.high %v894_v62, %v902_v0  ;;  %v11663_v5 = vcombine.high %v895_v1, %v903_v2  ;;  %v982_v51 = vld [vmem:[#allocation9 + $0x18e0] sm:$0xff]  ;;  %v975_v52 = vld [vmem:[#allocation9 + $0x18a8] sm:$0xff] }
 0x320   :  { %7193 = vmatpush1.bf16.msra.mxu0 %v11564_v9  ;;  %7357 = vmatpush1.bf16.msra.mxu1 %v11566_v10  ;;  %v919_v9 = vld [vmem:[#allocation9 + $0x16e8] sm:$0xff]  ;;  %v11660_v10 = vcombine.low %v894_v62, %v902_v0  ;;  %v990_v0 = vld [vmem:[#allocation9 + $0x1920] sm:$0xff] }
 0x321   :  { %7194 = vmatprep.subr.bf16.mxu0 %v11581_v13  ;;  %7358 = vmatprep.subr.bf16.mxu1 %v11583_v14  ;;  %v11662_v13 = vcombine.low %v895_v1, %v903_v2  ;;  %v11677_v14 = vcombine.high %v910_v6, %v918_v7  ;;  %v11679_v16 = vcombine.high %v911_v8, %v919_v9  ;;  %v998_v1 = vld [vmem:[#allocation9 + $0x1960] sm:$0xff]  ;;  %v991_v2 = vld [vmem:[#allocation9 + $0x1928] sm:$0xff] }
 0x324   :  { %7195 = vmatpush1.bf16.msra.mxu0 %v11580_v21  ;;  %7359 = vmatpush1.bf16.msra.mxu1 %v11582_v23  ;;  %v935_v21 = vld [vmem:[#allocation9 + $0x1768] sm:$0xff]  ;;  %v11676_v23 = vcombine.low %v910_v6, %v918_v7  ;;  %v1006_v7 = vld [vmem:[#allocation9 + $0x19a0] sm:$0xff] }
 0x325   :  { %7196 = vmatprep.subr.bf16.mxu0 %v11597_v24  ;;  %7360 = vmatprep.subr.bf16.mxu1 %v11599_v26  ;;  %v11678_v24 = vcombine.low %v911_v8, %v919_v9  ;;  %v11693_v26 = vcombine.high %v926_v17, %v934_v18  ;;  %v11695_v29 = vcombine.high %v927_v19, %v935_v21  ;;  %v1014_v8 = vld [vmem:[#allocation9 + $0x19e0] sm:$0xff]  ;;  %v1007_v9 = vld [vmem:[#allocation9 + $0x19a8] sm:$0xff] }
 0x328   :  { %7197 = vmatpush1.bf16.msra.mxu0 %v11596_v34  ;;  %7361 = vmatpush1.bf16.msra.mxu1 %v11598_v35  ;;  %v951_v34 = vld [vmem:[#allocation9 + $0x17e8] sm:$0xff]  ;;  %v11692_v35 = vcombine.low %v926_v17, %v934_v18  ;;  %v1022_v18 = vld [vmem:[#allocation9 + $0x1a20] sm:$0xff] }
 0x329   :  { %7198 = vmatprep.subr.bf16.mxu0 %v11613_v37  ;;  %7362 = vmatprep.subr.bf16.mxu1 %v11615_v38  ;;  %v11694_v37 = vcombine.low %v927_v19, %v935_v21  ;;  %v11709_v38 = vcombine.high %v942_v31, %v950_v15  ;;  %v11711_v40 = vcombine.high %v943_v33, %v951_v34  ;;  %v1030_v19 = vld [vmem:[#allocation9 + $0x1a60] sm:$0xff]  ;;  %v1023_v21 = vld [vmem:[#allocation9 + $0x1a28] sm:$0xff] }
 0x32c   :  { %7199 = vmatpush1.bf16.msra.mxu0 %v11612_v44  ;;  %7363 = vmatpush1.bf16.msra.mxu1 %v11614_v45  ;;  %v967_v44 = vld [vmem:[#allocation9 + $0x1868] sm:$0xff]  ;;  %v11708_v45 = vcombine.low %v942_v31, %v950_v15  ;;  %v1038_v15 = vld [vmem:[#allocation9 + $0x1aa0] sm:$0xff] }
 0x32d   :  { %7200 = vmatprep.subr.bf16.mxu0 %v11629_v25  ;;  %7364 = vmatprep.subr.bf16.mxu1 %v11631_v47  ;;  %v11710_v25 = vcombine.low %v943_v33, %v951_v34  ;;  %v11725_v47 = vcombine.high %v958_v41, %v966_v42  ;;  %v11727_v48 = vcombine.high %v959_v43, %v967_v44  ;;  %v1046_v33 = vld [vmem:[#allocation9 + $0x1ae0] sm:$0xff]  ;;  %v12776_v34 = vsub.s32 4, %v12733_v11 }
 0x330   :  { %7201 = vmatpush1.bf16.msra.mxu0 %v11628_v54  ;;  %7365 = vmatpush1.bf16.msra.mxu1 %v11630_v56  ;;  %v983_v54 = vld [vmem:[#allocation9 + $0x18e8] sm:$0xff]  ;;  %v11724_v56 = vcombine.low %v958_v41, %v966_v42  ;;  %v12782_v41 = vsub.s32 5, %v12733_v11 }
 0x331   :  { %7202 = vmatprep.subr.bf16.mxu0 %v11645_v60  ;;  %7366 = vmatprep.subr.bf16.mxu1 %v11647_v61  ;;  %v11726_v60 = vcombine.low %v959_v43, %v967_v44  ;;  %v11741_v61 = vcombine.high %v974_v49, %v982_v51  ;;  %v11743_v62 = vcombine.high %v975_v52, %v983_v54  ;;  %v12785_v43 = vsub.s32 7, %v12733_v11 }
 0x332   :  { %v11805_v44 = vcombine.high %v1038_v15, %v1046_v33 }
 0x334   :  { %7203 = vmatpush1.bf16.msra.mxu0 %v11644_v39  ;;  %7367 = vmatpush1.bf16.msra.mxu1 %v11646_v3  ;;  %v999_v39 = vld [vmem:[#allocation9 + $0x1968] sm:$0xff]  ;;  %v11740_v3 = vcombine.low %v974_v49, %v982_v51 }
 0x335   :  { %7204 = vmatprep.subr.bf16.mxu0 %v11661_v4  ;;  %7368 = vmatprep.subr.bf16.mxu1 %v11663_v5  ;;  %v11742_v4 = vcombine.low %v975_v52, %v983_v54  ;;  %v11757_v5 = vcombine.high %v990_v0, %v998_v1  ;;  %v11759_v6 = vcombine.high %v991_v2, %v999_v39  ;;  %v1055_v51 = vld [vmem:[#allocation9 + $0x1b28] sm:$0xff] }
 0x336   :  { %v1063_v52 = vld [vmem:[#allocation9 + $0x1b68] sm:$0xff] }
 0x338   :  { %7205 = vmatpush1.bf16.msra.mxu0 %v11660_v10  ;;  %7369 = vmatpush1.bf16.msra.mxu1 %v11662_v13  ;;  %v1015_v10 = vld [vmem:[#allocation9 + $0x19e8] sm:$0xff]  ;;  %v11756_v13 = vcombine.low %v990_v0, %v998_v1  ;;  %v11823_v1 = vcombine.high %v1055_v51, %v1063_v52 }
 0x339   :  { %7206 = vmatprep.subr.bf16.mxu0 %v11677_v14  ;;  %7370 = vmatprep.subr.bf16.mxu1 %v11679_v16  ;;  %v11758_v14 = vcombine.low %v991_v2, %v999_v39  ;;  %v11773_v16 = vcombine.high %v1006_v7, %v1014_v8  ;;  %v11775_v17 = vcombine.high %v1007_v9, %v1015_v10  ;;  %v1070_v2 = vld [vmem:[#allocation9 + $0x1ba0] sm:$0xff] }
 0x33a   :  { %v1078_v39 = vld [vmem:[#allocation9 + $0x1be0] sm:$0xff] }
 0x33c   :  { %7207 = vmatpush1.bf16.msra.mxu0 %v11676_v23  ;;  %7371 = vmatpush1.bf16.msra.mxu1 %v11678_v24  ;;  %v1031_v23 = vld [vmem:[#allocation9 + $0x1a68] sm:$0xff]  ;;  %v11772_v24 = vcombine.low %v1006_v7, %v1014_v8 }
 0x33d   :  { %7208 = vmatprep.subr.bf16.mxu0 %v11693_v26  ;;  %7372 = vmatprep.subr.bf16.mxu1 %v11695_v29  ;;  %v11774_v26 = vcombine.low %v1007_v9, %v1015_v10  ;;  %v11789_v29 = vcombine.high %v1022_v18, %v1030_v19  ;;  %v11791_v31 = vcombine.high %v1023_v21, %v1031_v23  ;;  %v1079_v7 = vld [vmem:[#allocation9 + $0x1be8] sm:$0xff] }
 0x33e   :  { %v11790_v42 = vcombine.low %v1023_v21, %v1031_v23  ;;  %v11837_v21 = vcombine.high %v1070_v2, %v1078_v39 }
 0x340   :  { %7209 = vmatpush1.bf16.msra.mxu0 %v11692_v35  ;;  %7373 = vmatpush1.bf16.msra.mxu1 %v11694_v37  ;;  %v1039_v35 = vld [vmem:[#allocation9 + $0x1aa8] sm:$0xff] }
 0x341   :  { %7210 = vmatprep.subr.bf16.mxu0 %v11709_v38  ;;  %7374 = vmatprep.subr.bf16.mxu1 %v11711_v40  ;;  %v1047_v37 = vld [vmem:[#allocation9 + $0x1ae8] sm:$0xff]  ;;  %v11788_v38 = vcombine.low %v1022_v18, %v1030_v19  ;;  %v12779_v40 = vsub.s32 6, %v12733_v11  ;;  %v11822_v19 = vcombine.low %v1055_v51, %v1063_v52  ;;  %v1118_v52 = vld [vmem:[#allocation9 + $0x1d20] sm:$0xff] }
 0x344   :  { %7211 = vmatpush1.bf16.msra.mxu0 %v11708_v45  ;;  %7375 = vmatpush1.bf16.msra.mxu1 %v11710_v25  ;;  %v11807_v45 = vcombine.high %v1039_v35, %v1047_v37  ;;  %v1054_v25 = vld [vmem:[#allocation9 + $0x1b20] sm:$0xff] }
 0x345   :  { %7221 = vmatprep.subr.bf16.mxu0 %v11725_v47  ;;  %7385 = vmatprep.subr.bf16.mxu1 %v11727_v48  ;;  %v1062_v47 = vld [vmem:[#allocation9 + $0x1b60] sm:$0xff] }
 0x346   :  { %v12310_v48 = vld [vmem:[#allocation11] sm:$0xff] }
 0x347   :  { %7213 = vmatmul.mubr.bf16.vlgmr.msra.gmra.mrb[8].mxu0 %v12701_v36  ;;  %7377 = vmatmul.mubr.bf16.vlgmr.msra.gmra.mrb[8].mxu1 %v12701_v36  ;;  %v1233_v49 = vrot.slane %v12310_v48, %v12776_v34  ;;  %v1241_v54 = vrot.slane %v12310_v48, %v12779_v40  ;;  %v1245_v11 = vrot.slane %v12310_v48, %v12785_v43 }
 0x348   :  { %7222 = vmatpush1.bf16.msra.mxu0 %v11724_v56  ;;  %7386 = vmatpush1.bf16.msra.mxu1 %v11726_v60  ;;  %v1237_v56 = vrot.slane %v12310_v48, %v12782_v41  ;;  %v11804_v60 = vcombine.low %v1038_v15, %v1046_v33  ;;  %v1095_v15 = vld [vmem:[#allocation9 + $0x1c68] sm:$0xff]  ;;  %v11836_v33 = vcombine.low %v1070_v2, %v1078_v39  ;;  %v1142_v2 = vld [vmem:[#allocation9 + $0x1de0] sm:$0xff] }
 0x349   :  { %7223 = vmatprep.subr.bf16.mxu0 %v11741_v61  ;;  %7387 = vmatprep.subr.bf16.mxu1 %v11743_v62  ;;  %v11806_v61 = vcombine.low %v1039_v35, %v1047_v37  ;;  %v11821_v62 = vcombine.high %v1054_v25, %v1062_v47  ;;  %v1135_v39 = vld [vmem:[#allocation9 + $0x1da8] sm:$0xff] }
 0x34a   :  { %7253 = vmatprep.mubr.bf16.mxu0 %v12707_v46  ;;  %7417 = vmatprep.mubr.bf16.mxu1 %v12707_v46 }
 0x34c   :  { %7224 = vmatpush1.bf16.msra.mxu0 %v11740_v3  ;;  %7388 = vmatpush1.bf16.msra.mxu1 %v11742_v4 }
 0x34d   :  { %7225 = vmatprep.subr.bf16.mxu0 %v11757_v5  ;;  %7389 = vmatprep.subr.bf16.mxu1 %v11759_v6  ;;  %v1071_v6 = vld [vmem:[#allocation9 + $0x1ba8] sm:$0xff] }
 0x34e   :  { %v11838_v35 = vcombine.low %v1071_v6, %v1079_v7 }
 0x350   :  { %7226 = vmatpush1.bf16.msra.mxu0 %v11756_v13  ;;  %7390 = vmatpush1.bf16.msra.mxu1 %v11758_v14  ;;  %v11820_v14 = vcombine.low %v1054_v25, %v1062_v47  ;;  %v1111_v25 = vld [vmem:[#allocation9 + $0x1ce8] sm:$0xff] }
 0x351   :  { %7227 = vmatprep.subr.bf16.mxu0 %v11773_v16  ;;  %7391 = vmatprep.subr.bf16.mxu1 %v11775_v17 }
 0x354   :  { %7228 = vmatpush1.bf16.msra.mxu0 %v11772_v24  ;;  %7392 = vmatpush1.bf16.msra.mxu1 %v11774_v26  ;;  %v11839_v24 = vcombine.high %v1071_v6, %v1079_v7  ;;  %v1086_v26 = vld [vmem:[#allocation9 + $0x1c20] sm:$0xff] }
 0x355   :  { %7229 = vmatprep.subr.bf16.mxu0 %v11789_v29  ;;  %7393 = vmatprep.subr.bf16.mxu1 %v11791_v31  ;;  %v1094_v29 = vld [vmem:[#allocation9 + $0x1c60] sm:$0xff]  ;;  %v1087_v31 = vld [vmem:[#allocation9 + $0x1c28] sm:$0xff] }
 0x356   :  { %v11853_v37 = vcombine.high %v1086_v26, %v1094_v29  ;;  %v11852_v47 = vcombine.low %v1086_v26, %v1094_v29  ;;  %v11854_v48 = vcombine.low %v1087_v31, %v1095_v15  ;;  %v1166_v26 = vld [vmem:[#allocation9 + $0x1ea0] sm:$0xff] }
 0x357   :  { %v1174_v29 = vld [vmem:[#allocation9 + $0x1ee0] sm:$0xff] }
 0x358   :  { %7230 = vmatpush1.bf16.msra.mxu0 %v11788_v38  ;;  %7394 = vmatpush1.bf16.msra.mxu1 %v11790_v42  ;;  %v11855_v38 = vcombine.high %v1087_v31, %v1095_v15  ;;  %v1102_v42 = vld [vmem:[#allocation9 + $0x1ca0] sm:$0xff]  ;;  %v1167_v31 = vld [vmem:[#allocation9 + $0x1ea8] sm:$0xff] }
 0x359   :  { %7231 = vmatprep.subr.bf16.mxu0 %v11805_v44  ;;  %7395 = vmatprep.subr.bf16.mxu1 %v11807_v45  ;;  %v1110_v44 = vld [vmem:[#allocation9 + $0x1ce0] sm:$0xff]  ;;  %v1103_v45 = vld [vmem:[#allocation9 + $0x1ca8] sm:$0xff] }
 0x35a   :  { %v6927_v0 = vpop.f32.mrb[4].mxu0  ;;  %v7091_v4 = vpop.f32.mrb[4].mxu1  ;;  %v11871_v51 = vcombine.high %v1103_v45, %v1111_v25  ;;  %v1175_v15 = vld [vmem:[#allocation9 + $0x1ee8] sm:$0xff] }
 0x35b   :  { %v12791_v3 = vadd.f32 %v6927_v0, %v1233_v49  ;;  %v6929_v5 = vpop.f32.mrb[5].mxu0  ;;  %v12793_v8 = vadd.f32 %v7091_v4, %v1241_v54  ;;  %v7093_v10 = vpop.f32.mrb[5].mxu1  ;;  %v11869_v49 = vcombine.high %v1102_v42, %v1110_v44  ;;  %v1126_v54 = vld [vmem:[#allocation9 + $0x1d60] sm:$0xff]  ;;  %v1143_v4 = vld [vmem:[#allocation9 + $0x1de8] sm:$0xff] }
 0x35c   :  { %v12795_v9 = vadd.f32 %v6929_v5, %v1237_v56  ;;  %v6931_v13 = vpop.f32.mrb[6].mxu0  ;;  %7232 = vmatpush1.bf16.msra.mxu0 %v11804_v60  ;;  %v12797_v16 = vadd.f32 %v7093_v10, %v1245_v11  ;;  %v7095_v17 = vpop.f32.mrb[6].mxu1  ;;  %7396 = vmatpush1.bf16.msra.mxu1 %v11806_v61  ;;  %v1119_v56 = vld [vmem:[#allocation9 + $0x1d28] sm:$0xff]  ;;  %v11868_v11 = vcombine.low %v1102_v42, %v1110_v44  ;;  %v1182_v42 = vld [vmem:[#allocation9 + $0x1f20] sm:$0xff] }
 0x35d   :  { %v6932_v18 = vpop.f32.mrb[7].mxu0  ;;  %7233 = vmatprep.subr.bf16.mxu0 %v11821_v62  ;;  %v7096_v23 = vpop.f32.mrb[7].mxu1  ;;  %7397 = vmatprep.subr.bf16.mxu1 %v11823_v1  ;;  %v1127_v60 = vld [vmem:[#allocation9 + $0x1d68] sm:$0xff]  ;;  %v11870_v61 = vcombine.low %v1103_v45, %v1111_v25  ;;  %v11885_v62 = vcombine.high %v1118_v52, %v1126_v54  ;;  %v1134_v1 = vld [vmem:[#allocation9 + $0x1da0] sm:$0xff]  ;;  %v11884_v5 = vcombine.low %v1118_v52, %v1126_v54 }
 0x35e   :  { %v11887_v0 = vcombine.high %v1119_v56, %v1127_v60  ;;  %v11886_v6 = vcombine.low %v1119_v56, %v1127_v60  ;;  %v11901_v7 = vcombine.high %v1134_v1, %v1142_v2  ;;  %v11903_v10 = vcombine.high %v1135_v39, %v1143_v4  ;;  %v1150_v13 = vld [vmem:[#allocation9 + $0x1e20] sm:$0xff]  ;;  %v1151_v17 = vld [vmem:[#allocation9 + $0x1e28] sm:$0xff] }
 0x35f   :  { %v1159_v18 = vld [vmem:[#allocation9 + $0x1e68] sm:$0xff]  ;;  %v1190_v44 = vld [vmem:[#allocation9 + $0x1f60] sm:$0xff] }
 0x360   :  { %7234 = vmatpush1.bf16.msra.mxu0 %v11820_v14  ;;  %7398 = vmatpush1.bf16.msra.mxu1 %v11822_v19  ;;  %v1158_v14 = vld [vmem:[#allocation9 + $0x1e60] sm:$0xff]  ;;  %v11900_v19 = vcombine.low %v1134_v1, %v1142_v2  ;;  %v1183_v45 = vld [vmem:[#allocation9 + $0x1f28] sm:$0xff]  ;;  %v192_v1 = vld [vmem:[#allocation9 + $0x30] sm:$0xff] }
 0x361   :  { %7235 = vmatprep.subr.bf16.mxu0 %v11837_v21  ;;  %7399 = vmatprep.subr.bf16.mxu1 %v11839_v24  ;;  %v11902_v21 = vcombine.low %v1135_v39, %v1143_v4  ;;  %v11917_v23 = vcombine.high %v1150_v13, %v1158_v14  ;;  %v11919_v24 = vcombine.high %v1151_v17, %v1159_v18  ;;  %v1191_v25 = vld [vmem:[#allocation9 + $0x1f68] sm:$0xff]  ;;  %v1198_v52 = vld [vmem:[#allocation9 + $0x1fa0] sm:$0xff]  ;;  %v200_v2 = vld [vmem:[#allocation9 + $0x70] sm:$0xff] }
 0x362   :  { %v1206_v54 = vld [vmem:[#allocation9 + $0x1fe0] sm:$0xff]  ;;  %v1199_v56 = vld [vmem:[#allocation9 + $0x1fa8] sm:$0xff]  ;;  %v193_v39 = vld [vmem:[#allocation9 + $0x38] sm:$0xff] }
 0x363   :  { %v1207_v60 = vld [vmem:[#allocation9 + $0x1fe8] sm:$0xff]  ;;  %v201_v4 = vld [vmem:[#allocation9 + $0x78] sm:$0xff] }
 0x364   :  { %7236 = vmatpush1.bf16.msra.mxu0 %v11836_v33  ;;  %7400 = vmatpush1.bf16.msra.mxu1 %v11838_v35  ;;  %v11916_v33 = vcombine.low %v1150_v13, %v1158_v14  ;;  %v11918_v35 = vcombine.low %v1151_v17, %v1159_v18  ;;  %v208_v13 = vld [vmem:[#allocation9 + $0xb0] sm:$0xff]  ;;  %v209_v17 = vld [vmem:[#allocation9 + $0xb8] sm:$0xff] }
 0x365   :  { %7237 = vmatprep.subr.bf16.mxu0 %v11853_v37  ;;  %7401 = vmatprep.subr.bf16.mxu1 %v11855_v38  ;;  %v11933_v37 = vcombine.high %v1166_v26, %v1174_v29  ;;  %v11935_v38 = vcombine.high %v1167_v31, %v1175_v15  ;;  %v216_v14 = vld [vmem:[#allocation9 + $0xf0] sm:$0xff]  ;;  %v217_v18 = vld [vmem:[#allocation9 + $0xf8] sm:$0xff] }
 0x368   :  { %7238 = vmatpush1.bf16.msra.mxu0 %v11852_v47  ;;  %7402 = vmatpush1.bf16.msra.mxu1 %v11854_v48  ;;  %v11932_v47 = vcombine.low %v1166_v26, %v1174_v29  ;;  %v11934_v48 = vcombine.low %v1167_v31, %v1175_v15  ;;  %v224_v26 = vld [vmem:[#allocation9 + $0x130] sm:$0xff]  ;;  %v225_v31 = vld [vmem:[#allocation9 + $0x138] sm:$0xff] }
 0x369   :  { %7239 = vmatprep.subr.bf16.mxu0 %v11869_v49  ;;  %7403 = vmatprep.subr.bf16.mxu1 %v11871_v51  ;;  %v11949_v49 = vcombine.high %v1182_v42, %v1190_v44  ;;  %v11951_v51 = vcombine.high %v1183_v45, %v1191_v25  ;;  %v232_v29 = vld [vmem:[#allocation9 + $0x170] sm:$0xff]  ;;  %v233_v15 = vld [vmem:[#allocation9 + $0x178] sm:$0xff] }
 0x36c   :  { %7240 = vmatpush1.bf16.msra.mxu0 %v11868_v11  ;;  %7404 = vmatpush1.bf16.msra.mxu1 %v11870_v61  ;;  %v11948_v11 = vcombine.low %v1182_v42, %v1190_v44  ;;  %v11950_v61 = vcombine.low %v1183_v45, %v1191_v25  ;;  %v240_v42 = vld [vmem:[#allocation9 + $0x1b0] sm:$0xff]  ;;  %v241_v45 = vld [vmem:[#allocation9 + $0x1b8] sm:$0xff] }
 0x36d   :  { %7241 = vmatprep.subr.bf16.mxu0 %v11885_v62  ;;  %7405 = vmatprep.subr.bf16.mxu1 %v11887_v0  ;;  %v11965_v62 = vcombine.high %v1198_v52, %v1206_v54  ;;  %v11967_v0 = vcombine.high %v1199_v56, %v1207_v60  ;;  %v248_v44 = vld [vmem:[#allocation9 + $0x1f0] sm:$0xff]  ;;  %v249_v25 = vld [vmem:[#allocation9 + $0x1f8] sm:$0xff] }
 0x370   :  { %7242 = vmatpush1.bf16.msra.mxu0 %v11884_v5  ;;  %7406 = vmatpush1.bf16.msra.mxu1 %v11886_v6  ;;  %v11964_v5 = vcombine.low %v1198_v52, %v1206_v54  ;;  %v11966_v6 = vcombine.low %v1199_v56, %v1207_v60  ;;  %v256_v52 = vld [vmem:[#allocation9 + $0x230] sm:$0xff]  ;;  %v257_v56 = vld [vmem:[#allocation9 + $0x238] sm:$0xff] }
 0x371   :  { %7243 = vmatprep.subr.bf16.mxu0 %v11901_v7  ;;  %7407 = vmatprep.subr.bf16.mxu1 %v11903_v10  ;;  %v10961_v7 = vcombine.high %v192_v1, %v200_v2  ;;  %v10963_v10 = vcombine.high %v193_v39, %v201_v4  ;;  %v264_v54 = vld [vmem:[#allocation9 + $0x270] sm:$0xff]  ;;  %v265_v60 = vld [vmem:[#allocation9 + $0x278] sm:$0xff] }
 0x374   :  { %7244 = vmatpush1.bf16.msra.mxu0 %v11900_v19  ;;  %7408 = vmatpush1.bf16.msra.mxu1 %v11902_v21  ;;  %v10960_v19 = vcombine.low %v192_v1, %v200_v2  ;;  %v10962_v21 = vcombine.low %v193_v39, %v201_v4  ;;  %v280_v1 = vld [vmem:[#allocation9 + $0x2f0] sm:$0xff]  ;;  %v273_v2 = vld [vmem:[#allocation9 + $0x2b8] sm:$0xff]  ;;  %v11024_v4 = vcombine.low %v256_v52, %v264_v54 }
 0x375   :  { %7245 = vmatprep.subr.bf16.mxu0 %v11917_v23  ;;  %7409 = vmatprep.subr.bf16.mxu1 %v11919_v24  ;;  %v10977_v23 = vcombine.high %v208_v13, %v216_v14  ;;  %v10979_v24 = vcombine.high %v209_v17, %v217_v18  ;;  %v281_v39 = vld [vmem:[#allocation9 + $0x2f8] sm:$0xff] }
 0x378   :  { %7246 = vmatpush1.bf16.msra.mxu0 %v11916_v33  ;;  %7410 = vmatpush1.bf16.msra.mxu1 %v11918_v35  ;;  %v10976_v33 = vcombine.low %v208_v13, %v216_v14  ;;  %v10978_v35 = vcombine.low %v209_v17, %v217_v18  ;;  %v296_v13 = vld [vmem:[#allocation9 + $0x370] sm:$0xff]  ;;  %v289_v14 = vld [vmem:[#allocation9 + $0x338] sm:$0xff] }
 0x379   :  { %7247 = vmatprep.subr.bf16.mxu0 %v11933_v37  ;;  %7411 = vmatprep.subr.bf16.mxu1 %v11935_v38  ;;  %v10993_v37 = vcombine.high %v224_v26, %v232_v29  ;;  %v10995_v38 = vcombine.high %v225_v31, %v233_v15  ;;  %v297_v17 = vld [vmem:[#allocation9 + $0x378] sm:$0xff] }
 0x37c   :  { %7248 = vmatpush1.bf16.msra.mxu0 %v11932_v47  ;;  %7412 = vmatpush1.bf16.msra.mxu1 %v11934_v48  ;;  %v10992_v47 = vcombine.low %v224_v26, %v232_v29  ;;  %v10994_v48 = vcombine.low %v225_v31, %v233_v15  ;;  %v312_v26 = vld [vmem:[#allocation9 + $0x3f0] sm:$0xff]  ;;  %v305_v29 = vld [vmem:[#allocation9 + $0x3b8] sm:$0xff] }
 0x37d   :  { %7249 = vmatprep.subr.bf16.mxu0 %v11949_v49  ;;  %7413 = vmatprep.subr.bf16.mxu1 %v11951_v51  ;;  %v11009_v49 = vcombine.high %v240_v42, %v248_v44  ;;  %v11011_v51 = vcombine.high %v241_v45, %v249_v25  ;;  %v313_v31 = vld [vmem:[#allocation9 + $0x3f8] sm:$0xff] }
 0x380   :  { %7250 = vmatpush1.bf16.msra.mxu0 %v11948_v11  ;;  %7414 = vmatpush1.bf16.msra.mxu1 %v11950_v61  ;;  %v11008_v11 = vcombine.low %v240_v42, %v248_v44  ;;  %v11010_v61 = vcombine.low %v241_v45, %v249_v25  ;;  %v328_v42 = vld [vmem:[#allocation9 + $0x470] sm:$0xff]  ;;  %v321_v44 = vld [vmem:[#allocation9 + $0x438] sm:$0xff] }
 0x381   :  { %7251 = vmatprep.subr.bf16.mxu0 %v11965_v62  ;;  %7415 = vmatprep.subr.bf16.mxu1 %v11967_v0  ;;  %v11025_v62 = vcombine.high %v256_v52, %v264_v54  ;;  %v272_v0 = vld [vmem:[#allocation9 + $0x2b0] sm:$0xff]  ;;  %v329_v45 = vld [vmem:[#allocation9 + $0x478] sm:$0xff] }
 0x382   :  { %v11040_v18 = vcombine.low %v272_v0, %v280_v1  ;;  %v344_v52 = vld [vmem:[#allocation9 + $0x4f0] sm:$0xff]  ;;  %v337_v54 = vld [vmem:[#allocation9 + $0x4b8] sm:$0xff] }
 0x384   :  { %7252 = vmatpush1.bf16.msra.mxu0 %v11964_v5  ;;  %7416 = vmatpush1.bf16.msra.mxu1 %v11966_v6  ;;  %v11026_v5 = vcombine.low %v257_v56, %v265_v60  ;;  %v11041_v6 = vcombine.high %v272_v0, %v280_v1  ;;  %v360_v0 = vld [vmem:[#allocation9 + $0x570] sm:$0xff]  ;;  %v353_v1 = vld [vmem:[#allocation9 + $0x538] sm:$0xff] }
 0x385   :  { %7426 = vmatprep.subr.bf16.mxu0 %v10961_v7  ;;  %7590 = vmatprep.subr.bf16.mxu1 %v10963_v10  ;;  %v11043_v7 = vcombine.high %v273_v2, %v281_v39  ;;  %v288_v10 = vld [vmem:[#allocation9 + $0x330] sm:$0xff] }
 0x386   :  { %v11056_v15 = vcombine.low %v288_v10, %v296_v13 }
 0x387   :  { %7254 = vmatmul.mubr.bf16.vlgmr.msra.gmra.mrb[8].mxu0 %v12715_v55  ;;  %7418 = vmatmul.mubr.bf16.vlgmr.msra.gmra.mrb[8].mxu1 %v12715_v55 }
 0x388   :  { %7427 = vmatpush1.bf16.msra.mxu0 %v10960_v19  ;;  %7591 = vmatpush1.bf16.msra.mxu1 %v10962_v21  ;;  %v11042_v19 = vcombine.low %v273_v2, %v281_v39  ;;  %v11057_v21 = vcombine.high %v288_v10, %v296_v13  ;;  %v361_v2 = vld [vmem:[#allocation9 + $0x578] sm:$0xff]  ;;  %v376_v10 = vld [vmem:[#allocation9 + $0x5f0] sm:$0xff] }
 0x389   :  { %7428 = vmatprep.subr.bf16.mxu0 %v10977_v23  ;;  %7592 = vmatprep.subr.bf16.mxu1 %v10979_v24  ;;  %v11059_v23 = vcombine.high %v289_v14, %v297_v17  ;;  %v304_v24 = vld [vmem:[#allocation9 + $0x3b0] sm:$0xff]  ;;  %v369_v13 = vld [vmem:[#allocation9 + $0x5b8] sm:$0xff] }
 0x38a   :  { %7458 = vmatprep.mubr.bf16.mxu0 %v12667_v57  ;;  %7622 = vmatprep.mubr.bf16.mxu1 %v12667_v57  ;;  %v11027_v57 = vcombine.high %v257_v56, %v265_v60  ;;  %v11072_v25 = vcombine.low %v304_v24, %v312_v26  ;;  %v345_v56 = vld [vmem:[#allocation9 + $0x4f8] sm:$0xff] }
 0x38c   :  { %7429 = vmatpush1.bf16.msra.mxu0 %v10976_v33  ;;  %7593 = vmatpush1.bf16.msra.mxu1 %v10978_v35  ;;  %v11058_v33 = vcombine.low %v289_v14, %v297_v17  ;;  %v11073_v35 = vcombine.high %v304_v24, %v312_v26  ;;  %v377_v14 = vld [vmem:[#allocation9 + $0x5f8] sm:$0xff]  ;;  %v392_v24 = vld [vmem:[#allocation9 + $0x670] sm:$0xff] }
 0x38d   :  { %7430 = vmatprep.subr.bf16.mxu0 %v10993_v37  ;;  %7594 = vmatprep.subr.bf16.mxu1 %v10995_v38  ;;  %v11075_v37 = vcombine.high %v305_v29, %v313_v31  ;;  %v320_v38 = vld [vmem:[#allocation9 + $0x430] sm:$0xff]  ;;  %v385_v26 = vld [vmem:[#allocation9 + $0x638] sm:$0xff] }
 0x38e   :  { %v11088_v60 = vcombine.low %v320_v38, %v328_v42 }
 0x390   :  { %7431 = vmatpush1.bf16.msra.mxu0 %v10992_v47  ;;  %7595 = vmatpush1.bf16.msra.mxu1 %v10994_v48  ;;  %v11074_v47 = vcombine.low %v305_v29, %v313_v31  ;;  %v11089_v48 = vcombine.high %v320_v38, %v328_v42  ;;  %v393_v29 = vld [vmem:[#allocation9 + $0x678] sm:$0xff]  ;;  %v408_v38 = vld [vmem:[#allocation9 + $0x6f0] sm:$0xff] }
 0x391   :  { %7432 = vmatprep.subr.bf16.mxu0 %v11009_v49  ;;  %7596 = vmatprep.subr.bf16.mxu1 %v11011_v51  ;;  %v11091_v49 = vcombine.high %v321_v44, %v329_v45  ;;  %v336_v51 = vld [vmem:[#allocation9 + $0x4b0] sm:$0xff]  ;;  %v401_v42 = vld [vmem:[#allocation9 + $0x6b8] sm:$0xff] }
 0x392   :  { %v11104_v39 = vcombine.low %v336_v51, %v344_v52 }
 0x394   :  { %7433 = vmatpush1.bf16.msra.mxu0 %v11008_v11  ;;  %7597 = vmatpush1.bf16.msra.mxu1 %v11010_v61  ;;  %v11090_v11 = vcombine.low %v321_v44, %v329_v45  ;;  %v11105_v61 = vcombine.high %v336_v51, %v344_v52  ;;  %v409_v44 = vld [vmem:[#allocation9 + $0x6f8] sm:$0xff]  ;;  %v424_v51 = vld [vmem:[#allocation9 + $0x770] sm:$0xff] }
 0x395   :  { %7434 = vmatprep.subr.bf16.mxu0 %v11025_v62  ;;  %7598 = vmatprep.subr.bf16.mxu1 %v11027_v57  ;;  %v11107_v62 = vcombine.high %v337_v54, %v345_v56  ;;  %v352_v57 = vld [vmem:[#allocation9 + $0x530] sm:$0xff]  ;;  %v417_v52 = vld [vmem:[#allocation9 + $0x738] sm:$0xff] }
 0x396   :  { %v11120_v17 = vcombine.low %v352_v57, %v360_v0 }
 0x398   :  { %7435 = vmatpush1.bf16.msra.mxu0 %v11024_v4  ;;  %7599 = vmatpush1.bf16.msra.mxu1 %v11026_v5  ;;  %v11106_v4 = vcombine.low %v337_v54, %v345_v56  ;;  %v11121_v5 = vcombine.high %v352_v57, %v360_v0  ;;  %v425_v54 = vld [vmem:[#allocation9 + $0x778] sm:$0xff]  ;;  %v440_v57 = vld [vmem:[#allocation9 + $0x7f0] sm:$0xff] }
 0x399   :  { %7436 = vmatprep.subr.bf16.mxu0 %v11041_v6  ;;  %7600 = vmatprep.subr.bf16.mxu1 %v11043_v7  ;;  %v11123_v6 = vcombine.high %v353_v1, %v361_v2  ;;  %v368_v7 = vld [vmem:[#allocation9 + $0x5b0] sm:$0xff]  ;;  %v433_v0 = vld [vmem:[#allocation9 + $0x7b8] sm:$0xff] }
 0x39a   :  { %v11136_v31 = vcombine.low %v368_v7, %v376_v10 }
 0x39c   :  { %7437 = vmatpush1.bf16.msra.mxu0 %v11040_v18  ;;  %7601 = vmatpush1.bf16.msra.mxu1 %v11042_v19  ;;  %v11122_v18 = vcombine.low %v353_v1, %v361_v2  ;;  %v11137_v19 = vcombine.high %v368_v7, %v376_v10  ;;  %v441_v1 = vld [vmem:[#allocation9 + $0x7f8] sm:$0xff]  ;;  %v456_v7 = vld [vmem:[#allocation9 + $0x870] sm:$0xff] }
 0x39d   :  { %7438 = vmatprep.subr.bf16.mxu0 %v11057_v21  ;;  %7602 = vmatprep.subr.bf16.mxu1 %v11059_v23  ;;  %v11139_v21 = vcombine.high %v369_v13, %v377_v14  ;;  %v384_v23 = vld [vmem:[#allocation9 + $0x630] sm:$0xff]  ;;  %v449_v10 = vld [vmem:[#allocation9 + $0x838] sm:$0xff] }
 0x39e   :  { %v11152_v45 = vcombine.low %v384_v23, %v392_v24 }
 0x3a0   :  { %7439 = vmatpush1.bf16.msra.mxu0 %v11056_v15  ;;  %7603 = vmatpush1.bf16.msra.mxu1 %v11058_v33  ;;  %v11138_v15 = vcombine.low %v369_v13, %v377_v14  ;;  %v11153_v33 = vcombine.high %v384_v23, %v392_v24  ;;  %v457_v13 = vld [vmem:[#allocation9 + $0x878] sm:$0xff]  ;;  %v472_v23 = vld [vmem:[#allocation9 + $0x8f0] sm:$0xff] }
 0x3a1   :  { %7440 = vmatprep.subr.bf16.mxu0 %v11073_v35  ;;  %7604 = vmatprep.subr.bf16.mxu1 %v11075_v37  ;;  %v11155_v35 = vcombine.high %v385_v26, %v393_v29  ;;  %v400_v37 = vld [vmem:[#allocation9 + $0x6b0] sm:$0xff]  ;;  %v465_v24 = vld [vmem:[#allocation9 + $0x8b8] sm:$0xff] }
 0x3a2   :  { %v11168_v56 = vcombine.low %v400_v37, %v408_v38 }
 0x3a4   :  { %7441 = vmatpush1.bf16.msra.mxu0 %v11072_v25  ;;  %7605 = vmatpush1.bf16.msra.mxu1 %v11074_v47  ;;  %v11154_v25 = vcombine.low %v385_v26, %v393_v29  ;;  %v11169_v47 = vcombine.high %v400_v37, %v408_v38  ;;  %v473_v26 = vld [vmem:[#allocation9 + $0x8f8] sm:$0xff]  ;;  %v488_v37 = vld [vmem:[#allocation9 + $0x970] sm:$0xff] }
 0x3a5   :  { %7442 = vmatprep.subr.bf16.mxu0 %v11089_v48  ;;  %7606 = vmatprep.subr.bf16.mxu1 %v11091_v49  ;;  %v11171_v48 = vcombine.high %v401_v42, %v409_v44  ;;  %v416_v49 = vld [vmem:[#allocation9 + $0x730] sm:$0xff]  ;;  %v481_v38 = vld [vmem:[#allocation9 + $0x938] sm:$0xff] }
 0x3a6   :  { %v11184_v2 = vcombine.low %v416_v49, %v424_v51 }
 0x3a8   :  { %7443 = vmatpush1.bf16.msra.mxu0 %v11088_v60  ;;  %7607 = vmatpush1.bf16.msra.mxu1 %v11090_v11  ;;  %v11170_v60 = vcombine.low %v401_v42, %v409_v44  ;;  %v11185_v11 = vcombine.high %v416_v49, %v424_v51  ;;  %v489_v42 = vld [vmem:[#allocation9 + $0x978] sm:$0xff]  ;;  %v504_v49 = vld [vmem:[#allocation9 + $0x9f0] sm:$0xff] }
 0x3a9   :  { %7444 = vmatprep.subr.bf16.mxu0 %v11105_v61  ;;  %7608 = vmatprep.subr.bf16.mxu1 %v11107_v62  ;;  %v11187_v61 = vcombine.high %v417_v52, %v425_v54  ;;  %v432_v62 = vld [vmem:[#allocation9 + $0x7b0] sm:$0xff]  ;;  %v497_v51 = vld [vmem:[#allocation9 + $0x9b8] sm:$0xff] }
 0x3aa   :  { %v11200_v14 = vcombine.low %v432_v62, %v440_v57 }
 0x3ac   :  { %7445 = vmatpush1.bf16.msra.mxu0 %v11104_v39  ;;  %7609 = vmatpush1.bf16.msra.mxu1 %v11106_v4  ;;  %v11186_v39 = vcombine.low %v417_v52, %v425_v54  ;;  %v11201_v4 = vcombine.high %v432_v62, %v440_v57  ;;  %v505_v52 = vld [vmem:[#allocation9 + $0x9f8] sm:$0xff] }
 0x3ad   :  { %7446 = vmatprep.subr.bf16.mxu0 %v11121_v5  ;;  %7610 = vmatprep.subr.bf16.mxu1 %v11123_v6  ;;  %v11203_v5 = vcombine.high %v433_v0, %v441_v1  ;;  %v448_v6 = vld [vmem:[#allocation9 + $0x830] sm:$0xff]  ;;  %v513_v62 = vld [vmem:[#allocation9 + $0xa38] sm:$0xff] }
 0x3ae   :  { %v11216_v29 = vcombine.low %v448_v6, %v456_v7  ;;  %v521_v57 = vld [vmem:[#allocation9 + $0xa78] sm:$0xff] }
 0x3b0   :  { %7447 = vmatpush1.bf16.msra.mxu0 %v11120_v17  ;;  %7611 = vmatpush1.bf16.msra.mxu1 %v11122_v18  ;;  %v11202_v17 = vcombine.low %v433_v0, %v441_v1  ;;  %v11217_v18 = vcombine.high %v448_v6, %v456_v7  ;;  %v11266_v1 = vcombine.low %v497_v51, %v505_v52  ;;  %v537_v6 = vld [vmem:[#allocation9 + $0xaf8] sm:$0xff] }
 0x3b1   :  { %7448 = vmatprep.subr.bf16.mxu0 %v11137_v19  ;;  %7612 = vmatprep.subr.bf16.mxu1 %v11139_v21  ;;  %v11219_v19 = vcombine.high %v449_v10, %v457_v13  ;;  %v464_v21 = vld [vmem:[#allocation9 + $0x8b0] sm:$0xff] }
 0x3b2   :  { %v11232_v44 = vcombine.low %v464_v21, %v472_v23 }
 0x3b4   :  { %7449 = vmatpush1.bf16.msra.mxu0 %v11136_v31  ;;  %7613 = vmatpush1.bf16.msra.mxu1 %v11138_v15  ;;  %v11218_v31 = vcombine.low %v449_v10, %v457_v13  ;;  %v11233_v15 = vcombine.high %v464_v21, %v472_v23  ;;  %v11282_v10 = vcombine.low %v513_v62, %v521_v57  ;;  %v553_v21 = vld [vmem:[#allocation9 + $0xb78] sm:$0xff] }
 0x3b5   :  { %7450 = vmatprep.subr.bf16.mxu0 %v11153_v33  ;;  %7614 = vmatprep.subr.bf16.mxu1 %v11155_v35  ;;  %v11235_v33 = vcombine.high %v465_v24, %v473_v26  ;;  %v480_v35 = vld [vmem:[#allocation9 + $0x930] sm:$0xff] }
 0x3b6   :  { %v11248_v54 = vcombine.low %v480_v35, %v488_v37 }
 0x3b8   :  { %7451 = vmatpush1.bf16.msra.mxu0 %v11152_v45  ;;  %7615 = vmatpush1.bf16.msra.mxu1 %v11154_v25  ;;  %v11234_v45 = vcombine.low %v465_v24, %v473_v26  ;;  %v11249_v25 = vcombine.high %v480_v35, %v488_v37  ;;  %v569_v35 = vld [vmem:[#allocation9 + $0xbf8] sm:$0xff] }
 0x3b9   :  { %7452 = vmatprep.subr.bf16.mxu0 %v11169_v47  ;;  %7616 = vmatprep.subr.bf16.mxu1 %v11171_v48  ;;  %v11251_v47 = vcombine.high %v481_v38, %v489_v42  ;;  %v496_v48 = vld [vmem:[#allocation9 + $0x9b0] sm:$0xff] }
 0x3ba   :  { %v11264_v0 = vcombine.low %v496_v48, %v504_v49 }
 0x3bc   :  { %7453 = vmatpush1.bf16.msra.mxu0 %v11168_v56  ;;  %7617 = vmatpush1.bf16.msra.mxu1 %v11170_v60  ;;  %v11265_v56 = vcombine.high %v496_v48, %v504_v49  ;;  %v11267_v60 = vcombine.high %v497_v51, %v505_v52  ;;  %v585_v48 = vld [vmem:[#allocation9 + $0xc78] sm:$0xff] }
 0x3bd   :  { %7454 = vmatprep.subr.bf16.mxu0 %v11185_v11  ;;  %7618 = vmatprep.subr.bf16.mxu1 %v11187_v61  ;;  %v512_v11 = vld [vmem:[#allocation9 + $0xa30] sm:$0xff] }
 0x3be   :  { %v520_v61 = vld [vmem:[#allocation9 + $0xa70] sm:$0xff] }
 0x3bf   :  { %v11280_v7 = vcombine.low %v512_v11, %v520_v61 }
 0x3c0   :  { %7455 = vmatpush1.bf16.msra.mxu0 %v11184_v2  ;;  %7619 = vmatpush1.bf16.msra.mxu1 %v11186_v39  ;;  %v11281_v2 = vcombine.high %v512_v11, %v520_v61  ;;  %v528_v39 = vld [vmem:[#allocation9 + $0xab0] sm:$0xff]  ;;  %v601_v11 = vld [vmem:[#allocation9 + $0xcf8] sm:$0xff] }
 0x3c1   :  { %7456 = vmatprep.subr.bf16.mxu0 %v11201_v4  ;;  %7620 = vmatprep.subr.bf16.mxu1 %v11203_v5  ;;  %v536_v4 = vld [vmem:[#allocation9 + $0xaf0] sm:$0xff]  ;;  %v529_v5 = vld [vmem:[#allocation9 + $0xab8] sm:$0xff] }
 0x3c2   :  { %v11297_v13 = vcombine.high %v528_v39, %v536_v4  ;;  %v11296_v23 = vcombine.low %v528_v39, %v536_v4  ;;  %v11298_v24 = vcombine.low %v529_v5, %v537_v6  ;;  %v617_v39 = vld [vmem:[#allocation9 + $0xd78] sm:$0xff] }
 0x3c4   :  { %7457 = vmatpush1.bf16.msra.mxu0 %v11200_v14  ;;  %7621 = vmatpush1.bf16.msra.mxu1 %v11202_v17  ;;  %v11299_v14 = vcombine.high %v529_v5, %v537_v6  ;;  %v544_v17 = vld [vmem:[#allocation9 + $0xb30] sm:$0xff] }
 0x3c5   :  { %7467 = vmatprep.subr.bf16.mxu0 %v11217_v18  ;;  %7631 = vmatprep.subr.bf16.mxu1 %v11219_v19  ;;  %v552_v18 = vld [vmem:[#allocation9 + $0xb70] sm:$0xff]  ;;  %v545_v19 = vld [vmem:[#allocation9 + $0xb38] sm:$0xff] }
 0x3c6   :  { %v11313_v26 = vcombine.high %v544_v17, %v552_v18  ;;  %v11312_v37 = vcombine.low %v544_v17, %v552_v18  ;;  %v633_v17 = vld [vmem:[#allocation9 + $0xdf8] sm:$0xff] }
 0x3c7   :  { %7459 = vmatmul.mubr.bf16.vlgmr.msra.gmra.mrb[12].mxu0 %v12673_v12  ;;  %7623 = vmatmul.mubr.bf16.vlgmr.msra.gmra.mrb[12].mxu1 %v12673_v12  ;;  %v11250_v12 = vcombine.low %v481_v38, %v489_v42  ;;  %v11314_v38 = vcombine.low %v545_v19, %v553_v21 }
 0x3c8   :  { %7468 = vmatpush1.bf16.msra.mxu0 %v11216_v29  ;;  %7632 = vmatpush1.bf16.msra.mxu1 %v11218_v31  ;;  %v11315_v29 = vcombine.high %v545_v19, %v553_v21  ;;  %v560_v31 = vld [vmem:[#allocation9 + $0xbb0] sm:$0xff] }
 0x3c9   :  { %7469 = vmatprep.subr.bf16.mxu0 %v11233_v15  ;;  %7633 = vmatprep.subr.bf16.mxu1 %v11235_v33  ;;  %v568_v15 = vld [vmem:[#allocation9 + $0xbf0] sm:$0xff]  ;;  %v561_v33 = vld [vmem:[#allocation9 + $0xbb8] sm:$0xff] }
 0x3ca   :  { %7499 = vmatprep.mubr.bf16.mxu0 %v12679_v22  ;;  %7663 = vmatprep.mubr.bf16.mxu1 %v12679_v22  ;;  %v11283_v22 = vcombine.high %v513_v62, %v521_v57  ;;  %v11329_v42 = vcombine.high %v560_v31, %v568_v15  ;;  %v11328_v49 = vcombine.low %v560_v31, %v568_v15  ;;  %v649_v31 = vld [vmem:[#allocation9 + $0xe78] sm:$0xff] }
 0x3cb   :  { %v11330_v51 = vcombine.low %v561_v33, %v569_v35 }
 0x3cc   :  { %7470 = vmatpush1.bf16.msra.mxu0 %v11232_v44  ;;  %7634 = vmatpush1.bf16.msra.mxu1 %v11234_v45  ;;  %v11331_v44 = vcombine.high %v561_v33, %v569_v35  ;;  %v576_v45 = vld [vmem:[#allocation9 + $0xc30] sm:$0xff] }
 0x3cd   :  { %7471 = vmatprep.subr.bf16.mxu0 %v11249_v25  ;;  %7635 = vmatprep.subr.bf16.mxu1 %v11251_v47  ;;  %v584_v25 = vld [vmem:[#allocation9 + $0xc70] sm:$0xff]  ;;  %v577_v47 = vld [vmem:[#allocation9 + $0xc38] sm:$0xff] }
 0x3ce   :  { %v11345_v52 = vcombine.high %v576_v45, %v584_v25  ;;  %v11344_v61 = vcombine.low %v576_v45, %v584_v25  ;;  %v11346_v62 = vcombine.low %v577_v47, %v585_v48  ;;  %v665_v45 = vld [vmem:[#allocation9 + $0xef8] sm:$0xff] }
 0x3d0   :  { %7472 = vmatpush1.bf16.msra.mxu0 %v11248_v54  ;;  %7636 = vmatpush1.bf16.msra.mxu1 %v11250_v12  ;;  %v11347_v54 = vcombine.high %v577_v47, %v585_v48  ;;  %v592_v12 = vld [vmem:[#allocation9 + $0xcb0] sm:$0xff] }
 0x3d1   :  { %7473 = vmatprep.subr.bf16.mxu0 %v11265_v56  ;;  %7637 = vmatprep.subr.bf16.mxu1 %v11267_v60  ;;  %v600_v56 = vld [vmem:[#allocation9 + $0xcf0] sm:$0xff]  ;;  %v593_v60 = vld [vmem:[#allocation9 + $0xcb8] sm:$0xff] }
 0x3d2   :  { %v11361_v57 = vcombine.high %v592_v12, %v600_v56  ;;  %v11360_v4 = vcombine.low %v592_v12, %v600_v56  ;;  %v11362_v5 = vcombine.low %v593_v60, %v601_v11  ;;  %v681_v12 = vld [vmem:[#allocation9 + $0xf78] sm:$0xff] }
 0x3d4   :  { %7474 = vmatpush1.bf16.msra.mxu0 %v11264_v0  ;;  %7638 = vmatpush1.bf16.msra.mxu1 %v11266_v1  ;;  %v11363_v0 = vcombine.high %v593_v60, %v601_v11  ;;  %v608_v1 = vld [vmem:[#allocation9 + $0xd30] sm:$0xff] }
 0x3d5   :  { %7475 = vmatprep.subr.bf16.mxu0 %v11281_v2  ;;  %7639 = vmatprep.subr.bf16.mxu1 %v11283_v22  ;;  %v616_v2 = vld [vmem:[#allocation9 + $0xd70] sm:$0xff]  ;;  %v609_v22 = vld [vmem:[#allocation9 + $0xd38] sm:$0xff] }
 0x3d6   :  { %v11377_v6 = vcombine.high %v608_v1, %v616_v2  ;;  %v11376_v18 = vcombine.low %v608_v1, %v616_v2  ;;  %v11378_v19 = vcombine.low %v609_v22, %v617_v39  ;;  %v697_v1 = vld [vmem:[#allocation9 + $0xff8] sm:$0xff] }
 0x3d8   :  { %7476 = vmatpush1.bf16.msra.mxu0 %v11280_v7  ;;  %7640 = vmatpush1.bf16.msra.mxu1 %v11282_v10  ;;  %v11379_v7 = vcombine.high %v609_v22, %v617_v39  ;;  %v624_v10 = vld [vmem:[#allocation9 + $0xdb0] sm:$0xff] }
 0x3d9   :  { %7477 = vmatprep.subr.bf16.mxu0 %v11297_v13  ;;  %7641 = vmatprep.subr.bf16.mxu1 %v11299_v14  ;;  %v632_v13 = vld [vmem:[#allocation9 + $0xdf0] sm:$0xff]  ;;  %v625_v14 = vld [vmem:[#allocation9 + $0xdb8] sm:$0xff] }
 0x3da   :  { %v11393_v21 = vcombine.high %v624_v10, %v632_v13  ;;  %v11392_v15 = vcombine.low %v624_v10, %v632_v13  ;;  %v11394_v33 = vcombine.low %v625_v14, %v633_v17  ;;  %v713_v10 = vld [vmem:[#allocation9 + $0x1078] sm:$0xff] }
 0x3dc   :  { %7478 = vmatpush1.bf16.msra.mxu0 %v11296_v23  ;;  %7642 = vmatpush1.bf16.msra.mxu1 %v11298_v24  ;;  %v11395_v23 = vcombine.high %v625_v14, %v633_v17  ;;  %v640_v24 = vld [vmem:[#allocation9 + $0xe30] sm:$0xff] }
 0x3dd   :  { %7479 = vmatprep.subr.bf16.mxu0 %v11313_v26  ;;  %7643 = vmatprep.subr.bf16.mxu1 %v11315_v29  ;;  %v648_v26 = vld [vmem:[#allocation9 + $0xe70] sm:$0xff]  ;;  %v641_v29 = vld [vmem:[#allocation9 + $0xe38] sm:$0xff] }
 0x3de   :  { %v11409_v35 = vcombine.high %v640_v24, %v648_v26  ;;  %v11408_v25 = vcombine.low %v640_v24, %v648_v26  ;;  %v11410_v47 = vcombine.low %v641_v29, %v649_v31  ;;  %v729_v24 = vld [vmem:[#allocation9 + $0x10f8] sm:$0xff] }
 0x3e0   :  { %7480 = vmatpush1.bf16.msra.mxu0 %v11312_v37  ;;  %7644 = vmatpush1.bf16.msra.mxu1 %v11314_v38  ;;  %v11411_v37 = vcombine.high %v641_v29, %v649_v31  ;;  %v656_v38 = vld [vmem:[#allocation9 + $0xeb0] sm:$0xff] }
 0x3e1   :  { %7481 = vmatprep.subr.bf16.mxu0 %v11329_v42  ;;  %7645 = vmatprep.subr.bf16.mxu1 %v11331_v44  ;;  %v664_v42 = vld [vmem:[#allocation9 + $0xef0] sm:$0xff]  ;;  %v657_v44 = vld [vmem:[#allocation9 + $0xeb8] sm:$0xff] }
 0x3e2   :  { %v11425_v48 = vcombine.high %v656_v38, %v664_v42  ;;  %v11424_v56 = vcombine.low %v656_v38, %v664_v42  ;;  %v11426_v60 = vcombine.low %v657_v44, %v665_v45  ;;  %v745_v38 = vld [vmem:[#allocation9 + $0x1178] sm:$0xff] }
 0x3e4   :  { %7482 = vmatpush1.bf16.msra.mxu0 %v11328_v49  ;;  %7646 = vmatpush1.bf16.msra.mxu1 %v11330_v51  ;;  %v11427_v49 = vcombine.high %v657_v44, %v665_v45  ;;  %v672_v51 = vld [vmem:[#allocation9 + $0xf30] sm:$0xff] }
 0x3e5   :  { %7483 = vmatprep.subr.bf16.mxu0 %v11345_v52  ;;  %7647 = vmatprep.subr.bf16.mxu1 %v11347_v54  ;;  %v680_v52 = vld [vmem:[#allocation9 + $0xf70] sm:$0xff]  ;;  %v673_v54 = vld [vmem:[#allocation9 + $0xf38] sm:$0xff] }
 0x3e6   :  { %v11441_v11 = vcombine.high %v672_v51, %v680_v52  ;;  %v11440_v2 = vcombine.low %v672_v51, %v680_v52  ;;  %v11442_v22 = vcombine.low %v673_v54, %v681_v12  ;;  %v761_v51 = vld [vmem:[#allocation9 + $0x11f8] sm:$0xff] }
 0x3e8   :  { %7484 = vmatpush1.bf16.msra.mxu0 %v11344_v61  ;;  %7648 = vmatpush1.bf16.msra.mxu1 %v11346_v62  ;;  %v11443_v61 = vcombine.high %v673_v54, %v681_v12  ;;  %v688_v62 = vld [vmem:[#allocation9 + $0xfb0] sm:$0xff] }
 0x3e9   :  { %7485 = vmatprep.subr.bf16.mxu0 %v11361_v57  ;;  %7649 = vmatprep.subr.bf16.mxu1 %v11363_v0  ;;  %v696_v57 = vld [vmem:[#allocation9 + $0xff0] sm:$0xff]  ;;  %v689_v0 = vld [vmem:[#allocation9 + $0xfb8] sm:$0xff] }
 0x3ea   :  { %v11457_v39 = vcombine.high %v688_v62, %v696_v57  ;;  %v11456_v13 = vcombine.low %v688_v62, %v696_v57  ;;  %v11458_v14 = vcombine.low %v689_v0, %v697_v1 }
 0x3ec   :  { %7486 = vmatpush1.bf16.msra.mxu0 %v11360_v4  ;;  %7650 = vmatpush1.bf16.msra.mxu1 %v11362_v5  ;;  %v11459_v4 = vcombine.high %v689_v0, %v697_v1  ;;  %v704_v5 = vld [vmem:[#allocation9 + $0x1030] sm:$0xff] }
 0x3ed   :  { %7487 = vmatprep.subr.bf16.mxu0 %v11377_v6  ;;  %7651 = vmatprep.subr.bf16.mxu1 %v11379_v7  ;;  %v712_v6 = vld [vmem:[#allocation9 + $0x1070] sm:$0xff]  ;;  %v705_v7 = vld [vmem:[#allocation9 + $0x1038] sm:$0xff] }
 0x3ee   :  { %v11473_v17 = vcombine.high %v704_v5, %v712_v6  ;;  %v11472_v26 = vcombine.low %v704_v5, %v712_v6  ;;  %v11474_v29 = vcombine.low %v705_v7, %v713_v10  ;;  %v784_v1 = vld [vmem:[#allocation9 + $0x12b0] sm:$0xff] }
 0x3f0   :  { %7488 = vmatpush1.bf16.msra.mxu0 %v11376_v18  ;;  %7652 = vmatpush1.bf16.msra.mxu1 %v11378_v19  ;;  %v11475_v18 = vcombine.high %v705_v7, %v713_v10  ;;  %v720_v19 = vld [vmem:[#allocation9 + $0x10b0] sm:$0xff] }
 0x3f1   :  { %7489 = vmatprep.subr.bf16.mxu0 %v11393_v21  ;;  %7653 = vmatprep.subr.bf16.mxu1 %v11395_v23  ;;  %v728_v21 = vld [vmem:[#allocation9 + $0x10f0] sm:$0xff]  ;;  %v721_v23 = vld [vmem:[#allocation9 + $0x10b8] sm:$0xff] }
 0x3f2   :  { %v11489_v31 = vcombine.high %v720_v19, %v728_v21  ;;  %v11488_v42 = vcombine.low %v720_v19, %v728_v21  ;;  %v11490_v44 = vcombine.low %v721_v23, %v729_v24  ;;  %v800_v10 = vld [vmem:[#allocation9 + $0x1330] sm:$0xff] }
 0x3f4   :  { %7490 = vmatpush1.bf16.msra.mxu0 %v11392_v15  ;;  %7654 = vmatpush1.bf16.msra.mxu1 %v11394_v33  ;;  %v11491_v15 = vcombine.high %v721_v23, %v729_v24  ;;  %v736_v33 = vld [vmem:[#allocation9 + $0x1130] sm:$0xff] }
 0x3f5   :  { %7491 = vmatprep.subr.bf16.mxu0 %v11409_v35  ;;  %7655 = vmatprep.subr.bf16.mxu1 %v11411_v37  ;;  %v744_v35 = vld [vmem:[#allocation9 + $0x1170] sm:$0xff]  ;;  %v737_v37 = vld [vmem:[#allocation9 + $0x1138] sm:$0xff] }
 0x3f6   :  { %v11505_v45 = vcombine.high %v736_v33, %v744_v35  ;;  %v11504_v52 = vcombine.low %v736_v33, %v744_v35  ;;  %v816_v24 = vld [vmem:[#allocation9 + $0x13b0] sm:$0xff] }
 0x3f8   :  { %7492 = vmatpush1.bf16.msra.mxu0 %v11408_v25  ;;  %7656 = vmatpush1.bf16.msra.mxu1 %v11410_v47  ;;  %v11507_v25 = vcombine.high %v737_v37, %v745_v38  ;;  %v752_v47 = vld [vmem:[#allocation9 + $0x11b0] sm:$0xff] }
 0x3f9   :  { %7493 = vmatprep.subr.bf16.mxu0 %v11425_v48  ;;  %7657 = vmatprep.subr.bf16.mxu1 %v11427_v49  ;;  %v760_v48 = vld [vmem:[#allocation9 + $0x11f0] sm:$0xff]  ;;  %v753_v49 = vld [vmem:[#allocation9 + $0x11b8] sm:$0xff] }
 0x3fa   :  { %v11521_v54 = vcombine.high %v752_v47, %v760_v48  ;;  %v11523_v12 = vcombine.high %v753_v49, %v761_v51  ;;  %v11520_v62 = vcombine.low %v752_v47, %v760_v48  ;;  %v11522_v57 = vcombine.low %v753_v49, %v761_v51  ;;  %v848_v51 = vld [vmem:[#allocation9 + $0x14b0] sm:$0xff] }
 0x3fc   :  { %7494 = vmatpush1.bf16.msra.mxu0 %v11424_v56  ;;  %7658 = vmatpush1.bf16.msra.mxu1 %v11426_v60  ;;  %v768_v56 = vld [vmem:[#allocation9 + $0x1230] sm:$0xff] }
 0x3fd   :  { %7495 = vmatprep.subr.bf16.mxu0 %v11441_v11  ;;  %7659 = vmatprep.subr.bf16.mxu1 %v11443_v61  ;;  %v776_v60 = vld [vmem:[#allocation9 + $0x1270] sm:$0xff]  ;;  %v769_v11 = vld [vmem:[#allocation9 + $0x1238] sm:$0xff] }
 0x3fe   :  { %v777_v61 = vld [vmem:[#allocation9 + $0x1278] sm:$0xff]  ;;  %v11537_v0 = vcombine.high %v768_v56, %v776_v60 }
 0x3ff   :  { %v11538_v5 = vcombine.low %v769_v11, %v777_v61 }
 0x400   :  { %7496 = vmatpush1.bf16.msra.mxu0 %v11440_v2  ;;  %7660 = vmatpush1.bf16.msra.mxu1 %v11442_v22  ;;  %v792_v2 = vld [vmem:[#allocation9 + $0x12f0] sm:$0xff]  ;;  %v785_v22 = vld [vmem:[#allocation9 + $0x12b8] sm:$0xff] }
 0x401   :  { %7497 = vmatprep.subr.bf16.mxu0 %v11457_v39  ;;  %7661 = vmatprep.subr.bf16.mxu1 %v11459_v4  ;;  %v793_v39 = vld [vmem:[#allocation9 + $0x12f8] sm:$0xff]  ;;  %v11536_v4 = vcombine.low %v768_v56, %v776_v60  ;;  %v11553_v6 = vcombine.high %v784_v1, %v792_v2 }
 0x402   :  { %v11555_v7 = vcombine.high %v785_v22, %v793_v39  ;;  %v11554_v19 = vcombine.low %v785_v22, %v793_v39  ;;  %v880_v39 = vld [vmem:[#allocation9 + $0x15b0] sm:$0xff] }
 0x404   :  { %7498 = vmatpush1.bf16.msra.mxu0 %v11456_v13  ;;  %7662 = vmatpush1.bf16.msra.mxu1 %v11458_v14  ;;  %v808_v13 = vld [vmem:[#allocation9 + $0x1370] sm:$0xff]  ;;  %v801_v14 = vld [vmem:[#allocation9 + $0x1338] sm:$0xff] }
 0x405   :  { %7508 = vmatprep.subr.bf16.mxu0 %v11473_v17  ;;  %7672 = vmatprep.subr.bf16.mxu1 %v11475_v18  ;;  %v809_v17 = vld [vmem:[#allocation9 + $0x1378] sm:$0xff]  ;;  %v11552_v18 = vcombine.low %v784_v1, %v792_v2  ;;  %v11569_v21 = vcombine.high %v800_v10, %v808_v13 }
 0x406   :  { %v11571_v23 = vcombine.high %v801_v14, %v809_v17  ;;  %v11570_v33 = vcombine.low %v801_v14, %v809_v17  ;;  %v896_v17 = vld [vmem:[#allocation9 + $0x1630] sm:$0xff] }
 0x407   :  { %7500 = vmatmul.mubr.bf16.vlgmr.msra.gmra.mrb[12].mxu0 %v12687_v53  ;;  %7664 = vmatmul.mubr.bf16.vlgmr.msra.gmra.mrb[12].mxu1 %v12687_v53  ;;  %v11506_v53 = vcombine.low %v737_v37, %v745_v38  ;;  %v832_v38 = vld [vmem:[#allocation9 + $0x1430] sm:$0xff] }
 0x408   :  { %7509 = vmatpush1.bf16.msra.mxu0 %v11472_v26  ;;  %7673 = vmatpush1.bf16.msra.mxu1 %v11474_v29  ;;  %v824_v26 = vld [vmem:[#allocation9 + $0x13f0] sm:$0xff]  ;;  %v817_v29 = vld [vmem:[#allocation9 + $0x13b8] sm:$0xff] }
 0x409   :  { %7510 = vmatprep.subr.bf16.mxu0 %v11489_v31  ;;  %7674 = vmatprep.subr.bf16.mxu1 %v11491_v15  ;;  %v825_v31 = vld [vmem:[#allocation9 + $0x13f8] sm:$0xff]  ;;  %v11568_v15 = vcombine.low %v800_v10, %v808_v13  ;;  %v11585_v35 = vcombine.high %v816_v24, %v824_v26 }
 0x40a   :  { %7540 = vmatprep.mubr.bf16.mxu0 %v12693_v32  ;;  %7704 = vmatprep.mubr.bf16.mxu1 %v12693_v32  ;;  %v11539_v32 = vcombine.high %v769_v11, %v777_v61  ;;  %v11587_v37 = vcombine.high %v817_v29, %v825_v31  ;;  %v11586_v47 = vcombine.low %v817_v29, %v825_v31  ;;  %v864_v61 = vld [vmem:[#allocation9 + $0x1530] sm:$0xff] }
 0x40b   :  { %v912_v31 = vld [vmem:[#allocation9 + $0x16b0] sm:$0xff] }
 0x40c   :  { %7511 = vmatpush1.bf16.msra.mxu0 %v11488_v42  ;;  %7675 = vmatpush1.bf16.msra.mxu1 %v11490_v44  ;;  %v840_v42 = vld [vmem:[#allocation9 + $0x1470] sm:$0xff]  ;;  %v833_v44 = vld [vmem:[#allocation9 + $0x1438] sm:$0xff] }
 0x40d   :  { %7512 = vmatprep.subr.bf16.mxu0 %v11505_v45  ;;  %7676 = vmatprep.subr.bf16.mxu1 %v11507_v25  ;;  %v841_v45 = vld [vmem:[#allocation9 + $0x1478] sm:$0xff]  ;;  %v11584_v25 = vcombine.low %v816_v24, %v824_v26  ;;  %v11601_v48 = vcombine.high %v832_v38, %v840_v42 }
 0x40e   :  { %v11603_v49 = vcombine.high %v833_v44, %v841_v45  ;;  %v11602_v56 = vcombine.low %v833_v44, %v841_v45  ;;  %v928_v45 = vld [vmem:[#allocation9 + $0x1730] sm:$0xff] }
 0x410   :  { %7513 = vmatpush1.bf16.msra.mxu0 %v11504_v52  ;;  %7677 = vmatpush1.bf16.msra.mxu1 %v11506_v53  ;;  %v856_v52 = vld [vmem:[#allocation9 + $0x14f0] sm:$0xff]  ;;  %v849_v53 = vld [vmem:[#allocation9 + $0x14b8] sm:$0xff] }
 0x411   :  { %7514 = vmatprep.subr.bf16.mxu0 %v11521_v54  ;;  %7678 = vmatprep.subr.bf16.mxu1 %v11523_v12  ;;  %v857_v54 = vld [vmem:[#allocation9 + $0x14f8] sm:$0xff]  ;;  %v11600_v12 = vcombine.low %v832_v38, %v840_v42  ;;  %v11617_v60 = vcombine.high %v848_v51, %v856_v52 }
 0x412   :  { %v11619_v11 = vcombine.high %v849_v53, %v857_v54  ;;  %v11618_v1 = vcombine.low %v849_v53, %v857_v54  ;;  %v944_v54 = vld [vmem:[#allocation9 + $0x17b0] sm:$0xff] }
 0x414   :  { %7515 = vmatpush1.bf16.msra.mxu0 %v11520_v62  ;;  %7679 = vmatpush1.bf16.msra.mxu1 %v11522_v57  ;;  %v872_v62 = vld [vmem:[#allocation9 + $0x1570] sm:$0xff]  ;;  %v865_v57 = vld [vmem:[#allocation9 + $0x1538] sm:$0xff] }
 0x415   :  { %7516 = vmatprep.subr.bf16.mxu0 %v11537_v0  ;;  %7680 = vmatprep.subr.bf16.mxu1 %v11539_v32  ;;  %v873_v0 = vld [vmem:[#allocation9 + $0x1578] sm:$0xff]  ;;  %v11616_v32 = vcombine.low %v848_v51, %v856_v52  ;;  %v11633_v2 = vcombine.high %v864_v61, %v872_v62 }
 0x416   :  { %v11635_v22 = vcombine.high %v865_v57, %v873_v0  ;;  %v11634_v10 = vcombine.low %v865_v57, %v873_v0  ;;  %v960_v0 = vld [vmem:[#allocation9 + $0x1830] sm:$0xff] }
 0x418   :  { %7517 = vmatpush1.bf16.msra.mxu0 %v11536_v4  ;;  %7681 = vmatpush1.bf16.msra.mxu1 %v11538_v5  ;;  %v888_v4 = vld [vmem:[#allocation9 + $0x15f0] sm:$0xff]  ;;  %v881_v5 = vld [vmem:[#allocation9 + $0x15b8] sm:$0xff] }
 0x419   :  { %7518 = vmatprep.subr.bf16.mxu0 %v11553_v6  ;;  %7682 = vmatprep.subr.bf16.mxu1 %v11555_v7  ;;  %v889_v6 = vld [vmem:[#allocation9 + $0x15f8] sm:$0xff]  ;;  %v11632_v7 = vcombine.low %v864_v61, %v872_v62  ;;  %v11649_v13 = vcombine.high %v880_v39, %v888_v4 }
 0x41a   :  { %v11651_v14 = vcombine.high %v881_v5, %v889_v6  ;;  %v11650_v24 = vcombine.low %v881_v5, %v889_v6  ;;  %v976_v6 = vld [vmem:[#allocation9 + $0x18b0] sm:$0xff] }
 0x41c   :  { %7519 = vmatpush1.bf16.msra.mxu0 %v11552_v18  ;;  %7683 = vmatpush1.bf16.msra.mxu1 %v11554_v19  ;;  %v904_v18 = vld [vmem:[#allocation9 + $0x1670] sm:$0xff]  ;;  %v897_v19 = vld [vmem:[#allocation9 + $0x1638] sm:$0xff] }
 0x41d   :  { %7520 = vmatprep.subr.bf16.mxu0 %v11569_v21  ;;  %7684 = vmatprep.subr.bf16.mxu1 %v11571_v23  ;;  %v905_v21 = vld [vmem:[#allocation9 + $0x1678] sm:$0xff]  ;;  %v11648_v23 = vcombine.low %v880_v39, %v888_v4  ;;  %v11665_v26 = vcombine.high %v896_v17, %v904_v18 }
 0x41e   :  { %v11667_v29 = vcombine.high %v897_v19, %v905_v21  ;;  %v11666_v38 = vcombine.low %v897_v19, %v905_v21  ;;  %v992_v21 = vld [vmem:[#allocation9 + $0x1930] sm:$0xff] }
 0x420   :  { %7521 = vmatpush1.bf16.msra.mxu0 %v11568_v15  ;;  %7685 = vmatpush1.bf16.msra.mxu1 %v11570_v33  ;;  %v920_v15 = vld [vmem:[#allocation9 + $0x16f0] sm:$0xff]  ;;  %v913_v33 = vld [vmem:[#allocation9 + $0x16b8] sm:$0xff] }
 0x421   :  { %7522 = vmatprep.subr.bf16.mxu0 %v11585_v35  ;;  %7686 = vmatprep.subr.bf16.mxu1 %v11587_v37  ;;  %v921_v35 = vld [vmem:[#allocation9 + $0x16f8] sm:$0xff]  ;;  %v11664_v37 = vcombine.low %v896_v17, %v904_v18  ;;  %v11681_v42 = vcombine.high %v912_v31, %v920_v15 }
 0x422   :  { %v11683_v44 = vcombine.high %v913_v33, %v921_v35  ;;  %v11682_v51 = vcombine.low %v913_v33, %v921_v35  ;;  %v1008_v35 = vld [vmem:[#allocation9 + $0x19b0] sm:$0xff] }
 0x424   :  { %7523 = vmatpush1.bf16.msra.mxu0 %v11584_v25  ;;  %7687 = vmatpush1.bf16.msra.mxu1 %v11586_v47  ;;  %v936_v25 = vld [vmem:[#allocation9 + $0x1770] sm:$0xff]  ;;  %v929_v47 = vld [vmem:[#allocation9 + $0x1738] sm:$0xff] }
 0x425   :  { %7524 = vmatprep.subr.bf16.mxu0 %v11601_v48  ;;  %7688 = vmatprep.subr.bf16.mxu1 %v11603_v49  ;;  %v937_v48 = vld [vmem:[#allocation9 + $0x1778] sm:$0xff]  ;;  %v11680_v49 = vcombine.low %v912_v31, %v920_v15  ;;  %v11697_v52 = vcombine.high %v928_v45, %v936_v25 }
 0x426   :  { %v11699_v53 = vcombine.high %v929_v47, %v937_v48  ;;  %v11698_v61 = vcombine.low %v929_v47, %v937_v48  ;;  %v1024_v47 = vld [vmem:[#allocation9 + $0x1a30] sm:$0xff] }
 0x427   :  { %v1032_v48 = vld [vmem:[#allocation9 + $0x1a70] sm:$0xff] }
 0x428   :  { %7525 = vmatpush1.bf16.msra.mxu0 %v11600_v12  ;;  %7689 = vmatpush1.bf16.msra.mxu1 %v11602_v56  ;;  %v952_v12 = vld [vmem:[#allocation9 + $0x17f0] sm:$0xff]  ;;  %v945_v56 = vld [vmem:[#allocation9 + $0x17b8] sm:$0xff] }
 0x429   :  { %7526 = vmatprep.subr.bf16.mxu0 %v11617_v60  ;;  %7690 = vmatprep.subr.bf16.mxu1 %v11619_v11  ;;  %v953_v60 = vld [vmem:[#allocation9 + $0x17f8] sm:$0xff]  ;;  %v11696_v11 = vcombine.low %v928_v45, %v936_v25  ;;  %v11713_v62 = vcombine.high %v944_v54, %v952_v12 }
 0x42a   :  { %v11715_v57 = vcombine.high %v945_v56, %v953_v60  ;;  %v11714_v39 = vcombine.low %v945_v56, %v953_v60  ;;  %v1048_v56 = vld [vmem:[#allocation9 + $0x1af0] sm:$0xff]  ;;  %v1041_v60 = vld [vmem:[#allocation9 + $0x1ab8] sm:$0xff] }
 0x42c   :  { %7527 = vmatpush1.bf16.msra.mxu0 %v11616_v32  ;;  %7691 = vmatpush1.bf16.msra.mxu1 %v11618_v1  ;;  %v968_v32 = vld [vmem:[#allocation9 + $0x1870] sm:$0xff]  ;;  %v961_v1 = vld [vmem:[#allocation9 + $0x1838] sm:$0xff] }
 0x42d   :  { %7528 = vmatprep.subr.bf16.mxu0 %v11633_v2  ;;  %7692 = vmatprep.subr.bf16.mxu1 %v11635_v22  ;;  %v969_v2 = vld [vmem:[#allocation9 + $0x1878] sm:$0xff]  ;;  %v11712_v22 = vcombine.low %v944_v54, %v952_v12  ;;  %v11729_v4 = vcombine.high %v960_v0, %v968_v32  ;;  %v11793_v54 = vcombine.high %v1024_v47, %v1032_v48  ;;  %v1040_v12 = vld [vmem:[#allocation9 + $0x1ab0] sm:$0xff] }
 0x42e   :  { %v11731_v5 = vcombine.high %v961_v1, %v969_v2  ;;  %v11730_v17 = vcombine.low %v961_v1, %v969_v2  ;;  %v1056_v1 = vld [vmem:[#allocation9 + $0x1b30] sm:$0xff] }
 0x42f   :  { %v1064_v2 = vld [vmem:[#allocation9 + $0x1b70] sm:$0xff] }
 0x430   :  { %7529 = vmatpush1.bf16.msra.mxu0 %v11632_v7  ;;  %7693 = vmatpush1.bf16.msra.mxu1 %v11634_v10  ;;  %v984_v7 = vld [vmem:[#allocation9 + $0x18f0] sm:$0xff]  ;;  %v977_v10 = vld [vmem:[#allocation9 + $0x18b8] sm:$0xff] }
 0x431   :  { %7530 = vmatprep.subr.bf16.mxu0 %v11649_v13  ;;  %7694 = vmatprep.subr.bf16.mxu1 %v11651_v14  ;;  %v985_v13 = vld [vmem:[#allocation9 + $0x18f8] sm:$0xff]  ;;  %v11728_v14 = vcombine.low %v960_v0, %v968_v32  ;;  %v11745_v18 = vcombine.high %v976_v6, %v984_v7  ;;  %v11809_v0 = vcombine.high %v1040_v12, %v1048_v56 }
 0x432   :  { %v11747_v19 = vcombine.high %v977_v10, %v985_v13  ;;  %v11746_v31 = vcombine.low %v977_v10, %v985_v13 }
 0x434   :  { %7531 = vmatpush1.bf16.msra.mxu0 %v11648_v23  ;;  %7695 = vmatpush1.bf16.msra.mxu1 %v11650_v24  ;;  %v1000_v23 = vld [vmem:[#allocation9 + $0x1970] sm:$0xff]  ;;  %v993_v24 = vld [vmem:[#allocation9 + $0x1938] sm:$0xff] }
 0x435   :  { %7532 = vmatprep.subr.bf16.mxu0 %v11665_v26  ;;  %7696 = vmatprep.subr.bf16.mxu1 %v11667_v29  ;;  %v1001_v26 = vld [vmem:[#allocation9 + $0x1978] sm:$0xff]  ;;  %v11744_v29 = vcombine.low %v976_v6, %v984_v7  ;;  %v11761_v15 = vcombine.high %v992_v21, %v1000_v23  ;;  %v11808_v7 = vcombine.low %v1040_v12, %v1048_v56 }
 0x436   :  { %v11763_v33 = vcombine.high %v993_v24, %v1001_v26 }
 0x438   :  { %7533 = vmatpush1.bf16.msra.mxu0 %v11664_v37  ;;  %7697 = vmatpush1.bf16.msra.mxu1 %v11666_v38  ;;  %v1016_v37 = vld [vmem:[#allocation9 + $0x19f0] sm:$0xff]  ;;  %v1009_v38 = vld [vmem:[#allocation9 + $0x19b8] sm:$0xff] }
 0x439   :  { %7534 = vmatprep.subr.bf16.mxu0 %v11681_v42  ;;  %7698 = vmatprep.subr.bf16.mxu1 %v11683_v44  ;;  %v1017_v42 = vld [vmem:[#allocation9 + $0x19f8] sm:$0xff]  ;;  %v11760_v44 = vcombine.low %v992_v21, %v1000_v23  ;;  %v11777_v45 = vcombine.high %v1008_v35, %v1016_v37  ;;  %v1080_v21 = vld [vmem:[#allocation9 + $0x1bf0] sm:$0xff] }
 0x43a   :  { %v11779_v25 = vcombine.high %v1009_v38, %v1017_v42 }
 0x43c   :  { %7535 = vmatpush1.bf16.msra.mxu0 %v11680_v49  ;;  %7699 = vmatpush1.bf16.msra.mxu1 %v11682_v51  ;;  %v1025_v49 = vld [vmem:[#allocation9 + $0x1a38] sm:$0xff] }
 0x43d   :  { %7536 = vmatprep.subr.bf16.mxu0 %v11697_v52  ;;  %7700 = vmatprep.subr.bf16.mxu1 %v11699_v53  ;;  %v1033_v51 = vld [vmem:[#allocation9 + $0x1a78] sm:$0xff]  ;;  %v11776_v52 = vcombine.low %v1008_v35, %v1016_v37  ;;  %v11778_v53 = vcombine.low %v1009_v38, %v1017_v42  ;;  %v11824_v38 = vcombine.low %v1056_v1, %v1064_v2 }
 0x440   :  { %7537 = vmatpush1.bf16.msra.mxu0 %v11696_v11  ;;  %7701 = vmatpush1.bf16.msra.mxu1 %v11698_v61  ;;  %v1049_v11 = vld [vmem:[#allocation9 + $0x1af8] sm:$0xff]  ;;  %v11792_v61 = vcombine.low %v1024_v47, %v1032_v48 }
 0x441   :  { %7538 = vmatprep.subr.bf16.mxu0 %v11713_v62  ;;  %7702 = vmatprep.subr.bf16.mxu1 %v11715_v57  ;;  %v12815_v62 = vld [vmem:[#allocation11 + $0x8] sm:$0xff]  ;;  %v11794_v57 = vcombine.low %v1025_v49, %v1033_v51  ;;  %v11811_v32 = vcombine.high %v1041_v60, %v1049_v11  ;;  %v11810_v13 = vcombine.low %v1041_v60, %v1049_v11  ;;  %v1104_v60 = vld [vmem:[#allocation9 + $0x1cb0] sm:$0xff] }
 0x442   :  { %v1253_v6 = vrot.slane %v12815_v62, %v12742_v28  ;;  %v1261_v10 = vrot.slane %v12815_v62, %v12745_v30  ;;  %v1112_v11 = vld [vmem:[#allocation9 + $0x1cf0] sm:$0xff] }
 0x444   :  { %7539 = vmatpush1.bf16.msra.mxu0 %v11712_v22  ;;  %7703 = vmatpush1.bf16.msra.mxu1 %v11714_v39  ;;  %v1249_v22 = vrot.slane %v12815_v62, %v12736_v20  ;;  %v1057_v39 = vld [vmem:[#allocation9 + $0x1b38] sm:$0xff] }
 0x445   :  { %7549 = vmatprep.subr.bf16.mxu0 %v11729_v4  ;;  %7713 = vmatprep.subr.bf16.mxu1 %v11731_v5  ;;  %v1065_v4 = vld [vmem:[#allocation9 + $0x1b78] sm:$0xff]  ;;  %v1257_v5 = vrot.slane %v12815_v62, %v12739_v27 }
 0x447   :  { %7541 = vmatmul.mubr.bf16.vlgmr.msra.gmra.mrb[12].mxu0 %v12701_v36  ;;  %7705 = vmatmul.mubr.bf16.vlgmr.msra.gmra.mrb[12].mxu1 %v12701_v36  ;;  %v11762_v36 = vcombine.low %v993_v24, %v1001_v26 }
 0x448   :  { %7550 = vmatpush1.bf16.msra.mxu0 %v11728_v14  ;;  %7714 = vmatpush1.bf16.msra.mxu1 %v11730_v17  ;;  %v11825_v14 = vcombine.high %v1056_v1, %v1064_v2  ;;  %v11873_v1 = vcombine.high %v1104_v60, %v1112_v11 }
 0x449   :  { %7551 = vmatprep.subr.bf16.mxu0 %v11745_v18  ;;  %7715 = vmatprep.subr.bf16.mxu1 %v11747_v19  ;;  %v11827_v18 = vcombine.high %v1057_v39, %v1065_v4  ;;  %v1072_v19 = vld [vmem:[#allocation9 + $0x1bb0] sm:$0xff] }
 0x44a   :  { %7581 = vmatprep.mubr.bf16.mxu0 %v12707_v46  ;;  %7745 = vmatprep.mubr.bf16.mxu1 %v12707_v46  ;;  %v11795_v46 = vcombine.high %v1025_v49, %v1033_v51  ;;  %v1088_v49 = vld [vmem:[#allocation9 + $0x1c30] sm:$0xff] }
 0x44b   :  { %v1096_v51 = vld [vmem:[#allocation9 + $0x1c70] sm:$0xff] }
 0x44c   :  { %7552 = vmatpush1.bf16.msra.mxu0 %v11744_v29  ;;  %7716 = vmatpush1.bf16.msra.mxu1 %v11746_v31  ;;  %v1073_v29 = vld [vmem:[#allocation9 + $0x1bb8] sm:$0xff]  ;;  %v11857_v12 = vcombine.high %v1088_v49, %v1096_v51 }
 0x44d   :  { %7553 = vmatprep.subr.bf16.mxu0 %v11761_v15  ;;  %7717 = vmatprep.subr.bf16.mxu1 %v11763_v33  ;;  %v1081_v31 = vld [vmem:[#allocation9 + $0x1bf8] sm:$0xff] }
 0x44e   :  { %v11843_v48 = vcombine.high %v1073_v29, %v1081_v31 }
 0x450   :  { %7554 = vmatpush1.bf16.msra.mxu0 %v11760_v44  ;;  %7718 = vmatpush1.bf16.msra.mxu1 %v11762_v36 }
 0x451   :  { %7555 = vmatprep.subr.bf16.mxu0 %v11777_v45  ;;  %7719 = vmatprep.subr.bf16.mxu1 %v11779_v25  ;;  %v11826_v45 = vcombine.low %v1057_v39, %v1065_v4  ;;  %v11841_v25 = vcombine.high %v1072_v19, %v1080_v21  ;;  %v1128_v39 = vld [vmem:[#allocation9 + $0x1d70] sm:$0xff]  ;;  %v1121_v4 = vld [vmem:[#allocation9 + $0x1d38] sm:$0xff] }
 0x454   :  { %7556 = vmatpush1.bf16.msra.mxu0 %v11776_v52  ;;  %7720 = vmatpush1.bf16.msra.mxu1 %v11778_v53  ;;  %v1089_v52 = vld [vmem:[#allocation9 + $0x1c38] sm:$0xff] }
 0x455   :  { %7557 = vmatprep.subr.bf16.mxu0 %v11793_v54  ;;  %7721 = vmatprep.subr.bf16.mxu1 %v11795_v46  ;;  %v1097_v53 = vld [vmem:[#allocation9 + $0x1c78] sm:$0xff]  ;;  %v11840_v54 = vcombine.low %v1072_v19, %v1080_v21  ;;  %v11842_v46 = vcombine.low %v1073_v29, %v1081_v31  ;;  %v1152_v31 = vld [vmem:[#allocation9 + $0x1e30] sm:$0xff] }
 0x456   :  { %v11859_v56 = vcombine.high %v1089_v52, %v1097_v53  ;;  %v1145_v19 = vld [vmem:[#allocation9 + $0x1df8] sm:$0xff] }
 0x458   :  { %7558 = vmatpush1.bf16.msra.mxu0 %v11792_v61  ;;  %7722 = vmatpush1.bf16.msra.mxu1 %v11794_v57  ;;  %v1105_v61 = vld [vmem:[#allocation9 + $0x1cb8] sm:$0xff] }
 0x459   :  { %7559 = vmatprep.subr.bf16.mxu0 %v11809_v0  ;;  %7723 = vmatprep.subr.bf16.mxu1 %v11811_v32  ;;  %v1113_v57 = vld [vmem:[#allocation9 + $0x1cf8] sm:$0xff]  ;;  %v11856_v0 = vcombine.low %v1088_v49, %v1096_v51  ;;  %v11858_v32 = vcombine.low %v1089_v52, %v1097_v53 }
 0x45a   :  { %v7255_v17 = vpop.f32.mrb[8].mxu0  ;;  %v7419_v24 = vpop.f32.mrb[8].mxu1  ;;  %v11875_v2 = vcombine.high %v1105_v61, %v1113_v57  ;;  %v1169_v49 = vld [vmem:[#allocation9 + $0x1eb8] sm:$0xff] }
 0x45b   :  { %v12825_v23 = vadd.f32 %v7255_v17, %v1249_v22  ;;  %v7257_v26 = vpop.f32.mrb[9].mxu0  ;;  %v12827_v15 = vadd.f32 %v7419_v24, %v1257_v5  ;;  %v7421_v35 = vpop.f32.mrb[9].mxu1  ;;  %v1120_v22 = vld [vmem:[#allocation9 + $0x1d30] sm:$0xff]  ;;  %v1129_v5 = vld [vmem:[#allocation9 + $0x1d78] sm:$0xff] }
 0x45c   :  { %v12829_v33 = vadd.f32 %v7257_v26, %v1253_v6  ;;  %v7259_v37 = vpop.f32.mrb[10].mxu0  ;;  %7560 = vmatpush1.bf16.msra.mxu0 %v11808_v7  ;;  %v12831_v42 = vadd.f32 %v7421_v35, %v1261_v10  ;;  %v7423_v44 = vpop.f32.mrb[10].mxu1  ;;  %7724 = vmatpush1.bf16.msra.mxu1 %v11810_v13  ;;  %v11872_v6 = vcombine.low %v1104_v60, %v1112_v11  ;;  %v1144_v17 = vld [vmem:[#allocation9 + $0x1df0] sm:$0xff]  ;;  %v1177_v51 = vld [vmem:[#allocation9 + $0x1ef8] sm:$0xff] }
 0x45d   :  { %v7260_v36 = vpop.f32.mrb[11].mxu0  ;;  %7561 = vmatprep.subr.bf16.mxu0 %v11825_v14  ;;  %v7424_v47 = vpop.f32.mrb[11].mxu1  ;;  %7725 = vmatprep.subr.bf16.mxu1 %v11827_v18  ;;  %v11874_v7 = vcombine.low %v1105_v61, %v1113_v57  ;;  %v11889_v10 = vcombine.high %v1120_v22, %v1128_v39  ;;  %v11891_v13 = vcombine.high %v1121_v4, %v1129_v5  ;;  %v1136_v14 = vld [vmem:[#allocation9 + $0x1db0] sm:$0xff]  ;;  %v1137_v18 = vld [vmem:[#allocation9 + $0x1db8] sm:$0xff] }
 0x45e   :  { %v11888_v21 = vcombine.low %v1120_v22, %v1128_v39  ;;  %v11890_v24 = vcombine.low %v1121_v4, %v1129_v5  ;;  %v11905_v26 = vcombine.high %v1136_v14, %v1144_v17  ;;  %v11907_v29 = vcombine.high %v1137_v18, %v1145_v19  ;;  %v1160_v35 = vld [vmem:[#allocation9 + $0x1e70] sm:$0xff]  ;;  %v1153_v37 = vld [vmem:[#allocation9 + $0x1e38] sm:$0xff] }
 0x45f   :  { %v11904_v44 = vcombine.low %v1136_v14, %v1144_v17  ;;  %v11906_v36 = vcombine.low %v1137_v18, %v1145_v19  ;;  %v1168_v47 = vld [vmem:[#allocation9 + $0x1eb0] sm:$0xff]  ;;  %v11920_v52 = vcombine.low %v1152_v31, %v1160_v35  ;;  %v1185_v60 = vld [vmem:[#allocation9 + $0x1f38] sm:$0xff]  ;;  %v11938_v57 = vcombine.low %v1169_v49, %v1177_v51 }
 0x460   :  { %7562 = vmatpush1.bf16.msra.mxu0 %v11824_v38  ;;  %7726 = vmatpush1.bf16.msra.mxu1 %v11826_v45  ;;  %v1161_v38 = vld [vmem:[#allocation9 + $0x1e78] sm:$0xff]  ;;  %v11921_v45 = vcombine.high %v1152_v31, %v1160_v35 }
 0x461   :  { %7563 = vmatprep.subr.bf16.mxu0 %v11841_v25  ;;  %7727 = vmatprep.subr.bf16.mxu1 %v11843_v48  ;;  %v11923_v25 = vcombine.high %v1153_v37, %v1161_v38  ;;  %v1176_v48 = vld [vmem:[#allocation9 + $0x1ef0] sm:$0xff]  ;;  %v11922_v53 = vcombine.low %v1153_v37, %v1161_v38  ;;  %v1193_v11 = vld [vmem:[#allocation9 + $0x1f78] sm:$0xff] }
 0x462   :  { %v11936_v61 = vcombine.low %v1168_v47, %v1176_v48  ;;  %v1201_v22 = vld [vmem:[#allocation9 + $0x1fb8] sm:$0xff]  ;;  %v11954_v5 = vcombine.low %v1185_v60, %v1193_v11 }
 0x463   :  { %v1209_v39 = vld [vmem:[#allocation9 + $0x1ff8] sm:$0xff] }
 0x464   :  { %7564 = vmatpush1.bf16.msra.mxu0 %v11840_v54  ;;  %7728 = vmatpush1.bf16.msra.mxu1 %v11842_v46  ;;  %v11937_v54 = vcombine.high %v1168_v47, %v1176_v48  ;;  %v11939_v46 = vcombine.high %v1169_v49, %v1177_v51 }
 0x465   :  { %7565 = vmatprep.subr.bf16.mxu0 %v11857_v12  ;;  %7729 = vmatprep.subr.bf16.mxu1 %v11859_v56  ;;  %v1184_v12 = vld [vmem:[#allocation9 + $0x1f30] sm:$0xff] }
 0x466   :  { %v1192_v56 = vld [vmem:[#allocation9 + $0x1f70] sm:$0xff] }
 0x467   :  { %v11952_v4 = vcombine.low %v1184_v12, %v1192_v56 }
 0x468   :  { %7566 = vmatpush1.bf16.msra.mxu0 %v11856_v0  ;;  %7730 = vmatpush1.bf16.msra.mxu1 %v11858_v32  ;;  %v11953_v0 = vcombine.high %v1184_v12, %v1192_v56  ;;  %v11955_v32 = vcombine.high %v1185_v60, %v1193_v11 }
 0x469   :  { %7567 = vmatprep.subr.bf16.mxu0 %v11873_v1  ;;  %7731 = vmatprep.subr.bf16.mxu1 %v11875_v2  ;;  %v1200_v1 = vld [vmem:[#allocation9 + $0x1fb0] sm:$0xff] }
 0x46a   :  { %v1208_v2 = vld [vmem:[#allocation9 + $0x1ff0] sm:$0xff] }
 0x46c   :  { %7568 = vmatpush1.bf16.msra.mxu0 %v11872_v6  ;;  %7732 = vmatpush1.bf16.msra.mxu1 %v11874_v7  ;;  %v11969_v6 = vcombine.high %v1200_v1, %v1208_v2  ;;  %v11971_v7 = vcombine.high %v1201_v22, %v1209_v39 }
 0x46d   :  { %7569 = vmatprep.subr.bf16.mxu0 %v11889_v10  ;;  %7733 = vmatprep.subr.bf16.mxu1 %v11891_v13  ;;  %v11968_v10 = vcombine.low %v1200_v1, %v1208_v2  ;;  %v11970_v13 = vcombine.low %v1201_v22, %v1209_v39 }
 0x470   :  { %7570 = vmatpush1.bf16.msra.mxu0 %v11888_v21  ;;  %7734 = vmatpush1.bf16.msra.mxu1 %v11890_v24 }
 0x471   :  { %7571 = vmatprep.subr.bf16.mxu0 %v11905_v26  ;;  %7735 = vmatprep.subr.bf16.mxu1 %v11907_v29 }
 0x474   :  { %7572 = vmatpush1.bf16.msra.mxu0 %v11904_v44  ;;  %7736 = vmatpush1.bf16.msra.mxu1 %v11906_v36 }
 0x475   :  { %7573 = vmatprep.subr.bf16.mxu0 %v11921_v45  ;;  %7737 = vmatprep.subr.bf16.mxu1 %v11923_v25 }
 0x478   :  { %7574 = vmatpush1.bf16.msra.mxu0 %v11920_v52  ;;  %7738 = vmatpush1.bf16.msra.mxu1 %v11922_v53 }
 0x479   :  { %7575 = vmatprep.subr.bf16.mxu0 %v11937_v54  ;;  %7739 = vmatprep.subr.bf16.mxu1 %v11939_v46 }
 0x47c   :  { %7576 = vmatpush1.bf16.msra.mxu0 %v11936_v61  ;;  %7740 = vmatpush1.bf16.msra.mxu1 %v11938_v57 }
 0x47d   :  { %7577 = vmatprep.subr.bf16.mxu0 %v11953_v0  ;;  %7741 = vmatprep.subr.bf16.mxu1 %v11955_v32 }
 0x480   :  { %7578 = vmatpush1.bf16.msra.mxu0 %v11952_v4  ;;  %7742 = vmatpush1.bf16.msra.mxu1 %v11954_v5 }
 0x481   :  { %7579 = vmatprep.subr.bf16.mxu0 %v11969_v6  ;;  %7743 = vmatprep.subr.bf16.mxu1 %v11971_v7 }
 0x484   :  { %7580 = vmatpush1.bf16.msra.mxu0 %v11968_v10  ;;  %7744 = vmatpush1.bf16.msra.mxu1 %v11970_v13 }
 0x487   :  { %7582 = vmatmul.mubr.bf16.vlgmr.msra.gmra.mrb[12].mxu0 %v12715_v55  ;;  %7746 = vmatmul.mubr.bf16.vlgmr.msra.gmra.mrb[12].mxu1 %v12715_v55 }
 0x488   :  { %12453 = shalt.err (!%p12450_p8)  }
 0x489   :  { %s12454_s17 = scalar_lea.vmem %s179_s7, 4096  ;;  %p12459_p10 = scmp.lt.s32.totalorder %s179_s7, %s179_s7 }
 0x48a   :  { %p12455_p9 = scmp.ne.s32.totalorder %s179_s7, %s12454_s17  ;;  %p12460_p11 = scmp.lt.s32.totalorder %s12454_s17, %s12454_s17 }
 0x48c   :  { %p12461_p12 = por %p12460_p11, %p12459_p10 }
 0x48e   :  { %p12462_p13 = pnand %p12461_p12, %p12455_p9 }
 0x490   :  { %12465 = shalt.err (!%p12462_p13)  }
 0x491   :  { %181 = dma.hbm_to_vmem [thread:$0]  %s13063_s8, 4096, %s179_s7, [#allocation5 + $0x2]  ;;  %v1265_v55 = vrot.slane %v12815_v62, %v12776_v34  ;;  %v1273_v14 = vrot.slane %v12815_v62, %v12779_v40  ;;  %v1269_v17 = vrot.slane %v12815_v62, %v12782_v41  ;;  %v1277_v18 = vrot.slane %v12815_v62, %v12785_v43 }
 0x55a   :  { %v7583_v19 = vpop.f32.mrb[12].mxu0  ;;  %v7747_v24 = vpop.f32.mrb[12].mxu1 }
 0x55b   :  { %v12855_v21 = vadd.f32 %v7583_v19, %v1265_v55  ;;  %v7585_v26 = vpop.f32.mrb[13].mxu0  ;;  %v12857_v29 = vadd.f32 %v7747_v24, %v1273_v14  ;;  %v7749_v35 = vpop.f32.mrb[13].mxu1 }
 0x55c   :  { %v12859_v31 = vadd.f32 %v7585_v26, %v1269_v17  ;;  %v7587_v37 = vpop.f32.mrb[14].mxu0  ;;  %v12861_v38 = vadd.f32 %v7749_v35, %v1277_v18  ;;  %v7751_v44 = vpop.f32.mrb[14].mxu1 }
 0x55d   :  { %v7588_v36 = vpop.f32.mrb[15].mxu0  ;;  %v7752_v45 = vpop.f32.mrb[15].mxu1 }
 0x55e   :  { %12496 = dma.done.wait [#allocation5], 131072 }
 0x55f   :  { %12497 = vsyncadd [#allocation5], 4294836224  ;;  %v12865_v62 = vpack.c.bf16 %v12755_v59, %v12755_v59  ;;  %v7759_v25 = vld [vmem:[#allocation2 + $0x8] sm:$0xff]  ;;  %v7761_v47 = vld [vmem:[#allocation2 + $0x18] sm:$0xff] }
 0x560   :  { %v7758_v48 = vld [vmem:[#allocation2] sm:$0xff]  ;;  %8840 = vmatprep.subr.bf16.mxu0 %v7759_v25  ;;  %9168 = vmatprep.subr.bf16.mxu1 %v7761_v47  ;;  %v7760_v49 = vld [vmem:[#allocation2 + $0x10] sm:$0xff]  ;;  %v7767_v51 = vld [vmem:[#allocation2 + $0x48] sm:$0xff] }
 0x561   :  { %8872 = vmatprep.mubr.bf16.mxu0 %v12865_v62  ;;  %9200 = vmatprep.mubr.bf16.mxu1 %v12865_v62  ;;  %v7769_v52 = vld [vmem:[#allocation2 + $0x58] sm:$0xff]  ;;  %v7766_v53 = vld [vmem:[#allocation2 + $0x40] sm:$0xff]  ;;  %v7768_v54 = vld [vmem:[#allocation2 + $0x50] sm:$0xff] }
 0x562   :  { %8841 = vmatpush1.bf16.msra.mxu0 %v7758_v48  ;;  %9169 = vmatpush1.bf16.msra.mxu1 %v7760_v49  ;;  %v7775_v59 = vld [vmem:[#allocation2 + $0x88] sm:$0xff]  ;;  %v7777_v46 = vld [vmem:[#allocation2 + $0x98] sm:$0xff]  ;;  %v7774_v12 = vld [vmem:[#allocation2 + $0x80] sm:$0xff] }
 0x563   :  { %8842 = vmatprep.subr.bf16.mxu0 %v7767_v51  ;;  %9170 = vmatprep.subr.bf16.mxu1 %v7769_v52  ;;  %v7776_v56 = vld [vmem:[#allocation2 + $0x90] sm:$0xff]  ;;  %v7783_v60 = vld [vmem:[#allocation2 + $0xc8] sm:$0xff]  ;;  %v7785_v11 = vld [vmem:[#allocation2 + $0xd8] sm:$0xff] }
 0x564   :  { %v7782_v61 = vld [vmem:[#allocation2 + $0xc0] sm:$0xff]  ;;  %v7784_v57 = vld [vmem:[#allocation2 + $0xd0] sm:$0xff]  ;;  %v7791_v0 = vld [vmem:[#allocation2 + $0x108] sm:$0xff] }
 0x565   :  { %v7793_v32 = vld [vmem:[#allocation2 + $0x118] sm:$0xff]  ;;  %v7790_v1 = vld [vmem:[#allocation2 + $0x100] sm:$0xff]  ;;  %v7792_v2 = vld [vmem:[#allocation2 + $0x110] sm:$0xff] }
 0x566   :  { %8843 = vmatpush1.bf16.msra.mxu0 %v7766_v53  ;;  %9171 = vmatpush1.bf16.msra.mxu1 %v7768_v54  ;;  %v7799_v22 = vld [vmem:[#allocation2 + $0x148] sm:$0xff]  ;;  %v7801_v39 = vld [vmem:[#allocation2 + $0x158] sm:$0xff]  ;;  %v7798_v4 = vld [vmem:[#allocation2 + $0x140] sm:$0xff] }
 0x567   :  { %8844 = vmatprep.subr.bf16.mxu0 %v7775_v59  ;;  %9172 = vmatprep.subr.bf16.mxu1 %v7777_v46  ;;  %v7800_v5 = vld [vmem:[#allocation2 + $0x150] sm:$0xff]  ;;  %v7807_v6 = vld [vmem:[#allocation2 + $0x188] sm:$0xff]  ;;  %v7809_v7 = vld [vmem:[#allocation2 + $0x198] sm:$0xff] }
 0x568   :  { %v7806_v10 = vld [vmem:[#allocation2 + $0x180] sm:$0xff]  ;;  %v7808_v13 = vld [vmem:[#allocation2 + $0x190] sm:$0xff]  ;;  %v7815_v55 = vld [vmem:[#allocation2 + $0x1c8] sm:$0xff] }
 0x569   :  { %v7817_v14 = vld [vmem:[#allocation2 + $0x1d8] sm:$0xff]  ;;  %v7814_v17 = vld [vmem:[#allocation2 + $0x1c0] sm:$0xff]  ;;  %v7816_v18 = vld [vmem:[#allocation2 + $0x1d0] sm:$0xff] }
 0x56a   :  { %8845 = vmatpush1.bf16.msra.mxu0 %v7774_v12  ;;  %9173 = vmatpush1.bf16.msra.mxu1 %v7776_v56  ;;  %v7823_v19 = vld [vmem:[#allocation2 + $0x208] sm:$0xff]  ;;  %v7825_v24 = vld [vmem:[#allocation2 + $0x218] sm:$0xff]  ;;  %v7822_v26 = vld [vmem:[#allocation2 + $0x200] sm:$0xff] }
 0x56b   :  { %8846 = vmatprep.subr.bf16.mxu0 %v7783_v60  ;;  %9174 = vmatprep.subr.bf16.mxu1 %v7785_v11  ;;  %v7824_v35 = vld [vmem:[#allocation2 + $0x210] sm:$0xff]  ;;  %v7831_v37 = vld [vmem:[#allocation2 + $0x248] sm:$0xff]  ;;  %v7833_v44 = vld [vmem:[#allocation2 + $0x258] sm:$0xff] }
 0x56c   :  { %v7830_v36 = vld [vmem:[#allocation2 + $0x240] sm:$0xff]  ;;  %v7832_v45 = vld [vmem:[#allocation2 + $0x250] sm:$0xff]  ;;  %v7839_v25 = vld [vmem:[#allocation2 + $0x288] sm:$0xff] }
 0x56d   :  { %v7841_v47 = vld [vmem:[#allocation2 + $0x298] sm:$0xff]  ;;  %v7838_v48 = vld [vmem:[#allocation2 + $0x280] sm:$0xff]  ;;  %v7840_v49 = vld [vmem:[#allocation2 + $0x290] sm:$0xff] }
 0x56e   :  { %8847 = vmatpush1.bf16.msra.mxu0 %v7782_v61  ;;  %9175 = vmatpush1.bf16.msra.mxu1 %v7784_v57  ;;  %v7847_v51 = vld [vmem:[#allocation2 + $0x2c8] sm:$0xff]  ;;  %v7849_v52 = vld [vmem:[#allocation2 + $0x2d8] sm:$0xff]  ;;  %v7846_v53 = vld [vmem:[#allocation2 + $0x2c0] sm:$0xff] }
 0x56f   :  { %8848 = vmatprep.subr.bf16.mxu0 %v7791_v0  ;;  %9176 = vmatprep.subr.bf16.mxu1 %v7793_v32  ;;  %v7848_v54 = vld [vmem:[#allocation2 + $0x2d0] sm:$0xff]  ;;  %v7855_v59 = vld [vmem:[#allocation2 + $0x308] sm:$0xff]  ;;  %v7857_v46 = vld [vmem:[#allocation2 + $0x318] sm:$0xff] }
 0x570   :  { %v7854_v12 = vld [vmem:[#allocation2 + $0x300] sm:$0xff]  ;;  %v7856_v56 = vld [vmem:[#allocation2 + $0x310] sm:$0xff]  ;;  %v7863_v60 = vld [vmem:[#allocation2 + $0x348] sm:$0xff] }
 0x571   :  { %v7865_v11 = vld [vmem:[#allocation2 + $0x358] sm:$0xff]  ;;  %v7862_v61 = vld [vmem:[#allocation2 + $0x340] sm:$0xff]  ;;  %v7864_v57 = vld [vmem:[#allocation2 + $0x350] sm:$0xff] }
 0x572   :  { %8849 = vmatpush1.bf16.msra.mxu0 %v7790_v1  ;;  %9177 = vmatpush1.bf16.msra.mxu1 %v7792_v2  ;;  %v7871_v0 = vld [vmem:[#allocation2 + $0x388] sm:$0xff]  ;;  %v7873_v32 = vld [vmem:[#allocation2 + $0x398] sm:$0xff]  ;;  %v7870_v1 = vld [vmem:[#allocation2 + $0x380] sm:$0xff] }
 0x573   :  { %8850 = vmatprep.subr.bf16.mxu0 %v7799_v22  ;;  %9178 = vmatprep.subr.bf16.mxu1 %v7801_v39  ;;  %v7872_v2 = vld [vmem:[#allocation2 + $0x390] sm:$0xff]  ;;  %v7879_v22 = vld [vmem:[#allocation2 + $0x3c8] sm:$0xff]  ;;  %v7881_v39 = vld [vmem:[#allocation2 + $0x3d8] sm:$0xff] }
 0x576   :  { %8851 = vmatpush1.bf16.msra.mxu0 %v7798_v4  ;;  %9179 = vmatpush1.bf16.msra.mxu1 %v7800_v5  ;;  %v7878_v4 = vld [vmem:[#allocation2 + $0x3c0] sm:$0xff]  ;;  %v7880_v5 = vld [vmem:[#allocation2 + $0x3d0] sm:$0xff] }
 0x577   :  { %8852 = vmatprep.subr.bf16.mxu0 %v7807_v6  ;;  %9180 = vmatprep.subr.bf16.mxu1 %v7809_v7  ;;  %v7887_v6 = vld [vmem:[#allocation2 + $0x408] sm:$0xff]  ;;  %v7889_v7 = vld [vmem:[#allocation2 + $0x418] sm:$0xff] }
 0x57a   :  { %8853 = vmatpush1.bf16.msra.mxu0 %v7806_v10  ;;  %9181 = vmatpush1.bf16.msra.mxu1 %v7808_v13  ;;  %v12871_v10 = vpack.c.bf16 %v12751_v50, %v12751_v50  ;;  %v7886_v13 = vld [vmem:[#allocation2 + $0x400] sm:$0xff] }
 0x57b   :  { %8854 = vmatprep.subr.bf16.mxu0 %v7815_v55  ;;  %9182 = vmatprep.subr.bf16.mxu1 %v7817_v14  ;;  %v7888_v55 = vld [vmem:[#allocation2 + $0x410] sm:$0xff]  ;;  %v7895_v14 = vld [vmem:[#allocation2 + $0x448] sm:$0xff]  ;;  %v7894_v50 = vld [vmem:[#allocation2 + $0x440] sm:$0xff] }
 0x57e   :  { %8855 = vmatpush1.bf16.msra.mxu0 %v7814_v17  ;;  %9183 = vmatpush1.bf16.msra.mxu1 %v7816_v18  ;;  %v7897_v17 = vld [vmem:[#allocation2 + $0x458] sm:$0xff]  ;;  %v12875_v18 = vpack.c.bf16 %v12757_v63, %v12757_v63  ;;  %v7902_v63 = vld [vmem:[#allocation2 + $0x480] sm:$0xff] }
 0x57f   :  { %8856 = vmatprep.subr.bf16.mxu0 %v7823_v19  ;;  %9184 = vmatprep.subr.bf16.mxu1 %v7825_v24  ;;  %v7896_v19 = vld [vmem:[#allocation2 + $0x450] sm:$0xff]  ;;  %v7903_v24 = vld [vmem:[#allocation2 + $0x488] sm:$0xff] }
 0x582   :  { %8857 = vmatpush1.bf16.msra.mxu0 %v7822_v26  ;;  %9185 = vmatpush1.bf16.msra.mxu1 %v7824_v35  ;;  %v7905_v26 = vld [vmem:[#allocation2 + $0x498] sm:$0xff]  ;;  %v7904_v35 = vld [vmem:[#allocation2 + $0x490] sm:$0xff] }
 0x583   :  { %8858 = vmatprep.subr.bf16.mxu0 %v7831_v37  ;;  %9186 = vmatprep.subr.bf16.mxu1 %v7833_v44  ;;  %v7911_v37 = vld [vmem:[#allocation2 + $0x4c8] sm:$0xff]  ;;  %v7913_v44 = vld [vmem:[#allocation2 + $0x4d8] sm:$0xff] }
 0x586   :  { %8859 = vmatpush1.bf16.msra.mxu0 %v7830_v36  ;;  %9187 = vmatpush1.bf16.msra.mxu1 %v7832_v45  ;;  %v7910_v36 = vld [vmem:[#allocation2 + $0x4c0] sm:$0xff]  ;;  %v7912_v45 = vld [vmem:[#allocation2 + $0x4d0] sm:$0xff] }
 0x587   :  { %8860 = vmatprep.subr.bf16.mxu0 %v7839_v25  ;;  %9188 = vmatprep.subr.bf16.mxu1 %v7841_v47  ;;  %v7919_v25 = vld [vmem:[#allocation2 + $0x508] sm:$0xff]  ;;  %v7921_v47 = vld [vmem:[#allocation2 + $0x518] sm:$0xff] }
 0x58a   :  { %8861 = vmatpush1.bf16.msra.mxu0 %v7838_v48  ;;  %9189 = vmatpush1.bf16.msra.mxu1 %v7840_v49  ;;  %v7918_v48 = vld [vmem:[#allocation2 + $0x500] sm:$0xff]  ;;  %v7920_v49 = vld [vmem:[#allocation2 + $0x510] sm:$0xff] }
 0x58b   :  { %8862 = vmatprep.subr.bf16.mxu0 %v7847_v51  ;;  %9190 = vmatprep.subr.bf16.mxu1 %v7849_v52  ;;  %v7927_v51 = vld [vmem:[#allocation2 + $0x548] sm:$0xff]  ;;  %v7929_v52 = vld [vmem:[#allocation2 + $0x558] sm:$0xff] }
 0x58e   :  { %8863 = vmatpush1.bf16.msra.mxu0 %v7846_v53  ;;  %9191 = vmatpush1.bf16.msra.mxu1 %v7848_v54  ;;  %v7926_v53 = vld [vmem:[#allocation2 + $0x540] sm:$0xff]  ;;  %v7928_v54 = vld [vmem:[#allocation2 + $0x550] sm:$0xff] }
 0x58f   :  { %8864 = vmatprep.subr.bf16.mxu0 %v7855_v59  ;;  %9192 = vmatprep.subr.bf16.mxu1 %v7857_v46  ;;  %v7935_v59 = vld [vmem:[#allocation2 + $0x588] sm:$0xff]  ;;  %v7937_v46 = vld [vmem:[#allocation2 + $0x598] sm:$0xff] }
 0x592   :  { %8865 = vmatpush1.bf16.msra.mxu0 %v7854_v12  ;;  %9193 = vmatpush1.bf16.msra.mxu1 %v7856_v56  ;;  %v7934_v12 = vld [vmem:[#allocation2 + $0x580] sm:$0xff]  ;;  %v7936_v56 = vld [vmem:[#allocation2 + $0x590] sm:$0xff] }
 0x593   :  { %8866 = vmatprep.subr.bf16.mxu0 %v7863_v60  ;;  %9194 = vmatprep.subr.bf16.mxu1 %v7865_v11  ;;  %v7943_v60 = vld [vmem:[#allocation2 + $0x5c8] sm:$0xff]  ;;  %v7945_v11 = vld [vmem:[#allocation2 + $0x5d8] sm:$0xff] }
 0x596   :  { %8867 = vmatpush1.bf16.msra.mxu0 %v7862_v61  ;;  %9195 = vmatpush1.bf16.msra.mxu1 %v7864_v57  ;;  %v7942_v61 = vld [vmem:[#allocation2 + $0x5c0] sm:$0xff]  ;;  %v7944_v57 = vld [vmem:[#allocation2 + $0x5d0] sm:$0xff] }
 0x597   :  { %8868 = vmatprep.subr.bf16.mxu0 %v7871_v0  ;;  %9196 = vmatprep.subr.bf16.mxu1 %v7873_v32  ;;  %v7951_v0 = vld [vmem:[#allocation2 + $0x608] sm:$0xff]  ;;  %v7953_v32 = vld [vmem:[#allocation2 + $0x618] sm:$0xff] }
 0x59a   :  { %8869 = vmatpush1.bf16.msra.mxu0 %v7870_v1  ;;  %9197 = vmatpush1.bf16.msra.mxu1 %v7872_v2  ;;  %v7950_v1 = vld [vmem:[#allocation2 + $0x600] sm:$0xff]  ;;  %v7952_v2 = vld [vmem:[#allocation2 + $0x610] sm:$0xff] }
 0x59b   :  { %8870 = vmatprep.subr.bf16.mxu0 %v7879_v22  ;;  %9198 = vmatprep.subr.bf16.mxu1 %v7881_v39  ;;  %v7959_v22 = vld [vmem:[#allocation2 + $0x648] sm:$0xff]  ;;  %v7961_v39 = vld [vmem:[#allocation2 + $0x658] sm:$0xff] }
 0x59e   :  { %8871 = vmatpush1.bf16.msra.mxu0 %v7878_v4  ;;  %9199 = vmatpush1.bf16.msra.mxu1 %v7880_v5  ;;  %v7958_v4 = vld [vmem:[#allocation2 + $0x640] sm:$0xff]  ;;  %v7960_v5 = vld [vmem:[#allocation2 + $0x650] sm:$0xff] }
 0x59f   :  { %8881 = vmatprep.subr.bf16.mxu0 %v7887_v6  ;;  %9209 = vmatprep.subr.bf16.mxu1 %v7889_v7  ;;  %v7967_v6 = vld [vmem:[#allocation2 + $0x688] sm:$0xff]  ;;  %v7969_v7 = vld [vmem:[#allocation2 + $0x698] sm:$0xff] }
 0x5a1   :  { %8873 = vmatmul.mubr.bf16.vlgmr.msra.gmra.mrb[16].mxu0 %v12871_v10  ;;  %9201 = vmatmul.mubr.bf16.vlgmr.msra.gmra.mrb[16].mxu1 %v12871_v10 }
 0x5a2   :  { %8882 = vmatpush1.bf16.msra.mxu0 %v7886_v13  ;;  %9210 = vmatpush1.bf16.msra.mxu1 %v7888_v55  ;;  %v7966_v13 = vld [vmem:[#allocation2 + $0x680] sm:$0xff]  ;;  %v7968_v55 = vld [vmem:[#allocation2 + $0x690] sm:$0xff] }
 0x5a3   :  { %8883 = vmatprep.subr.bf16.mxu0 %v7895_v14  ;;  %9211 = vmatprep.subr.bf16.mxu1 %v7897_v17  ;;  %v7975_v14 = vld [vmem:[#allocation2 + $0x6c8] sm:$0xff]  ;;  %v7977_v17 = vld [vmem:[#allocation2 + $0x6d8] sm:$0xff] }
 0x5a4   :  { %8913 = vmatprep.mubr.bf16.mxu0 %v12875_v18  ;;  %9241 = vmatprep.mubr.bf16.mxu1 %v12875_v18 }
 0x5a6   :  { %8884 = vmatpush1.bf16.msra.mxu0 %v7894_v50  ;;  %9212 = vmatpush1.bf16.msra.mxu1 %v7896_v19  ;;  %v7974_v50 = vld [vmem:[#allocation2 + $0x6c0] sm:$0xff]  ;;  %v7976_v19 = vld [vmem:[#allocation2 + $0x6d0] sm:$0xff] }
 0x5a7   :  { %8885 = vmatprep.subr.bf16.mxu0 %v7903_v24  ;;  %9213 = vmatprep.subr.bf16.mxu1 %v7905_v26  ;;  %v7983_v24 = vld [vmem:[#allocation2 + $0x708] sm:$0xff]  ;;  %v7985_v26 = vld [vmem:[#allocation2 + $0x718] sm:$0xff] }
 0x5aa   :  { %8886 = vmatpush1.bf16.msra.mxu0 %v7902_v63  ;;  %9214 = vmatpush1.bf16.msra.mxu1 %v7904_v35  ;;  %v7982_v63 = vld [vmem:[#allocation2 + $0x700] sm:$0xff]  ;;  %v7984_v35 = vld [vmem:[#allocation2 + $0x710] sm:$0xff] }
 0x5ab   :  { %8887 = vmatprep.subr.bf16.mxu0 %v7911_v37  ;;  %9215 = vmatprep.subr.bf16.mxu1 %v7913_v44  ;;  %v7991_v37 = vld [vmem:[#allocation2 + $0x748] sm:$0xff]  ;;  %v7993_v44 = vld [vmem:[#allocation2 + $0x758] sm:$0xff] }
 0x5ae   :  { %8888 = vmatpush1.bf16.msra.mxu0 %v7910_v36  ;;  %9216 = vmatpush1.bf16.msra.mxu1 %v7912_v45  ;;  %v7990_v36 = vld [vmem:[#allocation2 + $0x740] sm:$0xff]  ;;  %v7992_v45 = vld [vmem:[#allocation2 + $0x750] sm:$0xff] }
 0x5af   :  { %8889 = vmatprep.subr.bf16.mxu0 %v7919_v25  ;;  %9217 = vmatprep.subr.bf16.mxu1 %v7921_v47  ;;  %v7999_v25 = vld [vmem:[#allocation2 + $0x788] sm:$0xff]  ;;  %v8001_v47 = vld [vmem:[#allocation2 + $0x798] sm:$0xff] }
 0x5b2   :  { %8890 = vmatpush1.bf16.msra.mxu0 %v7918_v48  ;;  %9218 = vmatpush1.bf16.msra.mxu1 %v7920_v49  ;;  %v7998_v48 = vld [vmem:[#allocation2 + $0x780] sm:$0xff]  ;;  %v8000_v49 = vld [vmem:[#allocation2 + $0x790] sm:$0xff] }
 0x5b3   :  { %8891 = vmatprep.subr.bf16.mxu0 %v7927_v51  ;;  %9219 = vmatprep.subr.bf16.mxu1 %v7929_v52  ;;  %v8007_v51 = vld [vmem:[#allocation2 + $0x7c8] sm:$0xff]  ;;  %v8009_v52 = vld [vmem:[#allocation2 + $0x7d8] sm:$0xff] }
 0x5b6   :  { %8892 = vmatpush1.bf16.msra.mxu0 %v7926_v53  ;;  %9220 = vmatpush1.bf16.msra.mxu1 %v7928_v54  ;;  %v8006_v53 = vld [vmem:[#allocation2 + $0x7c0] sm:$0xff]  ;;  %v8008_v54 = vld [vmem:[#allocation2 + $0x7d0] sm:$0xff] }
 0x5b7   :  { %8893 = vmatprep.subr.bf16.mxu0 %v7935_v59  ;;  %9221 = vmatprep.subr.bf16.mxu1 %v7937_v46  ;;  %v8015_v59 = vld [vmem:[#allocation2 + $0x808] sm:$0xff]  ;;  %v8017_v46 = vld [vmem:[#allocation2 + $0x818] sm:$0xff] }
 0x5ba   :  { %8894 = vmatpush1.bf16.msra.mxu0 %v7934_v12  ;;  %9222 = vmatpush1.bf16.msra.mxu1 %v7936_v56  ;;  %v12883_v12 = vpack.c.bf16 %v12753_v58, %v12753_v58  ;;  %v8014_v56 = vld [vmem:[#allocation2 + $0x800] sm:$0xff] }
 0x5bb   :  { %8895 = vmatprep.subr.bf16.mxu0 %v7943_v60  ;;  %9223 = vmatprep.subr.bf16.mxu1 %v7945_v11  ;;  %v8016_v60 = vld [vmem:[#allocation2 + $0x810] sm:$0xff]  ;;  %v8023_v11 = vld [vmem:[#allocation2 + $0x848] sm:$0xff]  ;;  %v8022_v58 = vld [vmem:[#allocation2 + $0x840] sm:$0xff] }
 0x5be   :  { %8896 = vmatpush1.bf16.msra.mxu0 %v7942_v61  ;;  %9224 = vmatpush1.bf16.msra.mxu1 %v7944_v57  ;;  %v8025_v61 = vld [vmem:[#allocation2 + $0x858] sm:$0xff]  ;;  %v12887_v57 = vpack.c.bf16 %v12795_v9, %v12795_v9  ;;  %v8030_v9 = vld [vmem:[#allocation2 + $0x880] sm:$0xff] }
 0x5bf   :  { %8897 = vmatprep.subr.bf16.mxu0 %v7951_v0  ;;  %9225 = vmatprep.subr.bf16.mxu1 %v7953_v32  ;;  %v8024_v0 = vld [vmem:[#allocation2 + $0x850] sm:$0xff]  ;;  %v8031_v32 = vld [vmem:[#allocation2 + $0x888] sm:$0xff] }
 0x5c2   :  { %8898 = vmatpush1.bf16.msra.mxu0 %v7950_v1  ;;  %9226 = vmatpush1.bf16.msra.mxu1 %v7952_v2  ;;  %v8033_v1 = vld [vmem:[#allocation2 + $0x898] sm:$0xff]  ;;  %v8032_v2 = vld [vmem:[#allocation2 + $0x890] sm:$0xff] }
 0x5c3   :  { %8899 = vmatprep.subr.bf16.mxu0 %v7959_v22  ;;  %9227 = vmatprep.subr.bf16.mxu1 %v7961_v39  ;;  %v8039_v22 = vld [vmem:[#allocation2 + $0x8c8] sm:$0xff]  ;;  %v8041_v39 = vld [vmem:[#allocation2 + $0x8d8] sm:$0xff] }
 0x5c6   :  { %8900 = vmatpush1.bf16.msra.mxu0 %v7958_v4  ;;  %9228 = vmatpush1.bf16.msra.mxu1 %v7960_v5  ;;  %v8038_v4 = vld [vmem:[#allocation2 + $0x8c0] sm:$0xff]  ;;  %v8040_v5 = vld [vmem:[#allocation2 + $0x8d0] sm:$0xff] }
 0x5c7   :  { %8901 = vmatprep.subr.bf16.mxu0 %v7967_v6  ;;  %9229 = vmatprep.subr.bf16.mxu1 %v7969_v7  ;;  %v8047_v6 = vld [vmem:[#allocation2 + $0x908] sm:$0xff]  ;;  %v8049_v7 = vld [vmem:[#allocation2 + $0x918] sm:$0xff] }
 0x5ca   :  { %8902 = vmatpush1.bf16.msra.mxu0 %v7966_v13  ;;  %9230 = vmatpush1.bf16.msra.mxu1 %v7968_v55  ;;  %v8046_v13 = vld [vmem:[#allocation2 + $0x900] sm:$0xff]  ;;  %v8048_v55 = vld [vmem:[#allocation2 + $0x910] sm:$0xff] }
 0x5cb   :  { %8903 = vmatprep.subr.bf16.mxu0 %v7975_v14  ;;  %9231 = vmatprep.subr.bf16.mxu1 %v7977_v17  ;;  %v8055_v14 = vld [vmem:[#allocation2 + $0x948] sm:$0xff]  ;;  %v8057_v17 = vld [vmem:[#allocation2 + $0x958] sm:$0xff] }
 0x5ce   :  { %8904 = vmatpush1.bf16.msra.mxu0 %v7974_v50  ;;  %9232 = vmatpush1.bf16.msra.mxu1 %v7976_v19  ;;  %v8054_v50 = vld [vmem:[#allocation2 + $0x940] sm:$0xff]  ;;  %v8056_v19 = vld [vmem:[#allocation2 + $0x950] sm:$0xff] }
 0x5cf   :  { %8905 = vmatprep.subr.bf16.mxu0 %v7983_v24  ;;  %9233 = vmatprep.subr.bf16.mxu1 %v7985_v26  ;;  %v8063_v24 = vld [vmem:[#allocation2 + $0x988] sm:$0xff]  ;;  %v8065_v26 = vld [vmem:[#allocation2 + $0x998] sm:$0xff] }
 0x5d2   :  { %8906 = vmatpush1.bf16.msra.mxu0 %v7982_v63  ;;  %9234 = vmatpush1.bf16.msra.mxu1 %v7984_v35  ;;  %v8062_v63 = vld [vmem:[#allocation2 + $0x980] sm:$0xff]  ;;  %v8064_v35 = vld [vmem:[#allocation2 + $0x990] sm:$0xff] }
 0x5d3   :  { %8907 = vmatprep.subr.bf16.mxu0 %v7991_v37  ;;  %9235 = vmatprep.subr.bf16.mxu1 %v7993_v44  ;;  %v8071_v37 = vld [vmem:[#allocation2 + $0x9c8] sm:$0xff]  ;;  %v8073_v44 = vld [vmem:[#allocation2 + $0x9d8] sm:$0xff] }
 0x5d6   :  { %8908 = vmatpush1.bf16.msra.mxu0 %v7990_v36  ;;  %9236 = vmatpush1.bf16.msra.mxu1 %v7992_v45  ;;  %v8070_v36 = vld [vmem:[#allocation2 + $0x9c0] sm:$0xff]  ;;  %v8072_v45 = vld [vmem:[#allocation2 + $0x9d0] sm:$0xff] }
 0x5d7   :  { %8909 = vmatprep.subr.bf16.mxu0 %v7999_v25  ;;  %9237 = vmatprep.subr.bf16.mxu1 %v8001_v47  ;;  %v8079_v25 = vld [vmem:[#allocation2 + $0xa08] sm:$0xff]  ;;  %v8081_v47 = vld [vmem:[#allocation2 + $0xa18] sm:$0xff] }
 0x5da   :  { %8910 = vmatpush1.bf16.msra.mxu0 %v7998_v48  ;;  %9238 = vmatpush1.bf16.msra.mxu1 %v8000_v49  ;;  %v8078_v48 = vld [vmem:[#allocation2 + $0xa00] sm:$0xff]  ;;  %v8080_v49 = vld [vmem:[#allocation2 + $0xa10] sm:$0xff] }
 0x5db   :  { %8911 = vmatprep.subr.bf16.mxu0 %v8007_v51  ;;  %9239 = vmatprep.subr.bf16.mxu1 %v8009_v52  ;;  %v8087_v51 = vld [vmem:[#allocation2 + $0xa48] sm:$0xff]  ;;  %v8089_v52 = vld [vmem:[#allocation2 + $0xa58] sm:$0xff] }
 0x5de   :  { %8912 = vmatpush1.bf16.msra.mxu0 %v8006_v53  ;;  %9240 = vmatpush1.bf16.msra.mxu1 %v8008_v54  ;;  %v8086_v53 = vld [vmem:[#allocation2 + $0xa40] sm:$0xff]  ;;  %v8088_v54 = vld [vmem:[#allocation2 + $0xa50] sm:$0xff] }
 0x5df   :  { %8922 = vmatprep.subr.bf16.mxu0 %v8015_v59  ;;  %9250 = vmatprep.subr.bf16.mxu1 %v8017_v46  ;;  %v8095_v59 = vld [vmem:[#allocation2 + $0xa88] sm:$0xff]  ;;  %v8097_v46 = vld [vmem:[#allocation2 + $0xa98] sm:$0xff] }
 0x5e1   :  { %8914 = vmatmul.mubr.bf16.vlgmr.msra.gmra.mrb[16].mxu0 %v12883_v12  ;;  %9242 = vmatmul.mubr.bf16.vlgmr.msra.gmra.mrb[16].mxu1 %v12883_v12 }
 0x5e2   :  { %8923 = vmatpush1.bf16.msra.mxu0 %v8014_v56  ;;  %9251 = vmatpush1.bf16.msra.mxu1 %v8016_v60  ;;  %v8094_v56 = vld [vmem:[#allocation2 + $0xa80] sm:$0xff]  ;;  %v8096_v60 = vld [vmem:[#allocation2 + $0xa90] sm:$0xff] }
 0x5e3   :  { %8924 = vmatprep.subr.bf16.mxu0 %v8023_v11  ;;  %9252 = vmatprep.subr.bf16.mxu1 %v8025_v61  ;;  %v8103_v11 = vld [vmem:[#allocation2 + $0xac8] sm:$0xff]  ;;  %v8105_v61 = vld [vmem:[#allocation2 + $0xad8] sm:$0xff] }
 0x5e4   :  { %8954 = vmatprep.mubr.bf16.mxu0 %v12887_v57  ;;  %9282 = vmatprep.mubr.bf16.mxu1 %v12887_v57 }
 0x5e6   :  { %8925 = vmatpush1.bf16.msra.mxu0 %v8022_v58  ;;  %9253 = vmatpush1.bf16.msra.mxu1 %v8024_v0  ;;  %v8102_v58 = vld [vmem:[#allocation2 + $0xac0] sm:$0xff]  ;;  %v8104_v0 = vld [vmem:[#allocation2 + $0xad0] sm:$0xff] }
 0x5e7   :  { %8926 = vmatprep.subr.bf16.mxu0 %v8031_v32  ;;  %9254 = vmatprep.subr.bf16.mxu1 %v8033_v1  ;;  %v8111_v32 = vld [vmem:[#allocation2 + $0xb08] sm:$0xff]  ;;  %v8113_v1 = vld [vmem:[#allocation2 + $0xb18] sm:$0xff] }
 0x5ea   :  { %8927 = vmatpush1.bf16.msra.mxu0 %v8030_v9  ;;  %9255 = vmatpush1.bf16.msra.mxu1 %v8032_v2  ;;  %v8110_v9 = vld [vmem:[#allocation2 + $0xb00] sm:$0xff]  ;;  %v8112_v2 = vld [vmem:[#allocation2 + $0xb10] sm:$0xff] }
 0x5eb   :  { %8928 = vmatprep.subr.bf16.mxu0 %v8039_v22  ;;  %9256 = vmatprep.subr.bf16.mxu1 %v8041_v39  ;;  %v8119_v22 = vld [vmem:[#allocation2 + $0xb48] sm:$0xff]  ;;  %v8121_v39 = vld [vmem:[#allocation2 + $0xb58] sm:$0xff] }
 0x5ee   :  { %8929 = vmatpush1.bf16.msra.mxu0 %v8038_v4  ;;  %9257 = vmatpush1.bf16.msra.mxu1 %v8040_v5  ;;  %v8118_v4 = vld [vmem:[#allocation2 + $0xb40] sm:$0xff]  ;;  %v8120_v5 = vld [vmem:[#allocation2 + $0xb50] sm:$0xff] }
 0x5ef   :  { %8930 = vmatprep.subr.bf16.mxu0 %v8047_v6  ;;  %9258 = vmatprep.subr.bf16.mxu1 %v8049_v7  ;;  %v8127_v6 = vld [vmem:[#allocation2 + $0xb88] sm:$0xff]  ;;  %v8129_v7 = vld [vmem:[#allocation2 + $0xb98] sm:$0xff] }
 0x5f2   :  { %8931 = vmatpush1.bf16.msra.mxu0 %v8046_v13  ;;  %9259 = vmatpush1.bf16.msra.mxu1 %v8048_v55  ;;  %v8126_v13 = vld [vmem:[#allocation2 + $0xb80] sm:$0xff]  ;;  %v8128_v55 = vld [vmem:[#allocation2 + $0xb90] sm:$0xff] }
 0x5f3   :  { %8932 = vmatprep.subr.bf16.mxu0 %v8055_v14  ;;  %9260 = vmatprep.subr.bf16.mxu1 %v8057_v17  ;;  %v8135_v14 = vld [vmem:[#allocation2 + $0xbc8] sm:$0xff]  ;;  %v8137_v17 = vld [vmem:[#allocation2 + $0xbd8] sm:$0xff] }
 0x5f6   :  { %8933 = vmatpush1.bf16.msra.mxu0 %v8054_v50  ;;  %9261 = vmatpush1.bf16.msra.mxu1 %v8056_v19  ;;  %v8134_v50 = vld [vmem:[#allocation2 + $0xbc0] sm:$0xff]  ;;  %v8136_v19 = vld [vmem:[#allocation2 + $0xbd0] sm:$0xff] }
 0x5f7   :  { %8934 = vmatprep.subr.bf16.mxu0 %v8063_v24  ;;  %9262 = vmatprep.subr.bf16.mxu1 %v8065_v26  ;;  %v8143_v24 = vld [vmem:[#allocation2 + $0xc08] sm:$0xff]  ;;  %v8145_v26 = vld [vmem:[#allocation2 + $0xc18] sm:$0xff] }
 0x5fa   :  { %8935 = vmatpush1.bf16.msra.mxu0 %v8062_v63  ;;  %9263 = vmatpush1.bf16.msra.mxu1 %v8064_v35  ;;  %v12895_v63 = vpack.c.bf16 %v12791_v3, %v12791_v3  ;;  %v8142_v35 = vld [vmem:[#allocation2 + $0xc00] sm:$0xff] }
 0x5fb   :  { %8936 = vmatprep.subr.bf16.mxu0 %v8071_v37  ;;  %9264 = vmatprep.subr.bf16.mxu1 %v8073_v44  ;;  %v8144_v37 = vld [vmem:[#allocation2 + $0xc10] sm:$0xff]  ;;  %v8151_v44 = vld [vmem:[#allocation2 + $0xc48] sm:$0xff]  ;;  %v8150_v3 = vld [vmem:[#allocation2 + $0xc40] sm:$0xff] }
 0x5fe   :  { %8937 = vmatpush1.bf16.msra.mxu0 %v8070_v36  ;;  %9265 = vmatpush1.bf16.msra.mxu1 %v8072_v45  ;;  %v8153_v36 = vld [vmem:[#allocation2 + $0xc58] sm:$0xff]  ;;  %v12899_v45 = vpack.c.bf16 %v12797_v16, %v12797_v16  ;;  %v8158_v16 = vld [vmem:[#allocation2 + $0xc80] sm:$0xff] }
 0x5ff   :  { %8938 = vmatprep.subr.bf16.mxu0 %v8079_v25  ;;  %9266 = vmatprep.subr.bf16.mxu1 %v8081_v47  ;;  %v8152_v25 = vld [vmem:[#allocation2 + $0xc50] sm:$0xff]  ;;  %v8159_v47 = vld [vmem:[#allocation2 + $0xc88] sm:$0xff] }
 0x602   :  { %8939 = vmatpush1.bf16.msra.mxu0 %v8078_v48  ;;  %9267 = vmatpush1.bf16.msra.mxu1 %v8080_v49  ;;  %v8161_v48 = vld [vmem:[#allocation2 + $0xc98] sm:$0xff]  ;;  %v8160_v49 = vld [vmem:[#allocation2 + $0xc90] sm:$0xff] }
 0x603   :  { %8940 = vmatprep.subr.bf16.mxu0 %v8087_v51  ;;  %9268 = vmatprep.subr.bf16.mxu1 %v8089_v52  ;;  %v8167_v51 = vld [vmem:[#allocation2 + $0xcc8] sm:$0xff]  ;;  %v8169_v52 = vld [vmem:[#allocation2 + $0xcd8] sm:$0xff] }
 0x606   :  { %8941 = vmatpush1.bf16.msra.mxu0 %v8086_v53  ;;  %9269 = vmatpush1.bf16.msra.mxu1 %v8088_v54  ;;  %v8166_v53 = vld [vmem:[#allocation2 + $0xcc0] sm:$0xff]  ;;  %v8168_v54 = vld [vmem:[#allocation2 + $0xcd0] sm:$0xff] }
 0x607   :  { %8942 = vmatprep.subr.bf16.mxu0 %v8095_v59  ;;  %9270 = vmatprep.subr.bf16.mxu1 %v8097_v46  ;;  %v8175_v59 = vld [vmem:[#allocation2 + $0xd08] sm:$0xff]  ;;  %v8177_v46 = vld [vmem:[#allocation2 + $0xd18] sm:$0xff] }
 0x60a   :  { %8943 = vmatpush1.bf16.msra.mxu0 %v8094_v56  ;;  %9271 = vmatpush1.bf16.msra.mxu1 %v8096_v60  ;;  %v8174_v56 = vld [vmem:[#allocation2 + $0xd00] sm:$0xff]  ;;  %v8176_v60 = vld [vmem:[#allocation2 + $0xd10] sm:$0xff] }
 0x60b   :  { %8944 = vmatprep.subr.bf16.mxu0 %v8103_v11  ;;  %9272 = vmatprep.subr.bf16.mxu1 %v8105_v61  ;;  %v8183_v11 = vld [vmem:[#allocation2 + $0xd48] sm:$0xff]  ;;  %v8185_v61 = vld [vmem:[#allocation2 + $0xd58] sm:$0xff] }
 0x60e   :  { %8945 = vmatpush1.bf16.msra.mxu0 %v8102_v58  ;;  %9273 = vmatpush1.bf16.msra.mxu1 %v8104_v0  ;;  %v8182_v58 = vld [vmem:[#allocation2 + $0xd40] sm:$0xff]  ;;  %v8184_v0 = vld [vmem:[#allocation2 + $0xd50] sm:$0xff] }
 0x60f   :  { %8946 = vmatprep.subr.bf16.mxu0 %v8111_v32  ;;  %9274 = vmatprep.subr.bf16.mxu1 %v8113_v1  ;;  %v8191_v32 = vld [vmem:[#allocation2 + $0xd88] sm:$0xff]  ;;  %v8193_v1 = vld [vmem:[#allocation2 + $0xd98] sm:$0xff] }
 0x612   :  { %8947 = vmatpush1.bf16.msra.mxu0 %v8110_v9  ;;  %9275 = vmatpush1.bf16.msra.mxu1 %v8112_v2  ;;  %v8190_v9 = vld [vmem:[#allocation2 + $0xd80] sm:$0xff]  ;;  %v8192_v2 = vld [vmem:[#allocation2 + $0xd90] sm:$0xff] }
 0x613   :  { %8948 = vmatprep.subr.bf16.mxu0 %v8119_v22  ;;  %9276 = vmatprep.subr.bf16.mxu1 %v8121_v39  ;;  %v8199_v22 = vld [vmem:[#allocation2 + $0xdc8] sm:$0xff]  ;;  %v8201_v39 = vld [vmem:[#allocation2 + $0xdd8] sm:$0xff] }
 0x616   :  { %8949 = vmatpush1.bf16.msra.mxu0 %v8118_v4  ;;  %9277 = vmatpush1.bf16.msra.mxu1 %v8120_v5  ;;  %v8198_v4 = vld [vmem:[#allocation2 + $0xdc0] sm:$0xff]  ;;  %v8200_v5 = vld [vmem:[#allocation2 + $0xdd0] sm:$0xff] }
 0x617   :  { %8950 = vmatprep.subr.bf16.mxu0 %v8127_v6  ;;  %9278 = vmatprep.subr.bf16.mxu1 %v8129_v7  ;;  %v8207_v6 = vld [vmem:[#allocation2 + $0xe08] sm:$0xff]  ;;  %v8209_v7 = vld [vmem:[#allocation2 + $0xe18] sm:$0xff] }
 0x61a   :  { %8951 = vmatpush1.bf16.msra.mxu0 %v8126_v13  ;;  %9279 = vmatpush1.bf16.msra.mxu1 %v8128_v55  ;;  %v8206_v13 = vld [vmem:[#allocation2 + $0xe00] sm:$0xff]  ;;  %v8208_v55 = vld [vmem:[#allocation2 + $0xe10] sm:$0xff] }
 0x61b   :  { %8952 = vmatprep.subr.bf16.mxu0 %v8135_v14  ;;  %9280 = vmatprep.subr.bf16.mxu1 %v8137_v17  ;;  %v8215_v14 = vld [vmem:[#allocation2 + $0xe48] sm:$0xff]  ;;  %v8217_v17 = vld [vmem:[#allocation2 + $0xe58] sm:$0xff] }
 0x61e   :  { %8953 = vmatpush1.bf16.msra.mxu0 %v8134_v50  ;;  %9281 = vmatpush1.bf16.msra.mxu1 %v8136_v19  ;;  %v8214_v50 = vld [vmem:[#allocation2 + $0xe40] sm:$0xff]  ;;  %v8216_v19 = vld [vmem:[#allocation2 + $0xe50] sm:$0xff] }
 0x61f   :  { %8963 = vmatprep.subr.bf16.mxu0 %v8143_v24  ;;  %9291 = vmatprep.subr.bf16.mxu1 %v8145_v26  ;;  %v8223_v24 = vld [vmem:[#allocation2 + $0xe88] sm:$0xff]  ;;  %v8225_v26 = vld [vmem:[#allocation2 + $0xe98] sm:$0xff] }
 0x621   :  { %8955 = vmatmul.mubr.bf16.vlgmr.msra.gmra.mrb[16].mxu0 %v12895_v63  ;;  %9283 = vmatmul.mubr.bf16.vlgmr.msra.gmra.mrb[16].mxu1 %v12895_v63 }
 0x622   :  { %8964 = vmatpush1.bf16.msra.mxu0 %v8142_v35  ;;  %9292 = vmatpush1.bf16.msra.mxu1 %v8144_v37  ;;  %v8222_v35 = vld [vmem:[#allocation2 + $0xe80] sm:$0xff]  ;;  %v8224_v37 = vld [vmem:[#allocation2 + $0xe90] sm:$0xff] }
 0x623   :  { %8965 = vmatprep.subr.bf16.mxu0 %v8151_v44  ;;  %9293 = vmatprep.subr.bf16.mxu1 %v8153_v36  ;;  %v8231_v44 = vld [vmem:[#allocation2 + $0xec8] sm:$0xff]  ;;  %v8233_v36 = vld [vmem:[#allocation2 + $0xed8] sm:$0xff] }
 0x624   :  { %8995 = vmatprep.mubr.bf16.mxu0 %v12899_v45  ;;  %9323 = vmatprep.mubr.bf16.mxu1 %v12899_v45 }
 0x626   :  { %8966 = vmatpush1.bf16.msra.mxu0 %v8150_v3  ;;  %9294 = vmatpush1.bf16.msra.mxu1 %v8152_v25  ;;  %v8230_v3 = vld [vmem:[#allocation2 + $0xec0] sm:$0xff]  ;;  %v8232_v25 = vld [vmem:[#allocation2 + $0xed0] sm:$0xff] }
 0x627   :  { %8967 = vmatprep.subr.bf16.mxu0 %v8159_v47  ;;  %9295 = vmatprep.subr.bf16.mxu1 %v8161_v48  ;;  %v8239_v47 = vld [vmem:[#allocation2 + $0xf08] sm:$0xff]  ;;  %v8241_v48 = vld [vmem:[#allocation2 + $0xf18] sm:$0xff] }
 0x62a   :  { %8968 = vmatpush1.bf16.msra.mxu0 %v8158_v16  ;;  %9296 = vmatpush1.bf16.msra.mxu1 %v8160_v49  ;;  %v8238_v16 = vld [vmem:[#allocation2 + $0xf00] sm:$0xff]  ;;  %v8240_v49 = vld [vmem:[#allocation2 + $0xf10] sm:$0xff] }
 0x62b   :  { %8969 = vmatprep.subr.bf16.mxu0 %v8167_v51  ;;  %9297 = vmatprep.subr.bf16.mxu1 %v8169_v52  ;;  %v8247_v51 = vld [vmem:[#allocation2 + $0xf48] sm:$0xff]  ;;  %v8249_v52 = vld [vmem:[#allocation2 + $0xf58] sm:$0xff] }
 0x62e   :  { %8970 = vmatpush1.bf16.msra.mxu0 %v8166_v53  ;;  %9298 = vmatpush1.bf16.msra.mxu1 %v8168_v54  ;;  %v8246_v53 = vld [vmem:[#allocation2 + $0xf40] sm:$0xff]  ;;  %v8248_v54 = vld [vmem:[#allocation2 + $0xf50] sm:$0xff] }
 0x62f   :  { %8971 = vmatprep.subr.bf16.mxu0 %v8175_v59  ;;  %9299 = vmatprep.subr.bf16.mxu1 %v8177_v46  ;;  %v8255_v59 = vld [vmem:[#allocation2 + $0xf88] sm:$0xff]  ;;  %v8257_v46 = vld [vmem:[#allocation2 + $0xf98] sm:$0xff] }
 0x632   :  { %8972 = vmatpush1.bf16.msra.mxu0 %v8174_v56  ;;  %9300 = vmatpush1.bf16.msra.mxu1 %v8176_v60  ;;  %v8254_v56 = vld [vmem:[#allocation2 + $0xf80] sm:$0xff]  ;;  %v8256_v60 = vld [vmem:[#allocation2 + $0xf90] sm:$0xff] }
 0x633   :  { %8973 = vmatprep.subr.bf16.mxu0 %v8183_v11  ;;  %9301 = vmatprep.subr.bf16.mxu1 %v8185_v61  ;;  %v8263_v11 = vld [vmem:[#allocation2 + $0xfc8] sm:$0xff]  ;;  %v8265_v61 = vld [vmem:[#allocation2 + $0xfd8] sm:$0xff] }
 0x636   :  { %8974 = vmatpush1.bf16.msra.mxu0 %v8182_v58  ;;  %9302 = vmatpush1.bf16.msra.mxu1 %v8184_v0  ;;  %v8262_v58 = vld [vmem:[#allocation2 + $0xfc0] sm:$0xff]  ;;  %v8264_v0 = vld [vmem:[#allocation2 + $0xfd0] sm:$0xff] }
 0x637   :  { %8975 = vmatprep.subr.bf16.mxu0 %v8191_v32  ;;  %9303 = vmatprep.subr.bf16.mxu1 %v8193_v1  ;;  %v8271_v32 = vld [vmem:[#allocation2 + $0x1008] sm:$0xff]  ;;  %v8273_v1 = vld [vmem:[#allocation2 + $0x1018] sm:$0xff] }
 0x63a   :  { %8976 = vmatpush1.bf16.msra.mxu0 %v8190_v9  ;;  %9304 = vmatpush1.bf16.msra.mxu1 %v8192_v2  ;;  %v12907_v9 = vpack.c.bf16 %v12793_v8, %v12793_v8  ;;  %v8270_v2 = vld [vmem:[#allocation2 + $0x1000] sm:$0xff] }
 0x63b   :  { %8977 = vmatprep.subr.bf16.mxu0 %v8199_v22  ;;  %9305 = vmatprep.subr.bf16.mxu1 %v8201_v39  ;;  %v8272_v22 = vld [vmem:[#allocation2 + $0x1010] sm:$0xff]  ;;  %v8279_v39 = vld [vmem:[#allocation2 + $0x1048] sm:$0xff]  ;;  %v8278_v8 = vld [vmem:[#allocation2 + $0x1040] sm:$0xff] }
 0x63e   :  { %8978 = vmatpush1.bf16.msra.mxu0 %v8198_v4  ;;  %9306 = vmatpush1.bf16.msra.mxu1 %v8200_v5  ;;  %v8281_v4 = vld [vmem:[#allocation2 + $0x1058] sm:$0xff]  ;;  %v12911_v5 = vpack.c.bf16 %v12829_v33, %v12829_v33  ;;  %v8286_v33 = vld [vmem:[#allocation2 + $0x1080] sm:$0xff] }
 0x63f   :  { %8979 = vmatprep.subr.bf16.mxu0 %v8207_v6  ;;  %9307 = vmatprep.subr.bf16.mxu1 %v8209_v7  ;;  %v8280_v6 = vld [vmem:[#allocation2 + $0x1050] sm:$0xff]  ;;  %v8287_v7 = vld [vmem:[#allocation2 + $0x1088] sm:$0xff] }
 0x642   :  { %8980 = vmatpush1.bf16.msra.mxu0 %v8206_v13  ;;  %9308 = vmatpush1.bf16.msra.mxu1 %v8208_v55  ;;  %v8289_v13 = vld [vmem:[#allocation2 + $0x1098] sm:$0xff]  ;;  %v8288_v55 = vld [vmem:[#allocation2 + $0x1090] sm:$0xff] }
 0x643   :  { %8981 = vmatprep.subr.bf16.mxu0 %v8215_v14  ;;  %9309 = vmatprep.subr.bf16.mxu1 %v8217_v17  ;;  %v8295_v14 = vld [vmem:[#allocation2 + $0x10c8] sm:$0xff]  ;;  %v8297_v17 = vld [vmem:[#allocation2 + $0x10d8] sm:$0xff] }
 0x646   :  { %8982 = vmatpush1.bf16.msra.mxu0 %v8214_v50  ;;  %9310 = vmatpush1.bf16.msra.mxu1 %v8216_v19  ;;  %v8294_v50 = vld [vmem:[#allocation2 + $0x10c0] sm:$0xff]  ;;  %v8296_v19 = vld [vmem:[#allocation2 + $0x10d0] sm:$0xff] }
 0x647   :  { %8983 = vmatprep.subr.bf16.mxu0 %v8223_v24  ;;  %9311 = vmatprep.subr.bf16.mxu1 %v8225_v26  ;;  %v8303_v24 = vld [vmem:[#allocation2 + $0x1108] sm:$0xff]  ;;  %v8305_v26 = vld [vmem:[#allocation2 + $0x1118] sm:$0xff] }
 0x64a   :  { %8984 = vmatpush1.bf16.msra.mxu0 %v8222_v35  ;;  %9312 = vmatpush1.bf16.msra.mxu1 %v8224_v37  ;;  %v8302_v35 = vld [vmem:[#allocation2 + $0x1100] sm:$0xff]  ;;  %v8304_v37 = vld [vmem:[#allocation2 + $0x1110] sm:$0xff] }
 0x64b   :  { %8985 = vmatprep.subr.bf16.mxu0 %v8231_v44  ;;  %9313 = vmatprep.subr.bf16.mxu1 %v8233_v36  ;;  %v8311_v44 = vld [vmem:[#allocation2 + $0x1148] sm:$0xff]  ;;  %v8313_v36 = vld [vmem:[#allocation2 + $0x1158] sm:$0xff] }
 0x64e   :  { %8986 = vmatpush1.bf16.msra.mxu0 %v8230_v3  ;;  %9314 = vmatpush1.bf16.msra.mxu1 %v8232_v25  ;;  %v8310_v3 = vld [vmem:[#allocation2 + $0x1140] sm:$0xff]  ;;  %v8312_v25 = vld [vmem:[#allocation2 + $0x1150] sm:$0xff] }
 0x64f   :  { %8987 = vmatprep.subr.bf16.mxu0 %v8239_v47  ;;  %9315 = vmatprep.subr.bf16.mxu1 %v8241_v48  ;;  %v8319_v47 = vld [vmem:[#allocation2 + $0x1188] sm:$0xff]  ;;  %v8321_v48 = vld [vmem:[#allocation2 + $0x1198] sm:$0xff] }
 0x652   :  { %8988 = vmatpush1.bf16.msra.mxu0 %v8238_v16  ;;  %9316 = vmatpush1.bf16.msra.mxu1 %v8240_v49  ;;  %v8318_v16 = vld [vmem:[#allocation2 + $0x1180] sm:$0xff]  ;;  %v8320_v49 = vld [vmem:[#allocation2 + $0x1190] sm:$0xff] }
 0x653   :  { %8989 = vmatprep.subr.bf16.mxu0 %v8247_v51  ;;  %9317 = vmatprep.subr.bf16.mxu1 %v8249_v52  ;;  %v8327_v51 = vld [vmem:[#allocation2 + $0x11c8] sm:$0xff]  ;;  %v8329_v52 = vld [vmem:[#allocation2 + $0x11d8] sm:$0xff] }
 0x656   :  { %8990 = vmatpush1.bf16.msra.mxu0 %v8246_v53  ;;  %9318 = vmatpush1.bf16.msra.mxu1 %v8248_v54  ;;  %v8326_v53 = vld [vmem:[#allocation2 + $0x11c0] sm:$0xff]  ;;  %v8328_v54 = vld [vmem:[#allocation2 + $0x11d0] sm:$0xff] }
 0x657   :  { %8991 = vmatprep.subr.bf16.mxu0 %v8255_v59  ;;  %9319 = vmatprep.subr.bf16.mxu1 %v8257_v46  ;;  %v8335_v59 = vld [vmem:[#allocation2 + $0x1208] sm:$0xff]  ;;  %v8337_v46 = vld [vmem:[#allocation2 + $0x1218] sm:$0xff] }
 0x65a   :  { %8992 = vmatpush1.bf16.msra.mxu0 %v8254_v56  ;;  %9320 = vmatpush1.bf16.msra.mxu1 %v8256_v60  ;;  %v8334_v56 = vld [vmem:[#allocation2 + $0x1200] sm:$0xff]  ;;  %v8336_v60 = vld [vmem:[#allocation2 + $0x1210] sm:$0xff] }
 0x65b   :  { %8993 = vmatprep.subr.bf16.mxu0 %v8263_v11  ;;  %9321 = vmatprep.subr.bf16.mxu1 %v8265_v61  ;;  %v8343_v11 = vld [vmem:[#allocation2 + $0x1248] sm:$0xff]  ;;  %v8345_v61 = vld [vmem:[#allocation2 + $0x1258] sm:$0xff] }
 0x65e   :  { %8994 = vmatpush1.bf16.msra.mxu0 %v8262_v58  ;;  %9322 = vmatpush1.bf16.msra.mxu1 %v8264_v0  ;;  %v8342_v58 = vld [vmem:[#allocation2 + $0x1240] sm:$0xff]  ;;  %v8344_v0 = vld [vmem:[#allocation2 + $0x1250] sm:$0xff] }
 0x65f   :  { %9004 = vmatprep.subr.bf16.mxu0 %v8271_v32  ;;  %9332 = vmatprep.subr.bf16.mxu1 %v8273_v1  ;;  %v8351_v32 = vld [vmem:[#allocation2 + $0x1288] sm:$0xff]  ;;  %v8353_v1 = vld [vmem:[#allocation2 + $0x1298] sm:$0xff] }
 0x661   :  { %8996 = vmatmul.mubr.bf16.vlgmr.msra.gmra.mrb[16].mxu0 %v12907_v9  ;;  %9324 = vmatmul.mubr.bf16.vlgmr.msra.gmra.mrb[16].mxu1 %v12907_v9 }
 0x662   :  { %9005 = vmatpush1.bf16.msra.mxu0 %v8270_v2  ;;  %9333 = vmatpush1.bf16.msra.mxu1 %v8272_v22  ;;  %v8350_v2 = vld [vmem:[#allocation2 + $0x1280] sm:$0xff]  ;;  %v8352_v22 = vld [vmem:[#allocation2 + $0x1290] sm:$0xff] }
 0x663   :  { %9006 = vmatprep.subr.bf16.mxu0 %v8279_v39  ;;  %9334 = vmatprep.subr.bf16.mxu1 %v8281_v4  ;;  %v8359_v39 = vld [vmem:[#allocation2 + $0x12c8] sm:$0xff]  ;;  %v8361_v4 = vld [vmem:[#allocation2 + $0x12d8] sm:$0xff] }
 0x664   :  { %9036 = vmatprep.mubr.bf16.mxu0 %v12911_v5  ;;  %9364 = vmatprep.mubr.bf16.mxu1 %v12911_v5 }
 0x666   :  { %9007 = vmatpush1.bf16.msra.mxu0 %v8278_v8  ;;  %9335 = vmatpush1.bf16.msra.mxu1 %v8280_v6  ;;  %v8358_v8 = vld [vmem:[#allocation2 + $0x12c0] sm:$0xff]  ;;  %v8360_v6 = vld [vmem:[#allocation2 + $0x12d0] sm:$0xff] }
 0x667   :  { %9008 = vmatprep.subr.bf16.mxu0 %v8287_v7  ;;  %9336 = vmatprep.subr.bf16.mxu1 %v8289_v13  ;;  %v8367_v7 = vld [vmem:[#allocation2 + $0x1308] sm:$0xff]  ;;  %v8369_v13 = vld [vmem:[#allocation2 + $0x1318] sm:$0xff] }
 0x66a   :  { %9009 = vmatpush1.bf16.msra.mxu0 %v8286_v33  ;;  %9337 = vmatpush1.bf16.msra.mxu1 %v8288_v55  ;;  %v8366_v33 = vld [vmem:[#allocation2 + $0x1300] sm:$0xff]  ;;  %v8368_v55 = vld [vmem:[#allocation2 + $0x1310] sm:$0xff] }
 0x66b   :  { %9010 = vmatprep.subr.bf16.mxu0 %v8295_v14  ;;  %9338 = vmatprep.subr.bf16.mxu1 %v8297_v17  ;;  %v8375_v14 = vld [vmem:[#allocation2 + $0x1348] sm:$0xff]  ;;  %v8377_v17 = vld [vmem:[#allocation2 + $0x1358] sm:$0xff] }
 0x66e   :  { %9011 = vmatpush1.bf16.msra.mxu0 %v8294_v50  ;;  %9339 = vmatpush1.bf16.msra.mxu1 %v8296_v19  ;;  %v8374_v50 = vld [vmem:[#allocation2 + $0x1340] sm:$0xff]  ;;  %v8376_v19 = vld [vmem:[#allocation2 + $0x1350] sm:$0xff] }
 0x66f   :  { %9012 = vmatprep.subr.bf16.mxu0 %v8303_v24  ;;  %9340 = vmatprep.subr.bf16.mxu1 %v8305_v26  ;;  %v8383_v24 = vld [vmem:[#allocation2 + $0x1388] sm:$0xff]  ;;  %v8385_v26 = vld [vmem:[#allocation2 + $0x1398] sm:$0xff] }
 0x672   :  { %9013 = vmatpush1.bf16.msra.mxu0 %v8302_v35  ;;  %9341 = vmatpush1.bf16.msra.mxu1 %v8304_v37  ;;  %v8382_v35 = vld [vmem:[#allocation2 + $0x1380] sm:$0xff]  ;;  %v8384_v37 = vld [vmem:[#allocation2 + $0x1390] sm:$0xff] }
 0x673   :  { %9014 = vmatprep.subr.bf16.mxu0 %v8311_v44  ;;  %9342 = vmatprep.subr.bf16.mxu1 %v8313_v36  ;;  %v8391_v44 = vld [vmem:[#allocation2 + $0x13c8] sm:$0xff]  ;;  %v8393_v36 = vld [vmem:[#allocation2 + $0x13d8] sm:$0xff] }
 0x676   :  { %9015 = vmatpush1.bf16.msra.mxu0 %v8310_v3  ;;  %9343 = vmatpush1.bf16.msra.mxu1 %v8312_v25  ;;  %v8390_v3 = vld [vmem:[#allocation2 + $0x13c0] sm:$0xff]  ;;  %v8392_v25 = vld [vmem:[#allocation2 + $0x13d0] sm:$0xff] }
 0x677   :  { %9016 = vmatprep.subr.bf16.mxu0 %v8319_v47  ;;  %9344 = vmatprep.subr.bf16.mxu1 %v8321_v48  ;;  %v8399_v47 = vld [vmem:[#allocation2 + $0x1408] sm:$0xff]  ;;  %v8401_v48 = vld [vmem:[#allocation2 + $0x1418] sm:$0xff] }
 0x67a   :  { %9017 = vmatpush1.bf16.msra.mxu0 %v8318_v16  ;;  %9345 = vmatpush1.bf16.msra.mxu1 %v8320_v49  ;;  %v12919_v16 = vpack.c.bf16 %v12825_v23, %v12825_v23  ;;  %v8398_v49 = vld [vmem:[#allocation2 + $0x1400] sm:$0xff] }
 0x67b   :  { %9018 = vmatprep.subr.bf16.mxu0 %v8327_v51  ;;  %9346 = vmatprep.subr.bf16.mxu1 %v8329_v52  ;;  %v8400_v51 = vld [vmem:[#allocation2 + $0x1410] sm:$0xff]  ;;  %v8407_v52 = vld [vmem:[#allocation2 + $0x1448] sm:$0xff]  ;;  %v8406_v23 = vld [vmem:[#allocation2 + $0x1440] sm:$0xff] }
 0x67e   :  { %9019 = vmatpush1.bf16.msra.mxu0 %v8326_v53  ;;  %9347 = vmatpush1.bf16.msra.mxu1 %v8328_v54  ;;  %v8409_v53 = vld [vmem:[#allocation2 + $0x1458] sm:$0xff]  ;;  %v12923_v54 = vpack.c.bf16 %v12831_v42, %v12831_v42  ;;  %v8414_v42 = vld [vmem:[#allocation2 + $0x1480] sm:$0xff] }
 0x67f   :  { %9020 = vmatprep.subr.bf16.mxu0 %v8335_v59  ;;  %9348 = vmatprep.subr.bf16.mxu1 %v8337_v46  ;;  %v8408_v59 = vld [vmem:[#allocation2 + $0x1450] sm:$0xff]  ;;  %v8415_v46 = vld [vmem:[#allocation2 + $0x1488] sm:$0xff] }
 0x682   :  { %9021 = vmatpush1.bf16.msra.mxu0 %v8334_v56  ;;  %9349 = vmatpush1.bf16.msra.mxu1 %v8336_v60  ;;  %v8417_v56 = vld [vmem:[#allocation2 + $0x1498] sm:$0xff]  ;;  %v8416_v60 = vld [vmem:[#allocation2 + $0x1490] sm:$0xff] }
 0x683   :  { %9022 = vmatprep.subr.bf16.mxu0 %v8343_v11  ;;  %9350 = vmatprep.subr.bf16.mxu1 %v8345_v61  ;;  %v8423_v11 = vld [vmem:[#allocation2 + $0x14c8] sm:$0xff]  ;;  %v8425_v61 = vld [vmem:[#allocation2 + $0x14d8] sm:$0xff] }
 0x686   :  { %9023 = vmatpush1.bf16.msra.mxu0 %v8342_v58  ;;  %9351 = vmatpush1.bf16.msra.mxu1 %v8344_v0  ;;  %v8422_v58 = vld [vmem:[#allocation2 + $0x14c0] sm:$0xff]  ;;  %v8424_v0 = vld [vmem:[#allocation2 + $0x14d0] sm:$0xff] }
 0x687   :  { %9024 = vmatprep.subr.bf16.mxu0 %v8351_v32  ;;  %9352 = vmatprep.subr.bf16.mxu1 %v8353_v1  ;;  %v8431_v32 = vld [vmem:[#allocation2 + $0x1508] sm:$0xff]  ;;  %v8433_v1 = vld [vmem:[#allocation2 + $0x1518] sm:$0xff] }
 0x68a   :  { %9025 = vmatpush1.bf16.msra.mxu0 %v8350_v2  ;;  %9353 = vmatpush1.bf16.msra.mxu1 %v8352_v22  ;;  %v8430_v2 = vld [vmem:[#allocation2 + $0x1500] sm:$0xff]  ;;  %v8432_v22 = vld [vmem:[#allocation2 + $0x1510] sm:$0xff] }
 0x68b   :  { %9026 = vmatprep.subr.bf16.mxu0 %v8359_v39  ;;  %9354 = vmatprep.subr.bf16.mxu1 %v8361_v4  ;;  %v8439_v39 = vld [vmem:[#allocation2 + $0x1548] sm:$0xff]  ;;  %v8441_v4 = vld [vmem:[#allocation2 + $0x1558] sm:$0xff] }
 0x68e   :  { %9027 = vmatpush1.bf16.msra.mxu0 %v8358_v8  ;;  %9355 = vmatpush1.bf16.msra.mxu1 %v8360_v6  ;;  %v8438_v8 = vld [vmem:[#allocation2 + $0x1540] sm:$0xff]  ;;  %v8440_v6 = vld [vmem:[#allocation2 + $0x1550] sm:$0xff] }
 0x68f   :  { %9028 = vmatprep.subr.bf16.mxu0 %v8367_v7  ;;  %9356 = vmatprep.subr.bf16.mxu1 %v8369_v13  ;;  %v8447_v7 = vld [vmem:[#allocation2 + $0x1588] sm:$0xff]  ;;  %v8449_v13 = vld [vmem:[#allocation2 + $0x1598] sm:$0xff] }
 0x692   :  { %9029 = vmatpush1.bf16.msra.mxu0 %v8366_v33  ;;  %9357 = vmatpush1.bf16.msra.mxu1 %v8368_v55  ;;  %v8446_v33 = vld [vmem:[#allocation2 + $0x1580] sm:$0xff]  ;;  %v8448_v55 = vld [vmem:[#allocation2 + $0x1590] sm:$0xff] }
 0x693   :  { %9030 = vmatprep.subr.bf16.mxu0 %v8375_v14  ;;  %9358 = vmatprep.subr.bf16.mxu1 %v8377_v17  ;;  %v8455_v14 = vld [vmem:[#allocation2 + $0x15c8] sm:$0xff]  ;;  %v8457_v17 = vld [vmem:[#allocation2 + $0x15d8] sm:$0xff] }
 0x696   :  { %9031 = vmatpush1.bf16.msra.mxu0 %v8374_v50  ;;  %9359 = vmatpush1.bf16.msra.mxu1 %v8376_v19  ;;  %v8454_v50 = vld [vmem:[#allocation2 + $0x15c0] sm:$0xff]  ;;  %v8456_v19 = vld [vmem:[#allocation2 + $0x15d0] sm:$0xff] }
 0x697   :  { %9032 = vmatprep.subr.bf16.mxu0 %v8383_v24  ;;  %9360 = vmatprep.subr.bf16.mxu1 %v8385_v26  ;;  %v8463_v24 = vld [vmem:[#allocation2 + $0x1608] sm:$0xff]  ;;  %v8465_v26 = vld [vmem:[#allocation2 + $0x1618] sm:$0xff] }
 0x69a   :  { %9033 = vmatpush1.bf16.msra.mxu0 %v8382_v35  ;;  %9361 = vmatpush1.bf16.msra.mxu1 %v8384_v37  ;;  %v8462_v35 = vld [vmem:[#allocation2 + $0x1600] sm:$0xff]  ;;  %v8464_v37 = vld [vmem:[#allocation2 + $0x1610] sm:$0xff] }
 0x69b   :  { %9034 = vmatprep.subr.bf16.mxu0 %v8391_v44  ;;  %9362 = vmatprep.subr.bf16.mxu1 %v8393_v36  ;;  %v8471_v44 = vld [vmem:[#allocation2 + $0x1648] sm:$0xff]  ;;  %v8473_v36 = vld [vmem:[#allocation2 + $0x1658] sm:$0xff] }
 0x69e   :  { %9035 = vmatpush1.bf16.msra.mxu0 %v8390_v3  ;;  %9363 = vmatpush1.bf16.msra.mxu1 %v8392_v25  ;;  %v8470_v3 = vld [vmem:[#allocation2 + $0x1640] sm:$0xff]  ;;  %v8472_v25 = vld [vmem:[#allocation2 + $0x1650] sm:$0xff] }
 0x69f   :  { %9045 = vmatprep.subr.bf16.mxu0 %v8399_v47  ;;  %9373 = vmatprep.subr.bf16.mxu1 %v8401_v48  ;;  %v8479_v47 = vld [vmem:[#allocation2 + $0x1688] sm:$0xff]  ;;  %v8481_v48 = vld [vmem:[#allocation2 + $0x1698] sm:$0xff] }
 0x6a1   :  { %9037 = vmatmul.mubr.bf16.vlgmr.msra.gmra.mrb[16].mxu0 %v12919_v16  ;;  %9365 = vmatmul.mubr.bf16.vlgmr.msra.gmra.mrb[16].mxu1 %v12919_v16 }
 0x6a2   :  { %9046 = vmatpush1.bf16.msra.mxu0 %v8398_v49  ;;  %9374 = vmatpush1.bf16.msra.mxu1 %v8400_v51  ;;  %v8478_v49 = vld [vmem:[#allocation2 + $0x1680] sm:$0xff]  ;;  %v8480_v51 = vld [vmem:[#allocation2 + $0x1690] sm:$0xff] }
 0x6a3   :  { %9047 = vmatprep.subr.bf16.mxu0 %v8407_v52  ;;  %9375 = vmatprep.subr.bf16.mxu1 %v8409_v53  ;;  %v8487_v52 = vld [vmem:[#allocation2 + $0x16c8] sm:$0xff]  ;;  %v8489_v53 = vld [vmem:[#allocation2 + $0x16d8] sm:$0xff] }
 0x6a4   :  { %9077 = vmatprep.mubr.bf16.mxu0 %v12923_v54  ;;  %9405 = vmatprep.mubr.bf16.mxu1 %v12923_v54 }
 0x6a6   :  { %9048 = vmatpush1.bf16.msra.mxu0 %v8406_v23  ;;  %9376 = vmatpush1.bf16.msra.mxu1 %v8408_v59  ;;  %v8486_v23 = vld [vmem:[#allocation2 + $0x16c0] sm:$0xff]  ;;  %v8488_v59 = vld [vmem:[#allocation2 + $0x16d0] sm:$0xff] }
 0x6a7   :  { %9049 = vmatprep.subr.bf16.mxu0 %v8415_v46  ;;  %9377 = vmatprep.subr.bf16.mxu1 %v8417_v56  ;;  %v8495_v46 = vld [vmem:[#allocation2 + $0x1708] sm:$0xff]  ;;  %v8497_v56 = vld [vmem:[#allocation2 + $0x1718] sm:$0xff] }
 0x6aa   :  { %9050 = vmatpush1.bf16.msra.mxu0 %v8414_v42  ;;  %9378 = vmatpush1.bf16.msra.mxu1 %v8416_v60  ;;  %v8494_v42 = vld [vmem:[#allocation2 + $0x1700] sm:$0xff]  ;;  %v8496_v60 = vld [vmem:[#allocation2 + $0x1710] sm:$0xff] }
 0x6ab   :  { %9051 = vmatprep.subr.bf16.mxu0 %v8423_v11  ;;  %9379 = vmatprep.subr.bf16.mxu1 %v8425_v61  ;;  %v8503_v11 = vld [vmem:[#allocation2 + $0x1748] sm:$0xff]  ;;  %v8505_v61 = vld [vmem:[#allocation2 + $0x1758] sm:$0xff] }
 0x6ae   :  { %9052 = vmatpush1.bf16.msra.mxu0 %v8422_v58  ;;  %9380 = vmatpush1.bf16.msra.mxu1 %v8424_v0  ;;  %v8502_v58 = vld [vmem:[#allocation2 + $0x1740] sm:$0xff]  ;;  %v8504_v0 = vld [vmem:[#allocation2 + $0x1750] sm:$0xff] }
 0x6af   :  { %9053 = vmatprep.subr.bf16.mxu0 %v8431_v32  ;;  %9381 = vmatprep.subr.bf16.mxu1 %v8433_v1  ;;  %v8511_v32 = vld [vmem:[#allocation2 + $0x1788] sm:$0xff]  ;;  %v8513_v1 = vld [vmem:[#allocation2 + $0x1798] sm:$0xff] }
 0x6b2   :  { %9054 = vmatpush1.bf16.msra.mxu0 %v8430_v2  ;;  %9382 = vmatpush1.bf16.msra.mxu1 %v8432_v22  ;;  %v8510_v2 = vld [vmem:[#allocation2 + $0x1780] sm:$0xff]  ;;  %v8512_v22 = vld [vmem:[#allocation2 + $0x1790] sm:$0xff] }
 0x6b3   :  { %9055 = vmatprep.subr.bf16.mxu0 %v8439_v39  ;;  %9383 = vmatprep.subr.bf16.mxu1 %v8441_v4  ;;  %v8519_v39 = vld [vmem:[#allocation2 + $0x17c8] sm:$0xff]  ;;  %v8521_v4 = vld [vmem:[#allocation2 + $0x17d8] sm:$0xff] }
 0x6b6   :  { %9056 = vmatpush1.bf16.msra.mxu0 %v8438_v8  ;;  %9384 = vmatpush1.bf16.msra.mxu1 %v8440_v6  ;;  %v8518_v8 = vld [vmem:[#allocation2 + $0x17c0] sm:$0xff]  ;;  %v8520_v6 = vld [vmem:[#allocation2 + $0x17d0] sm:$0xff] }
 0x6b7   :  { %9057 = vmatprep.subr.bf16.mxu0 %v8447_v7  ;;  %9385 = vmatprep.subr.bf16.mxu1 %v8449_v13  ;;  %v8527_v7 = vld [vmem:[#allocation2 + $0x1808] sm:$0xff]  ;;  %v8529_v13 = vld [vmem:[#allocation2 + $0x1818] sm:$0xff] }
 0x6ba   :  { %9058 = vmatpush1.bf16.msra.mxu0 %v8446_v33  ;;  %9386 = vmatpush1.bf16.msra.mxu1 %v8448_v55  ;;  %v12931_v33 = vpack.c.bf16 %v12827_v15, %v12827_v15  ;;  %v8526_v55 = vld [vmem:[#allocation2 + $0x1800] sm:$0xff] }
 0x6bb   :  { %9059 = vmatprep.subr.bf16.mxu0 %v8455_v14  ;;  %9387 = vmatprep.subr.bf16.mxu1 %v8457_v17  ;;  %v8528_v14 = vld [vmem:[#allocation2 + $0x1810] sm:$0xff]  ;;  %v8535_v17 = vld [vmem:[#allocation2 + $0x1848] sm:$0xff]  ;;  %v8534_v15 = vld [vmem:[#allocation2 + $0x1840] sm:$0xff] }
 0x6be   :  { %9060 = vmatpush1.bf16.msra.mxu0 %v8454_v50  ;;  %9388 = vmatpush1.bf16.msra.mxu1 %v8456_v19  ;;  %v8537_v50 = vld [vmem:[#allocation2 + $0x1858] sm:$0xff]  ;;  %v12935_v19 = vpack.c.bf16 %v12859_v31, %v12859_v31  ;;  %v8542_v31 = vld [vmem:[#allocation2 + $0x1880] sm:$0xff] }
 0x6bf   :  { %9061 = vmatprep.subr.bf16.mxu0 %v8463_v24  ;;  %9389 = vmatprep.subr.bf16.mxu1 %v8465_v26  ;;  %v8536_v24 = vld [vmem:[#allocation2 + $0x1850] sm:$0xff]  ;;  %v8543_v26 = vld [vmem:[#allocation2 + $0x1888] sm:$0xff] }
 0x6c2   :  { %9062 = vmatpush1.bf16.msra.mxu0 %v8462_v35  ;;  %9390 = vmatpush1.bf16.msra.mxu1 %v8464_v37  ;;  %v8545_v35 = vld [vmem:[#allocation2 + $0x1898] sm:$0xff]  ;;  %v8544_v37 = vld [vmem:[#allocation2 + $0x1890] sm:$0xff] }
 0x6c3   :  { %9063 = vmatprep.subr.bf16.mxu0 %v8471_v44  ;;  %9391 = vmatprep.subr.bf16.mxu1 %v8473_v36  ;;  %v8551_v44 = vld [vmem:[#allocation2 + $0x18c8] sm:$0xff]  ;;  %v8553_v36 = vld [vmem:[#allocation2 + $0x18d8] sm:$0xff] }
 0x6c6   :  { %9064 = vmatpush1.bf16.msra.mxu0 %v8470_v3  ;;  %9392 = vmatpush1.bf16.msra.mxu1 %v8472_v25  ;;  %v8550_v3 = vld [vmem:[#allocation2 + $0x18c0] sm:$0xff]  ;;  %v8552_v25 = vld [vmem:[#allocation2 + $0x18d0] sm:$0xff] }
 0x6c7   :  { %9065 = vmatprep.subr.bf16.mxu0 %v8479_v47  ;;  %9393 = vmatprep.subr.bf16.mxu1 %v8481_v48  ;;  %v8559_v47 = vld [vmem:[#allocation2 + $0x1908] sm:$0xff]  ;;  %v8561_v48 = vld [vmem:[#allocation2 + $0x1918] sm:$0xff] }
 0x6ca   :  { %9066 = vmatpush1.bf16.msra.mxu0 %v8478_v49  ;;  %9394 = vmatpush1.bf16.msra.mxu1 %v8480_v51  ;;  %v8558_v49 = vld [vmem:[#allocation2 + $0x1900] sm:$0xff]  ;;  %v8560_v51 = vld [vmem:[#allocation2 + $0x1910] sm:$0xff] }
 0x6cb   :  { %9067 = vmatprep.subr.bf16.mxu0 %v8487_v52  ;;  %9395 = vmatprep.subr.bf16.mxu1 %v8489_v53  ;;  %v8567_v52 = vld [vmem:[#allocation2 + $0x1948] sm:$0xff]  ;;  %v8569_v53 = vld [vmem:[#allocation2 + $0x1958] sm:$0xff] }
 0x6ce   :  { %9068 = vmatpush1.bf16.msra.mxu0 %v8486_v23  ;;  %9396 = vmatpush1.bf16.msra.mxu1 %v8488_v59  ;;  %v8566_v23 = vld [vmem:[#allocation2 + $0x1940] sm:$0xff]  ;;  %v8568_v59 = vld [vmem:[#allocation2 + $0x1950] sm:$0xff] }
 0x6cf   :  { %9069 = vmatprep.subr.bf16.mxu0 %v8495_v46  ;;  %9397 = vmatprep.subr.bf16.mxu1 %v8497_v56  ;;  %v8575_v46 = vld [vmem:[#allocation2 + $0x1988] sm:$0xff]  ;;  %v8577_v56 = vld [vmem:[#allocation2 + $0x1998] sm:$0xff] }
 0x6d2   :  { %9070 = vmatpush1.bf16.msra.mxu0 %v8494_v42  ;;  %9398 = vmatpush1.bf16.msra.mxu1 %v8496_v60  ;;  %v8574_v42 = vld [vmem:[#allocation2 + $0x1980] sm:$0xff]  ;;  %v8576_v60 = vld [vmem:[#allocation2 + $0x1990] sm:$0xff] }
 0x6d3   :  { %9071 = vmatprep.subr.bf16.mxu0 %v8503_v11  ;;  %9399 = vmatprep.subr.bf16.mxu1 %v8505_v61  ;;  %v8583_v11 = vld [vmem:[#allocation2 + $0x19c8] sm:$0xff]  ;;  %v8585_v61 = vld [vmem:[#allocation2 + $0x19d8] sm:$0xff] }
 0x6d6   :  { %9072 = vmatpush1.bf16.msra.mxu0 %v8502_v58  ;;  %9400 = vmatpush1.bf16.msra.mxu1 %v8504_v0  ;;  %v8582_v58 = vld [vmem:[#allocation2 + $0x19c0] sm:$0xff]  ;;  %v8584_v0 = vld [vmem:[#allocation2 + $0x19d0] sm:$0xff] }
 0x6d7   :  { %9073 = vmatprep.subr.bf16.mxu0 %v8511_v32  ;;  %9401 = vmatprep.subr.bf16.mxu1 %v8513_v1  ;;  %v8591_v32 = vld [vmem:[#allocation2 + $0x1a08] sm:$0xff]  ;;  %v8593_v1 = vld [vmem:[#allocation2 + $0x1a18] sm:$0xff] }
 0x6da   :  { %9074 = vmatpush1.bf16.msra.mxu0 %v8510_v2  ;;  %9402 = vmatpush1.bf16.msra.mxu1 %v8512_v22  ;;  %v8590_v2 = vld [vmem:[#allocation2 + $0x1a00] sm:$0xff]  ;;  %v8592_v22 = vld [vmem:[#allocation2 + $0x1a10] sm:$0xff] }
 0x6db   :  { %9075 = vmatprep.subr.bf16.mxu0 %v8519_v39  ;;  %9403 = vmatprep.subr.bf16.mxu1 %v8521_v4  ;;  %v8599_v39 = vld [vmem:[#allocation2 + $0x1a48] sm:$0xff]  ;;  %v8601_v4 = vld [vmem:[#allocation2 + $0x1a58] sm:$0xff] }
 0x6de   :  { %9076 = vmatpush1.bf16.msra.mxu0 %v8518_v8  ;;  %9404 = vmatpush1.bf16.msra.mxu1 %v8520_v6  ;;  %v8598_v8 = vld [vmem:[#allocation2 + $0x1a40] sm:$0xff]  ;;  %v8600_v6 = vld [vmem:[#allocation2 + $0x1a50] sm:$0xff] }
 0x6df   :  { %9086 = vmatprep.subr.bf16.mxu0 %v8527_v7  ;;  %9414 = vmatprep.subr.bf16.mxu1 %v8529_v13  ;;  %v8607_v7 = vld [vmem:[#allocation2 + $0x1a88] sm:$0xff]  ;;  %v8609_v13 = vld [vmem:[#allocation2 + $0x1a98] sm:$0xff] }
 0x6e1   :  { %9078 = vmatmul.mubr.bf16.vlgmr.msra.gmra.mrb[16].mxu0 %v12931_v33  ;;  %9406 = vmatmul.mubr.bf16.vlgmr.msra.gmra.mrb[16].mxu1 %v12931_v33 }
 0x6e2   :  { %9087 = vmatpush1.bf16.msra.mxu0 %v8526_v55  ;;  %9415 = vmatpush1.bf16.msra.mxu1 %v8528_v14  ;;  %v8606_v55 = vld [vmem:[#allocation2 + $0x1a80] sm:$0xff]  ;;  %v8608_v14 = vld [vmem:[#allocation2 + $0x1a90] sm:$0xff] }
 0x6e3   :  { %9088 = vmatprep.subr.bf16.mxu0 %v8535_v17  ;;  %9416 = vmatprep.subr.bf16.mxu1 %v8537_v50  ;;  %v8615_v17 = vld [vmem:[#allocation2 + $0x1ac8] sm:$0xff]  ;;  %v8617_v50 = vld [vmem:[#allocation2 + $0x1ad8] sm:$0xff] }
 0x6e4   :  { %9118 = vmatprep.mubr.bf16.mxu0 %v12935_v19  ;;  %9446 = vmatprep.mubr.bf16.mxu1 %v12935_v19 }
 0x6e6   :  { %9089 = vmatpush1.bf16.msra.mxu0 %v8534_v15  ;;  %9417 = vmatpush1.bf16.msra.mxu1 %v8536_v24  ;;  %v8614_v15 = vld [vmem:[#allocation2 + $0x1ac0] sm:$0xff]  ;;  %v8616_v24 = vld [vmem:[#allocation2 + $0x1ad0] sm:$0xff] }
 0x6e7   :  { %9090 = vmatprep.subr.bf16.mxu0 %v8543_v26  ;;  %9418 = vmatprep.subr.bf16.mxu1 %v8545_v35  ;;  %v8623_v26 = vld [vmem:[#allocation2 + $0x1b08] sm:$0xff]  ;;  %v8625_v35 = vld [vmem:[#allocation2 + $0x1b18] sm:$0xff] }
 0x6ea   :  { %9091 = vmatpush1.bf16.msra.mxu0 %v8542_v31  ;;  %9419 = vmatpush1.bf16.msra.mxu1 %v8544_v37  ;;  %v8622_v31 = vld [vmem:[#allocation2 + $0x1b00] sm:$0xff]  ;;  %v8624_v37 = vld [vmem:[#allocation2 + $0x1b10] sm:$0xff] }
 0x6eb   :  { %9092 = vmatprep.subr.bf16.mxu0 %v8551_v44  ;;  %9420 = vmatprep.subr.bf16.mxu1 %v8553_v36  ;;  %v8631_v44 = vld [vmem:[#allocation2 + $0x1b48] sm:$0xff]  ;;  %v8633_v36 = vld [vmem:[#allocation2 + $0x1b58] sm:$0xff] }
 0x6ee   :  { %9093 = vmatpush1.bf16.msra.mxu0 %v8550_v3  ;;  %9421 = vmatpush1.bf16.msra.mxu1 %v8552_v25  ;;  %v8630_v3 = vld [vmem:[#allocation2 + $0x1b40] sm:$0xff]  ;;  %v8632_v25 = vld [vmem:[#allocation2 + $0x1b50] sm:$0xff] }
 0x6ef   :  { %9094 = vmatprep.subr.bf16.mxu0 %v8559_v47  ;;  %9422 = vmatprep.subr.bf16.mxu1 %v8561_v48  ;;  %v8639_v47 = vld [vmem:[#allocation2 + $0x1b88] sm:$0xff]  ;;  %v8641_v48 = vld [vmem:[#allocation2 + $0x1b98] sm:$0xff] }
 0x6f2   :  { %9095 = vmatpush1.bf16.msra.mxu0 %v8558_v49  ;;  %9423 = vmatpush1.bf16.msra.mxu1 %v8560_v51  ;;  %v8638_v49 = vld [vmem:[#allocation2 + $0x1b80] sm:$0xff]  ;;  %v8640_v51 = vld [vmem:[#allocation2 + $0x1b90] sm:$0xff] }
 0x6f3   :  { %9096 = vmatprep.subr.bf16.mxu0 %v8567_v52  ;;  %9424 = vmatprep.subr.bf16.mxu1 %v8569_v53  ;;  %v8647_v52 = vld [vmem:[#allocation2 + $0x1bc8] sm:$0xff]  ;;  %v8649_v53 = vld [vmem:[#allocation2 + $0x1bd8] sm:$0xff] }
 0x6f6   :  { %9097 = vmatpush1.bf16.msra.mxu0 %v8566_v23  ;;  %9425 = vmatpush1.bf16.msra.mxu1 %v8568_v59  ;;  %v8646_v23 = vld [vmem:[#allocation2 + $0x1bc0] sm:$0xff]  ;;  %v8648_v59 = vld [vmem:[#allocation2 + $0x1bd0] sm:$0xff] }
 0x6f7   :  { %9098 = vmatprep.subr.bf16.mxu0 %v8575_v46  ;;  %9426 = vmatprep.subr.bf16.mxu1 %v8577_v56  ;;  %v8655_v46 = vld [vmem:[#allocation2 + $0x1c08] sm:$0xff]  ;;  %v8657_v56 = vld [vmem:[#allocation2 + $0x1c18] sm:$0xff] }
 0x6fa   :  { %9099 = vmatpush1.bf16.msra.mxu0 %v8574_v42  ;;  %9427 = vmatpush1.bf16.msra.mxu1 %v8576_v60  ;;  %v12943_v42 = vpack.c.bf16 %v12855_v21, %v12855_v21  ;;  %v8654_v60 = vld [vmem:[#allocation2 + $0x1c00] sm:$0xff] }
 0x6fb   :  { %9100 = vmatprep.subr.bf16.mxu0 %v8583_v11  ;;  %9428 = vmatprep.subr.bf16.mxu1 %v8585_v61  ;;  %v8656_v11 = vld [vmem:[#allocation2 + $0x1c10] sm:$0xff]  ;;  %v8663_v61 = vld [vmem:[#allocation2 + $0x1c48] sm:$0xff]  ;;  %v8662_v21 = vld [vmem:[#allocation2 + $0x1c40] sm:$0xff] }
 0x6fe   :  { %9101 = vmatpush1.bf16.msra.mxu0 %v8582_v58  ;;  %9429 = vmatpush1.bf16.msra.mxu1 %v8584_v0  ;;  %v8665_v58 = vld [vmem:[#allocation2 + $0x1c58] sm:$0xff]  ;;  %v12947_v0 = vpack.c.bf16 %v12861_v38, %v12861_v38  ;;  %v8670_v38 = vld [vmem:[#allocation2 + $0x1c80] sm:$0xff] }
 0x6ff   :  { %9102 = vmatprep.subr.bf16.mxu0 %v8591_v32  ;;  %9430 = vmatprep.subr.bf16.mxu1 %v8593_v1  ;;  %v8664_v32 = vld [vmem:[#allocation2 + $0x1c50] sm:$0xff]  ;;  %v8671_v1 = vld [vmem:[#allocation2 + $0x1c88] sm:$0xff] }
 0x702   :  { %9103 = vmatpush1.bf16.msra.mxu0 %v8590_v2  ;;  %9431 = vmatpush1.bf16.msra.mxu1 %v8592_v22  ;;  %v8673_v2 = vld [vmem:[#allocation2 + $0x1c98] sm:$0xff]  ;;  %v8672_v22 = vld [vmem:[#allocation2 + $0x1c90] sm:$0xff] }
 0x703   :  { %9104 = vmatprep.subr.bf16.mxu0 %v8599_v39  ;;  %9432 = vmatprep.subr.bf16.mxu1 %v8601_v4  ;;  %v8679_v39 = vld [vmem:[#allocation2 + $0x1cc8] sm:$0xff]  ;;  %v8681_v4 = vld [vmem:[#allocation2 + $0x1cd8] sm:$0xff] }
 0x706   :  { %9105 = vmatpush1.bf16.msra.mxu0 %v8598_v8  ;;  %9433 = vmatpush1.bf16.msra.mxu1 %v8600_v6  ;;  %v8678_v8 = vld [vmem:[#allocation2 + $0x1cc0] sm:$0xff]  ;;  %v8680_v6 = vld [vmem:[#allocation2 + $0x1cd0] sm:$0xff] }
 0x707   :  { %9106 = vmatprep.subr.bf16.mxu0 %v8607_v7  ;;  %9434 = vmatprep.subr.bf16.mxu1 %v8609_v13  ;;  %v8687_v7 = vld [vmem:[#allocation2 + $0x1d08] sm:$0xff]  ;;  %v8689_v13 = vld [vmem:[#allocation2 + $0x1d18] sm:$0xff] }
 0x70a   :  { %9107 = vmatpush1.bf16.msra.mxu0 %v8606_v55  ;;  %9435 = vmatpush1.bf16.msra.mxu1 %v8608_v14  ;;  %v8686_v55 = vld [vmem:[#allocation2 + $0x1d00] sm:$0xff]  ;;  %v8688_v14 = vld [vmem:[#allocation2 + $0x1d10] sm:$0xff] }
 0x70b   :  { %9108 = vmatprep.subr.bf16.mxu0 %v8615_v17  ;;  %9436 = vmatprep.subr.bf16.mxu1 %v8617_v50  ;;  %v8695_v17 = vld [vmem:[#allocation2 + $0x1d48] sm:$0xff]  ;;  %v8697_v50 = vld [vmem:[#allocation2 + $0x1d58] sm:$0xff] }
 0x70e   :  { %9109 = vmatpush1.bf16.msra.mxu0 %v8614_v15  ;;  %9437 = vmatpush1.bf16.msra.mxu1 %v8616_v24  ;;  %v8694_v15 = vld [vmem:[#allocation2 + $0x1d40] sm:$0xff]  ;;  %v8696_v24 = vld [vmem:[#allocation2 + $0x1d50] sm:$0xff] }
 0x70f   :  { %9110 = vmatprep.subr.bf16.mxu0 %v8623_v26  ;;  %9438 = vmatprep.subr.bf16.mxu1 %v8625_v35  ;;  %v8703_v26 = vld [vmem:[#allocation2 + $0x1d88] sm:$0xff]  ;;  %v8705_v35 = vld [vmem:[#allocation2 + $0x1d98] sm:$0xff] }
 0x712   :  { %9111 = vmatpush1.bf16.msra.mxu0 %v8622_v31  ;;  %9439 = vmatpush1.bf16.msra.mxu1 %v8624_v37  ;;  %v8702_v31 = vld [vmem:[#allocation2 + $0x1d80] sm:$0xff]  ;;  %v8704_v37 = vld [vmem:[#allocation2 + $0x1d90] sm:$0xff] }
 0x713   :  { %9112 = vmatprep.subr.bf16.mxu0 %v8631_v44  ;;  %9440 = vmatprep.subr.bf16.mxu1 %v8633_v36  ;;  %v8711_v44 = vld [vmem:[#allocation2 + $0x1dc8] sm:$0xff]  ;;  %v8713_v36 = vld [vmem:[#allocation2 + $0x1dd8] sm:$0xff] }
 0x716   :  { %9113 = vmatpush1.bf16.msra.mxu0 %v8630_v3  ;;  %9441 = vmatpush1.bf16.msra.mxu1 %v8632_v25  ;;  %v8710_v3 = vld [vmem:[#allocation2 + $0x1dc0] sm:$0xff]  ;;  %v8712_v25 = vld [vmem:[#allocation2 + $0x1dd0] sm:$0xff] }
 0x717   :  { %9114 = vmatprep.subr.bf16.mxu0 %v8639_v47  ;;  %9442 = vmatprep.subr.bf16.mxu1 %v8641_v48  ;;  %v8719_v47 = vld [vmem:[#allocation2 + $0x1e08] sm:$0xff]  ;;  %v8721_v48 = vld [vmem:[#allocation2 + $0x1e18] sm:$0xff] }
 0x71a   :  { %9115 = vmatpush1.bf16.msra.mxu0 %v8638_v49  ;;  %9443 = vmatpush1.bf16.msra.mxu1 %v8640_v51  ;;  %v8718_v49 = vld [vmem:[#allocation2 + $0x1e00] sm:$0xff]  ;;  %v8720_v51 = vld [vmem:[#allocation2 + $0x1e10] sm:$0xff] }
 0x71b   :  { %9116 = vmatprep.subr.bf16.mxu0 %v8647_v52  ;;  %9444 = vmatprep.subr.bf16.mxu1 %v8649_v53  ;;  %v8727_v52 = vld [vmem:[#allocation2 + $0x1e48] sm:$0xff]  ;;  %v8729_v53 = vld [vmem:[#allocation2 + $0x1e58] sm:$0xff] }
 0x71e   :  { %9117 = vmatpush1.bf16.msra.mxu0 %v8646_v23  ;;  %9445 = vmatpush1.bf16.msra.mxu1 %v8648_v59  ;;  %v8726_v23 = vld [vmem:[#allocation2 + $0x1e40] sm:$0xff]  ;;  %v8728_v59 = vld [vmem:[#allocation2 + $0x1e50] sm:$0xff] }
 0x71f   :  { %9127 = vmatprep.subr.bf16.mxu0 %v8655_v46  ;;  %9455 = vmatprep.subr.bf16.mxu1 %v8657_v56  ;;  %v8735_v46 = vld [vmem:[#allocation2 + $0x1e88] sm:$0xff]  ;;  %v8737_v56 = vld [vmem:[#allocation2 + $0x1e98] sm:$0xff] }
 0x721   :  { %9119 = vmatmul.mubr.bf16.vlgmr.msra.gmra.mrb[16].mxu0 %v12943_v42  ;;  %9447 = vmatmul.mubr.bf16.vlgmr.msra.gmra.mrb[16].mxu1 %v12943_v42 }
 0x722   :  { %9128 = vmatpush1.bf16.msra.mxu0 %v8654_v60  ;;  %9456 = vmatpush1.bf16.msra.mxu1 %v8656_v11  ;;  %v8734_v60 = vld [vmem:[#allocation2 + $0x1e80] sm:$0xff]  ;;  %v8736_v11 = vld [vmem:[#allocation2 + $0x1e90] sm:$0xff] }
 0x723   :  { %9129 = vmatprep.subr.bf16.mxu0 %v8663_v61  ;;  %9457 = vmatprep.subr.bf16.mxu1 %v8665_v58  ;;  %v8743_v61 = vld [vmem:[#allocation2 + $0x1ec8] sm:$0xff]  ;;  %v8745_v58 = vld [vmem:[#allocation2 + $0x1ed8] sm:$0xff] }
 0x724   :  { %9159 = vmatprep.mubr.bf16.mxu0 %v12947_v0  ;;  %9487 = vmatprep.mubr.bf16.mxu1 %v12947_v0 }
 0x726   :  { %9130 = vmatpush1.bf16.msra.mxu0 %v8662_v21  ;;  %9458 = vmatpush1.bf16.msra.mxu1 %v8664_v32  ;;  %v8742_v21 = vld [vmem:[#allocation2 + $0x1ec0] sm:$0xff]  ;;  %v8744_v32 = vld [vmem:[#allocation2 + $0x1ed0] sm:$0xff] }
 0x727   :  { %9131 = vmatprep.subr.bf16.mxu0 %v8671_v1  ;;  %9459 = vmatprep.subr.bf16.mxu1 %v8673_v2  ;;  %v8751_v1 = vld [vmem:[#allocation2 + $0x1f08] sm:$0xff]  ;;  %v8753_v2 = vld [vmem:[#allocation2 + $0x1f18] sm:$0xff] }
 0x72a   :  { %9132 = vmatpush1.bf16.msra.mxu0 %v8670_v38  ;;  %9460 = vmatpush1.bf16.msra.mxu1 %v8672_v22  ;;  %v8750_v38 = vld [vmem:[#allocation2 + $0x1f00] sm:$0xff]  ;;  %v8752_v22 = vld [vmem:[#allocation2 + $0x1f10] sm:$0xff] }
 0x72b   :  { %9133 = vmatprep.subr.bf16.mxu0 %v8679_v39  ;;  %9461 = vmatprep.subr.bf16.mxu1 %v8681_v4  ;;  %v8759_v39 = vld [vmem:[#allocation2 + $0x1f48] sm:$0xff]  ;;  %v8761_v4 = vld [vmem:[#allocation2 + $0x1f58] sm:$0xff] }
 0x72e   :  { %9134 = vmatpush1.bf16.msra.mxu0 %v8678_v8  ;;  %9462 = vmatpush1.bf16.msra.mxu1 %v8680_v6  ;;  %v8758_v8 = vld [vmem:[#allocation2 + $0x1f40] sm:$0xff]  ;;  %v8760_v6 = vld [vmem:[#allocation2 + $0x1f50] sm:$0xff] }
 0x72f   :  { %9135 = vmatprep.subr.bf16.mxu0 %v8687_v7  ;;  %9463 = vmatprep.subr.bf16.mxu1 %v8689_v13  ;;  %v8767_v7 = vld [vmem:[#allocation2 + $0x1f88] sm:$0xff]  ;;  %v8769_v13 = vld [vmem:[#allocation2 + $0x1f98] sm:$0xff] }
 0x732   :  { %9136 = vmatpush1.bf16.msra.mxu0 %v8686_v55  ;;  %9464 = vmatpush1.bf16.msra.mxu1 %v8688_v14  ;;  %v8766_v55 = vld [vmem:[#allocation2 + $0x1f80] sm:$0xff]  ;;  %v8768_v14 = vld [vmem:[#allocation2 + $0x1f90] sm:$0xff] }
 0x733   :  { %9137 = vmatprep.subr.bf16.mxu0 %v8695_v17  ;;  %9465 = vmatprep.subr.bf16.mxu1 %v8697_v50  ;;  %v8775_v17 = vld [vmem:[#allocation2 + $0x1fc8] sm:$0xff]  ;;  %v8777_v50 = vld [vmem:[#allocation2 + $0x1fd8] sm:$0xff] }
 0x736   :  { %9138 = vmatpush1.bf16.msra.mxu0 %v8694_v15  ;;  %9466 = vmatpush1.bf16.msra.mxu1 %v8696_v24  ;;  %v8774_v15 = vld [vmem:[#allocation2 + $0x1fc0] sm:$0xff]  ;;  %v8776_v24 = vld [vmem:[#allocation2 + $0x1fd0] sm:$0xff] }
 0x737   :  { %9139 = vmatprep.subr.bf16.mxu0 %v8703_v26  ;;  %9467 = vmatprep.subr.bf16.mxu1 %v8705_v35  ;;  %v7763_v26 = vld [vmem:[#allocation2 + $0x28] sm:$0xff]  ;;  %v7765_v35 = vld [vmem:[#allocation2 + $0x38] sm:$0xff] }
 0x73a   :  { %9140 = vmatpush1.bf16.msra.mxu0 %v8702_v31  ;;  %9468 = vmatpush1.bf16.msra.mxu1 %v8704_v37  ;;  %v12955_v31 = vpack.c.bf16 %v12857_v29, %v12857_v29  ;;  %v7762_v37 = vld [vmem:[#allocation2 + $0x20] sm:$0xff]  ;;  %v7779_v29 = vld [vmem:[#allocation2 + $0xa8] sm:$0xff] }
 0x73b   :  { %9141 = vmatprep.subr.bf16.mxu0 %v8711_v44  ;;  %9469 = vmatprep.subr.bf16.mxu1 %v8713_v36  ;;  %v7764_v44 = vld [vmem:[#allocation2 + $0x30] sm:$0xff]  ;;  %v7771_v36 = vld [vmem:[#allocation2 + $0x68] sm:$0xff] }
 0x73e   :  { %9142 = vmatpush1.bf16.msra.mxu0 %v8710_v3  ;;  %9470 = vmatpush1.bf16.msra.mxu1 %v8712_v25  ;;  %v7773_v3 = vld [vmem:[#allocation2 + $0x78] sm:$0xff]  ;;  %v7770_v25 = vld [vmem:[#allocation2 + $0x60] sm:$0xff] }
 0x73f   :  { %9143 = vmatprep.subr.bf16.mxu0 %v8719_v47  ;;  %9471 = vmatprep.subr.bf16.mxu1 %v8721_v48  ;;  %v7772_v47 = vld [vmem:[#allocation2 + $0x70] sm:$0xff]  ;;  %v7781_v48 = vld [vmem:[#allocation2 + $0xb8] sm:$0xff] }
 0x742   :  { %9144 = vmatpush1.bf16.msra.mxu0 %v8718_v49  ;;  %9472 = vmatpush1.bf16.msra.mxu1 %v8720_v51  ;;  %v7778_v49 = vld [vmem:[#allocation2 + $0xa0] sm:$0xff]  ;;  %v7780_v51 = vld [vmem:[#allocation2 + $0xb0] sm:$0xff] }
 0x743   :  { %9145 = vmatprep.subr.bf16.mxu0 %v8727_v52  ;;  %9473 = vmatprep.subr.bf16.mxu1 %v8729_v53  ;;  %v7787_v52 = vld [vmem:[#allocation2 + $0xe8] sm:$0xff]  ;;  %v7789_v53 = vld [vmem:[#allocation2 + $0xf8] sm:$0xff] }
 0x746   :  { %9146 = vmatpush1.bf16.msra.mxu0 %v8726_v23  ;;  %9474 = vmatpush1.bf16.msra.mxu1 %v8728_v59  ;;  %v7786_v23 = vld [vmem:[#allocation2 + $0xe0] sm:$0xff]  ;;  %v7788_v59 = vld [vmem:[#allocation2 + $0xf0] sm:$0xff] }
 0x747   :  { %9147 = vmatprep.subr.bf16.mxu0 %v8735_v46  ;;  %9475 = vmatprep.subr.bf16.mxu1 %v8737_v56  ;;  %v7795_v46 = vld [vmem:[#allocation2 + $0x128] sm:$0xff]  ;;  %v7797_v56 = vld [vmem:[#allocation2 + $0x138] sm:$0xff] }
 0x74a   :  { %9148 = vmatpush1.bf16.msra.mxu0 %v8734_v60  ;;  %9476 = vmatpush1.bf16.msra.mxu1 %v8736_v11  ;;  %v7796_v60 = vld [vmem:[#allocation2 + $0x130] sm:$0xff]  ;;  %v7803_v11 = vld [vmem:[#allocation2 + $0x168] sm:$0xff] }
 0x74b   :  { %9149 = vmatprep.subr.bf16.mxu0 %v8743_v61  ;;  %9477 = vmatprep.subr.bf16.mxu1 %v8745_v58  ;;  %v7805_v61 = vld [vmem:[#allocation2 + $0x178] sm:$0xff]  ;;  %v7802_v58 = vld [vmem:[#allocation2 + $0x160] sm:$0xff] }
 0x74e   :  { %9150 = vmatpush1.bf16.msra.mxu0 %v8742_v21  ;;  %9478 = vmatpush1.bf16.msra.mxu1 %v8744_v32  ;;  %v7804_v21 = vld [vmem:[#allocation2 + $0x170] sm:$0xff]  ;;  %v7811_v32 = vld [vmem:[#allocation2 + $0x1a8] sm:$0xff] }
 0x74f   :  { %9151 = vmatprep.subr.bf16.mxu0 %v8751_v1  ;;  %9479 = vmatprep.subr.bf16.mxu1 %v8753_v2  ;;  %v7813_v1 = vld [vmem:[#allocation2 + $0x1b8] sm:$0xff]  ;;  %v7810_v2 = vld [vmem:[#allocation2 + $0x1a0] sm:$0xff] }
 0x752   :  { %9152 = vmatpush1.bf16.msra.mxu0 %v8750_v38  ;;  %9480 = vmatpush1.bf16.msra.mxu1 %v8752_v22  ;;  %v7812_v38 = vld [vmem:[#allocation2 + $0x1b0] sm:$0xff]  ;;  %v7819_v22 = vld [vmem:[#allocation2 + $0x1e8] sm:$0xff] }
 0x753   :  { %9153 = vmatprep.subr.bf16.mxu0 %v8759_v39  ;;  %9481 = vmatprep.subr.bf16.mxu1 %v8761_v4  ;;  %v7821_v39 = vld [vmem:[#allocation2 + $0x1f8] sm:$0xff]  ;;  %v7818_v4 = vld [vmem:[#allocation2 + $0x1e0] sm:$0xff] }
 0x756   :  { %9154 = vmatpush1.bf16.msra.mxu0 %v8758_v8  ;;  %9482 = vmatpush1.bf16.msra.mxu1 %v8760_v6  ;;  %v7820_v8 = vld [vmem:[#allocation2 + $0x1f0] sm:$0xff]  ;;  %v7827_v6 = vld [vmem:[#allocation2 + $0x228] sm:$0xff] }
 0x757   :  { %9155 = vmatprep.subr.bf16.mxu0 %v8767_v7  ;;  %9483 = vmatprep.subr.bf16.mxu1 %v8769_v13  ;;  %v7829_v7 = vld [vmem:[#allocation2 + $0x238] sm:$0xff]  ;;  %v7826_v13 = vld [vmem:[#allocation2 + $0x220] sm:$0xff] }
 0x75a   :  { %9156 = vmatpush1.bf16.msra.mxu0 %v8766_v55  ;;  %9484 = vmatpush1.bf16.msra.mxu1 %v8768_v14  ;;  %v7828_v55 = vld [vmem:[#allocation2 + $0x230] sm:$0xff]  ;;  %v7835_v14 = vld [vmem:[#allocation2 + $0x268] sm:$0xff] }
 0x75b   :  { %9157 = vmatprep.subr.bf16.mxu0 %v8775_v17  ;;  %9485 = vmatprep.subr.bf16.mxu1 %v8777_v50  ;;  %v7837_v17 = vld [vmem:[#allocation2 + $0x278] sm:$0xff]  ;;  %v7834_v50 = vld [vmem:[#allocation2 + $0x260] sm:$0xff] }
 0x75e   :  { %9158 = vmatpush1.bf16.msra.mxu0 %v8774_v15  ;;  %9486 = vmatpush1.bf16.msra.mxu1 %v8776_v24  ;;  %v7836_v15 = vld [vmem:[#allocation2 + $0x270] sm:$0xff]  ;;  %v7843_v24 = vld [vmem:[#allocation2 + $0x2a8] sm:$0xff] }
 0x75f   :  { %9496 = vmatprep.subr.bf16.mxu0 %v7763_v26  ;;  %9824 = vmatprep.subr.bf16.mxu1 %v7765_v35  ;;  %v7845_v26 = vld [vmem:[#allocation2 + $0x2b8] sm:$0xff]  ;;  %v7842_v35 = vld [vmem:[#allocation2 + $0x2a0] sm:$0xff] }
 0x761   :  { %9160 = vmatmul.mubr.bf16.vlgmr.msra.gmra.mrb[16].mxu0 %v12955_v31  ;;  %9488 = vmatmul.mubr.bf16.vlgmr.msra.gmra.mrb[16].mxu1 %v12955_v31 }
 0x762   :  { %9497 = vmatpush1.bf16.msra.mxu0 %v7762_v37  ;;  %9825 = vmatpush1.bf16.msra.mxu1 %v7764_v44  ;;  %v7844_v37 = vld [vmem:[#allocation2 + $0x2b0] sm:$0xff]  ;;  %v7851_v44 = vld [vmem:[#allocation2 + $0x2e8] sm:$0xff] }
 0x763   :  { %9498 = vmatprep.subr.bf16.mxu0 %v7771_v36  ;;  %9826 = vmatprep.subr.bf16.mxu1 %v7773_v3  ;;  %v7853_v36 = vld [vmem:[#allocation2 + $0x2f8] sm:$0xff]  ;;  %v7850_v3 = vld [vmem:[#allocation2 + $0x2e0] sm:$0xff] }
 0x764   :  { %9528 = vmatprep.mubr.bf16.mxu0 %v12865_v62  ;;  %9856 = vmatprep.mubr.bf16.mxu1 %v12865_v62  ;;  %v7794_v62 = vld [vmem:[#allocation2 + $0x120] sm:$0xff] }
 0x766   :  { %9499 = vmatpush1.bf16.msra.mxu0 %v7770_v25  ;;  %9827 = vmatpush1.bf16.msra.mxu1 %v7772_v47  ;;  %v7852_v25 = vld [vmem:[#allocation2 + $0x2f0] sm:$0xff]  ;;  %v7859_v47 = vld [vmem:[#allocation2 + $0x328] sm:$0xff] }
 0x767   :  { %9500 = vmatprep.subr.bf16.mxu0 %v7779_v29  ;;  %9828 = vmatprep.subr.bf16.mxu1 %v7781_v48  ;;  %v7861_v29 = vld [vmem:[#allocation2 + $0x338] sm:$0xff]  ;;  %v7858_v48 = vld [vmem:[#allocation2 + $0x320] sm:$0xff] }
 0x76a   :  { %9501 = vmatpush1.bf16.msra.mxu0 %v7778_v49  ;;  %9829 = vmatpush1.bf16.msra.mxu1 %v7780_v51  ;;  %v7860_v49 = vld [vmem:[#allocation2 + $0x330] sm:$0xff]  ;;  %v7867_v51 = vld [vmem:[#allocation2 + $0x368] sm:$0xff] }
 0x76b   :  { %9502 = vmatprep.subr.bf16.mxu0 %v7787_v52  ;;  %9830 = vmatprep.subr.bf16.mxu1 %v7789_v53  ;;  %v7869_v52 = vld [vmem:[#allocation2 + $0x378] sm:$0xff]  ;;  %v7866_v53 = vld [vmem:[#allocation2 + $0x360] sm:$0xff] }
 0x76e   :  { %9503 = vmatpush1.bf16.msra.mxu0 %v7786_v23  ;;  %9831 = vmatpush1.bf16.msra.mxu1 %v7788_v59  ;;  %v7868_v23 = vld [vmem:[#allocation2 + $0x370] sm:$0xff]  ;;  %v7875_v59 = vld [vmem:[#allocation2 + $0x3a8] sm:$0xff] }
 0x76f   :  { %9504 = vmatprep.subr.bf16.mxu0 %v7795_v46  ;;  %9832 = vmatprep.subr.bf16.mxu1 %v7797_v56  ;;  %v7877_v46 = vld [vmem:[#allocation2 + $0x3b8] sm:$0xff]  ;;  %v7874_v56 = vld [vmem:[#allocation2 + $0x3a0] sm:$0xff] }
 0x772   :  { %9505 = vmatpush1.bf16.msra.mxu0 %v7794_v62  ;;  %9833 = vmatpush1.bf16.msra.mxu1 %v7796_v60  ;;  %v7876_v62 = vld [vmem:[#allocation2 + $0x3b0] sm:$0xff]  ;;  %v7883_v60 = vld [vmem:[#allocation2 + $0x3e8] sm:$0xff] }
 0x773   :  { %9506 = vmatprep.subr.bf16.mxu0 %v7803_v11  ;;  %9834 = vmatprep.subr.bf16.mxu1 %v7805_v61  ;;  %v7885_v11 = vld [vmem:[#allocation2 + $0x3f8] sm:$0xff]  ;;  %v7882_v61 = vld [vmem:[#allocation2 + $0x3e0] sm:$0xff] }
 0x776   :  { %9507 = vmatpush1.bf16.msra.mxu0 %v7802_v58  ;;  %9835 = vmatpush1.bf16.msra.mxu1 %v7804_v21  ;;  %v7884_v58 = vld [vmem:[#allocation2 + $0x3f0] sm:$0xff]  ;;  %v7891_v21 = vld [vmem:[#allocation2 + $0x428] sm:$0xff] }
 0x777   :  { %9508 = vmatprep.subr.bf16.mxu0 %v7811_v32  ;;  %9836 = vmatprep.subr.bf16.mxu1 %v7813_v1  ;;  %v7893_v32 = vld [vmem:[#allocation2 + $0x438] sm:$0xff]  ;;  %v7890_v1 = vld [vmem:[#allocation2 + $0x420] sm:$0xff] }
 0x77a   :  { %9509 = vmatpush1.bf16.msra.mxu0 %v7810_v2  ;;  %9837 = vmatpush1.bf16.msra.mxu1 %v7812_v38  ;;  %v7892_v2 = vld [vmem:[#allocation2 + $0x430] sm:$0xff]  ;;  %v7899_v38 = vld [vmem:[#allocation2 + $0x468] sm:$0xff] }
 0x77b   :  { %9510 = vmatprep.subr.bf16.mxu0 %v7819_v22  ;;  %9838 = vmatprep.subr.bf16.mxu1 %v7821_v39  ;;  %v7901_v22 = vld [vmem:[#allocation2 + $0x478] sm:$0xff]  ;;  %v7898_v39 = vld [vmem:[#allocation2 + $0x460] sm:$0xff] }
 0x77e   :  { %9511 = vmatpush1.bf16.msra.mxu0 %v7818_v4  ;;  %9839 = vmatpush1.bf16.msra.mxu1 %v7820_v8  ;;  %v7900_v4 = vld [vmem:[#allocation2 + $0x470] sm:$0xff]  ;;  %v7907_v8 = vld [vmem:[#allocation2 + $0x4a8] sm:$0xff] }
 0x77f   :  { %9512 = vmatprep.subr.bf16.mxu0 %v7827_v6  ;;  %9840 = vmatprep.subr.bf16.mxu1 %v7829_v7  ;;  %v7909_v6 = vld [vmem:[#allocation2 + $0x4b8] sm:$0xff]  ;;  %v7906_v7 = vld [vmem:[#allocation2 + $0x4a0] sm:$0xff] }
 0x782   :  { %9513 = vmatpush1.bf16.msra.mxu0 %v7826_v13  ;;  %9841 = vmatpush1.bf16.msra.mxu1 %v7828_v55  ;;  %v7908_v13 = vld [vmem:[#allocation2 + $0x4b0] sm:$0xff]  ;;  %v7915_v55 = vld [vmem:[#allocation2 + $0x4e8] sm:$0xff] }
 0x783   :  { %9514 = vmatprep.subr.bf16.mxu0 %v7835_v14  ;;  %9842 = vmatprep.subr.bf16.mxu1 %v7837_v17  ;;  %v7914_v14 = vld [vmem:[#allocation2 + $0x4e0] sm:$0xff]  ;;  %v7916_v17 = vld [vmem:[#allocation2 + $0x4f0] sm:$0xff] }
 0x786   :  { %9515 = vmatpush1.bf16.msra.mxu0 %v7834_v50  ;;  %9843 = vmatpush1.bf16.msra.mxu1 %v7836_v15  ;;  %v7923_v50 = vld [vmem:[#allocation2 + $0x528] sm:$0xff]  ;;  %v7925_v15 = vld [vmem:[#allocation2 + $0x538] sm:$0xff] }
 0x787   :  { %9516 = vmatprep.subr.bf16.mxu0 %v7843_v24  ;;  %9844 = vmatprep.subr.bf16.mxu1 %v7845_v26  ;;  %v7924_v24 = vld [vmem:[#allocation2 + $0x530] sm:$0xff]  ;;  %v7931_v26 = vld [vmem:[#allocation2 + $0x568] sm:$0xff] }
 0x78a   :  { %9517 = vmatpush1.bf16.msra.mxu0 %v7842_v35  ;;  %9845 = vmatpush1.bf16.msra.mxu1 %v7844_v37  ;;  %v7933_v35 = vld [vmem:[#allocation2 + $0x578] sm:$0xff]  ;;  %v7930_v37 = vld [vmem:[#allocation2 + $0x560] sm:$0xff] }
 0x78b   :  { %9518 = vmatprep.subr.bf16.mxu0 %v7851_v44  ;;  %9846 = vmatprep.subr.bf16.mxu1 %v7853_v36  ;;  %v7932_v44 = vld [vmem:[#allocation2 + $0x570] sm:$0xff]  ;;  %v7939_v36 = vld [vmem:[#allocation2 + $0x5a8] sm:$0xff] }
 0x78e   :  { %9519 = vmatpush1.bf16.msra.mxu0 %v7850_v3  ;;  %9847 = vmatpush1.bf16.msra.mxu1 %v7852_v25  ;;  %v7941_v3 = vld [vmem:[#allocation2 + $0x5b8] sm:$0xff]  ;;  %v7938_v25 = vld [vmem:[#allocation2 + $0x5a0] sm:$0xff] }
 0x78f   :  { %9520 = vmatprep.subr.bf16.mxu0 %v7859_v47  ;;  %9848 = vmatprep.subr.bf16.mxu1 %v7861_v29  ;;  %v7940_v47 = vld [vmem:[#allocation2 + $0x5b0] sm:$0xff]  ;;  %v7947_v29 = vld [vmem:[#allocation2 + $0x5e8] sm:$0xff] }
 0x792   :  { %9521 = vmatpush1.bf16.msra.mxu0 %v7858_v48  ;;  %9849 = vmatpush1.bf16.msra.mxu1 %v7860_v49  ;;  %v7949_v48 = vld [vmem:[#allocation2 + $0x5f8] sm:$0xff]  ;;  %v7946_v49 = vld [vmem:[#allocation2 + $0x5e0] sm:$0xff] }
 0x793   :  { %9522 = vmatprep.subr.bf16.mxu0 %v7867_v51  ;;  %9850 = vmatprep.subr.bf16.mxu1 %v7869_v52  ;;  %v7948_v51 = vld [vmem:[#allocation2 + $0x5f0] sm:$0xff]  ;;  %v7955_v52 = vld [vmem:[#allocation2 + $0x628] sm:$0xff] }
 0x796   :  { %9523 = vmatpush1.bf16.msra.mxu0 %v7866_v53  ;;  %9851 = vmatpush1.bf16.msra.mxu1 %v7868_v23  ;;  %v7957_v53 = vld [vmem:[#allocation2 + $0x638] sm:$0xff]  ;;  %v7954_v23 = vld [vmem:[#allocation2 + $0x620] sm:$0xff] }
 0x797   :  { %9524 = vmatprep.subr.bf16.mxu0 %v7875_v59  ;;  %9852 = vmatprep.subr.bf16.mxu1 %v7877_v46  ;;  %v7956_v59 = vld [vmem:[#allocation2 + $0x630] sm:$0xff]  ;;  %v7963_v46 = vld [vmem:[#allocation2 + $0x668] sm:$0xff] }
 0x79a   :  { %9525 = vmatpush1.bf16.msra.mxu0 %v7874_v56  ;;  %9853 = vmatpush1.bf16.msra.mxu1 %v7876_v62  ;;  %v7965_v56 = vld [vmem:[#allocation2 + $0x678] sm:$0xff]  ;;  %v7962_v62 = vld [vmem:[#allocation2 + $0x660] sm:$0xff] }
 0x79b   :  { %9526 = vmatprep.subr.bf16.mxu0 %v7883_v60  ;;  %9854 = vmatprep.subr.bf16.mxu1 %v7885_v11  ;;  %v7964_v60 = vld [vmem:[#allocation2 + $0x670] sm:$0xff]  ;;  %v7971_v11 = vld [vmem:[#allocation2 + $0x6a8] sm:$0xff] }
 0x79e   :  { %9527 = vmatpush1.bf16.msra.mxu0 %v7882_v61  ;;  %9855 = vmatpush1.bf16.msra.mxu1 %v7884_v58  ;;  %v7973_v61 = vld [vmem:[#allocation2 + $0x6b8] sm:$0xff]  ;;  %v7970_v58 = vld [vmem:[#allocation2 + $0x6a0] sm:$0xff] }
 0x79f   :  { %9537 = vmatprep.subr.bf16.mxu0 %v7891_v21  ;;  %9865 = vmatprep.subr.bf16.mxu1 %v7893_v32  ;;  %v7972_v21 = vld [vmem:[#allocation2 + $0x6b0] sm:$0xff]  ;;  %v7979_v32 = vld [vmem:[#allocation2 + $0x6e8] sm:$0xff] }
 0x7a1   :  { %9529 = vmatmul.mubr.bf16.vlgmr.msra.gmra.mrb[20].mxu0 %v12871_v10  ;;  %9857 = vmatmul.mubr.bf16.vlgmr.msra.gmra.mrb[20].mxu1 %v12871_v10  ;;  %v7917_v10 = vld [vmem:[#allocation2 + $0x4f8] sm:$0xff] }
 0x7a2   :  { %9538 = vmatpush1.bf16.msra.mxu0 %v7890_v1  ;;  %9866 = vmatpush1.bf16.msra.mxu1 %v7892_v2  ;;  %v7981_v1 = vld [vmem:[#allocation2 + $0x6f8] sm:$0xff]  ;;  %v7978_v2 = vld [vmem:[#allocation2 + $0x6e0] sm:$0xff] }
 0x7a3   :  { %9539 = vmatprep.subr.bf16.mxu0 %v7899_v38  ;;  %9867 = vmatprep.subr.bf16.mxu1 %v7901_v22  ;;  %v7980_v38 = vld [vmem:[#allocation2 + $0x6f0] sm:$0xff]  ;;  %v7987_v22 = vld [vmem:[#allocation2 + $0x728] sm:$0xff] }
 0x7a4   :  { %9569 = vmatprep.mubr.bf16.mxu0 %v12875_v18  ;;  %9897 = vmatprep.mubr.bf16.mxu1 %v12875_v18  ;;  %v7922_v18 = vld [vmem:[#allocation2 + $0x520] sm:$0xff] }
 0x7a6   :  { %9540 = vmatpush1.bf16.msra.mxu0 %v7898_v39  ;;  %9868 = vmatpush1.bf16.msra.mxu1 %v7900_v4  ;;  %v7989_v39 = vld [vmem:[#allocation2 + $0x738] sm:$0xff]  ;;  %v7986_v4 = vld [vmem:[#allocation2 + $0x720] sm:$0xff] }
 0x7a7   :  { %9541 = vmatprep.subr.bf16.mxu0 %v7907_v8  ;;  %9869 = vmatprep.subr.bf16.mxu1 %v7909_v6  ;;  %v7988_v8 = vld [vmem:[#allocation2 + $0x730] sm:$0xff]  ;;  %v7995_v6 = vld [vmem:[#allocation2 + $0x768] sm:$0xff] }
 0x7aa   :  { %9542 = vmatpush1.bf16.msra.mxu0 %v7906_v7  ;;  %9870 = vmatpush1.bf16.msra.mxu1 %v7908_v13  ;;  %v7997_v7 = vld [vmem:[#allocation2 + $0x778] sm:$0xff]  ;;  %v7994_v13 = vld [vmem:[#allocation2 + $0x760] sm:$0xff] }
 0x7ab   :  { %9543 = vmatprep.subr.bf16.mxu0 %v7915_v55  ;;  %9871 = vmatprep.subr.bf16.mxu1 %v7917_v10  ;;  %v7996_v55 = vld [vmem:[#allocation2 + $0x770] sm:$0xff]  ;;  %v8003_v10 = vld [vmem:[#allocation2 + $0x7a8] sm:$0xff] }
 0x7ae   :  { %9544 = vmatpush1.bf16.msra.mxu0 %v7914_v14  ;;  %9872 = vmatpush1.bf16.msra.mxu1 %v7916_v17  ;;  %v8005_v14 = vld [vmem:[#allocation2 + $0x7b8] sm:$0xff]  ;;  %v8002_v17 = vld [vmem:[#allocation2 + $0x7a0] sm:$0xff] }
 0x7af   :  { %9545 = vmatprep.subr.bf16.mxu0 %v7923_v50  ;;  %9873 = vmatprep.subr.bf16.mxu1 %v7925_v15  ;;  %v8004_v50 = vld [vmem:[#allocation2 + $0x7b0] sm:$0xff]  ;;  %v8011_v15 = vld [vmem:[#allocation2 + $0x7e8] sm:$0xff] }
 0x7b2   :  { %9546 = vmatpush1.bf16.msra.mxu0 %v7922_v18  ;;  %9874 = vmatpush1.bf16.msra.mxu1 %v7924_v24  ;;  %v8013_v18 = vld [vmem:[#allocation2 + $0x7f8] sm:$0xff]  ;;  %v8010_v24 = vld [vmem:[#allocation2 + $0x7e0] sm:$0xff] }
 0x7b3   :  { %9547 = vmatprep.subr.bf16.mxu0 %v7931_v26  ;;  %9875 = vmatprep.subr.bf16.mxu1 %v7933_v35  ;;  %v8012_v26 = vld [vmem:[#allocation2 + $0x7f0] sm:$0xff]  ;;  %v8019_v35 = vld [vmem:[#allocation2 + $0x828] sm:$0xff] }
 0x7b6   :  { %9548 = vmatpush1.bf16.msra.mxu0 %v7930_v37  ;;  %9876 = vmatpush1.bf16.msra.mxu1 %v7932_v44  ;;  %v8021_v37 = vld [vmem:[#allocation2 + $0x838] sm:$0xff]  ;;  %v8018_v44 = vld [vmem:[#allocation2 + $0x820] sm:$0xff] }
 0x7b7   :  { %9549 = vmatprep.subr.bf16.mxu0 %v7939_v36  ;;  %9877 = vmatprep.subr.bf16.mxu1 %v7941_v3  ;;  %v8020_v36 = vld [vmem:[#allocation2 + $0x830] sm:$0xff]  ;;  %v8027_v3 = vld [vmem:[#allocation2 + $0x868] sm:$0xff] }
 0x7ba   :  { %9550 = vmatpush1.bf16.msra.mxu0 %v7938_v25  ;;  %9878 = vmatpush1.bf16.msra.mxu1 %v7940_v47  ;;  %v8029_v25 = vld [vmem:[#allocation2 + $0x878] sm:$0xff]  ;;  %v8026_v47 = vld [vmem:[#allocation2 + $0x860] sm:$0xff] }
 0x7bb   :  { %9551 = vmatprep.subr.bf16.mxu0 %v7947_v29  ;;  %9879 = vmatprep.subr.bf16.mxu1 %v7949_v48  ;;  %v8028_v29 = vld [vmem:[#allocation2 + $0x870] sm:$0xff]  ;;  %v8035_v48 = vld [vmem:[#allocation2 + $0x8a8] sm:$0xff] }
 0x7be   :  { %9552 = vmatpush1.bf16.msra.mxu0 %v7946_v49  ;;  %9880 = vmatpush1.bf16.msra.mxu1 %v7948_v51  ;;  %v8037_v49 = vld [vmem:[#allocation2 + $0x8b8] sm:$0xff]  ;;  %v8034_v51 = vld [vmem:[#allocation2 + $0x8a0] sm:$0xff] }
 0x7bf   :  { %9553 = vmatprep.subr.bf16.mxu0 %v7955_v52  ;;  %9881 = vmatprep.subr.bf16.mxu1 %v7957_v53  ;;  %v8036_v52 = vld [vmem:[#allocation2 + $0x8b0] sm:$0xff]  ;;  %v8043_v53 = vld [vmem:[#allocation2 + $0x8e8] sm:$0xff] }
 0x7c2   :  { %9554 = vmatpush1.bf16.msra.mxu0 %v7954_v23  ;;  %9882 = vmatpush1.bf16.msra.mxu1 %v7956_v59  ;;  %v8042_v23 = vld [vmem:[#allocation2 + $0x8e0] sm:$0xff]  ;;  %v8044_v59 = vld [vmem:[#allocation2 + $0x8f0] sm:$0xff] }
 0x7c3   :  { %9555 = vmatprep.subr.bf16.mxu0 %v7963_v46  ;;  %9883 = vmatprep.subr.bf16.mxu1 %v7965_v56  ;;  %v8051_v46 = vld [vmem:[#allocation2 + $0x928] sm:$0xff]  ;;  %v8053_v56 = vld [vmem:[#allocation2 + $0x938] sm:$0xff] }
 0x7c6   :  { %9556 = vmatpush1.bf16.msra.mxu0 %v7962_v62  ;;  %9884 = vmatpush1.bf16.msra.mxu1 %v7964_v60  ;;  %v8052_v62 = vld [vmem:[#allocation2 + $0x930] sm:$0xff]  ;;  %v8059_v60 = vld [vmem:[#allocation2 + $0x968] sm:$0xff] }
 0x7c7   :  { %9557 = vmatprep.subr.bf16.mxu0 %v7971_v11  ;;  %9885 = vmatprep.subr.bf16.mxu1 %v7973_v61  ;;  %v8061_v11 = vld [vmem:[#allocation2 + $0x978] sm:$0xff]  ;;  %v8058_v61 = vld [vmem:[#allocation2 + $0x960] sm:$0xff] }
 0x7ca   :  { %9558 = vmatpush1.bf16.msra.mxu0 %v7970_v58  ;;  %9886 = vmatpush1.bf16.msra.mxu1 %v7972_v21  ;;  %v8060_v58 = vld [vmem:[#allocation2 + $0x970] sm:$0xff]  ;;  %v8067_v21 = vld [vmem:[#allocation2 + $0x9a8] sm:$0xff] }
 0x7cb   :  { %9559 = vmatprep.subr.bf16.mxu0 %v7979_v32  ;;  %9887 = vmatprep.subr.bf16.mxu1 %v7981_v1  ;;  %v8069_v32 = vld [vmem:[#allocation2 + $0x9b8] sm:$0xff]  ;;  %v8066_v1 = vld [vmem:[#allocation2 + $0x9a0] sm:$0xff] }
 0x7ce   :  { %9560 = vmatpush1.bf16.msra.mxu0 %v7978_v2  ;;  %9888 = vmatpush1.bf16.msra.mxu1 %v7980_v38  ;;  %v8068_v2 = vld [vmem:[#allocation2 + $0x9b0] sm:$0xff]  ;;  %v8075_v38 = vld [vmem:[#allocation2 + $0x9e8] sm:$0xff] }
 0x7cf   :  { %9561 = vmatprep.subr.bf16.mxu0 %v7987_v22  ;;  %9889 = vmatprep.subr.bf16.mxu1 %v7989_v39  ;;  %v8077_v22 = vld [vmem:[#allocation2 + $0x9f8] sm:$0xff]  ;;  %v8074_v39 = vld [vmem:[#allocation2 + $0x9e0] sm:$0xff] }
 0x7d2   :  { %9562 = vmatpush1.bf16.msra.mxu0 %v7986_v4  ;;  %9890 = vmatpush1.bf16.msra.mxu1 %v7988_v8  ;;  %v8076_v4 = vld [vmem:[#allocation2 + $0x9f0] sm:$0xff]  ;;  %v8083_v8 = vld [vmem:[#allocation2 + $0xa28] sm:$0xff] }
 0x7d3   :  { %9563 = vmatprep.subr.bf16.mxu0 %v7995_v6  ;;  %9891 = vmatprep.subr.bf16.mxu1 %v7997_v7  ;;  %v8085_v6 = vld [vmem:[#allocation2 + $0xa38] sm:$0xff]  ;;  %v8082_v7 = vld [vmem:[#allocation2 + $0xa20] sm:$0xff] }
 0x7d6   :  { %9564 = vmatpush1.bf16.msra.mxu0 %v7994_v13  ;;  %9892 = vmatpush1.bf16.msra.mxu1 %v7996_v55  ;;  %v8084_v13 = vld [vmem:[#allocation2 + $0xa30] sm:$0xff]  ;;  %v8091_v55 = vld [vmem:[#allocation2 + $0xa68] sm:$0xff] }
 0x7d7   :  { %9565 = vmatprep.subr.bf16.mxu0 %v8003_v10  ;;  %9893 = vmatprep.subr.bf16.mxu1 %v8005_v14  ;;  %v8093_v10 = vld [vmem:[#allocation2 + $0xa78] sm:$0xff]  ;;  %v8090_v14 = vld [vmem:[#allocation2 + $0xa60] sm:$0xff] }
 0x7da   :  { %9566 = vmatpush1.bf16.msra.mxu0 %v8002_v17  ;;  %9894 = vmatpush1.bf16.msra.mxu1 %v8004_v50  ;;  %v8092_v17 = vld [vmem:[#allocation2 + $0xa70] sm:$0xff]  ;;  %v8099_v50 = vld [vmem:[#allocation2 + $0xaa8] sm:$0xff] }
 0x7db   :  { %9567 = vmatprep.subr.bf16.mxu0 %v8011_v15  ;;  %9895 = vmatprep.subr.bf16.mxu1 %v8013_v18  ;;  %v8101_v15 = vld [vmem:[#allocation2 + $0xab8] sm:$0xff]  ;;  %v8098_v18 = vld [vmem:[#allocation2 + $0xaa0] sm:$0xff] }
 0x7de   :  { %9568 = vmatpush1.bf16.msra.mxu0 %v8010_v24  ;;  %9896 = vmatpush1.bf16.msra.mxu1 %v8012_v26  ;;  %v8100_v24 = vld [vmem:[#allocation2 + $0xab0] sm:$0xff]  ;;  %v8107_v26 = vld [vmem:[#allocation2 + $0xae8] sm:$0xff] }
 0x7df   :  { %9578 = vmatprep.subr.bf16.mxu0 %v8019_v35  ;;  %9906 = vmatprep.subr.bf16.mxu1 %v8021_v37  ;;  %v8109_v35 = vld [vmem:[#allocation2 + $0xaf8] sm:$0xff]  ;;  %v8106_v37 = vld [vmem:[#allocation2 + $0xae0] sm:$0xff] }
 0x7e1   :  { %9570 = vmatmul.mubr.bf16.vlgmr.msra.gmra.mrb[20].mxu0 %v12883_v12  ;;  %9898 = vmatmul.mubr.bf16.vlgmr.msra.gmra.mrb[20].mxu1 %v12883_v12  ;;  %v8045_v12 = vld [vmem:[#allocation2 + $0x8f8] sm:$0xff] }
 0x7e2   :  { %9579 = vmatpush1.bf16.msra.mxu0 %v8018_v44  ;;  %9907 = vmatpush1.bf16.msra.mxu1 %v8020_v36  ;;  %v8108_v44 = vld [vmem:[#allocation2 + $0xaf0] sm:$0xff]  ;;  %v8115_v36 = vld [vmem:[#allocation2 + $0xb28] sm:$0xff] }
 0x7e3   :  { %9580 = vmatprep.subr.bf16.mxu0 %v8027_v3  ;;  %9908 = vmatprep.subr.bf16.mxu1 %v8029_v25  ;;  %v8117_v3 = vld [vmem:[#allocation2 + $0xb38] sm:$0xff]  ;;  %v8114_v25 = vld [vmem:[#allocation2 + $0xb20] sm:$0xff] }
 0x7e4   :  { %9610 = vmatprep.mubr.bf16.mxu0 %v12887_v57  ;;  %9938 = vmatprep.mubr.bf16.mxu1 %v12887_v57  ;;  %v8050_v57 = vld [vmem:[#allocation2 + $0x920] sm:$0xff] }
 0x7e6   :  { %9581 = vmatpush1.bf16.msra.mxu0 %v8026_v47  ;;  %9909 = vmatpush1.bf16.msra.mxu1 %v8028_v29  ;;  %v8116_v47 = vld [vmem:[#allocation2 + $0xb30] sm:$0xff]  ;;  %v8123_v29 = vld [vmem:[#allocation2 + $0xb68] sm:$0xff] }
 0x7e7   :  { %9582 = vmatprep.subr.bf16.mxu0 %v8035_v48  ;;  %9910 = vmatprep.subr.bf16.mxu1 %v8037_v49  ;;  %v8125_v48 = vld [vmem:[#allocation2 + $0xb78] sm:$0xff]  ;;  %v8122_v49 = vld [vmem:[#allocation2 + $0xb60] sm:$0xff] }
 0x7ea   :  { %9583 = vmatpush1.bf16.msra.mxu0 %v8034_v51  ;;  %9911 = vmatpush1.bf16.msra.mxu1 %v8036_v52  ;;  %v8124_v51 = vld [vmem:[#allocation2 + $0xb70] sm:$0xff]  ;;  %v8131_v52 = vld [vmem:[#allocation2 + $0xba8] sm:$0xff] }
 0x7eb   :  { %9584 = vmatprep.subr.bf16.mxu0 %v8043_v53  ;;  %9912 = vmatprep.subr.bf16.mxu1 %v8045_v12  ;;  %v8133_v53 = vld [vmem:[#allocation2 + $0xbb8] sm:$0xff]  ;;  %v8130_v12 = vld [vmem:[#allocation2 + $0xba0] sm:$0xff] }
 0x7ee   :  { %9585 = vmatpush1.bf16.msra.mxu0 %v8042_v23  ;;  %9913 = vmatpush1.bf16.msra.mxu1 %v8044_v59  ;;  %v8132_v23 = vld [vmem:[#allocation2 + $0xbb0] sm:$0xff]  ;;  %v8139_v59 = vld [vmem:[#allocation2 + $0xbe8] sm:$0xff] }
 0x7ef   :  { %9586 = vmatprep.subr.bf16.mxu0 %v8051_v46  ;;  %9914 = vmatprep.subr.bf16.mxu1 %v8053_v56  ;;  %v8141_v46 = vld [vmem:[#allocation2 + $0xbf8] sm:$0xff]  ;;  %v8138_v56 = vld [vmem:[#allocation2 + $0xbe0] sm:$0xff] }
 0x7f2   :  { %9587 = vmatpush1.bf16.msra.mxu0 %v8050_v57  ;;  %9915 = vmatpush1.bf16.msra.mxu1 %v8052_v62  ;;  %v8140_v57 = vld [vmem:[#allocation2 + $0xbf0] sm:$0xff]  ;;  %v8147_v62 = vld [vmem:[#allocation2 + $0xc28] sm:$0xff] }
 0x7f3   :  { %9588 = vmatprep.subr.bf16.mxu0 %v8059_v60  ;;  %9916 = vmatprep.subr.bf16.mxu1 %v8061_v11  ;;  %v8149_v60 = vld [vmem:[#allocation2 + $0xc38] sm:$0xff]  ;;  %v8146_v11 = vld [vmem:[#allocation2 + $0xc20] sm:$0xff] }
 0x7f6   :  { %9589 = vmatpush1.bf16.msra.mxu0 %v8058_v61  ;;  %9917 = vmatpush1.bf16.msra.mxu1 %v8060_v58  ;;  %v8148_v61 = vld [vmem:[#allocation2 + $0xc30] sm:$0xff]  ;;  %v8155_v58 = vld [vmem:[#allocation2 + $0xc68] sm:$0xff] }
 0x7f7   :  { %9590 = vmatprep.subr.bf16.mxu0 %v8067_v21  ;;  %9918 = vmatprep.subr.bf16.mxu1 %v8069_v32  ;;  %v8157_v21 = vld [vmem:[#allocation2 + $0xc78] sm:$0xff]  ;;  %v8154_v32 = vld [vmem:[#allocation2 + $0xc60] sm:$0xff] }
 0x7fa   :  { %9591 = vmatpush1.bf16.msra.mxu0 %v8066_v1  ;;  %9919 = vmatpush1.bf16.msra.mxu1 %v8068_v2  ;;  %v8156_v1 = vld [vmem:[#allocation2 + $0xc70] sm:$0xff]  ;;  %v8163_v2 = vld [vmem:[#allocation2 + $0xca8] sm:$0xff] }
 0x7fb   :  { %9592 = vmatprep.subr.bf16.mxu0 %v8075_v38  ;;  %9920 = vmatprep.subr.bf16.mxu1 %v8077_v22  ;;  %v8165_v38 = vld [vmem:[#allocation2 + $0xcb8] sm:$0xff]  ;;  %v8162_v22 = vld [vmem:[#allocation2 + $0xca0] sm:$0xff] }
 0x7fe   :  { %9593 = vmatpush1.bf16.msra.mxu0 %v8074_v39  ;;  %9921 = vmatpush1.bf16.msra.mxu1 %v8076_v4  ;;  %v8164_v39 = vld [vmem:[#allocation2 + $0xcb0] sm:$0xff]  ;;  %v8171_v4 = vld [vmem:[#allocation2 + $0xce8] sm:$0xff] }
 0x7ff   :  { %9594 = vmatprep.subr.bf16.mxu0 %v8083_v8  ;;  %9922 = vmatprep.subr.bf16.mxu1 %v8085_v6  ;;  %v8170_v8 = vld [vmem:[#allocation2 + $0xce0] sm:$0xff]  ;;  %v8172_v6 = vld [vmem:[#allocation2 + $0xcf0] sm:$0xff] }
 0x802   :  { %9595 = vmatpush1.bf16.msra.mxu0 %v8082_v7  ;;  %9923 = vmatpush1.bf16.msra.mxu1 %v8084_v13  ;;  %v8179_v7 = vld [vmem:[#allocation2 + $0xd28] sm:$0xff]  ;;  %v8181_v13 = vld [vmem:[#allocation2 + $0xd38] sm:$0xff] }
 0x803   :  { %9596 = vmatprep.subr.bf16.mxu0 %v8091_v55  ;;  %9924 = vmatprep.subr.bf16.mxu1 %v8093_v10  ;;  %v8782_v55 = vld [vmem:[#allocation12] sm:$0xff] }
 0x804   :  { %v8180_v10 = vld [vmem:[#allocation2 + $0xd30] sm:$0xff] }
 0x806   :  { %9597 = vmatpush1.bf16.msra.mxu0 %v8090_v14  ;;  %9925 = vmatpush1.bf16.msra.mxu1 %v8092_v17  ;;  %v8187_v14 = vld [vmem:[#allocation2 + $0xd68] sm:$0xff]  ;;  %v8189_v17 = vld [vmem:[#allocation2 + $0xd78] sm:$0xff] }
 0x807   :  { %9598 = vmatprep.subr.bf16.mxu0 %v8099_v50  ;;  %9926 = vmatprep.subr.bf16.mxu1 %v8101_v15  ;;  %v8803_v50 = vrot.slane %v8782_v55, %v12736_v20  ;;  %v8811_v15 = vrot.slane %v8782_v55, %v12739_v27 }
 0x80a   :  { %9599 = vmatpush1.bf16.msra.mxu0 %v8098_v18  ;;  %9927 = vmatpush1.bf16.msra.mxu1 %v8100_v24  ;;  %v8807_v18 = vrot.slane %v8782_v55, %v12742_v28  ;;  %v8815_v24 = vrot.slane %v8782_v55, %v12745_v30  ;;  %v8243_v55 = vld [vmem:[#allocation2 + $0xf28] sm:$0xff] }
 0x80b   :  { %9600 = vmatprep.subr.bf16.mxu0 %v8107_v26  ;;  %9928 = vmatprep.subr.bf16.mxu1 %v8109_v35  ;;  %v8186_v26 = vld [vmem:[#allocation2 + $0xd60] sm:$0xff]  ;;  %v8188_v35 = vld [vmem:[#allocation2 + $0xd70] sm:$0xff] }
 0x80e   :  { %9601 = vmatpush1.bf16.msra.mxu0 %v8106_v37  ;;  %9929 = vmatpush1.bf16.msra.mxu1 %v8108_v44 }
 0x80f   :  { %9602 = vmatprep.subr.bf16.mxu0 %v8115_v36  ;;  %9930 = vmatprep.subr.bf16.mxu1 %v8117_v3  ;;  %v8195_v36 = vld [vmem:[#allocation2 + $0xda8] sm:$0xff]  ;;  %v8197_v3 = vld [vmem:[#allocation2 + $0xdb8] sm:$0xff] }
 0x812   :  { %9603 = vmatpush1.bf16.msra.mxu0 %v8114_v25  ;;  %9931 = vmatpush1.bf16.msra.mxu1 %v8116_v47 }
 0x813   :  { %9604 = vmatprep.subr.bf16.mxu0 %v8123_v29  ;;  %9932 = vmatprep.subr.bf16.mxu1 %v8125_v48 }
 0x816   :  { %9605 = vmatpush1.bf16.msra.mxu0 %v8122_v49  ;;  %9933 = vmatpush1.bf16.msra.mxu1 %v8124_v51 }
 0x817   :  { %9606 = vmatprep.subr.bf16.mxu0 %v8131_v52  ;;  %9934 = vmatprep.subr.bf16.mxu1 %v8133_v53 }
 0x81a   :  { %9607 = vmatpush1.bf16.msra.mxu0 %v8130_v12  ;;  %9935 = vmatpush1.bf16.msra.mxu1 %v8132_v23 }
 0x81b   :  { %9608 = vmatprep.subr.bf16.mxu0 %v8139_v59  ;;  %9936 = vmatprep.subr.bf16.mxu1 %v8141_v46  ;;  %v8194_v59 = vld [vmem:[#allocation2 + $0xda0] sm:$0xff]  ;;  %v8196_v46 = vld [vmem:[#allocation2 + $0xdb0] sm:$0xff] }
 0x81e   :  { %9609 = vmatpush1.bf16.msra.mxu0 %v8138_v56  ;;  %9937 = vmatpush1.bf16.msra.mxu1 %v8140_v57  ;;  %v8203_v56 = vld [vmem:[#allocation2 + $0xde8] sm:$0xff]  ;;  %v8205_v57 = vld [vmem:[#allocation2 + $0xdf8] sm:$0xff] }
 0x81f   :  { %9619 = vmatprep.subr.bf16.mxu0 %v8147_v62  ;;  %9947 = vmatprep.subr.bf16.mxu1 %v8149_v60  ;;  %v8202_v62 = vld [vmem:[#allocation2 + $0xde0] sm:$0xff]  ;;  %v8204_v60 = vld [vmem:[#allocation2 + $0xdf0] sm:$0xff] }
 0x821   :  { %9611 = vmatmul.mubr.bf16.vlgmr.msra.gmra.mrb[20].mxu0 %v12895_v63  ;;  %9939 = vmatmul.mubr.bf16.vlgmr.msra.gmra.mrb[20].mxu1 %v12895_v63  ;;  %v8173_v63 = vld [vmem:[#allocation2 + $0xcf8] sm:$0xff] }
 0x822   :  { %9620 = vmatpush1.bf16.msra.mxu0 %v8146_v11  ;;  %9948 = vmatpush1.bf16.msra.mxu1 %v8148_v61  ;;  %v8211_v11 = vld [vmem:[#allocation2 + $0xe28] sm:$0xff]  ;;  %v8213_v61 = vld [vmem:[#allocation2 + $0xe38] sm:$0xff] }
 0x823   :  { %9621 = vmatprep.subr.bf16.mxu0 %v8155_v58  ;;  %9949 = vmatprep.subr.bf16.mxu1 %v8157_v21  ;;  %v8210_v58 = vld [vmem:[#allocation2 + $0xe20] sm:$0xff]  ;;  %v8212_v21 = vld [vmem:[#allocation2 + $0xe30] sm:$0xff] }
 0x824   :  { %9651 = vmatprep.mubr.bf16.mxu0 %v12899_v45  ;;  %9979 = vmatprep.mubr.bf16.mxu1 %v12899_v45  ;;  %v8178_v45 = vld [vmem:[#allocation2 + $0xd20] sm:$0xff] }
 0x826   :  { %9622 = vmatpush1.bf16.msra.mxu0 %v8154_v32  ;;  %9950 = vmatpush1.bf16.msra.mxu1 %v8156_v1  ;;  %v8219_v32 = vld [vmem:[#allocation2 + $0xe68] sm:$0xff]  ;;  %v8221_v1 = vld [vmem:[#allocation2 + $0xe78] sm:$0xff] }
 0x827   :  { %9623 = vmatprep.subr.bf16.mxu0 %v8163_v2  ;;  %9951 = vmatprep.subr.bf16.mxu1 %v8165_v38  ;;  %v8218_v2 = vld [vmem:[#allocation2 + $0xe60] sm:$0xff]  ;;  %v8220_v38 = vld [vmem:[#allocation2 + $0xe70] sm:$0xff] }
 0x82a   :  { %9624 = vmatpush1.bf16.msra.mxu0 %v8162_v22  ;;  %9952 = vmatpush1.bf16.msra.mxu1 %v8164_v39  ;;  %v8227_v22 = vld [vmem:[#allocation2 + $0xea8] sm:$0xff]  ;;  %v8229_v39 = vld [vmem:[#allocation2 + $0xeb8] sm:$0xff] }
 0x82b   :  { %9625 = vmatprep.subr.bf16.mxu0 %v8171_v4  ;;  %9953 = vmatprep.subr.bf16.mxu1 %v8173_v63  ;;  %v8226_v4 = vld [vmem:[#allocation2 + $0xea0] sm:$0xff]  ;;  %v8228_v63 = vld [vmem:[#allocation2 + $0xeb0] sm:$0xff] }
 0x82e   :  { %9626 = vmatpush1.bf16.msra.mxu0 %v8170_v8  ;;  %9954 = vmatpush1.bf16.msra.mxu1 %v8172_v6  ;;  %v8235_v8 = vld [vmem:[#allocation2 + $0xee8] sm:$0xff]  ;;  %v8237_v6 = vld [vmem:[#allocation2 + $0xef8] sm:$0xff] }
 0x82f   :  { %9627 = vmatprep.subr.bf16.mxu0 %v8179_v7  ;;  %9955 = vmatprep.subr.bf16.mxu1 %v8181_v13  ;;  %v8234_v7 = vld [vmem:[#allocation2 + $0xee0] sm:$0xff]  ;;  %v8236_v13 = vld [vmem:[#allocation2 + $0xef0] sm:$0xff] }
 0x832   :  { %9628 = vmatpush1.bf16.msra.mxu0 %v8178_v45  ;;  %9956 = vmatpush1.bf16.msra.mxu1 %v8180_v10  ;;  %v8245_v45 = vld [vmem:[#allocation2 + $0xf38] sm:$0xff]  ;;  %v8242_v10 = vld [vmem:[#allocation2 + $0xf20] sm:$0xff] }
 0x833   :  { %9629 = vmatprep.subr.bf16.mxu0 %v8187_v14  ;;  %9957 = vmatprep.subr.bf16.mxu1 %v8189_v17  ;;  %v8244_v14 = vld [vmem:[#allocation2 + $0xf30] sm:$0xff]  ;;  %v8251_v17 = vld [vmem:[#allocation2 + $0xf68] sm:$0xff] }
 0x834   :  { %v9161_v37 = vpop.f32.mrb[16].mxu0  ;;  %v9489_v44 = vpop.f32.mrb[16].mxu1 }
 0x835   :  { %v12977_v25 = vadd.f32 %v9161_v37, %v8803_v50  ;;  %v12979_v47 = vadd.f32 %v9489_v44, %v8811_v15  ;;  %v9163_v29 = vpop.f32.mrb[17].mxu0  ;;  %v9491_v48 = vpop.f32.mrb[17].mxu1  ;;  %v8253_v50 = vld [vmem:[#allocation2 + $0xf78] sm:$0xff]  ;;  %v8250_v15 = vld [vmem:[#allocation2 + $0xf60] sm:$0xff]  ;;  %v8260_v37 = vld [vmem:[#allocation2 + $0xfb0] sm:$0xff] }
 0x836   :  { %v12981_v49 = vadd.f32 %v9163_v29, %v8807_v18  ;;  %v12983_v51 = vadd.f32 %v9491_v48, %v8815_v24  ;;  %v9165_v52 = vpop.f32.mrb[18].mxu0  ;;  %v9493_v53 = vpop.f32.mrb[18].mxu1  ;;  %9630 = vmatpush1.bf16.msra.mxu0 %v8186_v26  ;;  %9958 = vmatpush1.bf16.msra.mxu1 %v8188_v35  ;;  %v8252_v18 = vld [vmem:[#allocation2 + $0xf70] sm:$0xff]  ;;  %v8259_v24 = vld [vmem:[#allocation2 + $0xfa8] sm:$0xff]  ;;  %v8261_v26 = vld [vmem:[#allocation2 + $0xfb8] sm:$0xff] }
 0x837   :  { %v9166_v12 = vpop.f32.mrb[19].mxu0  ;;  %v9494_v23 = vpop.f32.mrb[19].mxu1  ;;  %9631 = vmatprep.subr.bf16.mxu0 %v8195_v36  ;;  %9959 = vmatprep.subr.bf16.mxu1 %v8197_v3  ;;  %v8258_v35 = vld [vmem:[#allocation2 + $0xfa0] sm:$0xff]  ;;  %v8267_v44 = vld [vmem:[#allocation2 + $0xfe8] sm:$0xff]  ;;  %v8269_v36 = vld [vmem:[#allocation2 + $0xff8] sm:$0xff] }
 0x838   :  { %v8266_v3 = vld [vmem:[#allocation2 + $0xfe0] sm:$0xff]  ;;  %v8268_v29 = vld [vmem:[#allocation2 + $0xff0] sm:$0xff]  ;;  %v8275_v48 = vld [vmem:[#allocation2 + $0x1028] sm:$0xff] }
 0x839   :  { %v8277_v52 = vld [vmem:[#allocation2 + $0x1038] sm:$0xff]  ;;  %v8274_v53 = vld [vmem:[#allocation2 + $0x1020] sm:$0xff]  ;;  %v8276_v12 = vld [vmem:[#allocation2 + $0x1030] sm:$0xff] }
 0x83a   :  { %9632 = vmatpush1.bf16.msra.mxu0 %v8194_v59  ;;  %9960 = vmatpush1.bf16.msra.mxu1 %v8196_v46  ;;  %v8283_v23 = vld [vmem:[#allocation2 + $0x1068] sm:$0xff]  ;;  %v8285_v59 = vld [vmem:[#allocation2 + $0x1078] sm:$0xff]  ;;  %v8282_v46 = vld [vmem:[#allocation2 + $0x1060] sm:$0xff] }
 0x83b   :  { %9633 = vmatprep.subr.bf16.mxu0 %v8203_v56  ;;  %9961 = vmatprep.subr.bf16.mxu1 %v8205_v57  ;;  %v8284_v56 = vld [vmem:[#allocation2 + $0x1070] sm:$0xff]  ;;  %v8291_v57 = vld [vmem:[#allocation2 + $0x10a8] sm:$0xff] }
 0x83e   :  { %9634 = vmatpush1.bf16.msra.mxu0 %v8202_v62  ;;  %9962 = vmatpush1.bf16.msra.mxu1 %v8204_v60  ;;  %v8293_v62 = vld [vmem:[#allocation2 + $0x10b8] sm:$0xff]  ;;  %v8290_v60 = vld [vmem:[#allocation2 + $0x10a0] sm:$0xff] }
 0x83f   :  { %9635 = vmatprep.subr.bf16.mxu0 %v8211_v11  ;;  %9963 = vmatprep.subr.bf16.mxu1 %v8213_v61  ;;  %v8292_v11 = vld [vmem:[#allocation2 + $0x10b0] sm:$0xff]  ;;  %v8299_v61 = vld [vmem:[#allocation2 + $0x10e8] sm:$0xff] }
 0x842   :  { %9636 = vmatpush1.bf16.msra.mxu0 %v8210_v58  ;;  %9964 = vmatpush1.bf16.msra.mxu1 %v8212_v21  ;;  %v8298_v58 = vld [vmem:[#allocation2 + $0x10e0] sm:$0xff]  ;;  %v8300_v21 = vld [vmem:[#allocation2 + $0x10f0] sm:$0xff] }
 0x843   :  { %9637 = vmatprep.subr.bf16.mxu0 %v8219_v32  ;;  %9965 = vmatprep.subr.bf16.mxu1 %v8221_v1  ;;  %v8307_v32 = vld [vmem:[#allocation2 + $0x1128] sm:$0xff]  ;;  %v8309_v1 = vld [vmem:[#allocation2 + $0x1138] sm:$0xff] }
 0x846   :  { %9638 = vmatpush1.bf16.msra.mxu0 %v8218_v2  ;;  %9966 = vmatpush1.bf16.msra.mxu1 %v8220_v38  ;;  %v8308_v2 = vld [vmem:[#allocation2 + $0x1130] sm:$0xff]  ;;  %v8315_v38 = vld [vmem:[#allocation2 + $0x1168] sm:$0xff] }
 0x847   :  { %9639 = vmatprep.subr.bf16.mxu0 %v8227_v22  ;;  %9967 = vmatprep.subr.bf16.mxu1 %v8229_v39  ;;  %v8317_v22 = vld [vmem:[#allocation2 + $0x1178] sm:$0xff]  ;;  %v8314_v39 = vld [vmem:[#allocation2 + $0x1160] sm:$0xff] }
 0x84a   :  { %9640 = vmatpush1.bf16.msra.mxu0 %v8226_v4  ;;  %9968 = vmatpush1.bf16.msra.mxu1 %v8228_v63  ;;  %v8316_v4 = vld [vmem:[#allocation2 + $0x1170] sm:$0xff]  ;;  %v8323_v63 = vld [vmem:[#allocation2 + $0x11a8] sm:$0xff] }
 0x84b   :  { %9641 = vmatprep.subr.bf16.mxu0 %v8235_v8  ;;  %9969 = vmatprep.subr.bf16.mxu1 %v8237_v6  ;;  %v8325_v8 = vld [vmem:[#allocation2 + $0x11b8] sm:$0xff]  ;;  %v8322_v6 = vld [vmem:[#allocation2 + $0x11a0] sm:$0xff] }
 0x84e   :  { %9642 = vmatpush1.bf16.msra.mxu0 %v8234_v7  ;;  %9970 = vmatpush1.bf16.msra.mxu1 %v8236_v13  ;;  %v8324_v7 = vld [vmem:[#allocation2 + $0x11b0] sm:$0xff]  ;;  %v8331_v13 = vld [vmem:[#allocation2 + $0x11e8] sm:$0xff] }
 0x84f   :  { %9643 = vmatprep.subr.bf16.mxu0 %v8243_v55  ;;  %9971 = vmatprep.subr.bf16.mxu1 %v8245_v45  ;;  %v8333_v55 = vld [vmem:[#allocation2 + $0x11f8] sm:$0xff]  ;;  %v8330_v45 = vld [vmem:[#allocation2 + $0x11e0] sm:$0xff] }
 0x852   :  { %9644 = vmatpush1.bf16.msra.mxu0 %v8242_v10  ;;  %9972 = vmatpush1.bf16.msra.mxu1 %v8244_v14  ;;  %v8332_v10 = vld [vmem:[#allocation2 + $0x11f0] sm:$0xff]  ;;  %v8339_v14 = vld [vmem:[#allocation2 + $0x1228] sm:$0xff] }
 0x853   :  { %9645 = vmatprep.subr.bf16.mxu0 %v8251_v17  ;;  %9973 = vmatprep.subr.bf16.mxu1 %v8253_v50  ;;  %v8341_v17 = vld [vmem:[#allocation2 + $0x1238] sm:$0xff]  ;;  %v8338_v50 = vld [vmem:[#allocation2 + $0x1220] sm:$0xff] }
 0x856   :  { %9646 = vmatpush1.bf16.msra.mxu0 %v8250_v15  ;;  %9974 = vmatpush1.bf16.msra.mxu1 %v8252_v18  ;;  %v8340_v15 = vld [vmem:[#allocation2 + $0x1230] sm:$0xff]  ;;  %v8347_v18 = vld [vmem:[#allocation2 + $0x1268] sm:$0xff] }
 0x857   :  { %9647 = vmatprep.subr.bf16.mxu0 %v8259_v24  ;;  %9975 = vmatprep.subr.bf16.mxu1 %v8261_v26  ;;  %v8349_v24 = vld [vmem:[#allocation2 + $0x1278] sm:$0xff]  ;;  %v8346_v26 = vld [vmem:[#allocation2 + $0x1260] sm:$0xff] }
 0x85a   :  { %9648 = vmatpush1.bf16.msra.mxu0 %v8258_v35  ;;  %9976 = vmatpush1.bf16.msra.mxu1 %v8260_v37  ;;  %v8348_v35 = vld [vmem:[#allocation2 + $0x1270] sm:$0xff]  ;;  %v8355_v37 = vld [vmem:[#allocation2 + $0x12a8] sm:$0xff] }
 0x85b   :  { %9649 = vmatprep.subr.bf16.mxu0 %v8267_v44  ;;  %9977 = vmatprep.subr.bf16.mxu1 %v8269_v36  ;;  %v8357_v44 = vld [vmem:[#allocation2 + $0x12b8] sm:$0xff]  ;;  %v8354_v36 = vld [vmem:[#allocation2 + $0x12a0] sm:$0xff] }
 0x85e   :  { %9650 = vmatpush1.bf16.msra.mxu0 %v8266_v3  ;;  %9978 = vmatpush1.bf16.msra.mxu1 %v8268_v29  ;;  %v8356_v3 = vld [vmem:[#allocation2 + $0x12b0] sm:$0xff]  ;;  %v8363_v29 = vld [vmem:[#allocation2 + $0x12e8] sm:$0xff] }
 0x85f   :  { %9660 = vmatprep.subr.bf16.mxu0 %v8275_v48  ;;  %9988 = vmatprep.subr.bf16.mxu1 %v8277_v52  ;;  %v8365_v48 = vld [vmem:[#allocation2 + $0x12f8] sm:$0xff]  ;;  %v8362_v52 = vld [vmem:[#allocation2 + $0x12e0] sm:$0xff] }
 0x861   :  { %9652 = vmatmul.mubr.bf16.vlgmr.msra.gmra.mrb[20].mxu0 %v12907_v9  ;;  %9980 = vmatmul.mubr.bf16.vlgmr.msra.gmra.mrb[20].mxu1 %v12907_v9  ;;  %v8301_v9 = vld [vmem:[#allocation2 + $0x10f8] sm:$0xff] }
 0x862   :  { %9661 = vmatpush1.bf16.msra.mxu0 %v8274_v53  ;;  %9989 = vmatpush1.bf16.msra.mxu1 %v8276_v12  ;;  %v8364_v53 = vld [vmem:[#allocation2 + $0x12f0] sm:$0xff]  ;;  %v8371_v12 = vld [vmem:[#allocation2 + $0x1328] sm:$0xff] }
 0x863   :  { %9662 = vmatprep.subr.bf16.mxu0 %v8283_v23  ;;  %9990 = vmatprep.subr.bf16.mxu1 %v8285_v59  ;;  %v8373_v23 = vld [vmem:[#allocation2 + $0x1338] sm:$0xff]  ;;  %v8370_v59 = vld [vmem:[#allocation2 + $0x1320] sm:$0xff] }
 0x864   :  { %9692 = vmatprep.mubr.bf16.mxu0 %v12911_v5  ;;  %10020 = vmatprep.mubr.bf16.mxu1 %v12911_v5  ;;  %v8306_v5 = vld [vmem:[#allocation2 + $0x1120] sm:$0xff] }
 0x866   :  { %9663 = vmatpush1.bf16.msra.mxu0 %v8282_v46  ;;  %9991 = vmatpush1.bf16.msra.mxu1 %v8284_v56  ;;  %v8372_v46 = vld [vmem:[#allocation2 + $0x1330] sm:$0xff]  ;;  %v8379_v56 = vld [vmem:[#allocation2 + $0x1368] sm:$0xff] }
 0x867   :  { %9664 = vmatprep.subr.bf16.mxu0 %v8291_v57  ;;  %9992 = vmatprep.subr.bf16.mxu1 %v8293_v62  ;;  %v8381_v57 = vld [vmem:[#allocation2 + $0x1378] sm:$0xff]  ;;  %v8378_v62 = vld [vmem:[#allocation2 + $0x1360] sm:$0xff] }
 0x86a   :  { %9665 = vmatpush1.bf16.msra.mxu0 %v8290_v60  ;;  %9993 = vmatpush1.bf16.msra.mxu1 %v8292_v11  ;;  %v8380_v60 = vld [vmem:[#allocation2 + $0x1370] sm:$0xff]  ;;  %v8387_v11 = vld [vmem:[#allocation2 + $0x13a8] sm:$0xff] }
 0x86b   :  { %9666 = vmatprep.subr.bf16.mxu0 %v8299_v61  ;;  %9994 = vmatprep.subr.bf16.mxu1 %v8301_v9  ;;  %v8389_v61 = vld [vmem:[#allocation2 + $0x13b8] sm:$0xff]  ;;  %v8386_v9 = vld [vmem:[#allocation2 + $0x13a0] sm:$0xff] }
 0x86e   :  { %9667 = vmatpush1.bf16.msra.mxu0 %v8298_v58  ;;  %9995 = vmatpush1.bf16.msra.mxu1 %v8300_v21  ;;  %v8388_v58 = vld [vmem:[#allocation2 + $0x13b0] sm:$0xff]  ;;  %v8395_v21 = vld [vmem:[#allocation2 + $0x13e8] sm:$0xff] }
 0x86f   :  { %9668 = vmatprep.subr.bf16.mxu0 %v8307_v32  ;;  %9996 = vmatprep.subr.bf16.mxu1 %v8309_v1  ;;  %v8397_v32 = vld [vmem:[#allocation2 + $0x13f8] sm:$0xff]  ;;  %v8394_v1 = vld [vmem:[#allocation2 + $0x13e0] sm:$0xff] }
 0x872   :  { %9669 = vmatpush1.bf16.msra.mxu0 %v8306_v5  ;;  %9997 = vmatpush1.bf16.msra.mxu1 %v8308_v2  ;;  %v8396_v5 = vld [vmem:[#allocation2 + $0x13f0] sm:$0xff]  ;;  %v8403_v2 = vld [vmem:[#allocation2 + $0x1428] sm:$0xff] }
 0x873   :  { %9670 = vmatprep.subr.bf16.mxu0 %v8315_v38  ;;  %9998 = vmatprep.subr.bf16.mxu1 %v8317_v22  ;;  %v8405_v38 = vld [vmem:[#allocation2 + $0x1438] sm:$0xff]  ;;  %v8402_v22 = vld [vmem:[#allocation2 + $0x1420] sm:$0xff] }
 0x876   :  { %9671 = vmatpush1.bf16.msra.mxu0 %v8314_v39  ;;  %9999 = vmatpush1.bf16.msra.mxu1 %v8316_v4  ;;  %v8404_v39 = vld [vmem:[#allocation2 + $0x1430] sm:$0xff]  ;;  %v8411_v4 = vld [vmem:[#allocation2 + $0x1468] sm:$0xff] }
 0x877   :  { %9672 = vmatprep.subr.bf16.mxu0 %v8323_v63  ;;  %10000 = vmatprep.subr.bf16.mxu1 %v8325_v8  ;;  %v8413_v63 = vld [vmem:[#allocation2 + $0x1478] sm:$0xff]  ;;  %v8410_v8 = vld [vmem:[#allocation2 + $0x1460] sm:$0xff] }
 0x87a   :  { %9673 = vmatpush1.bf16.msra.mxu0 %v8322_v6  ;;  %10001 = vmatpush1.bf16.msra.mxu1 %v8324_v7  ;;  %v8412_v6 = vld [vmem:[#allocation2 + $0x1470] sm:$0xff]  ;;  %v8419_v7 = vld [vmem:[#allocation2 + $0x14a8] sm:$0xff] }
 0x87b   :  { %9674 = vmatprep.subr.bf16.mxu0 %v8331_v13  ;;  %10002 = vmatprep.subr.bf16.mxu1 %v8333_v55  ;;  %v8421_v13 = vld [vmem:[#allocation2 + $0x14b8] sm:$0xff]  ;;  %v8418_v55 = vld [vmem:[#allocation2 + $0x14a0] sm:$0xff] }
 0x87e   :  { %9675 = vmatpush1.bf16.msra.mxu0 %v8330_v45  ;;  %10003 = vmatpush1.bf16.msra.mxu1 %v8332_v10  ;;  %v8420_v45 = vld [vmem:[#allocation2 + $0x14b0] sm:$0xff]  ;;  %v8427_v10 = vld [vmem:[#allocation2 + $0x14e8] sm:$0xff] }
 0x87f   :  { %9676 = vmatprep.subr.bf16.mxu0 %v8339_v14  ;;  %10004 = vmatprep.subr.bf16.mxu1 %v8341_v17  ;;  %v8426_v14 = vld [vmem:[#allocation2 + $0x14e0] sm:$0xff]  ;;  %v8428_v17 = vld [vmem:[#allocation2 + $0x14f0] sm:$0xff] }
 0x882   :  { %9677 = vmatpush1.bf16.msra.mxu0 %v8338_v50  ;;  %10005 = vmatpush1.bf16.msra.mxu1 %v8340_v15  ;;  %v8435_v50 = vld [vmem:[#allocation2 + $0x1528] sm:$0xff]  ;;  %v8437_v15 = vld [vmem:[#allocation2 + $0x1538] sm:$0xff] }
 0x883   :  { %9678 = vmatprep.subr.bf16.mxu0 %v8347_v18  ;;  %10006 = vmatprep.subr.bf16.mxu1 %v8349_v24  ;;  %v8436_v18 = vld [vmem:[#allocation2 + $0x1530] sm:$0xff]  ;;  %v8443_v24 = vld [vmem:[#allocation2 + $0x1568] sm:$0xff] }
 0x886   :  { %9679 = vmatpush1.bf16.msra.mxu0 %v8346_v26  ;;  %10007 = vmatpush1.bf16.msra.mxu1 %v8348_v35  ;;  %v8445_v26 = vld [vmem:[#allocation2 + $0x1578] sm:$0xff]  ;;  %v8442_v35 = vld [vmem:[#allocation2 + $0x1560] sm:$0xff] }
 0x887   :  { %9680 = vmatprep.subr.bf16.mxu0 %v8355_v37  ;;  %10008 = vmatprep.subr.bf16.mxu1 %v8357_v44  ;;  %v8444_v37 = vld [vmem:[#allocation2 + $0x1570] sm:$0xff]  ;;  %v8451_v44 = vld [vmem:[#allocation2 + $0x15a8] sm:$0xff] }
 0x88a   :  { %9681 = vmatpush1.bf16.msra.mxu0 %v8354_v36  ;;  %10009 = vmatpush1.bf16.msra.mxu1 %v8356_v3  ;;  %v8453_v36 = vld [vmem:[#allocation2 + $0x15b8] sm:$0xff]  ;;  %v8450_v3 = vld [vmem:[#allocation2 + $0x15a0] sm:$0xff] }
 0x88b   :  { %9682 = vmatprep.subr.bf16.mxu0 %v8363_v29  ;;  %10010 = vmatprep.subr.bf16.mxu1 %v8365_v48  ;;  %v8452_v29 = vld [vmem:[#allocation2 + $0x15b0] sm:$0xff]  ;;  %v8459_v48 = vld [vmem:[#allocation2 + $0x15e8] sm:$0xff] }
 0x88e   :  { %9683 = vmatpush1.bf16.msra.mxu0 %v8362_v52  ;;  %10011 = vmatpush1.bf16.msra.mxu1 %v8364_v53  ;;  %v8461_v52 = vld [vmem:[#allocation2 + $0x15f8] sm:$0xff]  ;;  %v8458_v53 = vld [vmem:[#allocation2 + $0x15e0] sm:$0xff] }
 0x88f   :  { %9684 = vmatprep.subr.bf16.mxu0 %v8371_v12  ;;  %10012 = vmatprep.subr.bf16.mxu1 %v8373_v23  ;;  %v8460_v12 = vld [vmem:[#allocation2 + $0x15f0] sm:$0xff]  ;;  %v8467_v23 = vld [vmem:[#allocation2 + $0x1628] sm:$0xff] }
 0x892   :  { %9685 = vmatpush1.bf16.msra.mxu0 %v8370_v59  ;;  %10013 = vmatpush1.bf16.msra.mxu1 %v8372_v46  ;;  %v8469_v59 = vld [vmem:[#allocation2 + $0x1638] sm:$0xff]  ;;  %v8466_v46 = vld [vmem:[#allocation2 + $0x1620] sm:$0xff] }
 0x893   :  { %9686 = vmatprep.subr.bf16.mxu0 %v8379_v56  ;;  %10014 = vmatprep.subr.bf16.mxu1 %v8381_v57  ;;  %v8468_v56 = vld [vmem:[#allocation2 + $0x1630] sm:$0xff]  ;;  %v8475_v57 = vld [vmem:[#allocation2 + $0x1668] sm:$0xff] }
 0x896   :  { %9687 = vmatpush1.bf16.msra.mxu0 %v8378_v62  ;;  %10015 = vmatpush1.bf16.msra.mxu1 %v8380_v60  ;;  %v8477_v62 = vld [vmem:[#allocation2 + $0x1678] sm:$0xff]  ;;  %v8474_v60 = vld [vmem:[#allocation2 + $0x1660] sm:$0xff] }
 0x897   :  { %9688 = vmatprep.subr.bf16.mxu0 %v8387_v11  ;;  %10016 = vmatprep.subr.bf16.mxu1 %v8389_v61  ;;  %v8476_v11 = vld [vmem:[#allocation2 + $0x1670] sm:$0xff]  ;;  %v8483_v61 = vld [vmem:[#allocation2 + $0x16a8] sm:$0xff] }
 0x89a   :  { %9689 = vmatpush1.bf16.msra.mxu0 %v8386_v9  ;;  %10017 = vmatpush1.bf16.msra.mxu1 %v8388_v58  ;;  %v8485_v9 = vld [vmem:[#allocation2 + $0x16b8] sm:$0xff]  ;;  %v8482_v58 = vld [vmem:[#allocation2 + $0x16a0] sm:$0xff] }
 0x89b   :  { %9690 = vmatprep.subr.bf16.mxu0 %v8395_v21  ;;  %10018 = vmatprep.subr.bf16.mxu1 %v8397_v32  ;;  %v8484_v21 = vld [vmem:[#allocation2 + $0x16b0] sm:$0xff]  ;;  %v8491_v32 = vld [vmem:[#allocation2 + $0x16e8] sm:$0xff] }
 0x89e   :  { %9691 = vmatpush1.bf16.msra.mxu0 %v8394_v1  ;;  %10019 = vmatpush1.bf16.msra.mxu1 %v8396_v5  ;;  %v8493_v1 = vld [vmem:[#allocation2 + $0x16f8] sm:$0xff]  ;;  %v8490_v5 = vld [vmem:[#allocation2 + $0x16e0] sm:$0xff] }
 0x89f   :  { %9701 = vmatprep.subr.bf16.mxu0 %v8403_v2  ;;  %10029 = vmatprep.subr.bf16.mxu1 %v8405_v38  ;;  %v8492_v2 = vld [vmem:[#allocation2 + $0x16f0] sm:$0xff]  ;;  %v8499_v38 = vld [vmem:[#allocation2 + $0x1728] sm:$0xff] }
 0x8a1   :  { %9693 = vmatmul.mubr.bf16.vlgmr.msra.gmra.mrb[20].mxu0 %v12919_v16  ;;  %10021 = vmatmul.mubr.bf16.vlgmr.msra.gmra.mrb[20].mxu1 %v12919_v16  ;;  %v8429_v16 = vld [vmem:[#allocation2 + $0x14f8] sm:$0xff] }
 0x8a2   :  { %9702 = vmatpush1.bf16.msra.mxu0 %v8402_v22  ;;  %10030 = vmatpush1.bf16.msra.mxu1 %v8404_v39  ;;  %v8501_v22 = vld [vmem:[#allocation2 + $0x1738] sm:$0xff]  ;;  %v8498_v39 = vld [vmem:[#allocation2 + $0x1720] sm:$0xff] }
 0x8a3   :  { %9703 = vmatprep.subr.bf16.mxu0 %v8411_v4  ;;  %10031 = vmatprep.subr.bf16.mxu1 %v8413_v63  ;;  %v8500_v4 = vld [vmem:[#allocation2 + $0x1730] sm:$0xff]  ;;  %v8507_v63 = vld [vmem:[#allocation2 + $0x1768] sm:$0xff] }
 0x8a4   :  { %9733 = vmatprep.mubr.bf16.mxu0 %v12923_v54  ;;  %10061 = vmatprep.mubr.bf16.mxu1 %v12923_v54  ;;  %v8434_v54 = vld [vmem:[#allocation2 + $0x1520] sm:$0xff] }
 0x8a6   :  { %9704 = vmatpush1.bf16.msra.mxu0 %v8410_v8  ;;  %10032 = vmatpush1.bf16.msra.mxu1 %v8412_v6  ;;  %v8509_v8 = vld [vmem:[#allocation2 + $0x1778] sm:$0xff]  ;;  %v8506_v6 = vld [vmem:[#allocation2 + $0x1760] sm:$0xff] }
 0x8a7   :  { %9705 = vmatprep.subr.bf16.mxu0 %v8419_v7  ;;  %10033 = vmatprep.subr.bf16.mxu1 %v8421_v13  ;;  %v8508_v7 = vld [vmem:[#allocation2 + $0x1770] sm:$0xff]  ;;  %v8515_v13 = vld [vmem:[#allocation2 + $0x17a8] sm:$0xff] }
 0x8aa   :  { %9706 = vmatpush1.bf16.msra.mxu0 %v8418_v55  ;;  %10034 = vmatpush1.bf16.msra.mxu1 %v8420_v45  ;;  %v8517_v55 = vld [vmem:[#allocation2 + $0x17b8] sm:$0xff]  ;;  %v8514_v45 = vld [vmem:[#allocation2 + $0x17a0] sm:$0xff] }
 0x8ab   :  { %9707 = vmatprep.subr.bf16.mxu0 %v8427_v10  ;;  %10035 = vmatprep.subr.bf16.mxu1 %v8429_v16  ;;  %v8516_v10 = vld [vmem:[#allocation2 + $0x17b0] sm:$0xff]  ;;  %v8523_v16 = vld [vmem:[#allocation2 + $0x17e8] sm:$0xff] }
 0x8ae   :  { %9708 = vmatpush1.bf16.msra.mxu0 %v8426_v14  ;;  %10036 = vmatpush1.bf16.msra.mxu1 %v8428_v17  ;;  %v8525_v14 = vld [vmem:[#allocation2 + $0x17f8] sm:$0xff]  ;;  %v8522_v17 = vld [vmem:[#allocation2 + $0x17e0] sm:$0xff] }
 0x8af   :  { %9709 = vmatprep.subr.bf16.mxu0 %v8435_v50  ;;  %10037 = vmatprep.subr.bf16.mxu1 %v8437_v15  ;;  %v8524_v50 = vld [vmem:[#allocation2 + $0x17f0] sm:$0xff]  ;;  %v8531_v15 = vld [vmem:[#allocation2 + $0x1828] sm:$0xff] }
 0x8b2   :  { %9710 = vmatpush1.bf16.msra.mxu0 %v8434_v54  ;;  %10038 = vmatpush1.bf16.msra.mxu1 %v8436_v18  ;;  %v8533_v54 = vld [vmem:[#allocation2 + $0x1838] sm:$0xff]  ;;  %v8530_v18 = vld [vmem:[#allocation2 + $0x1820] sm:$0xff] }
 0x8b3   :  { %9711 = vmatprep.subr.bf16.mxu0 %v8443_v24  ;;  %10039 = vmatprep.subr.bf16.mxu1 %v8445_v26  ;;  %v8532_v24 = vld [vmem:[#allocation2 + $0x1830] sm:$0xff]  ;;  %v8539_v26 = vld [vmem:[#allocation2 + $0x1868] sm:$0xff] }
 0x8b6   :  { %9712 = vmatpush1.bf16.msra.mxu0 %v8442_v35  ;;  %10040 = vmatpush1.bf16.msra.mxu1 %v8444_v37  ;;  %v8541_v35 = vld [vmem:[#allocation2 + $0x1878] sm:$0xff]  ;;  %v8538_v37 = vld [vmem:[#allocation2 + $0x1860] sm:$0xff] }
 0x8b7   :  { %9713 = vmatprep.subr.bf16.mxu0 %v8451_v44  ;;  %10041 = vmatprep.subr.bf16.mxu1 %v8453_v36  ;;  %v8540_v44 = vld [vmem:[#allocation2 + $0x1870] sm:$0xff]  ;;  %v8547_v36 = vld [vmem:[#allocation2 + $0x18a8] sm:$0xff] }
 0x8ba   :  { %9714 = vmatpush1.bf16.msra.mxu0 %v8450_v3  ;;  %10042 = vmatpush1.bf16.msra.mxu1 %v8452_v29  ;;  %v8549_v3 = vld [vmem:[#allocation2 + $0x18b8] sm:$0xff]  ;;  %v8546_v29 = vld [vmem:[#allocation2 + $0x18a0] sm:$0xff] }
 0x8bb   :  { %9715 = vmatprep.subr.bf16.mxu0 %v8459_v48  ;;  %10043 = vmatprep.subr.bf16.mxu1 %v8461_v52  ;;  %v8548_v48 = vld [vmem:[#allocation2 + $0x18b0] sm:$0xff]  ;;  %v8555_v52 = vld [vmem:[#allocation2 + $0x18e8] sm:$0xff] }
 0x8be   :  { %9716 = vmatpush1.bf16.msra.mxu0 %v8458_v53  ;;  %10044 = vmatpush1.bf16.msra.mxu1 %v8460_v12  ;;  %v8554_v53 = vld [vmem:[#allocation2 + $0x18e0] sm:$0xff]  ;;  %v8556_v12 = vld [vmem:[#allocation2 + $0x18f0] sm:$0xff] }
 0x8bf   :  { %9717 = vmatprep.subr.bf16.mxu0 %v8467_v23  ;;  %10045 = vmatprep.subr.bf16.mxu1 %v8469_v59  ;;  %v8563_v23 = vld [vmem:[#allocation2 + $0x1928] sm:$0xff]  ;;  %v8565_v59 = vld [vmem:[#allocation2 + $0x1938] sm:$0xff] }
 0x8c2   :  { %9718 = vmatpush1.bf16.msra.mxu0 %v8466_v46  ;;  %10046 = vmatpush1.bf16.msra.mxu1 %v8468_v56  ;;  %v8564_v46 = vld [vmem:[#allocation2 + $0x1930] sm:$0xff]  ;;  %v8571_v56 = vld [vmem:[#allocation2 + $0x1968] sm:$0xff] }
 0x8c3   :  { %9719 = vmatprep.subr.bf16.mxu0 %v8475_v57  ;;  %10047 = vmatprep.subr.bf16.mxu1 %v8477_v62  ;;  %v8573_v57 = vld [vmem:[#allocation2 + $0x1978] sm:$0xff]  ;;  %v8570_v62 = vld [vmem:[#allocation2 + $0x1960] sm:$0xff] }
 0x8c6   :  { %9720 = vmatpush1.bf16.msra.mxu0 %v8474_v60  ;;  %10048 = vmatpush1.bf16.msra.mxu1 %v8476_v11  ;;  %v8572_v60 = vld [vmem:[#allocation2 + $0x1970] sm:$0xff]  ;;  %v8579_v11 = vld [vmem:[#allocation2 + $0x19a8] sm:$0xff] }
 0x8c7   :  { %9721 = vmatprep.subr.bf16.mxu0 %v8483_v61  ;;  %10049 = vmatprep.subr.bf16.mxu1 %v8485_v9  ;;  %v8581_v61 = vld [vmem:[#allocation2 + $0x19b8] sm:$0xff]  ;;  %v8578_v9 = vld [vmem:[#allocation2 + $0x19a0] sm:$0xff] }
 0x8ca   :  { %9722 = vmatpush1.bf16.msra.mxu0 %v8482_v58  ;;  %10050 = vmatpush1.bf16.msra.mxu1 %v8484_v21  ;;  %v8580_v58 = vld [vmem:[#allocation2 + $0x19b0] sm:$0xff]  ;;  %v8587_v21 = vld [vmem:[#allocation2 + $0x19e8] sm:$0xff] }
 0x8cb   :  { %9723 = vmatprep.subr.bf16.mxu0 %v8491_v32  ;;  %10051 = vmatprep.subr.bf16.mxu1 %v8493_v1  ;;  %v8589_v32 = vld [vmem:[#allocation2 + $0x19f8] sm:$0xff]  ;;  %v8586_v1 = vld [vmem:[#allocation2 + $0x19e0] sm:$0xff] }
 0x8ce   :  { %9724 = vmatpush1.bf16.msra.mxu0 %v8490_v5  ;;  %10052 = vmatpush1.bf16.msra.mxu1 %v8492_v2  ;;  %v8588_v5 = vld [vmem:[#allocation2 + $0x19f0] sm:$0xff]  ;;  %v8595_v2 = vld [vmem:[#allocation2 + $0x1a28] sm:$0xff] }
 0x8cf   :  { %9725 = vmatprep.subr.bf16.mxu0 %v8499_v38  ;;  %10053 = vmatprep.subr.bf16.mxu1 %v8501_v22  ;;  %v8597_v38 = vld [vmem:[#allocation2 + $0x1a38] sm:$0xff]  ;;  %v8594_v22 = vld [vmem:[#allocation2 + $0x1a20] sm:$0xff] }
 0x8d2   :  { %9726 = vmatpush1.bf16.msra.mxu0 %v8498_v39  ;;  %10054 = vmatpush1.bf16.msra.mxu1 %v8500_v4  ;;  %v8596_v39 = vld [vmem:[#allocation2 + $0x1a30] sm:$0xff]  ;;  %v8603_v4 = vld [vmem:[#allocation2 + $0x1a68] sm:$0xff] }
 0x8d3   :  { %9727 = vmatprep.subr.bf16.mxu0 %v8507_v63  ;;  %10055 = vmatprep.subr.bf16.mxu1 %v8509_v8  ;;  %v8605_v63 = vld [vmem:[#allocation2 + $0x1a78] sm:$0xff]  ;;  %v8602_v8 = vld [vmem:[#allocation2 + $0x1a60] sm:$0xff] }
 0x8d6   :  { %9728 = vmatpush1.bf16.msra.mxu0 %v8506_v6  ;;  %10056 = vmatpush1.bf16.msra.mxu1 %v8508_v7  ;;  %v8604_v6 = vld [vmem:[#allocation2 + $0x1a70] sm:$0xff]  ;;  %v8611_v7 = vld [vmem:[#allocation2 + $0x1aa8] sm:$0xff] }
 0x8d7   :  { %9729 = vmatprep.subr.bf16.mxu0 %v8515_v13  ;;  %10057 = vmatprep.subr.bf16.mxu1 %v8517_v55  ;;  %v8613_v13 = vld [vmem:[#allocation2 + $0x1ab8] sm:$0xff]  ;;  %v8610_v55 = vld [vmem:[#allocation2 + $0x1aa0] sm:$0xff] }
 0x8da   :  { %9730 = vmatpush1.bf16.msra.mxu0 %v8514_v45  ;;  %10058 = vmatpush1.bf16.msra.mxu1 %v8516_v10  ;;  %v8612_v45 = vld [vmem:[#allocation2 + $0x1ab0] sm:$0xff]  ;;  %v8619_v10 = vld [vmem:[#allocation2 + $0x1ae8] sm:$0xff] }
 0x8db   :  { %9731 = vmatprep.subr.bf16.mxu0 %v8523_v16  ;;  %10059 = vmatprep.subr.bf16.mxu1 %v8525_v14  ;;  %v8621_v16 = vld [vmem:[#allocation2 + $0x1af8] sm:$0xff]  ;;  %v8618_v14 = vld [vmem:[#allocation2 + $0x1ae0] sm:$0xff] }
 0x8de   :  { %9732 = vmatpush1.bf16.msra.mxu0 %v8522_v17  ;;  %10060 = vmatpush1.bf16.msra.mxu1 %v8524_v50  ;;  %v8620_v17 = vld [vmem:[#allocation2 + $0x1af0] sm:$0xff]  ;;  %v8627_v50 = vld [vmem:[#allocation2 + $0x1b28] sm:$0xff] }
 0x8df   :  { %9742 = vmatprep.subr.bf16.mxu0 %v8531_v15  ;;  %10070 = vmatprep.subr.bf16.mxu1 %v8533_v54  ;;  %v8629_v15 = vld [vmem:[#allocation2 + $0x1b38] sm:$0xff]  ;;  %v8626_v54 = vld [vmem:[#allocation2 + $0x1b20] sm:$0xff] }
 0x8e1   :  { %9734 = vmatmul.mubr.bf16.vlgmr.msra.gmra.mrb[20].mxu0 %v12931_v33  ;;  %10062 = vmatmul.mubr.bf16.vlgmr.msra.gmra.mrb[20].mxu1 %v12931_v33  ;;  %v8557_v33 = vld [vmem:[#allocation2 + $0x18f8] sm:$0xff] }
 0x8e2   :  { %9743 = vmatpush1.bf16.msra.mxu0 %v8530_v18  ;;  %10071 = vmatpush1.bf16.msra.mxu1 %v8532_v24  ;;  %v8628_v18 = vld [vmem:[#allocation2 + $0x1b30] sm:$0xff]  ;;  %v8635_v24 = vld [vmem:[#allocation2 + $0x1b68] sm:$0xff] }
 0x8e3   :  { %9744 = vmatprep.subr.bf16.mxu0 %v8539_v26  ;;  %10072 = vmatprep.subr.bf16.mxu1 %v8541_v35  ;;  %v8637_v26 = vld [vmem:[#allocation2 + $0x1b78] sm:$0xff]  ;;  %v8634_v35 = vld [vmem:[#allocation2 + $0x1b60] sm:$0xff] }
 0x8e4   :  { %9774 = vmatprep.mubr.bf16.mxu0 %v12935_v19  ;;  %10102 = vmatprep.mubr.bf16.mxu1 %v12935_v19  ;;  %v8562_v19 = vld [vmem:[#allocation2 + $0x1920] sm:$0xff] }
 0x8e6   :  { %9745 = vmatpush1.bf16.msra.mxu0 %v8538_v37  ;;  %10073 = vmatpush1.bf16.msra.mxu1 %v8540_v44  ;;  %v8636_v37 = vld [vmem:[#allocation2 + $0x1b70] sm:$0xff]  ;;  %v8643_v44 = vld [vmem:[#allocation2 + $0x1ba8] sm:$0xff] }
 0x8e7   :  { %9746 = vmatprep.subr.bf16.mxu0 %v8547_v36  ;;  %10074 = vmatprep.subr.bf16.mxu1 %v8549_v3  ;;  %v8645_v36 = vld [vmem:[#allocation2 + $0x1bb8] sm:$0xff]  ;;  %v8642_v3 = vld [vmem:[#allocation2 + $0x1ba0] sm:$0xff] }
 0x8ea   :  { %9747 = vmatpush1.bf16.msra.mxu0 %v8546_v29  ;;  %10075 = vmatpush1.bf16.msra.mxu1 %v8548_v48  ;;  %v8644_v29 = vld [vmem:[#allocation2 + $0x1bb0] sm:$0xff]  ;;  %v8651_v48 = vld [vmem:[#allocation2 + $0x1be8] sm:$0xff] }
 0x8eb   :  { %9748 = vmatprep.subr.bf16.mxu0 %v8555_v52  ;;  %10076 = vmatprep.subr.bf16.mxu1 %v8557_v33  ;;  %v8653_v52 = vld [vmem:[#allocation2 + $0x1bf8] sm:$0xff]  ;;  %v8650_v33 = vld [vmem:[#allocation2 + $0x1be0] sm:$0xff] }
 0x8ee   :  { %9749 = vmatpush1.bf16.msra.mxu0 %v8554_v53  ;;  %10077 = vmatpush1.bf16.msra.mxu1 %v8556_v12  ;;  %v8652_v53 = vld [vmem:[#allocation2 + $0x1bf0] sm:$0xff]  ;;  %v8659_v12 = vld [vmem:[#allocation2 + $0x1c28] sm:$0xff] }
 0x8ef   :  { %9750 = vmatprep.subr.bf16.mxu0 %v8563_v23  ;;  %10078 = vmatprep.subr.bf16.mxu1 %v8565_v59  ;;  %v8661_v23 = vld [vmem:[#allocation2 + $0x1c38] sm:$0xff]  ;;  %v8658_v59 = vld [vmem:[#allocation2 + $0x1c20] sm:$0xff] }
 0x8f2   :  { %9751 = vmatpush1.bf16.msra.mxu0 %v8562_v19  ;;  %10079 = vmatpush1.bf16.msra.mxu1 %v8564_v46  ;;  %v8660_v19 = vld [vmem:[#allocation2 + $0x1c30] sm:$0xff]  ;;  %v8667_v46 = vld [vmem:[#allocation2 + $0x1c68] sm:$0xff] }
 0x8f3   :  { %9752 = vmatprep.subr.bf16.mxu0 %v8571_v56  ;;  %10080 = vmatprep.subr.bf16.mxu1 %v8573_v57  ;;  %v8669_v56 = vld [vmem:[#allocation2 + $0x1c78] sm:$0xff]  ;;  %v8666_v57 = vld [vmem:[#allocation2 + $0x1c60] sm:$0xff] }
 0x8f6   :  { %9753 = vmatpush1.bf16.msra.mxu0 %v8570_v62  ;;  %10081 = vmatpush1.bf16.msra.mxu1 %v8572_v60  ;;  %v8668_v62 = vld [vmem:[#allocation2 + $0x1c70] sm:$0xff]  ;;  %v8675_v60 = vld [vmem:[#allocation2 + $0x1ca8] sm:$0xff] }
 0x8f7   :  { %9754 = vmatprep.subr.bf16.mxu0 %v8579_v11  ;;  %10082 = vmatprep.subr.bf16.mxu1 %v8581_v61  ;;  %v8677_v11 = vld [vmem:[#allocation2 + $0x1cb8] sm:$0xff]  ;;  %v8674_v61 = vld [vmem:[#allocation2 + $0x1ca0] sm:$0xff] }
 0x8fa   :  { %9755 = vmatpush1.bf16.msra.mxu0 %v8578_v9  ;;  %10083 = vmatpush1.bf16.msra.mxu1 %v8580_v58  ;;  %v8676_v9 = vld [vmem:[#allocation2 + $0x1cb0] sm:$0xff]  ;;  %v8683_v58 = vld [vmem:[#allocation2 + $0x1ce8] sm:$0xff] }
 0x8fb   :  { %9756 = vmatprep.subr.bf16.mxu0 %v8587_v21  ;;  %10084 = vmatprep.subr.bf16.mxu1 %v8589_v32  ;;  %v8682_v21 = vld [vmem:[#allocation2 + $0x1ce0] sm:$0xff]  ;;  %v8684_v32 = vld [vmem:[#allocation2 + $0x1cf0] sm:$0xff] }
 0x8fe   :  { %9757 = vmatpush1.bf16.msra.mxu0 %v8586_v1  ;;  %10085 = vmatpush1.bf16.msra.mxu1 %v8588_v5  ;;  %v8691_v1 = vld [vmem:[#allocation2 + $0x1d28] sm:$0xff]  ;;  %v8693_v5 = vld [vmem:[#allocation2 + $0x1d38] sm:$0xff] }
 0x8ff   :  { %9758 = vmatprep.subr.bf16.mxu0 %v8595_v2  ;;  %10086 = vmatprep.subr.bf16.mxu1 %v8597_v38  ;;  %v8692_v2 = vld [vmem:[#allocation2 + $0x1d30] sm:$0xff]  ;;  %v8699_v38 = vld [vmem:[#allocation2 + $0x1d68] sm:$0xff] }
 0x902   :  { %9759 = vmatpush1.bf16.msra.mxu0 %v8594_v22  ;;  %10087 = vmatpush1.bf16.msra.mxu1 %v8596_v39  ;;  %v8701_v22 = vld [vmem:[#allocation2 + $0x1d78] sm:$0xff]  ;;  %v8698_v39 = vld [vmem:[#allocation2 + $0x1d60] sm:$0xff] }
 0x903   :  { %9760 = vmatprep.subr.bf16.mxu0 %v8603_v4  ;;  %10088 = vmatprep.subr.bf16.mxu1 %v8605_v63  ;;  %v8700_v4 = vld [vmem:[#allocation2 + $0x1d70] sm:$0xff]  ;;  %v8707_v63 = vld [vmem:[#allocation2 + $0x1da8] sm:$0xff] }
 0x906   :  { %9761 = vmatpush1.bf16.msra.mxu0 %v8602_v8  ;;  %10089 = vmatpush1.bf16.msra.mxu1 %v8604_v6  ;;  %v8709_v8 = vld [vmem:[#allocation2 + $0x1db8] sm:$0xff]  ;;  %v8706_v6 = vld [vmem:[#allocation2 + $0x1da0] sm:$0xff] }
 0x907   :  { %9762 = vmatprep.subr.bf16.mxu0 %v8611_v7  ;;  %10090 = vmatprep.subr.bf16.mxu1 %v8613_v13  ;;  %v8708_v7 = vld [vmem:[#allocation2 + $0x1db0] sm:$0xff]  ;;  %v8715_v13 = vld [vmem:[#allocation2 + $0x1de8] sm:$0xff] }
 0x90a   :  { %9763 = vmatpush1.bf16.msra.mxu0 %v8610_v55  ;;  %10091 = vmatpush1.bf16.msra.mxu1 %v8612_v45  ;;  %v8717_v55 = vld [vmem:[#allocation2 + $0x1df8] sm:$0xff]  ;;  %v8714_v45 = vld [vmem:[#allocation2 + $0x1de0] sm:$0xff] }
 0x90b   :  { %9764 = vmatprep.subr.bf16.mxu0 %v8619_v10  ;;  %10092 = vmatprep.subr.bf16.mxu1 %v8621_v16  ;;  %v8716_v10 = vld [vmem:[#allocation2 + $0x1df0] sm:$0xff]  ;;  %v8723_v16 = vld [vmem:[#allocation2 + $0x1e28] sm:$0xff] }
 0x90e   :  { %9765 = vmatpush1.bf16.msra.mxu0 %v8618_v14  ;;  %10093 = vmatpush1.bf16.msra.mxu1 %v8620_v17  ;;  %v8725_v14 = vld [vmem:[#allocation2 + $0x1e38] sm:$0xff]  ;;  %v8722_v17 = vld [vmem:[#allocation2 + $0x1e20] sm:$0xff] }
 0x90f   :  { %9766 = vmatprep.subr.bf16.mxu0 %v8627_v50  ;;  %10094 = vmatprep.subr.bf16.mxu1 %v8629_v15  ;;  %v8724_v50 = vld [vmem:[#allocation2 + $0x1e30] sm:$0xff]  ;;  %v8731_v15 = vld [vmem:[#allocation2 + $0x1e68] sm:$0xff] }
 0x912   :  { %9767 = vmatpush1.bf16.msra.mxu0 %v8626_v54  ;;  %10095 = vmatpush1.bf16.msra.mxu1 %v8628_v18  ;;  %v8733_v54 = vld [vmem:[#allocation2 + $0x1e78] sm:$0xff]  ;;  %v8730_v18 = vld [vmem:[#allocation2 + $0x1e60] sm:$0xff] }
 0x913   :  { %9768 = vmatprep.subr.bf16.mxu0 %v8635_v24  ;;  %10096 = vmatprep.subr.bf16.mxu1 %v8637_v26  ;;  %v8732_v24 = vld [vmem:[#allocation2 + $0x1e70] sm:$0xff]  ;;  %v8739_v26 = vld [vmem:[#allocation2 + $0x1ea8] sm:$0xff] }
 0x916   :  { %9769 = vmatpush1.bf16.msra.mxu0 %v8634_v35  ;;  %10097 = vmatpush1.bf16.msra.mxu1 %v8636_v37  ;;  %v8741_v35 = vld [vmem:[#allocation2 + $0x1eb8] sm:$0xff]  ;;  %v8738_v37 = vld [vmem:[#allocation2 + $0x1ea0] sm:$0xff] }
 0x917   :  { %9770 = vmatprep.subr.bf16.mxu0 %v8643_v44  ;;  %10098 = vmatprep.subr.bf16.mxu1 %v8645_v36  ;;  %v8740_v44 = vld [vmem:[#allocation2 + $0x1eb0] sm:$0xff]  ;;  %v8747_v36 = vld [vmem:[#allocation2 + $0x1ee8] sm:$0xff] }
 0x91a   :  { %9771 = vmatpush1.bf16.msra.mxu0 %v8642_v3  ;;  %10099 = vmatpush1.bf16.msra.mxu1 %v8644_v29  ;;  %v8749_v3 = vld [vmem:[#allocation2 + $0x1ef8] sm:$0xff]  ;;  %v8746_v29 = vld [vmem:[#allocation2 + $0x1ee0] sm:$0xff] }
 0x91b   :  { %9772 = vmatprep.subr.bf16.mxu0 %v8651_v48  ;;  %10100 = vmatprep.subr.bf16.mxu1 %v8653_v52  ;;  %v8748_v48 = vld [vmem:[#allocation2 + $0x1ef0] sm:$0xff]  ;;  %v8755_v52 = vld [vmem:[#allocation2 + $0x1f28] sm:$0xff] }
 0x91e   :  { %9773 = vmatpush1.bf16.msra.mxu0 %v8650_v33  ;;  %10101 = vmatpush1.bf16.msra.mxu1 %v8652_v53  ;;  %v8757_v33 = vld [vmem:[#allocation2 + $0x1f38] sm:$0xff]  ;;  %v8754_v53 = vld [vmem:[#allocation2 + $0x1f20] sm:$0xff] }
 0x91f   :  { %9783 = vmatprep.subr.bf16.mxu0 %v8659_v12  ;;  %10111 = vmatprep.subr.bf16.mxu1 %v8661_v23  ;;  %v8756_v12 = vld [vmem:[#allocation2 + $0x1f30] sm:$0xff]  ;;  %v8763_v23 = vld [vmem:[#allocation2 + $0x1f68] sm:$0xff] }
 0x921   :  { %9775 = vmatmul.mubr.bf16.vlgmr.msra.gmra.mrb[20].mxu0 %v12943_v42  ;;  %10103 = vmatmul.mubr.bf16.vlgmr.msra.gmra.mrb[20].mxu1 %v12943_v42  ;;  %v8685_v42 = vld [vmem:[#allocation2 + $0x1cf8] sm:$0xff] }
 0x922   :  { %9784 = vmatpush1.bf16.msra.mxu0 %v8658_v59  ;;  %10112 = vmatpush1.bf16.msra.mxu1 %v8660_v19  ;;  %v8765_v59 = vld [vmem:[#allocation2 + $0x1f78] sm:$0xff]  ;;  %v8762_v19 = vld [vmem:[#allocation2 + $0x1f60] sm:$0xff] }
 0x923   :  { %9785 = vmatprep.subr.bf16.mxu0 %v8667_v46  ;;  %10113 = vmatprep.subr.bf16.mxu1 %v8669_v56  ;;  %v8764_v46 = vld [vmem:[#allocation2 + $0x1f70] sm:$0xff]  ;;  %v8771_v56 = vld [vmem:[#allocation2 + $0x1fa8] sm:$0xff] }
 0x924   :  { %9815 = vmatprep.mubr.bf16.mxu0 %v12947_v0  ;;  %10143 = vmatprep.mubr.bf16.mxu1 %v12947_v0  ;;  %v8690_v0 = vld [vmem:[#allocation2 + $0x1d20] sm:$0xff] }
 0x926   :  { %9786 = vmatpush1.bf16.msra.mxu0 %v8666_v57  ;;  %10114 = vmatpush1.bf16.msra.mxu1 %v8668_v62  ;;  %v8773_v57 = vld [vmem:[#allocation2 + $0x1fb8] sm:$0xff]  ;;  %v8770_v62 = vld [vmem:[#allocation2 + $0x1fa0] sm:$0xff] }
 0x927   :  { %9787 = vmatprep.subr.bf16.mxu0 %v8675_v60  ;;  %10115 = vmatprep.subr.bf16.mxu1 %v8677_v11  ;;  %v8772_v60 = vld [vmem:[#allocation2 + $0x1fb0] sm:$0xff]  ;;  %v8779_v11 = vld [vmem:[#allocation2 + $0x1fe8] sm:$0xff] }
 0x92a   :  { %9788 = vmatpush1.bf16.msra.mxu0 %v8674_v61  ;;  %10116 = vmatpush1.bf16.msra.mxu1 %v8676_v9  ;;  %v8781_v61 = vld [vmem:[#allocation2 + $0x1ff8] sm:$0xff]  ;;  %v8778_v9 = vld [vmem:[#allocation2 + $0x1fe0] sm:$0xff] }
 0x92b   :  { %9789 = vmatprep.subr.bf16.mxu0 %v8683_v58  ;;  %10117 = vmatprep.subr.bf16.mxu1 %v8685_v42  ;;  %v8780_v58 = vld [vmem:[#allocation2 + $0x1ff0] sm:$0xff] }
 0x92c   :  { %v12311_v42 = vld [vmem:[#allocation12] sm:$0xff] }
 0x92e   :  { %9790 = vmatpush1.bf16.msra.mxu0 %v8682_v21  ;;  %10118 = vmatpush1.bf16.msra.mxu1 %v8684_v32  ;;  %v8819_v21 = vrot.slane %v12311_v42, %v12776_v34  ;;  %v8827_v32 = vrot.slane %v12311_v42, %v12779_v40 }
 0x92f   :  { %9791 = vmatprep.subr.bf16.mxu0 %v8691_v1  ;;  %10119 = vmatprep.subr.bf16.mxu1 %v8693_v5  ;;  %v8823_v1 = vrot.slane %v12311_v42, %v12782_v41  ;;  %v8831_v5 = vrot.slane %v12311_v42, %v12785_v43 }
 0x932   :  { %9792 = vmatpush1.bf16.msra.mxu0 %v8690_v0  ;;  %10120 = vmatpush1.bf16.msra.mxu1 %v8692_v2 }
 0x933   :  { %9793 = vmatprep.subr.bf16.mxu0 %v8699_v38  ;;  %10121 = vmatprep.subr.bf16.mxu1 %v8701_v22 }
 0x936   :  { %9794 = vmatpush1.bf16.msra.mxu0 %v8698_v39  ;;  %10122 = vmatpush1.bf16.msra.mxu1 %v8700_v4 }
 0x937   :  { %9795 = vmatprep.subr.bf16.mxu0 %v8707_v63  ;;  %10123 = vmatprep.subr.bf16.mxu1 %v8709_v8 }
 0x93a   :  { %9796 = vmatpush1.bf16.msra.mxu0 %v8706_v6  ;;  %10124 = vmatpush1.bf16.msra.mxu1 %v8708_v7 }
 0x93b   :  { %9797 = vmatprep.subr.bf16.mxu0 %v8715_v13  ;;  %10125 = vmatprep.subr.bf16.mxu1 %v8717_v55 }
 0x93e   :  { %9798 = vmatpush1.bf16.msra.mxu0 %v8714_v45  ;;  %10126 = vmatpush1.bf16.msra.mxu1 %v8716_v10 }
 0x93f   :  { %9799 = vmatprep.subr.bf16.mxu0 %v8723_v16  ;;  %10127 = vmatprep.subr.bf16.mxu1 %v8725_v14 }
 0x942   :  { %9800 = vmatpush1.bf16.msra.mxu0 %v8722_v17  ;;  %10128 = vmatpush1.bf16.msra.mxu1 %v8724_v50 }
 0x943   :  { %9801 = vmatprep.subr.bf16.mxu0 %v8731_v15  ;;  %10129 = vmatprep.subr.bf16.mxu1 %v8733_v54 }
 0x946   :  { %9802 = vmatpush1.bf16.msra.mxu0 %v8730_v18  ;;  %10130 = vmatpush1.bf16.msra.mxu1 %v8732_v24 }
 0x947   :  { %9803 = vmatprep.subr.bf16.mxu0 %v8739_v26  ;;  %10131 = vmatprep.subr.bf16.mxu1 %v8741_v35 }
 0x94a   :  { %9804 = vmatpush1.bf16.msra.mxu0 %v8738_v37  ;;  %10132 = vmatpush1.bf16.msra.mxu1 %v8740_v44 }
 0x94b   :  { %9805 = vmatprep.subr.bf16.mxu0 %v8747_v36  ;;  %10133 = vmatprep.subr.bf16.mxu1 %v8749_v3 }
 0x94e   :  { %9806 = vmatpush1.bf16.msra.mxu0 %v8746_v29  ;;  %10134 = vmatpush1.bf16.msra.mxu1 %v8748_v48 }
 0x94f   :  { %9807 = vmatprep.subr.bf16.mxu0 %v8755_v52  ;;  %10135 = vmatprep.subr.bf16.mxu1 %v8757_v33 }
 0x952   :  { %9808 = vmatpush1.bf16.msra.mxu0 %v8754_v53  ;;  %10136 = vmatpush1.bf16.msra.mxu1 %v8756_v12 }
 0x953   :  { %9809 = vmatprep.subr.bf16.mxu0 %v8763_v23  ;;  %10137 = vmatprep.subr.bf16.mxu1 %v8765_v59 }
 0x956   :  { %9810 = vmatpush1.bf16.msra.mxu0 %v8762_v19  ;;  %10138 = vmatpush1.bf16.msra.mxu1 %v8764_v46 }
 0x957   :  { %9811 = vmatprep.subr.bf16.mxu0 %v8771_v56  ;;  %10139 = vmatprep.subr.bf16.mxu1 %v8773_v57 }
 0x95a   :  { %9812 = vmatpush1.bf16.msra.mxu0 %v8770_v62  ;;  %10140 = vmatpush1.bf16.msra.mxu1 %v8772_v60 }
 0x95b   :  { %9813 = vmatprep.subr.bf16.mxu0 %v8779_v11  ;;  %10141 = vmatprep.subr.bf16.mxu1 %v8781_v61 }
 0x95e   :  { %9814 = vmatpush1.bf16.msra.mxu0 %v8778_v9  ;;  %10142 = vmatpush1.bf16.msra.mxu1 %v8780_v58 }
 0x961   :  { %9816 = vmatmul.mubr.bf16.vlgmr.msra.gmra.mrb[20].mxu0 %v12955_v31  ;;  %10144 = vmatmul.mubr.bf16.vlgmr.msra.gmra.mrb[20].mxu1 %v12955_v31 }
 0xa34   :  { %v9817_v0 = vpop.f32.mrb[20].mxu0  ;;  %v10145_v2 = vpop.f32.mrb[20].mxu1 }
 0xa35   :  { %v13007_v38 = vadd.f32 %v9817_v0, %v8819_v21  ;;  %v13009_v22 = vadd.f32 %v10145_v2, %v8827_v32  ;;  %v9819_v39 = vpop.f32.mrb[21].mxu0  ;;  %v10147_v4 = vpop.f32.mrb[21].mxu1 }
 0xa36   :  { %v13011_v63 = vadd.f32 %v9819_v39, %v8823_v1  ;;  %v13013_v31 = vadd.f32 %v10147_v4, %v8831_v5  ;;  %v9821_v8 = vpop.f32.mrb[22].mxu0  ;;  %v10149_v34 = vpop.f32.mrb[22].mxu1 }
 0xa37   :  { %v9822_v6 = vpop.f32.mrb[23].mxu0  ;;  %v10150_v40 = vpop.f32.mrb[23].mxu1 }
 0xa38   :  { %12498 = dma.done.wait [#allocation5 + $0x1], 32768 }
 0xa39   :  { %12499 = vsyncadd [#allocation5 + $0x1], 4294934528  ;;  %v10414_v41 = vpack.c.bf16 %v12981_v49, %v12981_v49  ;;  %v10157_v43 = vld [vmem:[#allocation3 + $0x8] sm:$0xff]  ;;  %v10159_v7 = vld [vmem:[#allocation3 + $0x18] sm:$0xff] }
 0xa3a   :  { %v10156_v13 = vld [vmem:[#allocation3] sm:$0xff]  ;;  %10442 = vmatprep.subr.bf16.mxu0 %v10157_v43  ;;  %10606 = vmatprep.subr.bf16.mxu1 %v10159_v7  ;;  %v10158_v55 = vld [vmem:[#allocation3 + $0x10] sm:$0xff]  ;;  %v10161_v45 = vld [vmem:[#allocation3 + $0x28] sm:$0xff] }
 0xa3b   :  { %10474 = vmatprep.mubr.bf16.mxu0 %v10414_v41  ;;  %10638 = vmatprep.mubr.bf16.mxu1 %v10414_v41  ;;  %v10163_v10 = vld [vmem:[#allocation3 + $0x38] sm:$0xff]  ;;  %v10160_v16 = vld [vmem:[#allocation3 + $0x20] sm:$0xff]  ;;  %v10162_v14 = vld [vmem:[#allocation3 + $0x30] sm:$0xff] }
 0xa3c   :  { %10443 = vmatpush1.bf16.msra.mxu0 %v10156_v13  ;;  %10607 = vmatpush1.bf16.msra.mxu1 %v10158_v55  ;;  %v10165_v17 = vld [vmem:[#allocation3 + $0x48] sm:$0xff]  ;;  %v10167_v50 = vld [vmem:[#allocation3 + $0x58] sm:$0xff]  ;;  %v10164_v49 = vld [vmem:[#allocation3 + $0x40] sm:$0xff] }
 0xa3d   :  { %10444 = vmatprep.subr.bf16.mxu0 %v10161_v45  ;;  %10608 = vmatprep.subr.bf16.mxu1 %v10163_v10  ;;  %v10166_v15 = vld [vmem:[#allocation3 + $0x50] sm:$0xff]  ;;  %v10169_v54 = vld [vmem:[#allocation3 + $0x68] sm:$0xff]  ;;  %v10171_v18 = vld [vmem:[#allocation3 + $0x78] sm:$0xff] }
 0xa3e   :  { %v10168_v24 = vld [vmem:[#allocation3 + $0x60] sm:$0xff]  ;;  %v10170_v26 = vld [vmem:[#allocation3 + $0x70] sm:$0xff]  ;;  %v10173_v35 = vld [vmem:[#allocation3 + $0x88] sm:$0xff] }
 0xa3f   :  { %v10175_v37 = vld [vmem:[#allocation3 + $0x98] sm:$0xff]  ;;  %v10172_v44 = vld [vmem:[#allocation3 + $0x80] sm:$0xff]  ;;  %v10174_v36 = vld [vmem:[#allocation3 + $0x90] sm:$0xff] }
 0xa40   :  { %10445 = vmatpush1.bf16.msra.mxu0 %v10160_v16  ;;  %10609 = vmatpush1.bf16.msra.mxu1 %v10162_v14  ;;  %v10177_v3 = vld [vmem:[#allocation3 + $0xa8] sm:$0xff]  ;;  %v10179_v29 = vld [vmem:[#allocation3 + $0xb8] sm:$0xff]  ;;  %v10176_v48 = vld [vmem:[#allocation3 + $0xa0] sm:$0xff] }
 0xa41   :  { %10446 = vmatprep.subr.bf16.mxu0 %v10165_v17  ;;  %10610 = vmatprep.subr.bf16.mxu1 %v10167_v50  ;;  %v10178_v52 = vld [vmem:[#allocation3 + $0xb0] sm:$0xff]  ;;  %v10181_v33 = vld [vmem:[#allocation3 + $0xc8] sm:$0xff]  ;;  %v10183_v53 = vld [vmem:[#allocation3 + $0xd8] sm:$0xff] }
 0xa42   :  { %v10180_v12 = vld [vmem:[#allocation3 + $0xc0] sm:$0xff]  ;;  %v10182_v23 = vld [vmem:[#allocation3 + $0xd0] sm:$0xff]  ;;  %v10185_v59 = vld [vmem:[#allocation3 + $0xe8] sm:$0xff] }
 0xa43   :  { %v10187_v19 = vld [vmem:[#allocation3 + $0xf8] sm:$0xff]  ;;  %v10184_v46 = vld [vmem:[#allocation3 + $0xe0] sm:$0xff]  ;;  %v10186_v56 = vld [vmem:[#allocation3 + $0xf0] sm:$0xff] }
 0xa44   :  { %10447 = vmatpush1.bf16.msra.mxu0 %v10164_v49  ;;  %10611 = vmatpush1.bf16.msra.mxu1 %v10166_v15  ;;  %v10189_v57 = vld [vmem:[#allocation3 + $0x108] sm:$0xff]  ;;  %v10191_v62 = vld [vmem:[#allocation3 + $0x118] sm:$0xff]  ;;  %v10188_v60 = vld [vmem:[#allocation3 + $0x100] sm:$0xff] }
 0xa45   :  { %10448 = vmatprep.subr.bf16.mxu0 %v10169_v54  ;;  %10612 = vmatprep.subr.bf16.mxu1 %v10171_v18  ;;  %v10190_v11 = vld [vmem:[#allocation3 + $0x110] sm:$0xff]  ;;  %v10193_v61 = vld [vmem:[#allocation3 + $0x128] sm:$0xff]  ;;  %v10195_v9 = vld [vmem:[#allocation3 + $0x138] sm:$0xff]  ;;  %v10413_v18 = vpack.c.bf16 %v12977_v25, %v12977_v25 }
 0xa46   :  { %v10192_v58 = vld [vmem:[#allocation3 + $0x120] sm:$0xff]  ;;  %v10194_v42 = vld [vmem:[#allocation3 + $0x130] sm:$0xff]  ;;  %v10197_v21 = vld [vmem:[#allocation3 + $0x148] sm:$0xff] }
 0xa47   :  { %v10199_v32 = vld [vmem:[#allocation3 + $0x158] sm:$0xff]  ;;  %v10196_v1 = vld [vmem:[#allocation3 + $0x140] sm:$0xff]  ;;  %v10198_v5 = vld [vmem:[#allocation3 + $0x150] sm:$0xff] }
 0xa48   :  { %10449 = vmatpush1.bf16.msra.mxu0 %v10168_v24  ;;  %10613 = vmatpush1.bf16.msra.mxu1 %v10170_v26  ;;  %v10201_v0 = vld [vmem:[#allocation3 + $0x168] sm:$0xff]  ;;  %v10203_v2 = vld [vmem:[#allocation3 + $0x178] sm:$0xff]  ;;  %v10200_v39 = vld [vmem:[#allocation3 + $0x160] sm:$0xff] }
 0xa49   :  { %10450 = vmatprep.subr.bf16.mxu0 %v10173_v35  ;;  %10614 = vmatprep.subr.bf16.mxu1 %v10175_v37  ;;  %v10202_v4 = vld [vmem:[#allocation3 + $0x170] sm:$0xff]  ;;  %v10205_v8 = vld [vmem:[#allocation3 + $0x188] sm:$0xff]  ;;  %v10207_v34 = vld [vmem:[#allocation3 + $0x198] sm:$0xff] }
 0xa4a   :  { %v10204_v6 = vld [vmem:[#allocation3 + $0x180] sm:$0xff]  ;;  %v10206_v40 = vld [vmem:[#allocation3 + $0x190] sm:$0xff]  ;;  %v10209_v41 = vld [vmem:[#allocation3 + $0x1a8] sm:$0xff] }
 0xa4b   :  { %v10211_v43 = vld [vmem:[#allocation3 + $0x1b8] sm:$0xff]  ;;  %v10208_v7 = vld [vmem:[#allocation3 + $0x1a0] sm:$0xff]  ;;  %v10210_v13 = vld [vmem:[#allocation3 + $0x1b0] sm:$0xff] }
 0xa4c   :  { %10451 = vmatpush1.bf16.msra.mxu0 %v10172_v44  ;;  %10615 = vmatpush1.bf16.msra.mxu1 %v10174_v36  ;;  %v10213_v55 = vld [vmem:[#allocation3 + $0x1c8] sm:$0xff]  ;;  %v10215_v45 = vld [vmem:[#allocation3 + $0x1d8] sm:$0xff]  ;;  %v10212_v10 = vld [vmem:[#allocation3 + $0x1c0] sm:$0xff]  ;;  %v10416_v44 = vpack.c.bf16 %v12983_v51, %v12983_v51 }
 0xa4d   :  { %10452 = vmatprep.subr.bf16.mxu0 %v10177_v3  ;;  %10616 = vmatprep.subr.bf16.mxu1 %v10179_v29  ;;  %v10214_v16 = vld [vmem:[#allocation3 + $0x1d0] sm:$0xff]  ;;  %v10217_v14 = vld [vmem:[#allocation3 + $0x1e8] sm:$0xff]  ;;  %v10219_v17 = vld [vmem:[#allocation3 + $0x1f8] sm:$0xff] }
 0xa4e   :  { %v10216_v50 = vld [vmem:[#allocation3 + $0x1e0] sm:$0xff]  ;;  %v10218_v49 = vld [vmem:[#allocation3 + $0x1f0] sm:$0xff]  ;;  %v10221_v15 = vld [vmem:[#allocation3 + $0x208] sm:$0xff] }
 0xa4f   :  { %v10223_v54 = vld [vmem:[#allocation3 + $0x218] sm:$0xff]  ;;  %v10220_v24 = vld [vmem:[#allocation3 + $0x200] sm:$0xff]  ;;  %v10222_v26 = vld [vmem:[#allocation3 + $0x210] sm:$0xff] }
 0xa50   :  { %10453 = vmatpush1.bf16.msra.mxu0 %v10176_v48  ;;  %10617 = vmatpush1.bf16.msra.mxu1 %v10178_v52  ;;  %v10225_v35 = vld [vmem:[#allocation3 + $0x228] sm:$0xff]  ;;  %v10227_v37 = vld [vmem:[#allocation3 + $0x238] sm:$0xff]  ;;  %v10224_v36 = vld [vmem:[#allocation3 + $0x220] sm:$0xff] }
 0xa51   :  { %10454 = vmatprep.subr.bf16.mxu0 %v10181_v33  ;;  %10618 = vmatprep.subr.bf16.mxu1 %v10183_v53  ;;  %v10226_v3 = vld [vmem:[#allocation3 + $0x230] sm:$0xff]  ;;  %v10229_v25 = vld [vmem:[#allocation3 + $0x248] sm:$0xff]  ;;  %v10231_v29 = vld [vmem:[#allocation3 + $0x258] sm:$0xff] }
 0xa52   :  { %v10228_v48 = vld [vmem:[#allocation3 + $0x240] sm:$0xff]  ;;  %v10230_v52 = vld [vmem:[#allocation3 + $0x250] sm:$0xff]  ;;  %v10233_v33 = vld [vmem:[#allocation3 + $0x268] sm:$0xff] }
 0xa53   :  { %v10235_v51 = vld [vmem:[#allocation3 + $0x278] sm:$0xff]  ;;  %v10232_v53 = vld [vmem:[#allocation3 + $0x260] sm:$0xff] }
 0xa54   :  { %10455 = vmatpush1.bf16.msra.mxu0 %v10180_v12  ;;  %10619 = vmatpush1.bf16.msra.mxu1 %v10182_v23  ;;  %v10234_v12 = vld [vmem:[#allocation3 + $0x270] sm:$0xff]  ;;  %v10237_v23 = vld [vmem:[#allocation3 + $0x288] sm:$0xff] }
 0xa55   :  { %10456 = vmatprep.subr.bf16.mxu0 %v10185_v59  ;;  %10620 = vmatprep.subr.bf16.mxu1 %v10187_v19  ;;  %v10239_v59 = vld [vmem:[#allocation3 + $0x298] sm:$0xff]  ;;  %v10236_v19 = vld [vmem:[#allocation3 + $0x280] sm:$0xff] }
 0xa58   :  { %10457 = vmatpush1.bf16.msra.mxu0 %v10184_v46  ;;  %10621 = vmatpush1.bf16.msra.mxu1 %v10186_v56  ;;  %v10238_v46 = vld [vmem:[#allocation3 + $0x290] sm:$0xff]  ;;  %v10241_v56 = vld [vmem:[#allocation3 + $0x2a8] sm:$0xff] }
 0xa59   :  { %10458 = vmatprep.subr.bf16.mxu0 %v10189_v57  ;;  %10622 = vmatprep.subr.bf16.mxu1 %v10191_v62  ;;  %v10243_v57 = vld [vmem:[#allocation3 + $0x2b8] sm:$0xff]  ;;  %v10240_v62 = vld [vmem:[#allocation3 + $0x2a0] sm:$0xff] }
 0xa5c   :  { %10459 = vmatpush1.bf16.msra.mxu0 %v10188_v60  ;;  %10623 = vmatpush1.bf16.msra.mxu1 %v10190_v11  ;;  %v10242_v60 = vld [vmem:[#allocation3 + $0x2b0] sm:$0xff]  ;;  %v10245_v11 = vld [vmem:[#allocation3 + $0x2c8] sm:$0xff] }
 0xa5d   :  { %10460 = vmatprep.subr.bf16.mxu0 %v10193_v61  ;;  %10624 = vmatprep.subr.bf16.mxu1 %v10195_v9  ;;  %v10247_v61 = vld [vmem:[#allocation3 + $0x2d8] sm:$0xff]  ;;  %v10244_v9 = vld [vmem:[#allocation3 + $0x2c0] sm:$0xff] }
 0xa60   :  { %10461 = vmatpush1.bf16.msra.mxu0 %v10192_v58  ;;  %10625 = vmatpush1.bf16.msra.mxu1 %v10194_v42  ;;  %v10246_v58 = vld [vmem:[#allocation3 + $0x2d0] sm:$0xff]  ;;  %v10249_v42 = vld [vmem:[#allocation3 + $0x2e8] sm:$0xff] }
 0xa61   :  { %10462 = vmatprep.subr.bf16.mxu0 %v10197_v21  ;;  %10626 = vmatprep.subr.bf16.mxu1 %v10199_v32  ;;  %v10251_v21 = vld [vmem:[#allocation3 + $0x2f8] sm:$0xff]  ;;  %v10248_v32 = vld [vmem:[#allocation3 + $0x2e0] sm:$0xff] }
 0xa64   :  { %10463 = vmatpush1.bf16.msra.mxu0 %v10196_v1  ;;  %10627 = vmatpush1.bf16.msra.mxu1 %v10198_v5  ;;  %v10250_v1 = vld [vmem:[#allocation3 + $0x2f0] sm:$0xff]  ;;  %v10253_v5 = vld [vmem:[#allocation3 + $0x308] sm:$0xff] }
 0xa65   :  { %10464 = vmatprep.subr.bf16.mxu0 %v10201_v0  ;;  %10628 = vmatprep.subr.bf16.mxu1 %v10203_v2  ;;  %v10255_v0 = vld [vmem:[#allocation3 + $0x318] sm:$0xff]  ;;  %v10252_v2 = vld [vmem:[#allocation3 + $0x300] sm:$0xff] }
 0xa68   :  { %10465 = vmatpush1.bf16.msra.mxu0 %v10200_v39  ;;  %10629 = vmatpush1.bf16.msra.mxu1 %v10202_v4  ;;  %v10254_v39 = vld [vmem:[#allocation3 + $0x310] sm:$0xff]  ;;  %v10257_v4 = vld [vmem:[#allocation3 + $0x328] sm:$0xff] }
 0xa69   :  { %10466 = vmatprep.subr.bf16.mxu0 %v10205_v8  ;;  %10630 = vmatprep.subr.bf16.mxu1 %v10207_v34  ;;  %v10259_v8 = vld [vmem:[#allocation3 + $0x338] sm:$0xff]  ;;  %v10256_v34 = vld [vmem:[#allocation3 + $0x320] sm:$0xff] }
 0xa6c   :  { %10467 = vmatpush1.bf16.msra.mxu0 %v10204_v6  ;;  %10631 = vmatpush1.bf16.msra.mxu1 %v10206_v40  ;;  %v10258_v6 = vld [vmem:[#allocation3 + $0x330] sm:$0xff]  ;;  %v10261_v40 = vld [vmem:[#allocation3 + $0x348] sm:$0xff] }
 0xa6d   :  { %10468 = vmatprep.subr.bf16.mxu0 %v10209_v41  ;;  %10632 = vmatprep.subr.bf16.mxu1 %v10211_v43  ;;  %v10263_v41 = vld [vmem:[#allocation3 + $0x358] sm:$0xff]  ;;  %v10260_v43 = vld [vmem:[#allocation3 + $0x340] sm:$0xff] }
 0xa70   :  { %10469 = vmatpush1.bf16.msra.mxu0 %v10208_v7  ;;  %10633 = vmatpush1.bf16.msra.mxu1 %v10210_v13  ;;  %v10262_v7 = vld [vmem:[#allocation3 + $0x350] sm:$0xff]  ;;  %v10265_v13 = vld [vmem:[#allocation3 + $0x368] sm:$0xff] }
 0xa71   :  { %10470 = vmatprep.subr.bf16.mxu0 %v10213_v55  ;;  %10634 = vmatprep.subr.bf16.mxu1 %v10215_v45  ;;  %v10267_v55 = vld [vmem:[#allocation3 + $0x378] sm:$0xff]  ;;  %v10264_v45 = vld [vmem:[#allocation3 + $0x360] sm:$0xff] }
 0xa74   :  { %10471 = vmatpush1.bf16.msra.mxu0 %v10212_v10  ;;  %10635 = vmatpush1.bf16.msra.mxu1 %v10214_v16  ;;  %v10266_v10 = vld [vmem:[#allocation3 + $0x370] sm:$0xff]  ;;  %v10269_v16 = vld [vmem:[#allocation3 + $0x388] sm:$0xff] }
 0xa75   :  { %10472 = vmatprep.subr.bf16.mxu0 %v10217_v14  ;;  %10636 = vmatprep.subr.bf16.mxu1 %v10219_v17  ;;  %v10271_v14 = vld [vmem:[#allocation3 + $0x398] sm:$0xff]  ;;  %v10268_v17 = vld [vmem:[#allocation3 + $0x380] sm:$0xff] }
 0xa78   :  { %10473 = vmatpush1.bf16.msra.mxu0 %v10216_v50  ;;  %10637 = vmatpush1.bf16.msra.mxu1 %v10218_v49  ;;  %v10270_v50 = vld [vmem:[#allocation3 + $0x390] sm:$0xff]  ;;  %v10273_v49 = vld [vmem:[#allocation3 + $0x3a8] sm:$0xff] }
 0xa79   :  { %10483 = vmatprep.subr.bf16.mxu0 %v10221_v15  ;;  %10647 = vmatprep.subr.bf16.mxu1 %v10223_v54  ;;  %v10275_v15 = vld [vmem:[#allocation3 + $0x3b8] sm:$0xff]  ;;  %v10272_v54 = vld [vmem:[#allocation3 + $0x3a0] sm:$0xff] }
 0xa7b   :  { %10475 = vmatmul.mubr.bf16.vlgmr.msra.gmra.mrb[24].mxu0 %v10413_v18  ;;  %10639 = vmatmul.mubr.bf16.vlgmr.msra.gmra.mrb[24].mxu1 %v10413_v18  ;;  %v10274_v18 = vld [vmem:[#allocation3 + $0x3b0] sm:$0xff] }
 0xa7c   :  { %10484 = vmatpush1.bf16.msra.mxu0 %v10220_v24  ;;  %10648 = vmatpush1.bf16.msra.mxu1 %v10222_v26  ;;  %v10277_v24 = vld [vmem:[#allocation3 + $0x3c8] sm:$0xff]  ;;  %v10279_v26 = vld [vmem:[#allocation3 + $0x3d8] sm:$0xff] }
 0xa7d   :  { %10485 = vmatprep.subr.bf16.mxu0 %v10225_v35  ;;  %10649 = vmatprep.subr.bf16.mxu1 %v10227_v37  ;;  %v10276_v35 = vld [vmem:[#allocation3 + $0x3c0] sm:$0xff]  ;;  %v10278_v37 = vld [vmem:[#allocation3 + $0x3d0] sm:$0xff] }
 0xa7e   :  { %10515 = vmatprep.mubr.bf16.mxu0 %v10416_v44  ;;  %10679 = vmatprep.mubr.bf16.mxu1 %v10416_v44  ;;  %v10281_v44 = vld [vmem:[#allocation3 + $0x3e8] sm:$0xff] }
 0xa80   :  { %10486 = vmatpush1.bf16.msra.mxu0 %v10224_v36  ;;  %10650 = vmatpush1.bf16.msra.mxu1 %v10226_v3  ;;  %v10283_v36 = vld [vmem:[#allocation3 + $0x3f8] sm:$0xff]  ;;  %v10280_v3 = vld [vmem:[#allocation3 + $0x3e0] sm:$0xff] }
 0xa81   :  { %10487 = vmatprep.subr.bf16.mxu0 %v10229_v25  ;;  %10651 = vmatprep.subr.bf16.mxu1 %v10231_v29  ;;  %v10282_v25 = vld [vmem:[#allocation3 + $0x3f0] sm:$0xff]  ;;  %v10285_v29 = vld [vmem:[#allocation3 + $0x408] sm:$0xff] }
 0xa84   :  { %10488 = vmatpush1.bf16.msra.mxu0 %v10228_v48  ;;  %10652 = vmatpush1.bf16.msra.mxu1 %v10230_v52  ;;  %v10287_v48 = vld [vmem:[#allocation3 + $0x418] sm:$0xff]  ;;  %v10415_v52 = vpack.c.bf16 %v12979_v47, %v12979_v47  ;;  %v10293_v47 = vld [vmem:[#allocation3 + $0x448] sm:$0xff] }
 0xa85   :  { %10489 = vmatprep.subr.bf16.mxu0 %v10233_v33  ;;  %10653 = vmatprep.subr.bf16.mxu1 %v10235_v51  ;;  %v10284_v33 = vld [vmem:[#allocation3 + $0x400] sm:$0xff]  ;;  %v10286_v51 = vld [vmem:[#allocation3 + $0x410] sm:$0xff] }
 0xa88   :  { %10490 = vmatpush1.bf16.msra.mxu0 %v10232_v53  ;;  %10654 = vmatpush1.bf16.msra.mxu1 %v10234_v12  ;;  %v10289_v53 = vld [vmem:[#allocation3 + $0x428] sm:$0xff]  ;;  %v10291_v12 = vld [vmem:[#allocation3 + $0x438] sm:$0xff] }
 0xa89   :  { %10491 = vmatprep.subr.bf16.mxu0 %v10237_v23  ;;  %10655 = vmatprep.subr.bf16.mxu1 %v10239_v59  ;;  %v10418_v23 = vpack.c.bf16 %v13011_v63, %v13011_v63  ;;  %v10288_v59 = vld [vmem:[#allocation3 + $0x420] sm:$0xff]  ;;  %v10299_v63 = vld [vmem:[#allocation3 + $0x478] sm:$0xff] }
 0xa8c   :  { %10492 = vmatpush1.bf16.msra.mxu0 %v10236_v19  ;;  %10656 = vmatpush1.bf16.msra.mxu1 %v10238_v46  ;;  %v10290_v19 = vld [vmem:[#allocation3 + $0x430] sm:$0xff]  ;;  %v10295_v46 = vld [vmem:[#allocation3 + $0x458] sm:$0xff] }
 0xa8d   :  { %10493 = vmatprep.subr.bf16.mxu0 %v10241_v56  ;;  %10657 = vmatprep.subr.bf16.mxu1 %v10243_v57  ;;  %v10292_v56 = vld [vmem:[#allocation3 + $0x440] sm:$0xff]  ;;  %v10294_v57 = vld [vmem:[#allocation3 + $0x450] sm:$0xff] }
 0xa90   :  { %10494 = vmatpush1.bf16.msra.mxu0 %v10240_v62  ;;  %10658 = vmatpush1.bf16.msra.mxu1 %v10242_v60  ;;  %v10297_v62 = vld [vmem:[#allocation3 + $0x468] sm:$0xff]  ;;  %v10296_v60 = vld [vmem:[#allocation3 + $0x460] sm:$0xff] }
 0xa91   :  { %10495 = vmatprep.subr.bf16.mxu0 %v10245_v11  ;;  %10659 = vmatprep.subr.bf16.mxu1 %v10247_v61  ;;  %v10298_v11 = vld [vmem:[#allocation3 + $0x470] sm:$0xff]  ;;  %v10301_v61 = vld [vmem:[#allocation3 + $0x488] sm:$0xff] }
 0xa94   :  { %10496 = vmatpush1.bf16.msra.mxu0 %v10244_v9  ;;  %10660 = vmatpush1.bf16.msra.mxu1 %v10246_v58  ;;  %v10303_v9 = vld [vmem:[#allocation3 + $0x498] sm:$0xff]  ;;  %v10300_v58 = vld [vmem:[#allocation3 + $0x480] sm:$0xff] }
 0xa95   :  { %10497 = vmatprep.subr.bf16.mxu0 %v10249_v42  ;;  %10661 = vmatprep.subr.bf16.mxu1 %v10251_v21  ;;  %v10302_v42 = vld [vmem:[#allocation3 + $0x490] sm:$0xff]  ;;  %v10305_v21 = vld [vmem:[#allocation3 + $0x4a8] sm:$0xff] }
 0xa98   :  { %10498 = vmatpush1.bf16.msra.mxu0 %v10248_v32  ;;  %10662 = vmatpush1.bf16.msra.mxu1 %v10250_v1  ;;  %v10307_v32 = vld [vmem:[#allocation3 + $0x4b8] sm:$0xff]  ;;  %v10304_v1 = vld [vmem:[#allocation3 + $0x4a0] sm:$0xff] }
 0xa99   :  { %10499 = vmatprep.subr.bf16.mxu0 %v10253_v5  ;;  %10663 = vmatprep.subr.bf16.mxu1 %v10255_v0  ;;  %v10306_v5 = vld [vmem:[#allocation3 + $0x4b0] sm:$0xff]  ;;  %v10309_v0 = vld [vmem:[#allocation3 + $0x4c8] sm:$0xff] }
 0xa9c   :  { %10500 = vmatpush1.bf16.msra.mxu0 %v10252_v2  ;;  %10664 = vmatpush1.bf16.msra.mxu1 %v10254_v39  ;;  %v10311_v2 = vld [vmem:[#allocation3 + $0x4d8] sm:$0xff]  ;;  %v10308_v39 = vld [vmem:[#allocation3 + $0x4c0] sm:$0xff] }
 0xa9d   :  { %10501 = vmatprep.subr.bf16.mxu0 %v10257_v4  ;;  %10665 = vmatprep.subr.bf16.mxu1 %v10259_v8  ;;  %v10310_v4 = vld [vmem:[#allocation3 + $0x4d0] sm:$0xff]  ;;  %v10313_v8 = vld [vmem:[#allocation3 + $0x4e8] sm:$0xff] }
 0xaa0   :  { %10502 = vmatpush1.bf16.msra.mxu0 %v10256_v34  ;;  %10666 = vmatpush1.bf16.msra.mxu1 %v10258_v6  ;;  %v10315_v34 = vld [vmem:[#allocation3 + $0x4f8] sm:$0xff]  ;;  %v10312_v6 = vld [vmem:[#allocation3 + $0x4e0] sm:$0xff] }
 0xaa1   :  { %10503 = vmatprep.subr.bf16.mxu0 %v10261_v40  ;;  %10667 = vmatprep.subr.bf16.mxu1 %v10263_v41  ;;  %v10314_v40 = vld [vmem:[#allocation3 + $0x4f0] sm:$0xff]  ;;  %v10317_v41 = vld [vmem:[#allocation3 + $0x508] sm:$0xff] }
 0xaa4   :  { %10504 = vmatpush1.bf16.msra.mxu0 %v10260_v43  ;;  %10668 = vmatpush1.bf16.msra.mxu1 %v10262_v7  ;;  %v10319_v43 = vld [vmem:[#allocation3 + $0x518] sm:$0xff]  ;;  %v10316_v7 = vld [vmem:[#allocation3 + $0x500] sm:$0xff] }
 0xaa5   :  { %10505 = vmatprep.subr.bf16.mxu0 %v10265_v13  ;;  %10669 = vmatprep.subr.bf16.mxu1 %v10267_v55  ;;  %v10318_v13 = vld [vmem:[#allocation3 + $0x510] sm:$0xff]  ;;  %v10321_v55 = vld [vmem:[#allocation3 + $0x528] sm:$0xff] }
 0xaa8   :  { %10506 = vmatpush1.bf16.msra.mxu0 %v10264_v45  ;;  %10670 = vmatpush1.bf16.msra.mxu1 %v10266_v10  ;;  %v10323_v45 = vld [vmem:[#allocation3 + $0x538] sm:$0xff]  ;;  %v10320_v10 = vld [vmem:[#allocation3 + $0x520] sm:$0xff] }
 0xaa9   :  { %10507 = vmatprep.subr.bf16.mxu0 %v10269_v16  ;;  %10671 = vmatprep.subr.bf16.mxu1 %v10271_v14  ;;  %v10322_v16 = vld [vmem:[#allocation3 + $0x530] sm:$0xff]  ;;  %v10325_v14 = vld [vmem:[#allocation3 + $0x548] sm:$0xff] }
 0xaac   :  { %10508 = vmatpush1.bf16.msra.mxu0 %v10268_v17  ;;  %10672 = vmatpush1.bf16.msra.mxu1 %v10270_v50  ;;  %v10327_v17 = vld [vmem:[#allocation3 + $0x558] sm:$0xff]  ;;  %v10324_v50 = vld [vmem:[#allocation3 + $0x540] sm:$0xff] }
 0xaad   :  { %10509 = vmatprep.subr.bf16.mxu0 %v10273_v49  ;;  %10673 = vmatprep.subr.bf16.mxu1 %v10275_v15  ;;  %v10326_v49 = vld [vmem:[#allocation3 + $0x550] sm:$0xff]  ;;  %v10329_v15 = vld [vmem:[#allocation3 + $0x568] sm:$0xff] }
 0xab0   :  { %10510 = vmatpush1.bf16.msra.mxu0 %v10272_v54  ;;  %10674 = vmatpush1.bf16.msra.mxu1 %v10274_v18  ;;  %v10331_v54 = vld [vmem:[#allocation3 + $0x578] sm:$0xff]  ;;  %v10328_v18 = vld [vmem:[#allocation3 + $0x560] sm:$0xff] }
 0xab1   :  { %10511 = vmatprep.subr.bf16.mxu0 %v10277_v24  ;;  %10675 = vmatprep.subr.bf16.mxu1 %v10279_v26  ;;  %v10330_v24 = vld [vmem:[#allocation3 + $0x570] sm:$0xff]  ;;  %v10333_v26 = vld [vmem:[#allocation3 + $0x588] sm:$0xff] }
 0xab4   :  { %10512 = vmatpush1.bf16.msra.mxu0 %v10276_v35  ;;  %10676 = vmatpush1.bf16.msra.mxu1 %v10278_v37  ;;  %v10335_v35 = vld [vmem:[#allocation3 + $0x598] sm:$0xff]  ;;  %v10332_v37 = vld [vmem:[#allocation3 + $0x580] sm:$0xff] }
 0xab5   :  { %10513 = vmatprep.subr.bf16.mxu0 %v10281_v44  ;;  %10677 = vmatprep.subr.bf16.mxu1 %v10283_v36  ;;  %v10334_v44 = vld [vmem:[#allocation3 + $0x590] sm:$0xff]  ;;  %v10337_v36 = vld [vmem:[#allocation3 + $0x5a8] sm:$0xff] }
 0xab8   :  { %10514 = vmatpush1.bf16.msra.mxu0 %v10280_v3  ;;  %10678 = vmatpush1.bf16.msra.mxu1 %v10282_v25  ;;  %v10339_v3 = vld [vmem:[#allocation3 + $0x5b8] sm:$0xff]  ;;  %v10336_v25 = vld [vmem:[#allocation3 + $0x5a0] sm:$0xff] }
 0xab9   :  { %10524 = vmatprep.subr.bf16.mxu0 %v10285_v29  ;;  %10688 = vmatprep.subr.bf16.mxu1 %v10287_v48  ;;  %v10338_v29 = vld [vmem:[#allocation3 + $0x5b0] sm:$0xff]  ;;  %v10341_v48 = vld [vmem:[#allocation3 + $0x5c8] sm:$0xff] }
 0xabb   :  { %10516 = vmatmul.mubr.bf16.vlgmr.msra.gmra.mrb[24].mxu0 %v10415_v52  ;;  %10680 = vmatmul.mubr.bf16.vlgmr.msra.gmra.mrb[24].mxu1 %v10415_v52  ;;  %v10343_v52 = vld [vmem:[#allocation3 + $0x5d8] sm:$0xff] }
 0xabc   :  { %10525 = vmatpush1.bf16.msra.mxu0 %v10284_v33  ;;  %10689 = vmatpush1.bf16.msra.mxu1 %v10286_v51  ;;  %v10340_v33 = vld [vmem:[#allocation3 + $0x5c0] sm:$0xff]  ;;  %v10342_v51 = vld [vmem:[#allocation3 + $0x5d0] sm:$0xff] }
 0xabd   :  { %10526 = vmatprep.subr.bf16.mxu0 %v10289_v53  ;;  %10690 = vmatprep.subr.bf16.mxu1 %v10291_v12  ;;  %v10345_v53 = vld [vmem:[#allocation3 + $0x5e8] sm:$0xff]  ;;  %v10347_v12 = vld [vmem:[#allocation3 + $0x5f8] sm:$0xff] }
 0xabe   :  { %10556 = vmatprep.mubr.bf16.mxu0 %v10418_v23  ;;  %10720 = vmatprep.mubr.bf16.mxu1 %v10418_v23  ;;  %v10344_v23 = vld [vmem:[#allocation3 + $0x5e0] sm:$0xff] }
 0xac0   :  { %10527 = vmatpush1.bf16.msra.mxu0 %v10288_v59  ;;  %10691 = vmatpush1.bf16.msra.mxu1 %v10290_v19  ;;  %v10346_v59 = vld [vmem:[#allocation3 + $0x5f0] sm:$0xff]  ;;  %v10349_v19 = vld [vmem:[#allocation3 + $0x608] sm:$0xff] }
 0xac1   :  { %10528 = vmatprep.subr.bf16.mxu0 %v10293_v47  ;;  %10692 = vmatprep.subr.bf16.mxu1 %v10295_v46  ;;  %v10351_v47 = vld [vmem:[#allocation3 + $0x618] sm:$0xff]  ;;  %v10417_v46 = vpack.c.bf16 %v13007_v38, %v13007_v38  ;;  %v10357_v38 = vld [vmem:[#allocation3 + $0x648] sm:$0xff] }
 0xac4   :  { %10529 = vmatpush1.bf16.msra.mxu0 %v10292_v56  ;;  %10693 = vmatpush1.bf16.msra.mxu1 %v10294_v57  ;;  %v10348_v56 = vld [vmem:[#allocation3 + $0x600] sm:$0xff]  ;;  %v10350_v57 = vld [vmem:[#allocation3 + $0x610] sm:$0xff] }
 0xac5   :  { %10530 = vmatprep.subr.bf16.mxu0 %v10297_v62  ;;  %10694 = vmatprep.subr.bf16.mxu1 %v10299_v63  ;;  %v10353_v62 = vld [vmem:[#allocation3 + $0x628] sm:$0xff]  ;;  %v10355_v63 = vld [vmem:[#allocation3 + $0x638] sm:$0xff] }
 0xac8   :  { %10531 = vmatpush1.bf16.msra.mxu0 %v10296_v60  ;;  %10695 = vmatpush1.bf16.msra.mxu1 %v10298_v11  ;;  %v10420_v60 = vpack.c.bf16 %v13013_v31, %v13013_v31  ;;  %v10352_v11 = vld [vmem:[#allocation3 + $0x620] sm:$0xff]  ;;  %v10363_v31 = vld [vmem:[#allocation3 + $0x678] sm:$0xff] }
 0xac9   :  { %10532 = vmatprep.subr.bf16.mxu0 %v10301_v61  ;;  %10696 = vmatprep.subr.bf16.mxu1 %v10303_v9  ;;  %v10354_v61 = vld [vmem:[#allocation3 + $0x630] sm:$0xff]  ;;  %v10359_v9 = vld [vmem:[#allocation3 + $0x658] sm:$0xff] }
 0xacc   :  { %10533 = vmatpush1.bf16.msra.mxu0 %v10300_v58  ;;  %10697 = vmatpush1.bf16.msra.mxu1 %v10302_v42  ;;  %v10356_v58 = vld [vmem:[#allocation3 + $0x640] sm:$0xff]  ;;  %v10358_v42 = vld [vmem:[#allocation3 + $0x650] sm:$0xff] }
 0xacd   :  { %10534 = vmatprep.subr.bf16.mxu0 %v10305_v21  ;;  %10698 = vmatprep.subr.bf16.mxu1 %v10307_v32  ;;  %v10361_v21 = vld [vmem:[#allocation3 + $0x668] sm:$0xff]  ;;  %v10360_v32 = vld [vmem:[#allocation3 + $0x660] sm:$0xff] }
 0xad0   :  { %10535 = vmatpush1.bf16.msra.mxu0 %v10304_v1  ;;  %10699 = vmatpush1.bf16.msra.mxu1 %v10306_v5  ;;  %v10362_v1 = vld [vmem:[#allocation3 + $0x670] sm:$0xff]  ;;  %v10365_v5 = vld [vmem:[#allocation3 + $0x688] sm:$0xff] }
 0xad1   :  { %10536 = vmatprep.subr.bf16.mxu0 %v10309_v0  ;;  %10700 = vmatprep.subr.bf16.mxu1 %v10311_v2  ;;  %v10367_v0 = vld [vmem:[#allocation3 + $0x698] sm:$0xff]  ;;  %v10364_v2 = vld [vmem:[#allocation3 + $0x680] sm:$0xff] }
 0xad4   :  { %10537 = vmatpush1.bf16.msra.mxu0 %v10308_v39  ;;  %10701 = vmatpush1.bf16.msra.mxu1 %v10310_v4  ;;  %v10366_v39 = vld [vmem:[#allocation3 + $0x690] sm:$0xff]  ;;  %v10369_v4 = vld [vmem:[#allocation3 + $0x6a8] sm:$0xff] }
 0xad5   :  { %10538 = vmatprep.subr.bf16.mxu0 %v10313_v8  ;;  %10702 = vmatprep.subr.bf16.mxu1 %v10315_v34  ;;  %v10371_v8 = vld [vmem:[#allocation3 + $0x6b8] sm:$0xff]  ;;  %v10368_v34 = vld [vmem:[#allocation3 + $0x6a0] sm:$0xff] }
 0xad8   :  { %10539 = vmatpush1.bf16.msra.mxu0 %v10312_v6  ;;  %10703 = vmatpush1.bf16.msra.mxu1 %v10314_v40  ;;  %v10370_v6 = vld [vmem:[#allocation3 + $0x6b0] sm:$0xff]  ;;  %v10373_v40 = vld [vmem:[#allocation3 + $0x6c8] sm:$0xff] }
 0xad9   :  { %10540 = vmatprep.subr.bf16.mxu0 %v10317_v41  ;;  %10704 = vmatprep.subr.bf16.mxu1 %v10319_v43  ;;  %v10375_v41 = vld [vmem:[#allocation3 + $0x6d8] sm:$0xff]  ;;  %v10372_v43 = vld [vmem:[#allocation3 + $0x6c0] sm:$0xff] }
 0xadc   :  { %10541 = vmatpush1.bf16.msra.mxu0 %v10316_v7  ;;  %10705 = vmatpush1.bf16.msra.mxu1 %v10318_v13  ;;  %v10374_v7 = vld [vmem:[#allocation3 + $0x6d0] sm:$0xff]  ;;  %v10377_v13 = vld [vmem:[#allocation3 + $0x6e8] sm:$0xff] }
 0xadd   :  { %10542 = vmatprep.subr.bf16.mxu0 %v10321_v55  ;;  %10706 = vmatprep.subr.bf16.mxu1 %v10323_v45  ;;  %v10379_v55 = vld [vmem:[#allocation3 + $0x6f8] sm:$0xff]  ;;  %v10376_v45 = vld [vmem:[#allocation3 + $0x6e0] sm:$0xff] }
 0xae0   :  { %10543 = vmatpush1.bf16.msra.mxu0 %v10320_v10  ;;  %10707 = vmatpush1.bf16.msra.mxu1 %v10322_v16  ;;  %v10378_v10 = vld [vmem:[#allocation3 + $0x6f0] sm:$0xff]  ;;  %v10381_v16 = vld [vmem:[#allocation3 + $0x708] sm:$0xff] }
 0xae1   :  { %10544 = vmatprep.subr.bf16.mxu0 %v10325_v14  ;;  %10708 = vmatprep.subr.bf16.mxu1 %v10327_v17  ;;  %v10383_v14 = vld [vmem:[#allocation3 + $0x718] sm:$0xff]  ;;  %v10380_v17 = vld [vmem:[#allocation3 + $0x700] sm:$0xff] }
 0xae4   :  { %10545 = vmatpush1.bf16.msra.mxu0 %v10324_v50  ;;  %10709 = vmatpush1.bf16.msra.mxu1 %v10326_v49  ;;  %v10382_v50 = vld [vmem:[#allocation3 + $0x710] sm:$0xff]  ;;  %v10385_v49 = vld [vmem:[#allocation3 + $0x728] sm:$0xff] }
 0xae5   :  { %10546 = vmatprep.subr.bf16.mxu0 %v10329_v15  ;;  %10710 = vmatprep.subr.bf16.mxu1 %v10331_v54  ;;  %v10387_v15 = vld [vmem:[#allocation3 + $0x738] sm:$0xff]  ;;  %v10384_v54 = vld [vmem:[#allocation3 + $0x720] sm:$0xff] }
 0xae8   :  { %10547 = vmatpush1.bf16.msra.mxu0 %v10328_v18  ;;  %10711 = vmatpush1.bf16.msra.mxu1 %v10330_v24  ;;  %v10386_v18 = vld [vmem:[#allocation3 + $0x730] sm:$0xff]  ;;  %v10389_v24 = vld [vmem:[#allocation3 + $0x748] sm:$0xff] }
 0xae9   :  { %10548 = vmatprep.subr.bf16.mxu0 %v10333_v26  ;;  %10712 = vmatprep.subr.bf16.mxu1 %v10335_v35  ;;  %v10391_v26 = vld [vmem:[#allocation3 + $0x758] sm:$0xff]  ;;  %v10388_v35 = vld [vmem:[#allocation3 + $0x740] sm:$0xff] }
 0xaec   :  { %10549 = vmatpush1.bf16.msra.mxu0 %v10332_v37  ;;  %10713 = vmatpush1.bf16.msra.mxu1 %v10334_v44  ;;  %v10390_v37 = vld [vmem:[#allocation3 + $0x750] sm:$0xff]  ;;  %v10393_v44 = vld [vmem:[#allocation3 + $0x768] sm:$0xff] }
 0xaed   :  { %10550 = vmatprep.subr.bf16.mxu0 %v10337_v36  ;;  %10714 = vmatprep.subr.bf16.mxu1 %v10339_v3  ;;  %v10395_v36 = vld [vmem:[#allocation3 + $0x778] sm:$0xff]  ;;  %v10392_v3 = vld [vmem:[#allocation3 + $0x760] sm:$0xff] }
 0xaf0   :  { %10551 = vmatpush1.bf16.msra.mxu0 %v10336_v25  ;;  %10715 = vmatpush1.bf16.msra.mxu1 %v10338_v29  ;;  %v10394_v25 = vld [vmem:[#allocation3 + $0x770] sm:$0xff]  ;;  %v10397_v29 = vld [vmem:[#allocation3 + $0x788] sm:$0xff] }
 0xaf1   :  { %10552 = vmatprep.subr.bf16.mxu0 %v10341_v48  ;;  %10716 = vmatprep.subr.bf16.mxu1 %v10343_v52  ;;  %v10399_v48 = vld [vmem:[#allocation3 + $0x798] sm:$0xff]  ;;  %v10396_v52 = vld [vmem:[#allocation3 + $0x780] sm:$0xff] }
 0xaf4   :  { %10553 = vmatpush1.bf16.msra.mxu0 %v10340_v33  ;;  %10717 = vmatpush1.bf16.msra.mxu1 %v10342_v51  ;;  %v10398_v33 = vld [vmem:[#allocation3 + $0x790] sm:$0xff]  ;;  %v10401_v51 = vld [vmem:[#allocation3 + $0x7a8] sm:$0xff] }
 0xaf5   :  { %10554 = vmatprep.subr.bf16.mxu0 %v10345_v53  ;;  %10718 = vmatprep.subr.bf16.mxu1 %v10347_v12  ;;  %v10403_v53 = vld [vmem:[#allocation3 + $0x7b8] sm:$0xff]  ;;  %v10400_v12 = vld [vmem:[#allocation3 + $0x7a0] sm:$0xff] }
 0xaf8   :  { %10555 = vmatpush1.bf16.msra.mxu0 %v10344_v23  ;;  %10719 = vmatpush1.bf16.msra.mxu1 %v10346_v59  ;;  %v10402_v23 = vld [vmem:[#allocation3 + $0x7b0] sm:$0xff]  ;;  %v10405_v59 = vld [vmem:[#allocation3 + $0x7c8] sm:$0xff] }
 0xaf9   :  { %10565 = vmatprep.subr.bf16.mxu0 %v10349_v19  ;;  %10729 = vmatprep.subr.bf16.mxu1 %v10351_v47  ;;  %v10407_v19 = vld [vmem:[#allocation3 + $0x7d8] sm:$0xff]  ;;  %v10404_v47 = vld [vmem:[#allocation3 + $0x7c0] sm:$0xff] }
 0xafb   :  { %10557 = vmatmul.mubr.bf16.vlgmr.msra.gmra.mrb[24].mxu0 %v10417_v46  ;;  %10721 = vmatmul.mubr.bf16.vlgmr.msra.gmra.mrb[24].mxu1 %v10417_v46  ;;  %v10406_v46 = vld [vmem:[#allocation3 + $0x7d0] sm:$0xff] }
 0xafc   :  { %10566 = vmatpush1.bf16.msra.mxu0 %v10348_v56  ;;  %10730 = vmatpush1.bf16.msra.mxu1 %v10350_v57  ;;  %v10409_v56 = vld [vmem:[#allocation3 + $0x7e8] sm:$0xff]  ;;  %v10411_v57 = vld [vmem:[#allocation3 + $0x7f8] sm:$0xff] }
 0xafd   :  { %10567 = vmatprep.subr.bf16.mxu0 %v10353_v62  ;;  %10731 = vmatprep.subr.bf16.mxu1 %v10355_v63  ;;  %v10408_v62 = vld [vmem:[#allocation3 + $0x7e0] sm:$0xff]  ;;  %v10410_v63 = vld [vmem:[#allocation3 + $0x7f0] sm:$0xff] }
 0xafe   :  { %10597 = vmatprep.mubr.bf16.mxu0 %v10420_v60  ;;  %10761 = vmatprep.mubr.bf16.mxu1 %v10420_v60  ;;  %v10419_v60 = vpack.c.bf16 %v13009_v22, %v13009_v22 }
 0xb00   :  { %10568 = vmatpush1.bf16.msra.mxu0 %v10352_v11  ;;  %10732 = vmatpush1.bf16.msra.mxu1 %v10354_v61  ;;  %v10412_v11 = vld [vmem:[#allocation14] sm:$0xf] }
 0xb01   :  { %10569 = vmatprep.subr.bf16.mxu0 %v10357_v38  ;;  %10733 = vmatprep.subr.bf16.mxu1 %v10359_v9  ;;  %v10425_v61 = vrot.slane %v10412_v11, %v12736_v20  ;;  %v10433_v38 = vrot.slane %v10412_v11, %v12739_v27  ;;  %v10429_v9 = vrot.slane %v10412_v11, %v12742_v28 }
 0xb04   :  { %10570 = vmatpush1.bf16.msra.mxu0 %v10356_v58  ;;  %10734 = vmatpush1.bf16.msra.mxu1 %v10358_v42  ;;  %v10437_v58 = vrot.slane %v10412_v11, %v12745_v30 }
 0xb05   :  { %10571 = vmatprep.subr.bf16.mxu0 %v10361_v21  ;;  %10735 = vmatprep.subr.bf16.mxu1 %v10363_v31 }
 0xb08   :  { %10572 = vmatpush1.bf16.msra.mxu0 %v10360_v32  ;;  %10736 = vmatpush1.bf16.msra.mxu1 %v10362_v1 }
 0xb09   :  { %10573 = vmatprep.subr.bf16.mxu0 %v10365_v5  ;;  %10737 = vmatprep.subr.bf16.mxu1 %v10367_v0 }
 0xb0c   :  { %10574 = vmatpush1.bf16.msra.mxu0 %v10364_v2  ;;  %10738 = vmatpush1.bf16.msra.mxu1 %v10366_v39 }
 0xb0d   :  { %10575 = vmatprep.subr.bf16.mxu0 %v10369_v4  ;;  %10739 = vmatprep.subr.bf16.mxu1 %v10371_v8 }
 0xb10   :  { %10576 = vmatpush1.bf16.msra.mxu0 %v10368_v34  ;;  %10740 = vmatpush1.bf16.msra.mxu1 %v10370_v6 }
 0xb11   :  { %10577 = vmatprep.subr.bf16.mxu0 %v10373_v40  ;;  %10741 = vmatprep.subr.bf16.mxu1 %v10375_v41 }
 0xb14   :  { %10578 = vmatpush1.bf16.msra.mxu0 %v10372_v43  ;;  %10742 = vmatpush1.bf16.msra.mxu1 %v10374_v7 }
 0xb15   :  { %10579 = vmatprep.subr.bf16.mxu0 %v10377_v13  ;;  %10743 = vmatprep.subr.bf16.mxu1 %v10379_v55 }
 0xb18   :  { %10580 = vmatpush1.bf16.msra.mxu0 %v10376_v45  ;;  %10744 = vmatpush1.bf16.msra.mxu1 %v10378_v10 }
 0xb19   :  { %10581 = vmatprep.subr.bf16.mxu0 %v10381_v16  ;;  %10745 = vmatprep.subr.bf16.mxu1 %v10383_v14 }
 0xb1c   :  { %10582 = vmatpush1.bf16.msra.mxu0 %v10380_v17  ;;  %10746 = vmatpush1.bf16.msra.mxu1 %v10382_v50 }
 0xb1d   :  { %10583 = vmatprep.subr.bf16.mxu0 %v10385_v49  ;;  %10747 = vmatprep.subr.bf16.mxu1 %v10387_v15 }
 0xb20   :  { %10584 = vmatpush1.bf16.msra.mxu0 %v10384_v54  ;;  %10748 = vmatpush1.bf16.msra.mxu1 %v10386_v18 }
 0xb21   :  { %10585 = vmatprep.subr.bf16.mxu0 %v10389_v24  ;;  %10749 = vmatprep.subr.bf16.mxu1 %v10391_v26 }
 0xb24   :  { %10586 = vmatpush1.bf16.msra.mxu0 %v10388_v35  ;;  %10750 = vmatpush1.bf16.msra.mxu1 %v10390_v37 }
 0xb25   :  { %10587 = vmatprep.subr.bf16.mxu0 %v10393_v44  ;;  %10751 = vmatprep.subr.bf16.mxu1 %v10395_v36 }
 0xb28   :  { %10588 = vmatpush1.bf16.msra.mxu0 %v10392_v3  ;;  %10752 = vmatpush1.bf16.msra.mxu1 %v10394_v25 }
 0xb29   :  { %10589 = vmatprep.subr.bf16.mxu0 %v10397_v29  ;;  %10753 = vmatprep.subr.bf16.mxu1 %v10399_v48 }
 0xb2c   :  { %10590 = vmatpush1.bf16.msra.mxu0 %v10396_v52  ;;  %10754 = vmatpush1.bf16.msra.mxu1 %v10398_v33 }
 0xb2d   :  { %10591 = vmatprep.subr.bf16.mxu0 %v10401_v51  ;;  %10755 = vmatprep.subr.bf16.mxu1 %v10403_v53 }
 0xb30   :  { %10592 = vmatpush1.bf16.msra.mxu0 %v10400_v12  ;;  %10756 = vmatpush1.bf16.msra.mxu1 %v10402_v23 }
 0xb31   :  { %10593 = vmatprep.subr.bf16.mxu0 %v10405_v59  ;;  %10757 = vmatprep.subr.bf16.mxu1 %v10407_v19 }
 0xb34   :  { %10594 = vmatpush1.bf16.msra.mxu0 %v10404_v47  ;;  %10758 = vmatpush1.bf16.msra.mxu1 %v10406_v46 }
 0xb35   :  { %10595 = vmatprep.subr.bf16.mxu0 %v10409_v56  ;;  %10759 = vmatprep.subr.bf16.mxu1 %v10411_v57 }
 0xb38   :  { %10596 = vmatpush1.bf16.msra.mxu0 %v10408_v62  ;;  %10760 = vmatpush1.bf16.msra.mxu1 %v10410_v63 }
 0xb3b   :  { %10598 = vmatmul.mubr.bf16.vlgmr.msra.gmra.mrb[24].mxu0 %v10419_v60  ;;  %10762 = vmatmul.mubr.bf16.vlgmr.msra.gmra.mrb[24].mxu1 %v10419_v60 }
 0xc0e   :  { %v10599_v42 = vpop.f32.mrb[24].mxu0  ;;  %v10763_v21 = vpop.f32.mrb[24].mxu1 }
 0xc0f   :  { %v13035_v31 = vadd.f32 %v10599_v42, %v10425_v61  ;;  %v13037_v32 = vadd.f32 %v10763_v21, %v10433_v38  ;;  %v10601_v22 = vpop.f32.mrb[25].mxu0  ;;  %v10765_v1 = vpop.f32.mrb[25].mxu1 }
 0xc10   :  { %v12045_v5 = vadd.f32 %v10601_v22, %v10429_v9  ;;  %v12047_v0 = vadd.f32 %v10765_v1, %v10437_v58  ;;  %v10603_v2 = vpop.f32.mrb[26].mxu0  ;;  %v10767_v39 = vpop.f32.mrb[26].mxu1 }
 0xc11   :  { %v10604_v4 = vpop.f32.mrb[27].mxu0  ;;  %v10768_v20 = vpop.f32.mrb[27].mxu1 }
 0xc12   :  { %12500 = dma.done.wait [#allocation5 + $0x2], 4096 }
 0xc13   :  { %12501 = vsyncadd [#allocation5 + $0x2], 4294963200  ;;  %v10808_v27 = vpack.c.bf16 %v12045_v5, %v12045_v5  ;;  %v10810_v28 = vpack.c.bf16 %v12047_v0, %v12047_v0  ;;  %v10782_v30 = vld [vmem:[#allocation4 + $0x40] sm:$0xff]  ;;  %v10783_v40 = vld [vmem:[#allocation4 + $0x48] sm:$0xff]  ;;  %v10807_v51 = vpack.c.bf16 %v13035_v31, %v13035_v31  ;;  %v10809_v53 = vpack.c.bf16 %v13037_v32, %v13037_v32  ;;  %s12525_s8 = smov [#allocation17]  }
 0xc14   :  { %v10798_v8 = vld [vmem:[#allocation4 + $0xc0] sm:$0xff]  ;;  %11976 = vmatprep.subr.bf16.mxu0 %v10782_v30  ;;  %v10799_v41 = vld [vmem:[#allocation4 + $0xc8] sm:$0xff]  ;;  %v10784_v13 = vld [vmem:[#allocation4 + $0x50] sm:$0xff]  ;;  %s10904_s5 = sshll.u32 %s12525_s8, 4  ;;  %s10905_s5 = int_to_ptr.vmem [resolvable:$true] %s10904_s5 }
 0xc15   :  { %10849 = vmatprep.mubr.bf16.mxu0 %v10808_v27  ;;  %10889 = vmatprep.mubr.bf16.mxu1 %v10810_v28  ;;  %v10774_v34 = vld [vmem:[#allocation4] sm:$0xff]  ;;  %v10775_v43 = vld [vmem:[#allocation4 + $0x8] sm:$0xff]  ;;  %v10800_v55 = vld [vmem:[#allocation4 + $0xd0] sm:$0xff]  ;;  %s12466_s22 = scalar_lea.vmem %s10905_s5, 128  ;;  %p12471_p1 = scmp.lt.s32.totalorder %s10905_s5, %s10905_s5 }
 0xc16   :  { %11998 = vmatprep.subr.bf16.mxu1 %v10798_v8  ;;  %v10790_v6 = vld [vmem:[#allocation4 + $0x80] sm:$0xff]  ;;  %11977 = vmatpush3.bf16.msra.mxu0 %v10774_v34  ;;  %v10791_v7 = vld [vmem:[#allocation4 + $0x88] sm:$0xff]  ;;  %v10776_v45 = vld [vmem:[#allocation4 + $0x10] sm:$0xff]  ;;  %p12467_p0 = scmp.ne.s32.totalorder %s10905_s5, %s12466_s22  ;;  %p12472_p2 = scmp.lt.s32.totalorder %s12466_s22, %s12466_s22 }
 0xc17   :  { %11999 = vmatpush3.bf16.msra.mxu1 %v10790_v6  ;;  %11978 = vmatprep.subr.bf16.mxu0 %v10783_v40  ;;  %v10792_v10 = vld [vmem:[#allocation4 + $0x90] sm:$0xff]  ;;  %v10785_v16 = vld [vmem:[#allocation4 + $0x58] sm:$0xff]  ;;  %v10786_v49 = vld [vmem:[#allocation4 + $0x60] sm:$0xff] }
 0xc18   :  { %12000 = vmatprep.subr.bf16.mxu1 %v10799_v41  ;;  %v10801_v14 = vld [vmem:[#allocation4 + $0xd8] sm:$0xff]  ;;  %v10802_v15 = vld [vmem:[#allocation4 + $0xe0] sm:$0xff]  ;;  %v10787_v24 = vld [vmem:[#allocation4 + $0x68] sm:$0xff]  ;;  %p12473_p3 = por %p12472_p2, %p12471_p1 }
 0xc19   :  { %v10777_v17 = vld [vmem:[#allocation4 + $0x18] sm:$0xff]  ;;  %v10778_v54 = vld [vmem:[#allocation4 + $0x20] sm:$0xff]  ;;  %v10803_v26 = vld [vmem:[#allocation4 + $0xe8] sm:$0xff] }
 0xc1a   :  { %11979 = vmatpush3.bf16.msra.mxu0 %v10775_v43  ;;  %v10793_v50 = vld [vmem:[#allocation4 + $0x98] sm:$0xff]  ;;  %v10794_v18 = vld [vmem:[#allocation4 + $0xa0] sm:$0xff]  ;;  %v10779_v35 = vld [vmem:[#allocation4 + $0x28] sm:$0xff]  ;;  %p12474_p4 = pnand %p12473_p3, %p12467_p0 }
 0xc1b   :  { %12001 = vmatpush3.bf16.msra.mxu1 %v10791_v7  ;;  %11980 = vmatprep.subr.bf16.mxu0 %v10784_v13  ;;  %v10795_v37 = vld [vmem:[#allocation4 + $0xa8] sm:$0xff]  ;;  %v10788_v44 = vld [vmem:[#allocation4 + $0x70] sm:$0xff]  ;;  %v10789_v29 = vld [vmem:[#allocation4 + $0x78] sm:$0xff] }
 0xc1c   :  { %12002 = vmatprep.subr.bf16.mxu1 %v10800_v55  ;;  %v10804_v36 = vld [vmem:[#allocation4 + $0xf0] sm:$0xff]  ;;  %v10805_v48 = vld [vmem:[#allocation4 + $0xf8] sm:$0xff] }
 0xc1d   :  { %v10780_v3 = vld [vmem:[#allocation4 + $0x30] sm:$0xff]  ;;  %v10781_v52 = vld [vmem:[#allocation4 + $0x38] sm:$0xff] }
 0xc1e   :  { %11981 = vmatpush3.bf16.msra.mxu0 %v10776_v45  ;;  %v10796_v25 = vld [vmem:[#allocation4 + $0xb0] sm:$0xff]  ;;  %v10797_v33 = vld [vmem:[#allocation4 + $0xb8] sm:$0xff] }
 0xc1f   :  { %12003 = vmatpush3.bf16.msra.mxu1 %v10792_v10  ;;  %11982 = vmatprep.subr.bf16.mxu0 %v10785_v16  ;;  %v11972_v59 = vld [vmem:[#allocation15] ss:$0 sm:$0xff] }
 0xc20   :  { %12004 = vmatprep.subr.bf16.mxu1 %v10801_v14 }
 0xc22   :  { %11983 = vmatpush3.bf16.msra.mxu0 %v10777_v17 }
 0xc23   :  { %12005 = vmatpush3.bf16.msra.mxu1 %v10793_v50  ;;  %11984 = vmatprep.subr.bf16.mxu0 %v10786_v49 }
 0xc24   :  { %12006 = vmatprep.subr.bf16.mxu1 %v10802_v15 }
 0xc26   :  { %11985 = vmatpush3.bf16.msra.mxu0 %v10778_v54 }
 0xc27   :  { %12007 = vmatpush3.bf16.msra.mxu1 %v10794_v18  ;;  %11986 = vmatprep.subr.bf16.mxu0 %v10787_v24 }
 0xc28   :  { %12008 = vmatprep.subr.bf16.mxu1 %v10803_v26 }
 0xc2a   :  { %11987 = vmatpush3.bf16.msra.mxu0 %v10779_v35 }
 0xc2b   :  { %12009 = vmatpush3.bf16.msra.mxu1 %v10795_v37  ;;  %11988 = vmatprep.subr.bf16.mxu0 %v10788_v44 }
 0xc2c   :  { %12010 = vmatprep.subr.bf16.mxu1 %v10804_v36 }
 0xc2e   :  { %11989 = vmatpush3.bf16.msra.mxu0 %v10780_v3 }
 0xc2f   :  { %12011 = vmatpush3.bf16.msra.mxu1 %v10796_v25  ;;  %11990 = vmatprep.subr.bf16.mxu0 %v10789_v29 }
 0xc30   :  { %12012 = vmatprep.subr.bf16.mxu1 %v10805_v48 }
 0xc32   :  { %11991 = vmatpush3.bf16.msra.mxu0 %v10781_v52 }
 0xc33   :  { %12013 = vmatpush3.bf16.msra.mxu1 %v10797_v33 }
 0xc35   :  { %10850 = vmatmul.mubr.bf16.vlgmr.msra.gmra.mrb[28].mxu0 %v10807_v51 }
 0xc36   :  { %10890 = vmatmul.mubr.bf16.vlgmr.msra.gmra.mrb[28].mxu1 %v10809_v53 }
 0xd08   :  { %v11992_v12 = vpop.f32.mrb[28].mxu0 }
 0xd09   :  { %v12014_v23 = vpop.f32.mrb[28].mxu1  ;;  %v11993_v19 = vpop.f32.mrb[29].mxu0 }
 0xd0a   :  { %v12015_v47 = vpop.f32.mrb[29].mxu1  ;;  %v11994_v46 = vadd.f32 %v11993_v19, %v11992_v12  ;;  %v11995_v57 = vpop.f32.mrb[30].mxu0 }
 0xd0b   :  { %v12016_v56 = vadd.f32 %v12015_v47, %v12014_v23  ;;  %v12017_v62 = vpop.f32.mrb[30].mxu1  ;;  %v11996_v63 = vpop.f32.mrb[31].mxu0 }
 0xd0c   :  { %v12018_v60 = vpop.f32.mrb[31].mxu1  ;;  %v10852_v11 = vadd.f32 %v11994_v46, %v11972_v59 }
 0xd0e   :  { %v10892_v61 = vadd.f32 %v12016_v56, %v10852_v11 }
 0xd10   :  { %10897 = vst [vmem:[#allocation17] sm:$0xff] %v10892_v61 }
 0xd11   :  { %12477 = shalt.err (!%p12474_p4)
}
 0xd12   :  { %s12478_s3 = scalar_lea.hbm %s13064_s9, 128 }
 0xd13   :  { %p12479_p5 = scmp.ne.s32.totalorder %s13064_s9, %s12478_s3  ;;  %p12482_p6 = scmp.lt.u32.totalorder %s12478_s3, %s13064_s9 }
 0xd15   :  { %p12484_p7 = pnand %p12482_p6, %p12479_p5 }
 0xd17   :  { %12487 = shalt.err (!%p12484_p7)
}
 0xd18   :  { %10907 = dma.vmem_to_hbm [thread:$0]  %s10905_s5, 128, %s13064_s9, [#allocation8]  }
 0xd19   :  { %12502 = dma.done.wait [#allocation8], 128  }
 0xd1a   :  { %12503 = vsyncadd [#allocation8], 4294967168 }
 0xd1b   :  { %10911 = vsyncpa [#allocation7], 1 }
 0xd1c   :  { %10912 = vsyncpa [#allocation10], 1 }
 0xd1d   :  { %10913 = vsyncpa [#allocation13], 1 }
 0xd1e   :  { %10914 = vsyncpa [#allocation16], 1 }
 0xd1f   :  { %10915 = vsyncpa [#allocation8], 1 }
 0xd20   :  { %10916 = vsyncmov [#allocation5] }
 0xd23   :  { %s10917_s11 = vpop.sfrf %10916 }
 0xd24   :  { %p11973_p8 = scmp.ne.s32.totalorder %s10917_s11, 0 }
 0xd26   :  { %10921 = shalt.err (%p11973_p8)  }
 0xd27   :  { %10923 = vsyncmov [#allocation5 + $0x1] }
 0xd2a   :  { %s10924_s12 = vpop.sfrf %10923 }
 0xd2b   :  { %p11974_p9 = scmp.ne.s32.totalorder %s10924_s12, 0 }
 0xd2d   :  { %10928 = shalt.err (%p11974_p9)  }
 0xd2e   :  { %10930 = vsyncmov [#allocation5 + $0x2] }
 0xd31   :  { %s10931_s13 = vpop.sfrf %10930 }
 0xd32   :  { %p11975_p10 = scmp.ne.s32.totalorder %s10931_s13, 0 }
 0xd34   :  { %10935 = shalt.err (%p11975_p10)  }

</bundles_post_ra>
